<compile_context>
chip_gen: v6e
topology: v6e:2x2x1
jax: 0.10.0
libtpu: 0.0.40
codegen_flags: <defaults>
</compile_context>

<pallas_src>
import functools

import jax
import jax.numpy as jnp
from jax.experimental import pallas as pl
from jax.experimental.pallas import tpu as pltpu

IN_DIM = 33
HIDDEN = 168
N_CLASSES = 10

IN_PAD = 64      # 33  -> 64   lane pad for the first-layer contraction (done in-kernel)
HID_PAD = 256    # 168 -> 256  clean lane multiple for the MXU
TILE_N = 2048    # node-tile rows per grid step (sweepable; clamped to node count)
NUM_BLOCKS = 2   # node super-blocks -> leading "parallel" axis (uses both v7x cores)


def _mlpnet_kernel(gid_ref, valid_ref, x_ref,
                   w1_ref, b1_ref, w2_ref, b2_ref, w3_ref, b3_ref, w4_ref, b4_ref,
                   out_ref, xpad_ref, acc_ref):
    t = pl.program_id(1)   # node-tile index within this super-block (reduction axis)

    @pl.when(t == 0)
    def _init():
        # Zero the lane-pad columns [IN_DIM:IN_PAD] (never written below) and the
        # per-graph accumulator, once per super-block (so every core initializes).
        xpad_ref[...] = jnp.zeros_like(xpad_ref)
        acc_ref[...] = jnp.zeros_like(acc_ref)

    # ---- stage masked, bf16-cast, lane-padded node features in VMEM ----
    # valid==0 rows are the partial tail tile's undefined data; where() (not *0) so
    # NaN/Inf garbage cannot leak into the matmuls.
    xm = jnp.where(valid_ref[...] > 0.5, x_ref[...], 0.0)          # (TILE_N, 33) f32
    xpad_ref[:, :IN_DIM] = xm.astype(jnp.bfloat16)

    # ---- feat_mlp: 4 x (Linear + ReLU), bf16 on the MXU with f32 accumulation ----
    def layer(h, w_ref, b_ref):
        y = jnp.dot(h, w_ref[...], preferred_element_type=jnp.float32) + b_ref[...]
        return jnp.maximum(y, 0.0).astype(jnp.bfloat16)

    h = layer(xpad_ref[...], w1_ref, b1_ref)                        # (TILE_N, HID_PAD)
    h = layer(h, w2_ref, b2_ref)
    h = layer(h, w3_ref, b3_ref)
    h = layer(h, w4_ref, b4_ref)                                    # bf16

    # ---- bf16 one-hot segment-sum into the f32 per-graph accumulator ----
    # one_hot[g, i] = 1 iff node i of this tile belongs to graph g; padding rows carry
    # graph id -1 and match nothing, so they contribute exactly zero.
    g_pad = acc_ref.shape[0]
    tile_n = h.shape[0]
    giota = jax.lax.broadcasted_iota(jnp.int32, (g_pad, tile_n), 0)
    one_hot = (gid_ref[...] == giota).astype(jnp.bfloat16)          # (g_pad, TILE_N)
    acc_ref[...] += jnp.dot(one_hot, h, preferred_element_type=jnp.float32)

    # ---- last tile of this super-block: emit the partial per-graph sums ----
    @pl.when(t == pl.num_programs(1) - 1)
    def _emit():
        out_ref[...] = acc_ref[...]


def _pad2(a, rows, cols, dtype):
    """Zero-pad a (possibly 1-D) array into a (rows, cols) block of `dtype`."""
    a = jnp.asarray(a)
    if a.ndim == 1:
        a = a[None, :]
    out = jnp.zeros((rows, cols), dtype)
    return out.at[:a.shape[0], :a.shape[1]].set(a.astype(dtype))


@functools.partial(jax.jit, static_argnames=("tile_n", "num_blocks"))
def mlpnet_forward(nodes_feat, graph_ids, graph_counts, params, *,
                   tile_n=TILE_N, num_blocks=NUM_BLOCKS):
    """nodes_feat: [N, 33] f32; graph_ids: [N] int32 (graph index per node);
    graph_counts: [G] int32 (nodes per graph); params: PyTorch-shaped weights ([in,out])."""
    n = nodes_feat.shape[0]
    g = graph_counts.shape[0]

    # Static tiling decisions (all Python ints at trace time).
    tile_n = pl.cdiv(tile_n, 8) * 8
    tile_n = min(tile_n, max(8, pl.cdiv(n, 8) * 8))          # never larger than needed
    num_tiles = pl.cdiv(n, tile_n)
    num_blocks = max(1, min(num_blocks, num_tiles))
    tiles_per_block = pl.cdiv(num_tiles, num_blocks)
    n_pad = num_blocks * tiles_per_block * tile_n
    g_pad = max(8, pl.cdiv(g, 8) * 8)

    # Tiny per-node side arrays (4 B/node each). Node features are fed UNPADDED.
    gid = jnp.full((1, n_pad), -1, jnp.int32).at[0, :n].set(graph_ids.astype(jnp.int32))
    valid = jnp.zeros((n_pad, 1), jnp.float32).at[:n, 0].set(1.0)

    bf16, f32 = jnp.bfloat16, jnp.float32
    w1 = _pad2(params["w1"], IN_PAD, HID_PAD, bf16)
    b1 = _pad2(params["b1"], 1, HID_PAD, f32)
    w2 = _pad2(params["w2"], HID_PAD, HID_PAD, bf16)
    b2 = _pad2(params["b2"], 1, HID_PAD, f32)
    w3 = _pad2(params["w3"], HID_PAD, HID_PAD, bf16)
    b3 = _pad2(params["b3"], 1, HID_PAD, f32)
    w4 = _pad2(params["w4"], HID_PAD, HID_PAD, bf16)
    b4 = _pad2(params["b4"], 1, HID_PAD, f32)

    def node_idx(c, t):
        # Clamp so a fully-padded trailing tile (possible when num_blocks does not
        # divide num_tiles) re-reads the last real tile instead of indexing past the
        # array; its rows are masked off via valid==0 / gid==-1 and contribute nothing.
        return jnp.minimum(c * tiles_per_block + t, num_tiles - 1)

    def wspec(shape):
        # Full-array block, constant index map -> DMA'd once, resident across the grid.
        return pl.BlockSpec(shape, lambda c, t: (0, 0))

    grid = (num_blocks, tiles_per_block)
    grid_spec = pltpu.PrefetchScalarGridSpec(
        num_scalar_prefetch=0,
        grid=grid,
        in_specs=[
            pl.BlockSpec((1, tile_n), lambda c, t: (0, c * tiles_per_block + t)),   # gid
            pl.BlockSpec((tile_n, 1), lambda c, t: (c * tiles_per_block + t, 0)),   # valid
            pl.BlockSpec((tile_n, IN_DIM), lambda c, t: (node_idx(c, t), 0)),       # x (raw)
            wspec((IN_PAD, HID_PAD)), wspec((1, HID_PAD)),
            wspec((HID_PAD, HID_PAD)), wspec((1, HID_PAD)),
            wspec((HID_PAD, HID_PAD)), wspec((1, HID_PAD)),
            wspec((HID_PAD, HID_PAD)), wspec((1, HID_PAD)),
        ],
        # Per-super-block partial graph sums; leading dim squeezed in the kernel.
        out_specs=pl.BlockSpec((None, g_pad, HID_PAD), lambda c, t: (c, 0, 0)),
        scratch_shapes=[
            pltpu.VMEM((tile_n, IN_PAD), jnp.bfloat16),    # staged, lane-padded x tile
            pltpu.VMEM((g_pad, HID_PAD), jnp.float32),     # per-graph sum accumulator
        ],
    )

    partial_sums = pl.pallas_call(
        _mlpnet_kernel,
        out_shape=jax.ShapeDtypeStruct((num_blocks, g_pad, HID_PAD), jnp.float32),
        grid_spec=grid_spec,
        compiler_params=pltpu.CompilerParams(
            dimension_semantics=("parallel", "arbitrary"),   # super-blocks || , node tiles = reduction
            vmem_limit_bytes=32 * 1024 * 1024,               # ample headroom, fits v7x (64 MiB)
        ),
    )(gid, valid, nodes_feat.astype(jnp.float32),
      w1, b1, w2, b2, w3, b3, w4, b4)

    # ---- dgl.mean_nodes + MLPReadout (168->84->42->10), tiny, plain JAX f32 ----
    sums = jnp.sum(partial_sums, axis=0)[:g, :HIDDEN]
    counts = jnp.maximum(graph_counts.astype(jnp.float32), 1.0)     # guard empty graphs
    hg = sums / counts[:, None]
    y = jnp.maximum(hg @ params["wr0"] + params["br0"], 0.0)
    y = jnp.maximum(y @ params["wr1"] + params["br1"], 0.0)
    return y @ params["wr2"] + params["br2"]


# ----------------------------- parameters & reference -----------------------------

def _linear_params(key, fan_in, fan_out):
    """PyTorch-style uniform init; weight stored as [in, out], bias as [out]."""
    kw, kb = jax.random.split(key)
    bound = 1.0 / jnp.sqrt(fan_in)
    w = jax.random.uniform(kw, (fan_in, fan_out), jnp.float32, -bound, bound)
    b = jax.random.uniform(kb, (fan_out,), jnp.float32, -bound, bound)
    return w, b


def make_params(key):
    keys = jax.random.split(key, 7)
    p = {}
    p["w1"], p["b1"] = _linear_params(keys[0], IN_DIM, HIDDEN)
    p["w2"], p["b2"] = _linear_params(keys[1], HIDDEN, HIDDEN)
    p["w3"], p["b3"] = _linear_params(keys[2], HIDDEN, HIDDEN)
    p["w4"], p["b4"] = _linear_params(keys[3], HIDDEN, HIDDEN)
    # MLPReadout(168, 10, L=2): 168 -> 84 -> 42 -> 10
    p["wr0"], p["br0"] = _linear_params(keys[4], HIDDEN, HIDDEN // 2)
    p["wr1"], p["br1"] = _linear_params(keys[5], HIDDEN // 2, HIDDEN // 4)
    p["wr2"], p["br2"] = _linear_params(keys[6], HIDDEN // 4, N_CLASSES)
    return p


def reference_forward(nodes_feat, graph_ids, graph_counts, p):
    """Pure-JAX f32 reference matching the PyTorch forward (gated=False path)."""
    h = nodes_feat
    h = jnp.maximum(h @ p["w1"] + p["b1"], 0.0)
    h = jnp.maximum(h @ p["w2"] + p["b2"], 0.0)
    h = jnp.maximum(h @ p["w3"] + p["b3"], 0.0)
    h = jnp.maximum(h @ p["w4"] + p["b4"], 0.0)
    g = graph_counts.shape[0]
    one_hot = (jnp.arange(g)[:, None] == graph_ids[None, :]).astype(jnp.float32)
    hg = (one_hot @ h) / graph_counts.astype(jnp.float32)[:, None]   # dgl.mean_nodes
    y = jnp.maximum(hg @ p["wr0"] + p["br0"], 0.0)
    y = jnp.maximum(y @ p["wr1"] + p["br1"], 0.0)
    return y @ p["wr2"] + p["br2"]


if __name__ == "__main__":
    key = jax.random.PRNGKey(0)
    k_feat, k_param = jax.random.split(key)

    # A small batch of 4 graphs; total 1008 nodes.
    nodes_per_graph = [5, 3, 600, 400]
    n_total = sum(nodes_per_graph)

    nodes_feat = jax.random.normal(k_feat, (n_total, IN_DIM), jnp.float32)
    graph_ids = jnp.concatenate(
        [jnp.full((c,), i, jnp.int32) for i, c in enumerate(nodes_per_graph)])
    graph_counts = jnp.asarray(nodes_per_graph, jnp.int32)
    # edges_feat / nodes_num_norm_sqrt / edges_num_norm_sqrt are unused by the
    # non-gated forward pass, so they are omitted.
    params = make_params(k_param)

    ref = reference_forward(nodes_feat, graph_ids, graph_counts, params)

    # 1) Default config: one large node tile (tile clamped to 1008 rows).
    logits = mlpnet_forward(nodes_feat, graph_ids, graph_counts, params)
    jax.block_until_ready(logits)
    assert logits.shape == (len(nodes_per_graph), N_CLASSES)
    # bf16 hidden matmuls loosen the tolerance vs. the f32 reference (intentional).
    assert jnp.allclose(logits, ref, atol=5e-2, rtol=5e-2), (
        float(jnp.max(jnp.abs(logits - ref))))

    # 2) Multi-tile + 2 node super-blocks: exercises the cross-tile accumulation,
    #    the partial tail tile mask, and the leading "parallel" (v7x two-core) axis.
    logits2 = mlpnet_forward(nodes_feat, graph_ids, graph_counts, params,
                             tile_n=256, num_blocks=2)
    jax.block_until_ready(logits2)
    assert jnp.allclose(logits2, ref, atol=5e-2, rtol=5e-2), (
        float(jnp.max(jnp.abs(logits2 - ref))))

    print("KERNEL_OK")
</pallas_src>

<mosaic_0001>
module attributes {stable_mosaic.version = 11 : i64} {
  func.func @_mlpnet_kernel(%arg0: i32, %arg1: i32, %arg2: memref<1x1008xi32, #tpu.memory_space<vmem>>, %arg3: memref<1008x1xf32, #tpu.memory_space<vmem>>, %arg4: memref<1008x33xf32, #tpu.memory_space<vmem>>, %arg5: memref<64x256xbf16, #tpu.memory_space<vmem>>, %arg6: memref<1x256xf32, #tpu.memory_space<vmem>>, %arg7: memref<256x256xbf16, #tpu.memory_space<vmem>>, %arg8: memref<1x256xf32, #tpu.memory_space<vmem>>, %arg9: memref<256x256xbf16, #tpu.memory_space<vmem>>, %arg10: memref<1x256xf32, #tpu.memory_space<vmem>>, %arg11: memref<256x256xbf16, #tpu.memory_space<vmem>>, %arg12: memref<1x256xf32, #tpu.memory_space<vmem>>, %arg13: memref<1x8x256xf32, #tpu.memory_space<vmem>>, %arg14: memref<1008x64xbf16, #tpu.memory_space<vmem>>, %arg15: memref<8x256xf32, #tpu.memory_space<vmem>>) attributes {dimension_semantics = [#tpu.dimension_semantics<parallel>, #tpu.dimension_semantics<arbitrary>], iteration_bounds = array<i64: 1, 1>, scalar_prefetch = 0 : i64, scratch_operands = 2 : i64, tpu.core_type = #tpu.core_type<tc>, window_params = [{transform_indices = @transform_0, window_bounds = array<i64: 1, 1008>}, {transform_indices = @transform_1, window_bounds = array<i64: 1008, 1>}, {transform_indices = @transform_2, window_bounds = array<i64: 1008, 33>}, {pipeline_mode = #tpu.pipeline_mode<synchronous>, transform_indices = @transform_3, window_bounds = array<i64: 64, 256>}, {pipeline_mode = #tpu.pipeline_mode<synchronous>, transform_indices = @transform_4, window_bounds = array<i64: 1, 256>}, {pipeline_mode = #tpu.pipeline_mode<synchronous>, transform_indices = @transform_5, window_bounds = array<i64: 256, 256>}, {pipeline_mode = #tpu.pipeline_mode<synchronous>, transform_indices = @transform_6, window_bounds = array<i64: 1, 256>}, {pipeline_mode = #tpu.pipeline_mode<synchronous>, transform_indices = @transform_7, window_bounds = array<i64: 256, 256>}, {pipeline_mode = #tpu.pipeline_mode<synchronous>, transform_indices = @transform_8, window_bounds = array<i64: 1, 256>}, {pipeline_mode = #tpu.pipeline_mode<synchronous>, transform_indices = @transform_9, window_bounds = array<i64: 256, 256>}, {pipeline_mode = #tpu.pipeline_mode<synchronous>, transform_indices = @transform_10, window_bounds = array<i64: 1, 256>}, {transform_indices = @transform_11, window_bounds = array<i64: 1, 8, 256>}]} {
    %c0_i32 = arith.constant 0 : i32
    %0 = arith.cmpi eq, %arg1, %c0_i32 : i32
    %1 = arith.extui %0 : i1 to i32
    %c0_i32_0 = arith.constant 0 : i32
    %2 = arith.cmpi ne, %1, %c0_i32_0 : i32
    scf.if %2 {
      %cst_42 = arith.constant 0.000000e+00 : bf16
      %60 = vector.broadcast %cst_42 : bf16 to vector<1008x64xbf16>
      %c0_43 = arith.constant 0 : index
      %c0_44 = arith.constant 0 : index
      %61 = vector.load %arg14[%c0_43, %c0_44] : memref<1008x64xbf16, #tpu.memory_space<vmem>>, vector<1008x64xbf16>
      tpu.vector_store %arg14[%c0_43, %c0_44], %60 {strides = array<i32>} : memref<1008x64xbf16, #tpu.memory_space<vmem>>, vector<1008x64xbf16>,
      %cst_45 = arith.constant 0.000000e+00 : f32
      %62 = vector.broadcast %cst_45 : f32 to vector<8x256xf32>
      %c0_46 = arith.constant 0 : index
      %c0_47 = arith.constant 0 : index
      %63 = vector.load %arg15[%c0_46, %c0_47] : memref<8x256xf32, #tpu.memory_space<vmem>>, vector<8x256xf32>
      tpu.vector_store %arg15[%c0_46, %c0_47], %62 {strides = array<i32>} : memref<8x256xf32, #tpu.memory_space<vmem>>, vector<8x256xf32>,
    } else {
    }
    %c0 = arith.constant 0 : index
    %c0_1 = arith.constant 0 : index
    %3 = vector.load %arg3[%c0, %c0_1] : memref<1008x1xf32, #tpu.memory_space<vmem>>, vector<1008x1xf32>
    %cst = arith.constant 5.000000e-01 : f32
    %4 = vector.broadcast %cst : f32 to vector<1008x1xf32>
    %5 = arith.cmpf ogt, %3, %4 : vector<1008x1xf32>
    %c0_2 = arith.constant 0 : index
    %c0_3 = arith.constant 0 : index
    %6 = vector.load %arg4[%c0_2, %c0_3] : memref<1008x33xf32, #tpu.memory_space<vmem>>, vector<1008x33xf32>
    %cst_4 = arith.constant 0.000000e+00 : f32
    %7 = vector.shape_cast %5 : vector<1008x1xi1> to vector<1008x1xi1>
    %8 = vector.broadcast %7 : vector<1008x1xi1> to vector<1008x33xi1>
    %9 = vector.broadcast %cst_4 : f32 to vector<1008x33xf32>
    %10 = arith.select %8, %6, %9 : vector<1008x33xi1>, vector<1008x33xf32>
    %11 = arith.truncf %10 : vector<1008x33xf32> to vector<1008x33xbf16>
    %c0_5 = arith.constant 0 : index
    %c0_6 = arith.constant 0 : index
    %12 = vector.load %arg14[%c0_5, %c0_6] : memref<1008x64xbf16, #tpu.memory_space<vmem>>, vector<1008x33xbf16>
    tpu.vector_store %arg14[%c0_5, %c0_6], %11 {strides = array<i32>} : memref<1008x64xbf16, #tpu.memory_space<vmem>>, vector<1008x33xbf16>,
    %c0_7 = arith.constant 0 : index
    %c0_8 = arith.constant 0 : index
    %13 = vector.load %arg14[%c0_7, %c0_8] : memref<1008x64xbf16, #tpu.memory_space<vmem>>, vector<1008x64xbf16>
    %c0_9 = arith.constant 0 : index
    %c0_10 = arith.constant 0 : index
    %14 = vector.load %arg5[%c0_9, %c0_10] : memref<64x256xbf16, #tpu.memory_space<vmem>>, vector<64x256xbf16>
    %cst_11 = arith.constant dense<0.000000e+00> : vector<1008x256xf32>
    %15 = tpu.matmul %13, %14, %cst_11 {dimension_numbers = #tpu.dot_dimension_numbers<[1], [0], [0], [1], [0, 0, 1, 1], [], []>} : vector<1008x64xbf16>, vector<64x256xbf16>, vector<1008x256xf32> -> vector<1008x256xf32>
    %c0_12 = arith.constant 0 : index
    %c0_13 = arith.constant 0 : index
    %16 = vector.load %arg6[%c0_12, %c0_13] : memref<1x256xf32, #tpu.memory_space<vmem>>, vector<1x256xf32>
    %17 = vector.broadcast %16 : vector<1x256xf32> to vector<1008x256xf32>
    %18 = arith.addf %15, %17 : vector<1008x256xf32>
    %cst_14 = arith.constant 0.000000e+00 : f32
    %19 = vector.broadcast %cst_14 : f32 to vector<1008x256xf32>
    %20 = arith.maximumf %18, %19 : vector<1008x256xf32>
    %21 = arith.truncf %20 : vector<1008x256xf32> to vector<1008x256xbf16>
    %c0_15 = arith.constant 0 : index
    %c0_16 = arith.constant 0 : index
    %22 = vector.load %arg7[%c0_15, %c0_16] : memref<256x256xbf16, #tpu.memory_space<vmem>>, vector<256x256xbf16>
    %cst_17 = arith.constant dense<0.000000e+00> : vector<1008x256xf32>
    %23 = tpu.matmul %21, %22, %cst_17 {dimension_numbers = #tpu.dot_dimension_numbers<[1], [0], [0], [1], [0, 0, 1, 1], [], []>} : vector<1008x256xbf16>, vector<256x256xbf16>, vector<1008x256xf32> -> vector<1008x256xf32>
    %c0_18 = arith.constant 0 : index
    %c0_19 = arith.constant 0 : index
    %24 = vector.load %arg8[%c0_18, %c0_19] : memref<1x256xf32, #tpu.memory_space<vmem>>, vector<1x256xf32>
    %25 = vector.broadcast %24 : vector<1x256xf32> to vector<1008x256xf32>
    %26 = arith.addf %23, %25 : vector<1008x256xf32>
    %cst_20 = arith.constant 0.000000e+00 : f32
    %27 = vector.broadcast %cst_20 : f32 to vector<1008x256xf32>
    %28 = arith.maximumf %26, %27 : vector<1008x256xf32>
    %29 = arith.truncf %28 : vector<1008x256xf32> to vector<1008x256xbf16>
    %c0_21 = arith.constant 0 : index
    %c0_22 = arith.constant 0 : index
    %30 = vector.load %arg9[%c0_21, %c0_22] : memref<256x256xbf16, #tpu.memory_space<vmem>>, vector<256x256xbf16>
    %cst_23 = arith.constant dense<0.000000e+00> : vector<1008x256xf32>
    %31 = tpu.matmul %29, %30, %cst_23 {dimension_numbers = #tpu.dot_dimension_numbers<[1], [0], [0], [1], [0, 0, 1, 1], [], []>} : vector<1008x256xbf16>, vector<256x256xbf16>, vector<1008x256xf32> -> vector<1008x256xf32>
    %c0_24 = arith.constant 0 : index
    %c0_25 = arith.constant 0 : index
    %32 = vector.load %arg10[%c0_24, %c0_25] : memref<1x256xf32, #tpu.memory_space<vmem>>, vector<1x256xf32>
    %33 = vector.broadcast %32 : vector<1x256xf32> to vector<1008x256xf32>
    %34 = arith.addf %31, %33 : vector<1008x256xf32>
    %cst_26 = arith.constant 0.000000e+00 : f32
    %35 = vector.broadcast %cst_26 : f32 to vector<1008x256xf32>
    %36 = arith.maximumf %34, %35 : vector<1008x256xf32>
    %37 = arith.truncf %36 : vector<1008x256xf32> to vector<1008x256xbf16>
    %c0_27 = arith.constant 0 : index
    %c0_28 = arith.constant 0 : index
    %38 = vector.load %arg11[%c0_27, %c0_28] : memref<256x256xbf16, #tpu.memory_space<vmem>>, vector<256x256xbf16>
    %cst_29 = arith.constant dense<0.000000e+00> : vector<1008x256xf32>
    %39 = tpu.matmul %37, %38, %cst_29 {dimension_numbers = #tpu.dot_dimension_numbers<[1], [0], [0], [1], [0, 0, 1, 1], [], []>} : vector<1008x256xbf16>, vector<256x256xbf16>, vector<1008x256xf32> -> vector<1008x256xf32>
    %c0_30 = arith.constant 0 : index
    %c0_31 = arith.constant 0 : index
    %40 = vector.load %arg12[%c0_30, %c0_31] : memref<1x256xf32, #tpu.memory_space<vmem>>, vector<1x256xf32>
    %41 = vector.broadcast %40 : vector<1x256xf32> to vector<1008x256xf32>
    %42 = arith.addf %39, %41 : vector<1008x256xf32>
    %cst_32 = arith.constant 0.000000e+00 : f32
    %43 = vector.broadcast %cst_32 : f32 to vector<1008x256xf32>
    %44 = arith.maximumf %42, %43 : vector<1008x256xf32>
    %45 = arith.truncf %44 : vector<1008x256xf32> to vector<1008x256xbf16>
    %46 = tpu.iota {dimensions = array<i32: 0>} : vector<8x1008xi32>
    %c0_33 = arith.constant 0 : index
    %c0_34 = arith.constant 0 : index
    %47 = vector.load %arg2[%c0_33, %c0_34] : memref<1x1008xi32, #tpu.memory_space<vmem>>, vector<1x1008xi32>
    %48 = vector.broadcast %47 : vector<1x1008xi32> to vector<8x1008xi32>
    %49 = arith.cmpi eq, %48, %46 : vector<8x1008xi32>
    %50 = arith.extui %49 : vector<8x1008xi1> to vector<8x1008xi32>
    %51 = arith.sitofp %50 : vector<8x1008xi32> to vector<8x1008xf32>
    %52 = arith.truncf %51 : vector<8x1008xf32> to vector<8x1008xbf16>
    %c0_35 = arith.constant 0 : index
    %c0_36 = arith.constant 0 : index
    %53 = vector.load %arg15[%c0_35, %c0_36] : memref<8x256xf32, #tpu.memory_space<vmem>>, vector<8x256xf32>
    %cst_37 = arith.constant dense<0.000000e+00> : vector<8x256xf32>
    %54 = tpu.matmul %52, %45, %cst_37 {dimension_numbers = #tpu.dot_dimension_numbers<[1], [0], [0], [1], [0, 0, 1, 1], [], []>} : vector<8x1008xbf16>, vector<1008x256xbf16>, vector<8x256xf32> -> vector<8x256xf32>
    %55 = arith.addf %53, %54 : vector<8x256xf32>
    %c0_38 = arith.constant 0 : index
    %c0_39 = arith.constant 0 : index
    %56 = vector.load %arg15[%c0_38, %c0_39] : memref<8x256xf32, #tpu.memory_space<vmem>>, vector<8x256xf32>
    tpu.vector_store %arg15[%c0_38, %c0_39], %55 {strides = array<i32>} : memref<8x256xf32, #tpu.memory_space<vmem>>, vector<8x256xf32>,
    %c0_i32_40 = arith.constant 0 : i32
    %57 = arith.cmpi eq, %arg1, %c0_i32_40 : i32
    %58 = arith.extui %57 : i1 to i32
    %c0_i32_41 = arith.constant 0 : i32
    %59 = arith.cmpi ne, %58, %c0_i32_41 : i32
    scf.if %59 {
      %c0_42 = arith.constant 0 : index
      %c0_43 = arith.constant 0 : index
      %60 = vector.load %arg15[%c0_42, %c0_43] : memref<8x256xf32, #tpu.memory_space<vmem>>, vector<8x256xf32>
      %c0_44 = arith.constant 0 : index
      %c0_45 = arith.constant 0 : index
      %c0_46 = arith.constant 0 : index
      %61 = vector.load %arg13[%c0_44, %c0_45, %c0_46] : memref<1x8x256xf32, #tpu.memory_space<vmem>>, vector<1x8x256xf32>
      %62 = vector.shape_cast %61 : vector<1x8x256xf32> to vector<8x256xf32>
      %63 = vector.shape_cast %60 : vector<8x256xf32> to vector<1x8x256xf32>
      tpu.vector_store %arg13[%c0_44, %c0_45, %c0_46], %63 {strides = array<i32>} : memref<1x8x256xf32, #tpu.memory_space<vmem>>, vector<1x8x256xf32>,
    } else {
    }
    return
  }
  func.func @transform_0(%arg0: i32, %arg1: i32) -> (i32, i32) {
    %c1_i32 = arith.constant 1 : i32
    %0 = arith.muli %arg0, %c1_i32 : i32
    %1 = arith.addi %0, %arg1 : i32
    %c0_i32 = arith.constant 0 : i32
    %c0_i32_0 = arith.constant 0 : i32
    return %c0_i32, %1 : i32, i32
  }
  func.func @transform_1(%arg0: i32, %arg1: i32) -> (i32, i32) {
    %c1_i32 = arith.constant 1 : i32
    %0 = arith.muli %arg0, %c1_i32 : i32
    %1 = arith.addi %0, %arg1 : i32
    %c0_i32 = arith.constant 0 : i32
    %c0_i32_0 = arith.constant 0 : i32
    return %1, %c0_i32 : i32, i32
  }
  func.func @transform_2(%arg0: i32, %arg1: i32) -> (i32, i32) {
    %c1_i32 = arith.constant 1 : i32
    %0 = arith.muli %arg0, %c1_i32 : i32
    %1 = arith.addi %0, %arg1 : i32
    %c0_i32 = arith.constant 0 : i32
    %2 = arith.minsi %1, %c0_i32 : i32
    %c0_i32_0 = arith.constant 0 : i32
    %c0_i32_1 = arith.constant 0 : i32
    return %2, %c0_i32_0 : i32, i32
  }
  func.func @transform_3(%arg0: i32, %arg1: i32) -> (i32, i32) {
    %c0_i32 = arith.constant 0 : i32
    %c0_i32_0 = arith.constant 0 : i32
    %c0_i32_1 = arith.constant 0 : i32
    return %c0_i32, %c0_i32_0 : i32, i32
  }
  func.func @transform_4(%arg0: i32, %arg1: i32) -> (i32, i32) {
    %c0_i32 = arith.constant 0 : i32
    %c0_i32_0 = arith.constant 0 : i32
    %c0_i32_1 = arith.constant 0 : i32
    return %c0_i32, %c0_i32_0 : i32, i32
  }
  func.func @transform_5(%arg0: i32, %arg1: i32) -> (i32, i32) {
    %c0_i32 = arith.constant 0 : i32
    %c0_i32_0 = arith.constant 0 : i32
    %c0_i32_1 = arith.constant 0 : i32
    return %c0_i32, %c0_i32_0 : i32, i32
  }
  func.func @transform_6(%arg0: i32, %arg1: i32) -> (i32, i32) {
    %c0_i32 = arith.constant 0 : i32
    %c0_i32_0 = arith.constant 0 : i32
    %c0_i32_1 = arith.constant 0 : i32
    return %c0_i32, %c0_i32_0 : i32, i32
  }
  func.func @transform_7(%arg0: i32, %arg1: i32) -> (i32, i32) {
    %c0_i32 = arith.constant 0 : i32
    %c0_i32_0 = arith.constant 0 : i32
    %c0_i32_1 = arith.constant 0 : i32
    return %c0_i32, %c0_i32_0 : i32, i32
  }
  func.func @transform_8(%arg0: i32, %arg1: i32) -> (i32, i32) {
    %c0_i32 = arith.constant 0 : i32
    %c0_i32_0 = arith.constant 0 : i32
    %c0_i32_1 = arith.constant 0 : i32
    return %c0_i32, %c0_i32_0 : i32, i32
  }
  func.func @transform_9(%arg0: i32, %arg1: i32) -> (i32, i32) {
    %c0_i32 = arith.constant 0 : i32
    %c0_i32_0 = arith.constant 0 : i32
    %c0_i32_1 = arith.constant 0 : i32
    return %c0_i32, %c0_i32_0 : i32, i32
  }
  func.func @transform_10(%arg0: i32, %arg1: i32) -> (i32, i32) {
    %c0_i32 = arith.constant 0 : i32
    %c0_i32_0 = arith.constant 0 : i32
    %c0_i32_1 = arith.constant 0 : i32
    return %c0_i32, %c0_i32_0 : i32, i32
  }
  func.func @transform_11(%arg0: i32, %arg1: i32) -> (i32, i32, i32) {
    %c0_i32 = arith.constant 0 : i32
    %c0_i32_0 = arith.constant 0 : i32
    %c0_i32_1 = arith.constant 0 : i32
    return %arg0, %c0_i32, %c0_i32_0 : i32, i32, i32
  }
}

</mosaic_0001>

<bundles_post_ra>
// kernel: mlpnet_forward.1
= control target key start
LH: loop header
LB: loop body
LE: loop exit
PB: predicated region body
PF: predicated region fallthrough
CT: control target
= control target key end

     0   :  { %vm116_vm0 = vcmask 519168   ;;  %v8474_v0 = vmov 0   ;;  %s12333_s1 = inlined_call_operand.vmem [shape: f32[1008,1], index: 1, kind: input, shape index: {}]   ;;  %s12334_s3 = inlined_call_operand.vmem [shape: bf16[64,256], index: 3, kind: input, shape index: {}]   ;;  %s12335_s2 = inlined_call_operand.vmem [shape: f32[1008,33], index: 2, kind: input, shape index: {}]   ;;  %s12336_s5 = inlined_call_operand.vmem [shape: bf16[256,256], index: 5, kind: input, shape index: {}]   ;;  %s12337_s7 = inlined_call_operand.vmem [shape: bf16[256,256], index: 7, kind: input, shape index: {}]   ;;  %s12338_s4 = inlined_call_operand.vmem [shape: f32[1,256], index: 4, kind: input, shape index: {}]   ;;  %s12339_s9 = inlined_call_operand.vmem [shape: bf16[256,256], index: 9, kind: input, shape index: {}]   ;;  %s12340_s6 = inlined_call_operand.vmem [shape: f32[1,256], index: 6, kind: input, shape index: {}]   ;;  %s12341_s8 = inlined_call_operand.vmem [shape: f32[1,256], index: 8, kind: input, shape index: {}]   ;;  %s12342_s10 = inlined_call_operand.vmem [shape: f32[1,256], index: 10, kind: input, shape index: {}]   ;;  %s12343_s0 = inlined_call_operand.vmem [shape: s32[1,1008], index: 0, kind: input, shape index: {}]   ;;  %s12344_s11 = inlined_call_operand.vmem [shape: f32[1,8,256], index: 11, kind: output, shape index: {}]  }
   0x1   :  { %8253 = vset.pattern.permute.xlu1 %v8474_v0  ;;  %8252 = vset.pattern.permute.xlu0 %v8474_v0  ;;  %v8542_v1 = vld [vmem:[%s12333_s1 + $0x10] sm:$0xff]  ;;  %v8547_v2 = vld [vmem:[%s12333_s1] sm:$0xff]  ;;  %v8552_v3 = vld [vmem:[%s12333_s1 + $0x18] sm:$0xff]  ;;  %119 = vst.msk [vmem:[#allocation2 + $0x8] sm:$0xf] %vm116_vm0, %v8474_v0 }
   0x2   :  { %117 = vst.msk [vmem:[#allocation2] sm:$0xf] %vm116_vm0, %v8474_v0  ;;  %118 = vst.msk [vmem:[#allocation2 + $0x4] sm:$0xf] %vm116_vm0, %v8474_v0  ;;  %vm373_vm1 = vcmp.gt.f32.partialorder %v8542_v1, 0.5  ;;  %vm371_vm2 = vcmp.gt.f32.partialorder %v8547_v2, 0.5  ;;  %2733 = vmatprep.mubr.bf16.mxu0 %v8474_v0 }
   0x3   :  { %120 = vst.msk [vmem:[#allocation2 + $0xc] sm:$0xf] %vm116_vm0, %v8474_v0  ;;  %121 = vst.msk [vmem:[#allocation2 + $0x10] sm:$0xf] %vm116_vm0, %v8474_v0  ;;  %vm374_vm3 = vcmp.gt.f32.partialorder %v8552_v3, 0.5  ;;  %v246_v4 = vld [vmem:[%s12333_s1 + $0x8] sm:$0xff] }
   0x4   :  { %122 = vst.msk [vmem:[#allocation2 + $0x14] sm:$0xf] %vm116_vm0, %v8474_v0  ;;  %123 = vst.msk [vmem:[#allocation2 + $0x18] sm:$0xf] %vm116_vm0, %v8474_v0  ;;  %v625_v5 = vsel %vm373_vm1, 1, %v8474_v0  ;;  %v623_v6 = vsel %vm371_vm2, 1, %v8474_v0 }
   0x5   :  { %124 = vst.msk [vmem:[#allocation2 + $0x1c] sm:$0xf] %vm116_vm0, %v8474_v0  ;;  %125 = vst.msk [vmem:[#allocation2 + $0x20] sm:$0xf] %vm116_vm0, %v8474_v0  ;;  %vm372_vm4 = vcmp.gt.f32.partialorder %v246_v4, 0.5  ;;  %v250_v7 = vld [vmem:[%s12333_s1 + $0x28] sm:$0xff]  ;;  %756 = vperm.xlu1 %8253, %v625_v5   ;;  %750 = vperm.xlu0 %8252, %v623_v6  }
   0x6   :  { %126 = vst.msk [vmem:[#allocation2 + $0x24] sm:$0xf] %vm116_vm0, %v8474_v0  ;;  %127 = vst.msk [vmem:[#allocation2 + $0x28] sm:$0xf] %vm116_vm0, %v8474_v0  ;;  %v249_v8 = vld [vmem:[%s12333_s1 + $0x20] sm:$0xff]  ;;  %v626_v9 = vsel %vm374_vm3, 1, %v8474_v0 }
   0x7   :  { %128 = vst.msk [vmem:[#allocation2 + $0x2c] sm:$0xf] %vm116_vm0, %v8474_v0  ;;  %129 = vst.msk [vmem:[#allocation2 + $0x30] sm:$0xf] %vm116_vm0, %v8474_v0  ;;  %v624_v10 = vsel %vm372_vm4, 1, %v8474_v0  ;;  %vm376_vm5 = vcmp.gt.f32.partialorder %v250_v7, 0.5 }
   0x8   :  { %130 = vst.msk [vmem:[#allocation2 + $0x34] sm:$0xf] %vm116_vm0, %v8474_v0  ;;  %131 = vst.msk [vmem:[#allocation2 + $0x38] sm:$0xf] %vm116_vm0, %v8474_v0  ;;  %vm375_vm6 = vcmp.gt.f32.partialorder %v249_v8, 0.5  ;;  %v252_v11 = vld [vmem:[%s12333_s1 + $0x38] sm:$0xff] }
   0x9   :  { %132 = vst.msk [vmem:[#allocation2 + $0x3c] sm:$0xf] %vm116_vm0, %v8474_v0  ;;  %133 = vst.msk [vmem:[#allocation2 + $0x40] sm:$0xf] %vm116_vm0, %v8474_v0  ;;  %v251_v12 = vld [vmem:[%s12333_s1 + $0x30] sm:$0xff]  ;;  %759 = vperm.xlu1 %8253, %v626_v9   ;;  %753 = vperm.xlu0 %8252, %v624_v10   ;;  %v628_v13 = vsel %vm376_vm5, 1, %v8474_v0 }
   0xa   :  { %134 = vst.msk [vmem:[#allocation2 + $0x44] sm:$0xf] %vm116_vm0, %v8474_v0  ;;  %135 = vst.msk [vmem:[#allocation2 + $0x48] sm:$0xf] %vm116_vm0, %v8474_v0  ;;  %v627_v14 = vsel %vm375_vm6, 1, %v8474_v0  ;;  %vm378_vm7 = vcmp.gt.f32.partialorder %v252_v11, 0.5 }
   0xb   :  { %136 = vst.msk [vmem:[#allocation2 + $0x4c] sm:$0xf] %vm116_vm0, %v8474_v0  ;;  %137 = vst.msk [vmem:[#allocation2 + $0x50] sm:$0xf] %vm116_vm0, %v8474_v0  ;;  %vm377_vm8 = vcmp.gt.f32.partialorder %v251_v12, 0.5  ;;  %v254_v15 = vld [vmem:[%s12333_s1 + $0x48] sm:$0xff] }
   0xc   :  { %138 = vst.msk [vmem:[#allocation2 + $0x54] sm:$0xf] %vm116_vm0, %v8474_v0  ;;  %139 = vst.msk [vmem:[#allocation2 + $0x58] sm:$0xf] %vm116_vm0, %v8474_v0  ;;  %v253_v16 = vld [vmem:[%s12333_s1 + $0x40] sm:$0xff]  ;;  %v630_v17 = vsel %vm378_vm7, 1, %v8474_v0 }
   0xd   :  { %140 = vst.msk [vmem:[#allocation2 + $0x5c] sm:$0xf] %vm116_vm0, %v8474_v0  ;;  %141 = vst.msk [vmem:[#allocation2 + $0x60] sm:$0xf] %vm116_vm0, %v8474_v0  ;;  %765 = vperm.xlu1 %8253, %v628_v13   ;;  %762 = vperm.xlu0 %8252, %v627_v14   ;;  %v629_v18 = vsel %vm377_vm8, 1, %v8474_v0  ;;  %vm380_vm9 = vcmp.gt.f32.partialorder %v254_v15, 0.5 }
   0xe   :  { %142 = vst.msk [vmem:[#allocation2 + $0x64] sm:$0xf] %vm116_vm0, %v8474_v0  ;;  %143 = vst.msk [vmem:[#allocation2 + $0x68] sm:$0xf] %vm116_vm0, %v8474_v0  ;;  %vm379_vm10 = vcmp.gt.f32.partialorder %v253_v16, 0.5  ;;  %v256_v19 = vld [vmem:[%s12333_s1 + $0x58] sm:$0xff] }
   0xf   :  { %144 = vst.msk [vmem:[#allocation2 + $0x6c] sm:$0xf] %vm116_vm0, %v8474_v0  ;;  %145 = vst.msk [vmem:[#allocation2 + $0x70] sm:$0xf] %vm116_vm0, %v8474_v0  ;;  %v255_v20 = vld [vmem:[%s12333_s1 + $0x50] sm:$0xff]  ;;  %v632_v21 = vsel %vm380_vm9, 1, %v8474_v0 }
  0x10   :  { %146 = vst.msk [vmem:[#allocation2 + $0x74] sm:$0xf] %vm116_vm0, %v8474_v0  ;;  %147 = vst.msk [vmem:[#allocation2 + $0x78] sm:$0xf] %vm116_vm0, %v8474_v0  ;;  %v631_v22 = vsel %vm379_vm10, 1, %v8474_v0  ;;  %vm382_vm11 = vcmp.gt.f32.partialorder %v256_v19, 0.5 }
  0x11   :  { %148 = vst.msk [vmem:[#allocation2 + $0x7c] sm:$0xf] %vm116_vm0, %v8474_v0  ;;  %149 = vst.msk [vmem:[#allocation2 + $0x80] sm:$0xf] %vm116_vm0, %v8474_v0  ;;  %771 = vperm.xlu1 %8253, %v630_v17   ;;  %768 = vperm.xlu0 %8252, %v629_v18   ;;  %vm381_vm12 = vcmp.gt.f32.partialorder %v255_v20, 0.5  ;;  %v258_v23 = vld [vmem:[%s12333_s1 + $0x68] sm:$0xff] }
  0x12   :  { %150 = vst.msk [vmem:[#allocation2 + $0x84] sm:$0xf] %vm116_vm0, %v8474_v0  ;;  %151 = vst.msk [vmem:[#allocation2 + $0x88] sm:$0xf] %vm116_vm0, %v8474_v0  ;;  %v257_v24 = vld [vmem:[%s12333_s1 + $0x60] sm:$0xff]  ;;  %v634_v25 = vsel %vm382_vm11, 1, %v8474_v0 }
  0x13   :  { %152 = vst.msk [vmem:[#allocation2 + $0x8c] sm:$0xf] %vm116_vm0, %v8474_v0  ;;  %153 = vst.msk [vmem:[#allocation2 + $0x90] sm:$0xf] %vm116_vm0, %v8474_v0  ;;  %v633_v26 = vsel %vm381_vm12, 1, %v8474_v0  ;;  %vm384_vm13 = vcmp.gt.f32.partialorder %v258_v23, 0.5 }
  0x14   :  { %154 = vst.msk [vmem:[#allocation2 + $0x94] sm:$0xf] %vm116_vm0, %v8474_v0  ;;  %155 = vst.msk [vmem:[#allocation2 + $0x98] sm:$0xf] %vm116_vm0, %v8474_v0  ;;  %vm383_vm14 = vcmp.gt.f32.partialorder %v257_v24, 0.5  ;;  %v260_v27 = vld [vmem:[%s12333_s1 + $0x78] sm:$0xff] }
  0x15   :  { %156 = vst.msk [vmem:[#allocation2 + $0x9c] sm:$0xf] %vm116_vm0, %v8474_v0  ;;  %157 = vst.msk [vmem:[#allocation2 + $0xa0] sm:$0xf] %vm116_vm0, %v8474_v0  ;;  %777 = vperm.xlu1 %8253, %v632_v21   ;;  %774 = vperm.xlu0 %8252, %v631_v22   ;;  %v259_v28 = vld [vmem:[%s12333_s1 + $0x70] sm:$0xff]  ;;  %v636_v29 = vsel %vm384_vm13, 1, %v8474_v0 }
  0x16   :  { %158 = vst.msk [vmem:[#allocation2 + $0xa4] sm:$0xf] %vm116_vm0, %v8474_v0  ;;  %159 = vst.msk [vmem:[#allocation2 + $0xa8] sm:$0xf] %vm116_vm0, %v8474_v0  ;;  %v635_v30 = vsel %vm383_vm14, 1, %v8474_v0  ;;  %vm386_vm15 = vcmp.gt.f32.partialorder %v260_v27, 0.5 }
  0x17   :  { %160 = vst.msk [vmem:[#allocation2 + $0xac] sm:$0xf] %vm116_vm0, %v8474_v0  ;;  %161 = vst.msk [vmem:[#allocation2 + $0xb0] sm:$0xf] %vm116_vm0, %v8474_v0  ;;  %v262_v31 = vld [vmem:[%s12333_s1 + $0x88] sm:$0xff]  ;;  %v261_v32 = vld [vmem:[%s12333_s1 + $0x80] sm:$0xff] }
  0x18   :  { %162 = vst.msk [vmem:[#allocation2 + $0xb4] sm:$0xf] %vm116_vm0, %v8474_v0  ;;  %163 = vst.msk [vmem:[#allocation2 + $0xb8] sm:$0xf] %vm116_vm0, %v8474_v0  ;;  %v638_v33 = vsel %vm386_vm15, 1, %v8474_v0  ;;  %vm388_vm1 = vcmp.gt.f32.partialorder %v262_v31, 0.5 }
  0x19   :  { %164 = vst.msk [vmem:[#allocation2 + $0xbc] sm:$0xf] %vm116_vm0, %v8474_v0  ;;  %165 = vst.msk [vmem:[#allocation2 + $0xc0] sm:$0xf] %vm116_vm0, %v8474_v0  ;;  %783 = vperm.xlu1 %8253, %v634_v25   ;;  %780 = vperm.xlu0 %8252, %v633_v26   ;;  %vm387_vm2 = vcmp.gt.f32.partialorder %v261_v32, 0.5  ;;  %v264_v35 = vld [vmem:[%s12333_s1 + $0x98] sm:$0xff] }
  0x1a   :  { %166 = vst.msk [vmem:[#allocation2 + $0xc4] sm:$0xf] %vm116_vm0, %v8474_v0  ;;  %167 = vst.msk [vmem:[#allocation2 + $0xc8] sm:$0xf] %vm116_vm0, %v8474_v0  ;;  %v263_v36 = vld [vmem:[%s12333_s1 + $0x90] sm:$0xff]  ;;  %v640_v37 = vsel %vm388_vm1, 1, %v8474_v0 }
  0x1b   :  { %168 = vst.msk [vmem:[#allocation2 + $0xcc] sm:$0xf] %vm116_vm0, %v8474_v0  ;;  %169 = vst.msk [vmem:[#allocation2 + $0xd0] sm:$0xf] %vm116_vm0, %v8474_v0  ;;  %v639_v38 = vsel %vm387_vm2, 1, %v8474_v0  ;;  %vm390_vm3 = vcmp.gt.f32.partialorder %v264_v35, 0.5 }
  0x1c   :  { %170 = vst.msk [vmem:[#allocation2 + $0xd4] sm:$0xf] %vm116_vm0, %v8474_v0  ;;  %171 = vst.msk [vmem:[#allocation2 + $0xd8] sm:$0xf] %vm116_vm0, %v8474_v0  ;;  %vm389_vm4 = vcmp.gt.f32.partialorder %v263_v36, 0.5  ;;  %v266_v41 = vld [vmem:[%s12333_s1 + $0xa8] sm:$0xff] }
  0x1d   :  { %172 = vst.msk [vmem:[#allocation2 + $0xdc] sm:$0xf] %vm116_vm0, %v8474_v0  ;;  %173 = vst.msk [vmem:[#allocation2 + $0xe0] sm:$0xf] %vm116_vm0, %v8474_v0  ;;  %789 = vperm.xlu1 %8253, %v636_v29   ;;  %786 = vperm.xlu0 %8252, %v635_v30   ;;  %v8254_v39 = vld [vmem:[%s12334_s3 + $0x34] ss:$8 sps:$4 sm:$0xff]  }
  0x1e   :  { %174 = vst.msk [vmem:[#allocation2 + $0xe4] sm:$0xf] %vm116_vm0, %v8474_v0  ;;  %175 = vst.msk [vmem:[#allocation2 + $0xe8] sm:$0xf] %vm116_vm0, %v8474_v0  ;;  %v8256_v40 = vld [vmem:[%s12334_s3 + $0x30] ss:$8 sps:$4 sm:$0xff]   ;;  %2709 = vmatprep.subr.bf16.mxu0 %v8254_v39 }
  0x1f   :  { %176 = vst.msk [vmem:[#allocation2 + $0xec] sm:$0xf] %vm116_vm0, %v8474_v0  ;;  %177 = vst.msk [vmem:[#allocation2 + $0xf0] sm:$0xf] %vm116_vm0, %v8474_v0  ;;  %v265_v42 = vld [vmem:[%s12333_s1 + $0xa0] sm:$0xff]  ;;  %v642_v44 = vsel %vm390_vm3, 1, %v8474_v0  ;;  %2710 = vmatpush1.bf16.msra.mxu0 %v8256_v40 }
  0x20   :  { %178 = vst.msk [vmem:[#allocation2 + $0xf4] sm:$0xf] %vm116_vm0, %v8474_v0  ;;  %179 = vst.msk [vmem:[#allocation2 + $0xf8] sm:$0xf] %vm116_vm0, %v8474_v0  ;;  %v8257_v43 = vld [vmem:[%s12334_s3 + $0x24] ss:$8 sps:$4 sm:$0xff]  }
  0x21   :  { %180 = vst.msk [vmem:[#allocation2 + $0xfc] sm:$0xf] %vm116_vm0, %v8474_v0  ;;  %181 = vst.msk [vmem:[#allocation2 + $0x100] sm:$0xf] %vm116_vm0, %v8474_v0  ;;  %795 = vperm.xlu1 %8253, %v638_v33   ;;  %v641_v45 = vsel %vm389_vm4, 1, %v8474_v0  ;;  %vm392_vm5 = vcmp.gt.f32.partialorder %v266_v41, 0.5  ;;  %2711 = vmatprep.subr.bf16.mxu0 %v8257_v43 }
  0x22   :  { %182 = vst.msk [vmem:[#allocation2 + $0x104] sm:$0xf] %vm116_vm0, %v8474_v0  ;;  %183 = vst.msk [vmem:[#allocation2 + $0x108] sm:$0xf] %vm116_vm0, %v8474_v0  ;;  %vm391_vm6 = vcmp.gt.f32.partialorder %v265_v42, 0.5  ;;  %v268_v46 = vld [vmem:[%s12333_s1 + $0xb8] sm:$0xff] }
  0x23   :  { %184 = vst.msk [vmem:[#allocation2 + $0x10c] sm:$0xf] %vm116_vm0, %v8474_v0  ;;  %185 = vst.msk [vmem:[#allocation2 + $0x110] sm:$0xf] %vm116_vm0, %v8474_v0  ;;  %v8259_v47 = vld [vmem:[%s12334_s3 + $0x20] ss:$8 sps:$4 sm:$0xff]  }
  0x24   :  { %186 = vst.msk [vmem:[#allocation2 + $0x114] sm:$0xf] %vm116_vm0, %v8474_v0  ;;  %187 = vst.msk [vmem:[#allocation2 + $0x118] sm:$0xf] %vm116_vm0, %v8474_v0  ;;  %v267_v48 = vld [vmem:[%s12333_s1 + $0xb0] sm:$0xff]  ;;  %v644_v50 = vsel %vm392_vm5, 1, %v8474_v0  ;;  %2712 = vmatpush1.bf16.msra.mxu0 %v8259_v47 }
  0x25   :  { %188 = vst.msk [vmem:[#allocation2 + $0x11c] sm:$0xf] %vm116_vm0, %v8474_v0  ;;  %189 = vst.msk [vmem:[#allocation2 + $0x120] sm:$0xf] %vm116_vm0, %v8474_v0  ;;  %801 = vperm.xlu1 %8253, %v640_v37   ;;  %v8260_v49 = vld [vmem:[%s12334_s3 + $0x14] ss:$8 sps:$4 sm:$0xff]  }
  0x26   :  { %190 = vst.msk [vmem:[#allocation2 + $0x124] sm:$0xf] %vm116_vm0, %v8474_v0  ;;  %191 = vst.msk [vmem:[#allocation2 + $0x128] sm:$0xf] %vm116_vm0, %v8474_v0  ;;  %v643_v51 = vsel %vm391_vm6, 1, %v8474_v0  ;;  %vm394_vm7 = vcmp.gt.f32.partialorder %v268_v46, 0.5  ;;  %2713 = vmatprep.subr.bf16.mxu0 %v8260_v49 }
  0x27   :  { %192 = vst.msk [vmem:[#allocation2 + $0x12c] sm:$0xf] %vm116_vm0, %v8474_v0  ;;  %193 = vst.msk [vmem:[#allocation2 + $0x130] sm:$0xf] %vm116_vm0, %v8474_v0  ;;  %vm393_vm8 = vcmp.gt.f32.partialorder %v267_v48, 0.5  ;;  %v270_v53 = vld [vmem:[%s12333_s1 + $0xc8] sm:$0xff] }
  0x28   :  { %194 = vst.msk [vmem:[#allocation2 + $0x134] sm:$0xf] %vm116_vm0, %v8474_v0  ;;  %195 = vst.msk [vmem:[#allocation2 + $0x138] sm:$0xf] %vm116_vm0, %v8474_v0  ;;  %v8262_v52 = vld [vmem:[%s12334_s3 + $0x10] ss:$8 sps:$4 sm:$0xff]  }
  0x29   :  { %196 = vst.msk [vmem:[#allocation2 + $0x13c] sm:$0xf] %vm116_vm0, %v8474_v0  ;;  %197 = vst.msk [vmem:[#allocation2 + $0x140] sm:$0xf] %vm116_vm0, %v8474_v0  ;;  %807 = vperm.xlu1 %8253, %v642_v44   ;;  %v269_v54 = vld [vmem:[%s12333_s1 + $0xc0] sm:$0xff]  ;;  %v646_v56 = vsel %vm394_vm7, 1, %v8474_v0  ;;  %2714 = vmatpush1.bf16.msra.mxu0 %v8262_v52 }
  0x2a   :  { %198 = vst.msk [vmem:[#allocation2 + $0x144] sm:$0xf] %vm116_vm0, %v8474_v0  ;;  %199 = vst.msk [vmem:[#allocation2 + $0x148] sm:$0xf] %vm116_vm0, %v8474_v0  ;;  %v8263_v55 = vld [vmem:[%s12334_s3 + $0x4] ss:$8 sps:$4 sm:$0xff]  }
  0x2b   :  { %200 = vst.msk [vmem:[#allocation2 + $0x14c] sm:$0xf] %vm116_vm0, %v8474_v0  ;;  %201 = vst.msk [vmem:[#allocation2 + $0x150] sm:$0xf] %vm116_vm0, %v8474_v0  ;;  %v645_v57 = vsel %vm393_vm8, 1, %v8474_v0  ;;  %vm396_vm9 = vcmp.gt.f32.partialorder %v270_v53, 0.5  ;;  %2715 = vmatprep.subr.bf16.mxu0 %v8263_v55 }
  0x2c   :  { %202 = vst.msk [vmem:[#allocation2 + $0x154] sm:$0xf] %vm116_vm0, %v8474_v0  ;;  %203 = vst.msk [vmem:[#allocation2 + $0x158] sm:$0xf] %vm116_vm0, %v8474_v0  ;;  %vm395_vm10 = vcmp.gt.f32.partialorder %v269_v54, 0.5  ;;  %v272_v59 = vld [vmem:[%s12333_s1 + $0xd8] sm:$0xff] }
  0x2d   :  { %204 = vst.msk [vmem:[#allocation2 + $0x15c] sm:$0xf] %vm116_vm0, %v8474_v0  ;;  %205 = vst.msk [vmem:[#allocation2 + $0x160] sm:$0xf] %vm116_vm0, %v8474_v0  ;;  %813 = vperm.xlu1 %8253, %v644_v50   ;;  %v8265_v58 = vld [vmem:[%s12334_s3] ss:$8 sps:$4 sm:$0xff]  }
  0x2e   :  { %206 = vst.msk [vmem:[#allocation2 + $0x164] sm:$0xf] %vm116_vm0, %v8474_v0  ;;  %207 = vst.msk [vmem:[#allocation2 + $0x168] sm:$0xf] %vm116_vm0, %v8474_v0  ;;  %v271_v60 = vld [vmem:[%s12333_s1 + $0xd0] sm:$0xff]  ;;  %v648_v61 = vsel %vm396_vm9, 1, %v8474_v0  ;;  %2716 = vmatpush1.bf16.msra.mxu0 %v8265_v58 }
  0x2f   :  { %208 = vst.msk [vmem:[#allocation2 + $0x16c] sm:$0xf] %vm116_vm0, %v8474_v0  ;;  %209 = vst.msk [vmem:[#allocation2 + $0x170] sm:$0xf] %vm116_vm0, %v8474_v0  ;;  %v647_v62 = vsel %vm395_vm10, 1, %v8474_v0  ;;  %vm398_vm11 = vcmp.gt.f32.partialorder %v272_v59, 0.5 }
  0x30   :  { %210 = vst.msk [vmem:[#allocation2 + $0x174] sm:$0xf] %vm116_vm0, %v8474_v0  ;;  %211 = vst.msk [vmem:[#allocation2 + $0x178] sm:$0xf] %vm116_vm0, %v8474_v0  ;;  %vm397_vm12 = vcmp.gt.f32.partialorder %v271_v60, 0.5  ;;  %v274_v63 = vld [vmem:[%s12333_s1 + $0xe8] sm:$0xff] }
  0x31   :  { %212 = vst.msk [vmem:[#allocation2 + $0x17c] sm:$0xf] %vm116_vm0, %v8474_v0  ;;  %213 = vst.msk [vmem:[#allocation2 + $0x180] sm:$0xf] %vm116_vm0, %v8474_v0  ;;  %819 = vperm.xlu1 %8253, %v646_v56   ;;  %v273_v1 = vld [vmem:[%s12333_s1 + $0xe0] sm:$0xff]  ;;  %v650_v2 = vsel %vm398_vm11, 1, %v8474_v0 }
  0x32   :  { %214 = vst.msk [vmem:[#allocation2 + $0x184] sm:$0xf] %vm116_vm0, %v8474_v0  ;;  %215 = vst.msk [vmem:[#allocation2 + $0x188] sm:$0xf] %vm116_vm0, %v8474_v0  ;;  %v649_v3 = vsel %vm397_vm12, 1, %v8474_v0  ;;  %vm400_vm13 = vcmp.gt.f32.partialorder %v274_v63, 0.5 }
  0x33   :  { %216 = vst.msk [vmem:[#allocation2 + $0x18c] sm:$0xf] %vm116_vm0, %v8474_v0  ;;  %217 = vst.msk [vmem:[#allocation2 + $0x190] sm:$0xf] %vm116_vm0, %v8474_v0  ;;  %vm399_vm14 = vcmp.gt.f32.partialorder %v273_v1, 0.5  ;;  %v276_v4 = vld [vmem:[%s12333_s1 + $0xf8] sm:$0xff] }
  0x34   :  { %218 = vst.msk [vmem:[#allocation2 + $0x194] sm:$0xf] %vm116_vm0, %v8474_v0  ;;  %219 = vst.msk [vmem:[#allocation2 + $0x198] sm:$0xf] %vm116_vm0, %v8474_v0  ;;  %v275_v5 = vld [vmem:[%s12333_s1 + $0xf0] sm:$0xff]  ;;  %v652_v6 = vsel %vm400_vm13, 1, %v8474_v0 }
  0x35   :  { %220 = vst.msk [vmem:[#allocation2 + $0x19c] sm:$0xf] %vm116_vm0, %v8474_v0  ;;  %221 = vst.msk [vmem:[#allocation2 + $0x1a0] sm:$0xf] %vm116_vm0, %v8474_v0  ;;  %825 = vperm.xlu1 %8253, %v648_v61   ;;  %v651_v7 = vsel %vm399_vm14, 1, %v8474_v0  ;;  %vm402_vm15 = vcmp.gt.f32.partialorder %v276_v4, 0.5 }
  0x36   :  { %222 = vst.msk [vmem:[#allocation2 + $0x1a4] sm:$0xf] %vm116_vm0, %v8474_v0  ;;  %223 = vst.msk [vmem:[#allocation2 + $0x1a8] sm:$0xf] %vm116_vm0, %v8474_v0  ;;  %v278_v8 = vld [vmem:[%s12333_s1 + $0x108] sm:$0xff]  ;;  %v277_v9 = vld [vmem:[%s12333_s1 + $0x100] sm:$0xff] }
  0x37   :  { %224 = vst.msk [vmem:[#allocation2 + $0x1ac] sm:$0xf] %vm116_vm0, %v8474_v0  ;;  %225 = vst.msk [vmem:[#allocation2 + $0x1b0] sm:$0xf] %vm116_vm0, %v8474_v0  ;;  %v654_v10 = vsel %vm402_vm15, 1, %v8474_v0  ;;  %vm404_vm1 = vcmp.gt.f32.partialorder %v278_v8, 0.5 }
  0x38   :  { %226 = vst.msk [vmem:[#allocation2 + $0x1b4] sm:$0xf] %vm116_vm0, %v8474_v0  ;;  %227 = vst.msk [vmem:[#allocation2 + $0x1b8] sm:$0xf] %vm116_vm0, %v8474_v0  ;;  %vm403_vm2 = vcmp.gt.f32.partialorder %v277_v9, 0.5  ;;  %v280_v12 = vld [vmem:[%s12333_s1 + $0x118] sm:$0xff] }
  0x39   :  { %228 = vst.msk [vmem:[#allocation2 + $0x1bc] sm:$0xf] %vm116_vm0, %v8474_v0  ;;  %229 = vst.msk [vmem:[#allocation2 + $0x1c0] sm:$0xf] %vm116_vm0, %v8474_v0  ;;  %831 = vperm.xlu1 %8253, %v650_v2   ;;  %v279_v13 = vld [vmem:[%s12333_s1 + $0x110] sm:$0xff]  ;;  %v656_v14 = vsel %vm404_vm1, 1, %v8474_v0 }
  0x3a   :  { %230 = vst.msk [vmem:[#allocation2 + $0x1c4] sm:$0xf] %vm116_vm0, %v8474_v0  ;;  %231 = vst.msk [vmem:[#allocation2 + $0x1c8] sm:$0xf] %vm116_vm0, %v8474_v0  ;;  %v655_v15 = vsel %vm403_vm2, 1, %v8474_v0  ;;  %vm406_vm3 = vcmp.gt.f32.partialorder %v280_v12, 0.5 }
  0x3b   :  { %232 = vst.msk [vmem:[#allocation2 + $0x1cc] sm:$0xf] %vm116_vm0, %v8474_v0  ;;  %233 = vst.msk [vmem:[#allocation2 + $0x1d0] sm:$0xf] %vm116_vm0, %v8474_v0  ;;  %vm405_vm4 = vcmp.gt.f32.partialorder %v279_v13, 0.5  ;;  %v282_v16 = vld [vmem:[%s12333_s1 + $0x128] sm:$0xff] }
  0x3c   :  { %234 = vst.msk [vmem:[#allocation2 + $0x1d4] sm:$0xf] %vm116_vm0, %v8474_v0  ;;  %235 = vst.msk [vmem:[#allocation2 + $0x1d8] sm:$0xf] %vm116_vm0, %v8474_v0  ;;  %v281_v17 = vld [vmem:[%s12333_s1 + $0x120] sm:$0xff]  ;;  %v658_v18 = vsel %vm406_vm3, 1, %v8474_v0 }
  0x3d   :  { %236 = vst.msk [vmem:[#allocation2 + $0x1dc] sm:$0xf] %vm116_vm0, %v8474_v0  ;;  %237 = vst.msk [vmem:[#allocation2 + $0x1e0] sm:$0xf] %vm116_vm0, %v8474_v0  ;;  %837 = vperm.xlu1 %8253, %v652_v6   ;;  %v657_v19 = vsel %vm405_vm4, 1, %v8474_v0  ;;  %vm408_vm5 = vcmp.gt.f32.partialorder %v282_v16, 0.5 }
  0x3e   :  { %238 = vst.msk [vmem:[#allocation2 + $0x1e4] sm:$0xf] %vm116_vm0, %v8474_v0  ;;  %239 = vst.msk [vmem:[#allocation2 + $0x1e8] sm:$0xf] %vm116_vm0, %v8474_v0  ;;  %vm407_vm6 = vcmp.gt.f32.partialorder %v281_v17, 0.5  ;;  %v284_v20 = vld [vmem:[%s12333_s1 + $0x138] sm:$0xff] }
  0x3f   :  { %240 = vst.msk [vmem:[#allocation2 + $0x1ec] sm:$0xf] %vm116_vm0, %v8474_v0  ;;  %241 = vst.msk [vmem:[#allocation2 + $0x1f0] sm:$0xf] %vm116_vm0, %v8474_v0  ;;  %v283_v21 = vld [vmem:[%s12333_s1 + $0x130] sm:$0xff]  ;;  %v660_v22 = vsel %vm408_vm5, 1, %v8474_v0 }
  0x40   :  { %242 = vst.msk [vmem:[#allocation2 + $0x1f4] sm:$0xf] %vm116_vm0, %v8474_v0  ;;  %vm385_vm0 = vcmp.gt.f32.partialorder %v259_v28, 0.5  ;;  %v659_v23 = vsel %vm407_vm6, 1, %v8474_v0  ;;  %vm410_vm7 = vcmp.gt.f32.partialorder %v284_v20, 0.5  ;;  %vm409_vm8 = vcmp.gt.f32.partialorder %v283_v21, 0.5 }
  0x41   :  { %v637_v34 = vsel %vm385_vm0, 1, %v8474_v0  ;;  %vm401_vm0 = vcmp.gt.f32.partialorder %v275_v5, 0.5  ;;  %843 = vperm.xlu1 %8253, %v654_v10   ;;  %v286_v24 = vld [vmem:[%s12333_s1 + $0x148] sm:$0xff]  ;;  %v285_v25 = vld [vmem:[%s12333_s1 + $0x140] sm:$0xff]  ;;  %v662_v26 = vsel %vm410_vm7, 1, %v8474_v0  ;;  %v661_v27 = vsel %vm409_vm8, 1, %v8474_v0 }
  0x42   :  { %792 = vperm.xlu0 %8252, %v637_v34   ;;  %v653_v11 = vsel %vm401_vm0, 1, %v8474_v0  ;;  %vm412_vm9 = vcmp.gt.f32.partialorder %v286_v24, 0.5  ;;  %vm411_vm10 = vcmp.gt.f32.partialorder %v285_v25, 0.5  ;;  %v288_v28 = vld [vmem:[%s12333_s1 + $0x158] sm:$0xff]  ;;  %v287_v29 = vld [vmem:[%s12333_s1 + $0x150] sm:$0xff]  ;;  %v290_v32 = vld [vmem:[%s12333_s1 + $0x168] sm:$0xff] }
  0x43   :  { %v664_v30 = vsel %vm412_vm9, 1, %v8474_v0  ;;  %v663_v31 = vsel %vm411_vm10, 1, %v8474_v0  ;;  %vm414_vm11 = vcmp.gt.f32.partialorder %v288_v28, 0.5  ;;  %vm413_vm12 = vcmp.gt.f32.partialorder %v287_v29, 0.5  ;;  %v289_v33 = vld [vmem:[%s12333_s1 + $0x160] sm:$0xff]  ;;  %v292_v36 = vld [vmem:[%s12333_s1 + $0x178] sm:$0xff] }
  0x44   :  { %v666_v34 = vsel %vm414_vm11, 1, %v8474_v0  ;;  %v665_v35 = vsel %vm413_vm12, 1, %v8474_v0  ;;  %vm416_vm13 = vcmp.gt.f32.partialorder %v290_v32, 0.5  ;;  %vm415_vm14 = vcmp.gt.f32.partialorder %v289_v33, 0.5  ;;  %v291_v37 = vld [vmem:[%s12333_s1 + $0x170] sm:$0xff]  ;;  %v294_v40 = vld [vmem:[%s12333_s1 + $0x188] sm:$0xff] }
  0x45   :  { %849 = vperm.xlu1 %8253, %v656_v14   ;;  %v667_v39 = vsel %vm415_vm14, 1, %v8474_v0  ;;  %vm418_vm15 = vcmp.gt.f32.partialorder %v292_v36, 0.5  ;;  %vm417_vm0 = vcmp.gt.f32.partialorder %v291_v37, 0.5  ;;  %v293_v41 = vld [vmem:[%s12333_s1 + $0x180] sm:$0xff]  ;;  %vm420_vm1 = vcmp.gt.f32.partialorder %v294_v40, 0.5  ;;  %v296_v44 = vld [vmem:[%s12333_s1 + $0x198] sm:$0xff] }
  0x46   :  { %798 = vperm.xlu0 %8252, %v639_v38   ;;  %v668_v38 = vsel %vm416_vm13, 1, %v8474_v0  ;;  %v670_v42 = vsel %vm418_vm15, 1, %v8474_v0  ;;  %v669_v43 = vsel %vm417_vm0, 1, %v8474_v0  ;;  %vm419_vm2 = vcmp.gt.f32.partialorder %v293_v41, 0.5  ;;  %v298_v48 = vld [vmem:[%s12333_s1 + $0x1a8] sm:$0xff]  ;;  %v297_v49 = vld [vmem:[%s12333_s1 + $0x1a0] sm:$0xff] }
  0x47   :  { %v672_v46 = vsel %vm420_vm1, 1, %v8474_v0  ;;  %v671_v47 = vsel %vm419_vm2, 1, %v8474_v0  ;;  %vm422_vm3 = vcmp.gt.f32.partialorder %v296_v44, 0.5  ;;  %vm424_vm5 = vcmp.gt.f32.partialorder %v298_v48, 0.5  ;;  %v300_v52 = vld [vmem:[%s12333_s1 + $0x1b8] sm:$0xff]  ;;  %v299_v53 = vld [vmem:[%s12333_s1 + $0x1b0] sm:$0xff] }
  0x48   :  { %v674_v50 = vsel %vm422_vm3, 1, %v8474_v0  ;;  %vm423_vm6 = vcmp.gt.f32.partialorder %v297_v49, 0.5  ;;  %v676_v54 = vsel %vm424_vm5, 1, %v8474_v0  ;;  %vm426_vm7 = vcmp.gt.f32.partialorder %v300_v52, 0.5  ;;  %v302_v56 = vld [vmem:[%s12333_s1 + $0x1c8] sm:$0xff]  ;;  %v304_v60 = vld [vmem:[%s12333_s1 + $0x1d8] sm:$0xff] }
  0x49   :  { %855 = vperm.xlu1 %8253, %v658_v18   ;;  %v675_v55 = vsel %vm423_vm6, 1, %v8474_v0  ;;  %vm425_vm8 = vcmp.gt.f32.partialorder %v299_v53, 0.5  ;;  %v678_v58 = vsel %vm426_vm7, 1, %v8474_v0  ;;  %vm428_vm9 = vcmp.gt.f32.partialorder %v302_v56, 0.5  ;;  %v303_v61 = vld [vmem:[%s12333_s1 + $0x1d0] sm:$0xff]  ;;  %v306_v1 = vld [vmem:[%s12333_s1 + $0x1e8] sm:$0xff] }
  0x4a   :  { %804 = vperm.xlu0 %8252, %v641_v45   ;;  %v295_v45 = vld [vmem:[%s12333_s1 + $0x190] sm:$0xff]  ;;  %v677_v59 = vsel %vm425_vm8, 1, %v8474_v0  ;;  %vm430_vm11 = vcmp.gt.f32.partialorder %v304_v60, 0.5  ;;  %vm429_vm12 = vcmp.gt.f32.partialorder %v303_v61, 0.5  ;;  %v305_v2 = vld [vmem:[%s12333_s1 + $0x1e0] sm:$0xff]  ;;  %vm432_vm13 = vcmp.gt.f32.partialorder %v306_v1, 0.5 }
  0x4b   :  { %vm421_vm4 = vcmp.gt.f32.partialorder %v295_v45, 0.5  ;;  %v681_v4 = vsel %vm429_vm12, 1, %v8474_v0  ;;  %vm431_vm14 = vcmp.gt.f32.partialorder %v305_v2, 0.5  ;;  %v308_v5 = vld [vmem:[%s12333_s1 + $0x1f8] sm:$0xff]  ;;  %v307_v6 = vld [vmem:[%s12333_s1 + $0x1f0] sm:$0xff]  ;;  %v310_v9 = vld [vmem:[%s12333_s1 + $0x208] sm:$0xff] }
  0x4c   :  { %v683_v8 = vsel %vm431_vm14, 1, %v8474_v0  ;;  %vm434_vm15 = vcmp.gt.f32.partialorder %v308_v5, 0.5  ;;  %vm433_vm0 = vcmp.gt.f32.partialorder %v307_v6, 0.5  ;;  %v309_v10 = vld [vmem:[%s12333_s1 + $0x200] sm:$0xff]  ;;  %vm436_vm1 = vcmp.gt.f32.partialorder %v310_v9, 0.5  ;;  %v311_v16 = vld [vmem:[%s12333_s1 + $0x210] sm:$0xff] }
  0x4d   :  { %861 = vperm.xlu1 %8253, %v660_v22   ;;  %v686_v12 = vsel %vm434_vm15, 1, %v8474_v0  ;;  %v685_v13 = vsel %vm433_vm0, 1, %v8474_v0  ;;  %vm435_vm2 = vcmp.gt.f32.partialorder %v309_v10, 0.5  ;;  %v497_v14 = vld [vmem:[%s12335_s2] sm:$0xff]  ;;  %vm1883_vm3 = vcmask 265216   ;;  %v315_v40 = vld [vmem:[%s12333_s1 + $0x230] sm:$0xff] }
  0x4e   :  { %810 = vperm.xlu0 %8252, %v643_v51   ;;  %v673_v51 = vsel %vm421_vm4, 1, %v8474_v0  ;;  %v687_v20 = vsel %vm435_vm2, 1, %v8474_v0  ;;  %vm437_vm7 = vcmp.gt.f32.partialorder %v311_v16, 0.5  ;;  %v313_v28 = vld [vmem:[%s12333_s1 + $0x220] sm:$0xff]  ;;  %vm441_vm15 = vcmp.gt.f32.partialorder %v315_v40, 0.5  ;;  %v319_v1 = vld [vmem:[%s12333_s1 + $0x250] sm:$0xff] }
  0x4f   :  { %v689_v32 = vsel %vm437_vm7, 1, %v8474_v0  ;;  %v317_v52 = vld [vmem:[%s12333_s1 + $0x240] sm:$0xff]  ;;  %v693_v56 = vsel %vm441_vm15, 1, %v8474_v0  ;;  %v508_v9 = vld [vmem:[%s12335_s2 + $0x58] sm:$0xff] }
  0x51   :  { %867 = vperm.xlu1 %8253, %v662_v26   ;;  %v498_v26 = vld [vmem:[%s12335_s2 + $0x8] sm:$0xff] }
  0x52   :  { %816 = vperm.xlu0 %8252, %v645_v57   ;;  %v301_v57 = vld [vmem:[%s12333_s1 + $0x1c0] sm:$0xff] }
  0x53   :  { %vm427_vm10 = vcmp.gt.f32.partialorder %v301_v57, 0.5 }
  0x54   :  { %v679_v63 = vsel %vm427_vm10, 1, %v8474_v0 }
  0x55   :  { %873 = vperm.xlu1 %8253, %v664_v30  }
  0x56   :  { %822 = vperm.xlu0 %8252, %v647_v62   ;;  %v680_v62 = vsel %vm428_vm9, 1, %v8474_v0 }
  0x59   :  { %879 = vperm.xlu1 %8253, %v666_v34  }
  0x5a   :  { %828 = vperm.xlu0 %8252, %v649_v3   ;;  %v682_v3 = vsel %vm430_vm11, 1, %v8474_v0  ;;  %vm439_vm11 = vcmp.gt.f32.partialorder %v313_v28, 0.5 }
  0x5b   :  { %v691_v44 = vsel %vm439_vm11, 1, %v8474_v0 }
  0x5d   :  { %885 = vperm.xlu1 %8253, %v668_v38   ;;  %v501_v38 = vld [vmem:[%s12335_s2 + $0x20] sm:$0xff] }
  0x5e   :  { %834 = vperm.xlu0 %8252, %v651_v7   ;;  %v684_v7 = vsel %vm432_vm13, 1, %v8474_v0 }
  0x61   :  { %891 = vperm.xlu1 %8253, %v670_v42  }
  0x62   :  { %840 = vperm.xlu0 %8252, %v653_v11   ;;  %v499_v11 = vld [vmem:[%s12335_s2 + $0x10] sm:$0xff] }
  0x65   :  { %897 = vperm.xlu1 %8253, %v672_v46  }
  0x66   :  { %846 = vperm.xlu0 %8252, %v655_v15   ;;  %v312_v15 = vld [vmem:[%s12333_s1 + $0x218] sm:$0xff] }
  0x67   :  { %vm438_vm6 = vcmp.gt.f32.partialorder %v312_v15, 0.5 }
  0x69   :  { %903 = vperm.xlu1 %8253, %v674_v50   ;;  %v503_v50 = vld [vmem:[%s12335_s2 + $0x30] sm:$0xff] }
  0x6a   :  { %852 = vperm.xlu0 %8252, %v657_v19   ;;  %v688_v19 = vsel %vm436_vm1, 1, %v8474_v0 }
  0x6d   :  { %909 = vperm.xlu1 %8253, %v676_v54  }
  0x6e   :  { %858 = vperm.xlu0 %8252, %v659_v23   ;;  %v500_v23 = vld [vmem:[%s12335_s2 + $0x18] sm:$0xff] }
  0x71   :  { %915 = vperm.xlu1 %8253, %v678_v58  }
  0x72   :  { %864 = vperm.xlu0 %8252, %v661_v27   ;;  %v314_v27 = vld [vmem:[%s12333_s1 + $0x228] sm:$0xff] }
  0x73   :  { %vm440_vm10 = vcmp.gt.f32.partialorder %v314_v27, 0.5 }
  0x75   :  { %921 = vperm.xlu1 %8253, %v680_v62   ;;  %v505_v62 = vld [vmem:[%s12335_s2 + $0x40] sm:$0xff] }
  0x76   :  { %870 = vperm.xlu0 %8252, %v663_v31   ;;  %v690_v31 = vsel %vm438_vm6, 1, %v8474_v0 }
  0x79   :  { %927 = vperm.xlu1 %8253, %v682_v3  }
  0x7a   :  { %876 = vperm.xlu0 %8252, %v665_v35   ;;  %v502_v35 = vld [vmem:[%s12335_s2 + $0x28] sm:$0xff] }
  0x7d   :  { %933 = vperm.xlu1 %8253, %v684_v7  }
  0x7e   :  { %882 = vperm.xlu0 %8252, %v667_v39   ;;  %v316_v39 = vld [vmem:[%s12333_s1 + $0x238] sm:$0xff] }
  0x7f   :  { %vm442_vm14 = vcmp.gt.f32.partialorder %v316_v39, 0.5  ;;  %v511_v39 = vld [vmem:[%s12335_s2 + $0x70] sm:$0xff] }
  0x80   :  { %v757_v17 = vpop.permute.xlu1 %756  ;;  %v751_v18 = vpop.permute.xlu0 %750 }
  0x81   :  { %vm1129_vm4 = vcmp.eq.s32.totalorder %v757_v17, 1  ;;  %vm1127_vm5 = vcmp.eq.s32.totalorder %v751_v18, 1  ;;  %939 = vperm.xlu1 %8253, %v686_v12   ;;  %v507_v12 = vld [vmem:[%s12335_s2 + $0x50] sm:$0xff] }
  0x82   :  { %888 = vperm.xlu0 %8252, %v669_v43   ;;  %v1255_v21 = vsel %vm1129_vm4, %v499_v11, 0.0  ;;  %v1253_v22 = vsel %vm1127_vm5, %v497_v14, 0.0  ;;  %v692_v43 = vsel %vm440_vm10, 1, %v8474_v0  ;;  %vm443_vm4 = vcmp.gt.f32.partialorder %v317_v52, 0.5  ;;  %v321_v14 = vld [vmem:[%s12333_s1 + $0x260] sm:$0xff] }
  0x83   :  { %v8125_v24 = vpack.c.bf16 %v1255_v21, %v1255_v21  ;;  %v8123_v25 = vpack.c.bf16 %v1253_v22, %v1253_v22  ;;  %vm2511_vm5 = vcmask 523264   ;;  %v695_v6 = vsel %vm443_vm4, 1, %v8474_v0  ;;  %v510_v21 = vld [vmem:[%s12335_s2 + $0x68] sm:$0xff] }
  0x84   :  { %v760_v29 = vpop.permute.xlu1 %759  ;;  %v754_v30 = vpop.permute.xlu0 %753 }
  0x85   :  { %1886 = vst.msk [vmem:[#allocation2 + $0x8] sm:$0xf] %vm1883_vm3, %v8125_v24  ;;  %1884 = vst.msk [vmem:[#allocation2] sm:$0xf] %vm1883_vm3, %v8123_v25  ;;  %vm1130_vm8 = vcmp.eq.s32.totalorder %v760_v29, 1  ;;  %vm1128_vm9 = vcmp.eq.s32.totalorder %v754_v30, 1  ;;  %945 = vperm.xlu1 %8253, %v688_v19  }
  0x86   :  { %894 = vperm.xlu0 %8252, %v671_v47   ;;  %v1256_v33 = vsel %vm1130_vm8, %v500_v23, 0.0  ;;  %v1254_v34 = vsel %vm1128_vm9, %v498_v26, 0.0  ;;  %v504_v47 = vld [vmem:[%s12335_s2 + $0x38] sm:$0xff]  ;;  %vm445_vm9 = vcmp.gt.f32.partialorder %v319_v1, 0.5  ;;  %v509_v24 = vld [vmem:[%s12335_s2 + $0x60] sm:$0xff]  ;;  %v323_v26 = vld [vmem:[%s12333_s1 + $0x270] sm:$0xff] }
  0x87   :  { %v8126_v36 = vpack.c.bf16 %v1256_v33, %v1256_v33  ;;  %v8124_v37 = vpack.c.bf16 %v1254_v34, %v1254_v34  ;;  %v697_v18 = vsel %vm445_vm9, 1, %v8474_v0  ;;  %v324_v25 = vld [vmem:[%s12333_s1 + $0x278] sm:$0xff]  ;;  %v325_v33 = vld [vmem:[%s12333_s1 + $0x280] sm:$0xff] }
  0x88   :  { %v766_v41 = vpop.permute.xlu1 %765  ;;  %v763_v42 = vpop.permute.xlu0 %762  ;;  %vm451_vm4 = vcmp.gt.f32.partialorder %v325_v33, 0.5 }
  0x89   :  { %1887 = vst.msk [vmem:[#allocation2 + $0xc] sm:$0xf] %vm1883_vm3, %v8126_v36  ;;  %1885 = vst.msk [vmem:[#allocation2 + $0x4] sm:$0xf] %vm1883_vm3, %v8124_v37  ;;  %vm1132_vm12 = vcmp.eq.s32.totalorder %v766_v41, 1  ;;  %vm1131_vm13 = vcmp.eq.s32.totalorder %v763_v42, 1  ;;  %951 = vperm.xlu1 %8253, %v690_v31  }
  0x8a   :  { %900 = vperm.xlu0 %8252, %v673_v51   ;;  %v1258_v45 = vsel %vm1132_vm12, %v502_v35, 0.0  ;;  %v1257_v46 = vsel %vm1131_vm13, %v501_v38, 0.0  ;;  %v318_v51 = vld [vmem:[%s12333_s1 + $0x248] sm:$0xff]  ;;  %vm447_vm13 = vcmp.gt.f32.partialorder %v321_v14, 0.5  ;;  %v512_v38 = vld [vmem:[%s12335_s2 + $0x78] sm:$0xff] }
  0x8b   :  { %v8128_v48 = vpack.c.bf16 %v1258_v45, %v1258_v45  ;;  %v8127_v49 = vpack.c.bf16 %v1257_v46, %v1257_v46  ;;  %vm444_vm2 = vcmp.gt.f32.partialorder %v318_v51, 0.5  ;;  %v699_v31 = vsel %vm447_vm13, 1, %v8474_v0  ;;  %v514_v42 = vld [vmem:[%s12335_s2 + $0x88] sm:$0xff]  ;;  %v328_v46 = vld [vmem:[%s12333_s1 + $0x298] sm:$0xff] }
  0x8c   :  { %v772_v53 = vpop.permute.xlu1 %771  ;;  %v769_v54 = vpop.permute.xlu0 %768  ;;  %v696_v5 = vsel %vm444_vm2, 1, %v8474_v0 }
  0x8d   :  { %1889 = vst.msk [vmem:[#allocation2 + $0x14] sm:$0xf] %vm1883_vm3, %v8128_v48  ;;  %1888 = vst.msk [vmem:[#allocation2 + $0x10] sm:$0xf] %vm1883_vm3, %v8127_v49  ;;  %vm1134_vm0 = vcmp.eq.s32.totalorder %v772_v53, 1  ;;  %vm1133_vm1 = vcmp.eq.s32.totalorder %v769_v54, 1  ;;  %957 = vperm.xlu1 %8253, %v692_v43  }
  0x8e   :  { %906 = vperm.xlu0 %8252, %v675_v55   ;;  %v694_v55 = vsel %vm442_vm14, 1, %v8474_v0  ;;  %v1260_v57 = vsel %vm1134_vm0, %v504_v47, 0.0  ;;  %v1259_v58 = vsel %vm1133_vm1, %v503_v50, 0.0  ;;  %vm450_vm0 = vcmp.gt.f32.partialorder %v324_v25, 0.5  ;;  %v513_v43 = vld [vmem:[%s12335_s2 + $0x80] sm:$0xff]  ;;  %v327_v47 = vld [vmem:[%s12333_s1 + $0x290] sm:$0xff] }
  0x8f   :  { %v8130_v60 = vpack.c.bf16 %v1260_v57, %v1260_v57  ;;  %v8129_v61 = vpack.c.bf16 %v1259_v58, %v1259_v58  ;;  %vm449_vm1 = vcmp.gt.f32.partialorder %v323_v26, 0.5  ;;  %v8284_v50 = vld [vmem:[%s12336_s5 + $0x74] ss:$8 sps:$4 sm:$0xff]   ;;  %v703_v54 = vsel %vm451_vm4, 1, %v8474_v0 }
  0x90   :  { %v778_v2 = vpop.permute.xlu1 %777  ;;  %v775_v3 = vpop.permute.xlu0 %774  ;;  %v8267_v29 = vld [vmem:[#allocation2 + $0x8] sm:$0xff]   ;;  %v701_v45 = vsel %vm449_vm1, 1, %v8474_v0  ;;  %3946 = vmatprep.subr.bf16.mxu1 %v8284_v50  ;;  %v520_v25 = vld [vmem:[%s12335_s2 + $0xb8] sm:$0xff]  ;;  %v519_v26 = vld [vmem:[%s12335_s2 + $0xb0] sm:$0xff] }
  0x91   :  { %1891 = vst.msk [vmem:[#allocation2 + $0x1c] sm:$0xf] %vm1883_vm3, %v8130_v60  ;;  %1890 = vst.msk [vmem:[#allocation2 + $0x18] sm:$0xf] %vm1883_vm3, %v8129_v61  ;;  %vm1136_vm6 = vcmp.eq.s32.totalorder %v778_v2, 1  ;;  %vm1135_vm7 = vcmp.eq.s32.totalorder %v775_v3, 1  ;;  %963 = vperm.xlu1 %8253, %v694_v55  }
  0x92   :  { %912 = vperm.xlu0 %8252, %v677_v59   ;;  %v506_v59 = vld [vmem:[%s12335_s2 + $0x48] sm:$0xff]  ;;  %v8286_v55 = vld [vmem:[%s12336_s5 + $0x70] ss:$8 sps:$4 sm:$0xff]  }
  0x93   :  { %v1262_v7 = vsel %vm1136_vm6, %v506_v59, 0.0  ;;  %v516_v59 = vld [vmem:[%s12335_s2 + $0x98] sm:$0xff]  ;;  %v515_v60 = vld [vmem:[%s12335_s2 + $0x90] sm:$0xff]  ;;  %v330_v61 = vld [vmem:[%s12333_s1 + $0x2a8] sm:$0xff]  ;;  %3947 = vmatpush1.bf16.msra.mxu1 %v8286_v55 }
  0x94   :  { %v8132_v10 = vpack.c.bf16 %v1262_v7, %v1262_v7  ;;  %v784_v15 = vpop.permute.xlu1 %783  ;;  %v781_v16 = vpop.permute.xlu0 %780  ;;  %v8268_v58 = vld [vmem:[#allocation2 + $0x10] sm:$0xff]   ;;  %v8288_v2 = vld [vmem:[%s12336_s5 + $0x64] ss:$8 sps:$4 sm:$0xff]  }
  0x95   :  { %vm1138_vm10 = vcmp.eq.s32.totalorder %v784_v15, 1  ;;  %vm1137_vm11 = vcmp.eq.s32.totalorder %v781_v16, 1  ;;  %969 = vperm.xlu1 %8253, %v696_v5   ;;  %3948 = vmatprep.subr.bf16.mxu1 %v8288_v2  ;;  %v8291_v16 = vld [vmem:[%s12336_s5 + $0x54] ss:$8 sps:$4 sm:$0xff]   ;;  %v8300_v50 = vld [vmem:[%s12336_s5 + $0x30] ss:$8 sps:$4 sm:$0xff]  }
  0x96   :  { %918 = vperm.xlu0 %8252, %v679_v63   ;;  %v320_v63 = vld [vmem:[%s12333_s1 + $0x258] sm:$0xff]  ;;  %1893 = vst.msk [vmem:[#allocation2 + $0x24] sm:$0xf] %vm1883_vm3, %v8132_v10  ;;  %v1264_v19 = vsel %vm1138_vm10, %v508_v9, 0.0  ;;  %v518_v9 = vld [vmem:[%s12335_s2 + $0xa8] sm:$0xff]  ;;  %v517_v10 = vld [vmem:[%s12335_s2 + $0xa0] sm:$0xff] }
  0x97   :  { %vm446_vm8 = vcmp.gt.f32.partialorder %v320_v63, 0.5  ;;  %v8134_v22 = vpack.c.bf16 %v1264_v19, %v1264_v19  ;;  %v523_v55 = vld [vmem:[%s12335_s2 + $0xd0] sm:$0xff] }
  0x98   :  { %v698_v17 = vsel %vm446_vm8, 1, %v8474_v0  ;;  %v790_v27 = vpop.permute.xlu1 %789  ;;  %v787_v28 = vpop.permute.xlu0 %786  ;;  %vm454_vm8 = vcmp.gt.f32.partialorder %v328_v46, 0.5 }
  0x99   :  { %1895 = vst.msk [vmem:[#allocation2 + $0x2c] sm:$0xf] %vm1883_vm3, %v8134_v22  ;;  %vm1140_vm14 = vcmp.eq.s32.totalorder %v790_v27, 1  ;;  %vm1139_vm15 = vcmp.eq.s32.totalorder %v787_v28, 1  ;;  %975 = vperm.xlu1 %8253, %v698_v17   ;;  %v706_v5 = vsel %vm454_vm8, 1, %v8474_v0  ;;  %v334_v27 = vld [vmem:[%s12333_s1 + $0x2c8] sm:$0xff] }
  0x9a   :  { %924 = vperm.xlu0 %8252, %v681_v4   ;;  %v8266_v4 = vld [vmem:[#allocation2] sm:$0xff]   ;;  %v1266_v34 = vsel %vm1140_vm14, %v510_v21, 0.0  ;;  %v1265_v35 = vsel %vm1139_vm15, %v509_v24, 0.0  ;;  %v8293_v21 = vld [vmem:[%s12336_s5 + $0x50] ss:$8 sps:$4 sm:$0xff]  }
  0x9b   :  { %7941 = vmatmul.mubr.msk.bf16.vlgmr.msra.gmra.mxu0 %vm2511_vm5, %v8266_v4  ;;  %v8136_v36 = vpack.c.bf16 %v1266_v34, %v1266_v34  ;;  %v8135_v37 = vpack.c.bf16 %v1265_v35, %v1265_v35  ;;  %v8269_v24 = vld [vmem:[#allocation2 + $0x18] sm:$0xff]   ;;  %v333_v28 = vld [vmem:[%s12333_s1 + $0x2c0] sm:$0xff] }
  0x9c   :  { %2743 = vmatprep.mubr.bf16.mxu0 %v8474_v0  ;;  %v796_v40 = vpop.permute.xlu1 %795  ;;  %v8297_v35 = vld [vmem:[%s12336_s5 + $0x40] ss:$8 sps:$4 sm:$0xff]  }
  0x9d   :  { %1897 = vst.msk [vmem:[#allocation2 + $0x34] sm:$0xf] %vm1883_vm3, %v8136_v36  ;;  %1896 = vst.msk [vmem:[#allocation2 + $0x30] sm:$0xf] %vm1883_vm3, %v8135_v37  ;;  %vm1142_vm6 = vcmp.eq.s32.totalorder %v796_v40, 1 }
  0x9e   :  { %930 = vperm.xlu0 %8252, %v683_v8   ;;  %v1261_v8 = vsel %vm1135_vm7, %v505_v62, 0.0  ;;  %v1268_v48 = vsel %vm1142_vm6, %v512_v38, 0.0  ;;  %v329_v62 = vld [vmem:[%s12333_s1 + $0x2a0] sm:$0xff]  ;;  %vm460_vm6 = vcmp.gt.f32.partialorder %v334_v27, 0.5  ;;  %v522_v38 = vld [vmem:[%s12335_s2 + $0xc8] sm:$0xff] }
  0x9f   :  { %v8131_v11 = vpack.c.bf16 %v1261_v8, %v1261_v8  ;;  %v8138_v51 = vpack.c.bf16 %v1268_v48, %v1268_v48  ;;  %vm455_vm13 = vcmp.gt.f32.partialorder %v329_v62, 0.5  ;;  %v712_v48 = vsel %vm460_vm6, 1, %v8474_v0  ;;  %v342_v27 = vld [vmem:[%s12333_s1 + $0x308] sm:$0xff] }
  0xa1   :  { %1892 = vst.msk [vmem:[#allocation2 + $0x20] sm:$0xf] %vm1883_vm3, %v8131_v11  ;;  %1899 = vst.msk [vmem:[#allocation2 + $0x3c] sm:$0xf] %vm1883_vm3, %v8138_v51 }
  0xa2   :  { %936 = vperm.xlu0 %8252, %v685_v13   ;;  %v322_v13 = vld [vmem:[%s12333_s1 + $0x268] sm:$0xff] }
  0xa3   :  { %vm448_vm12 = vcmp.gt.f32.partialorder %v322_v13, 0.5  ;;  %7942 = vmatmul.mubr.msk.bf16.gmra.mxu0 %vm2511_vm5, %v8267_v29  ;;  %v331_v13 = vld [vmem:[%s12333_s1 + $0x2b0] sm:$0xff] }
  0xa4   :  { %v700_v30 = vsel %vm448_vm12, 1, %v8474_v0  ;;  %2753 = vmatprep.mubr.bf16.mxu0 %v8474_v0  ;;  %vm456_vm12 = vcmp.gt.f32.partialorder %v330_v61, 0.5  ;;  %vm457_vm4 = vcmp.gt.f32.partialorder %v331_v13, 0.5  ;;  %v339_v13 = vld [vmem:[%s12333_s1 + $0x2f0] sm:$0xff] }
  0xa5   :  { %981 = vperm.xlu1 %8253, %v700_v30   ;;  %v708_v19 = vsel %vm456_vm12, 1, %v8474_v0  ;;  %v709_v40 = vsel %vm457_vm4, 1, %v8474_v0 }
  0xa6   :  { %942 = vperm.xlu0 %8252, %v687_v20   ;;  %v1263_v20 = vsel %vm1137_vm11, %v507_v12, 0.0  ;;  %vm453_vm11 = vcmp.gt.f32.partialorder %v327_v47, 0.5  ;;  %v332_v12 = vld [vmem:[%s12333_s1 + $0x2b8] sm:$0xff] }
  0xa7   :  { %v8133_v23 = vpack.c.bf16 %v1263_v20, %v1263_v20  ;;  %v705_v11 = vsel %vm453_vm11, 1, %v8474_v0  ;;  %v707_v20 = vsel %vm455_vm13, 1, %v8474_v0 }
  0xa9   :  { %1894 = vst.msk [vmem:[#allocation2 + $0x28] sm:$0xf] %vm1883_vm3, %v8133_v23 }
  0xaa   :  { %948 = vperm.xlu0 %8252, %v689_v32   ;;  %v326_v32 = vld [vmem:[%s12333_s1 + $0x288] sm:$0xff] }
  0xab   :  { %vm452_vm2 = vcmp.gt.f32.partialorder %v326_v32, 0.5  ;;  %7943 = vmatmul.mubr.msk.bf16.gmra.mxu0 %vm2511_vm5, %v8268_v58 }
  0xac   :  { %v704_v53 = vsel %vm452_vm2, 1, %v8474_v0  ;;  %2763 = vmatprep.mubr.bf16.mxu0 %v8474_v0 }
  0xae   :  { %954 = vperm.xlu0 %8252, %v691_v44   ;;  %v702_v44 = vsel %vm450_vm0, 1, %v8474_v0  ;;  %vm458_vm0 = vcmp.gt.f32.partialorder %v332_v12, 0.5  ;;  %v340_v12 = vld [vmem:[%s12333_s1 + $0x2f8] sm:$0xff] }
  0xaf   :  { %987 = vperm.xlu1 %8253, %v702_v44   ;;  %v710_v34 = vsel %vm458_vm0, 1, %v8474_v0  ;;  %vm466_vm6 = vcmp.gt.f32.partialorder %v340_v12, 0.5 }
  0xb2   :  { %960 = vperm.xlu0 %8252, %v693_v56   ;;  %v802_v56 = vpop.permute.xlu1 %801 }
  0xb3   :  { %vm1144_vm9 = vcmp.eq.s32.totalorder %v802_v56, 1  ;;  %993 = vperm.xlu1 %8253, %v704_v53   ;;  %7944 = vmatmul.mubr.msk.bf16.gmra.mxu0 %vm2511_vm5, %v8269_v24  ;;  %v8270_v53 = vld [vmem:[#allocation2 + $0x20] sm:$0xff]   ;;  %v338_v56 = vld [vmem:[%s12333_s1 + $0x2e8] sm:$0xff] }
  0xb4   :  { %v1270_v63 = vsel %vm1144_vm9, %v514_v42, 0.0  ;;  %2773 = vmatprep.mubr.bf16.mxu0 %v8474_v0  ;;  %v335_v42 = vld [vmem:[%s12333_s1 + $0x2d0] sm:$0xff]  ;;  %vm464_vm0 = vcmp.gt.f32.partialorder %v338_v56, 0.5  ;;  %v8309_v24 = vld [vmem:[%s12336_s5 + $0x4] ss:$8 sps:$4 sm:$0xff]  }
  0xb5   :  { %v8140_v3 = vpack.c.bf16 %v1270_v63, %v1270_v63  ;;  %vm461_vm13 = vcmp.gt.f32.partialorder %v335_v42, 0.5  ;;  %v8304_v63 = vld [vmem:[%s12336_s5 + $0x20] ss:$8 sps:$4 sm:$0xff]   ;;  %v343_v42 = vld [vmem:[%s12333_s1 + $0x310] sm:$0xff] }
  0xb6   :  { %966 = vperm.xlu0 %8252, %v695_v6   ;;  %v8290_v6 = vld [vmem:[%s12336_s5 + $0x60] ss:$8 sps:$4 sm:$0xff]   ;;  %v808_v7 = vpop.permute.xlu1 %807 }
  0xb7   :  { %1901 = vst.msk [vmem:[#allocation2 + $0x44] sm:$0xf] %vm1883_vm3, %v8140_v3  ;;  %vm1146_vm14 = vcmp.eq.s32.totalorder %v808_v7, 1  ;;  %3949 = vmatpush1.bf16.msra.mxu1 %v8290_v6  ;;  %999 = vperm.xlu1 %8253, %v706_v5   ;;  %v526_v5 = vld [vmem:[%s12335_s2 + $0xe8] sm:$0xff]  ;;  %v525_v6 = vld [vmem:[%s12335_s2 + $0xe0] sm:$0xff] }
  0xb8   :  { %v1272_v14 = vsel %vm1146_vm14, %v516_v59, 0.0  ;;  %3950 = vmatprep.subr.bf16.mxu1 %v8291_v16  ;;  %v346_v56 = vld [vmem:[%s12333_s1 + $0x328] sm:$0xff] }
  0xb9   :  { %v8142_v17 = vpack.c.bf16 %v1272_v14, %v1272_v14  ;;  %v8307_v14 = vld [vmem:[%s12336_s5 + $0x10] ss:$8 sps:$4 sm:$0xff]  }
  0xba   :  { %972 = vperm.xlu0 %8252, %v697_v18   ;;  %v814_v22 = vpop.permute.xlu1 %813 }
  0xbb   :  { %1903 = vst.msk [vmem:[#allocation2 + $0x4c] sm:$0xf] %vm1883_vm3, %v8142_v17  ;;  %vm1148_vm1 = vcmp.eq.s32.totalorder %v814_v22, 1  ;;  %3951 = vmatpush1.bf16.msra.mxu1 %v8293_v21  ;;  %1005 = vperm.xlu1 %8253, %v708_v19   ;;  %v8271_v17 = vld [vmem:[#allocation2 + $0x28] sm:$0xff]   ;;  %v527_v19 = vld [vmem:[%s12335_s2 + $0xf0] sm:$0xff] }
  0xbc   :  { %v1274_v29 = vsel %vm1148_vm1, %v518_v9, 0.0  ;;  %7945 = vmatmul.mubr.msk.bf16.gmra.mxu0 %vm2511_vm5, %v8270_v53  ;;  %v8305_v9 = vld [vmem:[%s12336_s5 + $0x14] ss:$8 sps:$4 sm:$0xff]   ;;  %v8316_v53 = vld [vmem:[%s12336_s5 + $0xe4] ss:$8 sps:$4 sm:$0xff]  }
  0xbd   :  { %v793_v41 = vpop.permute.xlu0 %792  ;;  %v8144_v32 = vpack.c.bf16 %v1274_v29, %v1274_v29  ;;  %2783 = vmatprep.mubr.bf16.mxu0 %v8474_v0  ;;  %v8311_v29 = vld [vmem:[%s12336_s5] ss:$8 sps:$4 sm:$0xff]  }
  0xbe   :  { %vm1141_vm7 = vcmp.eq.s32.totalorder %v793_v41, 1  ;;  %978 = vperm.xlu0 %8252, %v699_v31   ;;  %v8295_v31 = vld [vmem:[%s12336_s5 + $0x44] ss:$8 sps:$4 sm:$0xff]   ;;  %v820_v36 = vpop.permute.xlu1 %819  ;;  %v336_v41 = vld [vmem:[%s12333_s1 + $0x2d8] sm:$0xff] }
  0xbf   :  { %v1267_v49 = vsel %vm1141_vm7, %v511_v39, 0.0  ;;  %vm459_vm7 = vcmp.gt.f32.partialorder %v333_v28, 0.5  ;;  %3952 = vmatprep.subr.bf16.mxu1 %v8295_v31  ;;  %1905 = vst.msk [vmem:[#allocation2 + $0x54] sm:$0xf] %vm1883_vm3, %v8144_v32  ;;  %vm1150_vm8 = vcmp.eq.s32.totalorder %v820_v36, 1  ;;  %v521_v39 = vld [vmem:[%s12335_s2 + $0xc0] sm:$0xff]  ;;  %1011 = vperm.xlu1 %8253, %v710_v34  }
  0xc0   :  { %v8137_v52 = vpack.c.bf16 %v1267_v49, %v1267_v49  ;;  %3953 = vmatpush1.bf16.msra.mxu1 %v8297_v35  ;;  %v711_v49 = vsel %vm459_vm7, 1, %v8474_v0  ;;  %vm465_vm7 = vcmp.gt.f32.partialorder %v339_v13, 0.5  ;;  %v341_v28 = vld [vmem:[%s12333_s1 + $0x300] sm:$0xff]  ;;  %v530_v32 = vld [vmem:[%s12335_s2 + $0x108] sm:$0xff]  ;;  %v718_v34 = vsel %vm466_vm6, 1, %v8474_v0  ;;  %v536_v13 = vld [vmem:[%s12335_s2 + $0x138] sm:$0xff] }
  0xc1   :  { %v799_v57 = vpop.permute.xlu0 %798  ;;  %v717_v35 = vsel %vm465_vm7, 1, %v8474_v0 }
  0xc2   :  { %1898 = vst.msk [vmem:[#allocation2 + $0x38] sm:$0xf] %vm1883_vm3, %v8137_v52  ;;  %vm1143_vm10 = vcmp.eq.s32.totalorder %v799_v57, 1  ;;  %984 = vperm.xlu0 %8252, %v701_v45   ;;  %v8298_v45 = vld [vmem:[%s12336_s5 + $0x34] ss:$8 sps:$4 sm:$0xff]   ;;  %v826_v51 = vpop.permute.xlu1 %825  ;;  %v337_v57 = vld [vmem:[%s12333_s1 + $0x2e0] sm:$0xff] }
  0xc3   :  { %v1269_v1 = vsel %vm1143_vm10, %v513_v43, 0.0  ;;  %v1276_v43 = vsel %vm1150_vm8, %v520_v25, 0.0  ;;  %vm462_vm10 = vcmp.gt.f32.partialorder %v336_v41, 0.5  ;;  %3954 = vmatprep.subr.bf16.mxu1 %v8298_v45  ;;  %vm1152_vm11 = vcmp.eq.s32.totalorder %v826_v51, 1  ;;  %1017 = vperm.xlu1 %8253, %v712_v48   ;;  %v344_v41 = vld [vmem:[%s12333_s1 + $0x318] sm:$0xff]  ;;  %v531_v48 = vld [vmem:[%s12335_s2 + $0x110] sm:$0xff] }
  0xc4   :  { %v8139_v4 = vpack.c.bf16 %v1269_v1, %v1269_v1  ;;  %v8146_v46 = vpack.c.bf16 %v1276_v43, %v1276_v43  ;;  %v1278_v58 = vsel %vm1152_vm11, %v522_v38, 0.0  ;;  %3955 = vmatpush1.bf16.msra.mxu1 %v8300_v50  ;;  %v714_v3 = vsel %vm462_vm10, 1, %v8474_v0  ;;  %7946 = vmatmul.mubr.msk.bf16.gmra.mxu0 %vm2511_vm5, %v8271_v17  ;;  %v8312_v38 = vld [vmem:[%s12336_s5 + $0xf4] ss:$8 sps:$4 sm:$0xff]   ;;  %v8314_v43 = vld [vmem:[%s12336_s5 + $0xf0] ss:$8 sps:$4 sm:$0xff]  }
  0xc5   :  { %v805_v8 = vpop.permute.xlu0 %804  ;;  %v8148_v61 = vpack.c.bf16 %v1278_v58, %v1278_v58  ;;  %vm463_vm1 = vcmp.gt.f32.partialorder %v337_v57, 0.5  ;;  %2793 = vmatprep.mubr.bf16.mxu0 %v8474_v0  ;;  %vm468_vm10 = vcmp.gt.f32.partialorder %v342_v27, 0.5  ;;  %vm467_vm11 = vcmp.gt.f32.partialorder %v341_v28, 0.5  ;;  %v345_v57 = vld [vmem:[%s12333_s1 + $0x320] sm:$0xff]  ;;  %v538_v27 = vld [vmem:[%s12335_s2 + $0x148] sm:$0xff] }
  0xc6   :  { %1900 = vst.msk [vmem:[#allocation2 + $0x40] sm:$0xf] %vm1883_vm3, %v8139_v4  ;;  %vm1145_vm15 = vcmp.eq.s32.totalorder %v805_v8, 1  ;;  %990 = vperm.xlu0 %8252, %v703_v54   ;;  %1907 = vst.msk [vmem:[#allocation2 + $0x5c] sm:$0xf] %vm1883_vm3, %v8146_v46  ;;  %v524_v54 = vld [vmem:[%s12335_s2 + $0xd8] sm:$0xff]  ;;  %v832_v1 = vpop.permute.xlu1 %831 }
  0xc7   :  { %v1271_v15 = vsel %vm1145_vm15, %v515_v60, 0.0  ;;  %v8302_v60 = vld [vmem:[%s12336_s5 + $0x24] ss:$8 sps:$4 sm:$0xff]   ;;  %v713_v4 = vsel %vm461_vm13, 1, %v8474_v0  ;;  %1909 = vst.msk [vmem:[#allocation2 + $0x64] sm:$0xf] %vm1883_vm3, %v8148_v61  ;;  %1023 = vperm.xlu1 %8253, %v714_v3  }
  0xc8   :  { %v8141_v18 = vpack.c.bf16 %v1271_v15, %v1271_v15  ;;  %3956 = vmatprep.subr.bf16.mxu1 %v8302_v60  ;;  %vm1154_vm14 = vcmp.eq.s32.totalorder %v832_v1, 1  ;;  %v715_v21 = vsel %vm463_vm1, 1, %v8474_v0  ;;  %v8272_v46 = vld [vmem:[#allocation2 + $0x30] sm:$0xff]   ;;  %v719_v50 = vsel %vm467_vm11, 1, %v8474_v0  ;;  %v8318_v58 = vld [vmem:[%s12336_s5 + $0xe0] ss:$8 sps:$4 sm:$0xff]  }
  0xc9   :  { %v811_v23 = vpop.permute.xlu0 %810  ;;  %v1280_v7 = vsel %vm1154_vm14, %v524_v54, 0.0  ;;  %3957 = vmatpush1.bf16.msra.mxu1 %v8304_v63  ;;  %vm470_vm14 = vcmp.gt.f32.partialorder %v344_v41, 0.5  ;;  %v534_v61 = vld [vmem:[%s12335_s2 + $0x128] sm:$0xff]  ;;  %v8273_v12 = vld [vmem:[#allocation2 + $0x38] sm:$0xff]   ;;  %v537_v28 = vld [vmem:[%s12335_s2 + $0x140] sm:$0xff] }
  0xca   :  { %1902 = vst.msk [vmem:[#allocation2 + $0x48] sm:$0xf] %vm1883_vm3, %v8141_v18  ;;  %vm1147_vm2 = vcmp.eq.s32.totalorder %v811_v23, 1  ;;  %996 = vperm.xlu0 %8252, %v705_v11   ;;  %v838_v15 = vpop.permute.xlu1 %837  ;;  %3958 = vmatprep.subr.bf16.mxu1 %v8305_v9  ;;  %v528_v18 = vld [vmem:[%s12335_s2 + $0xf8] sm:$0xff]  ;;  %v722_v63 = vsel %vm470_vm14, 1, %v8474_v0 }
  0xcb   :  { %v1273_v30 = vsel %vm1147_vm2, %v517_v10, 0.0  ;;  %v8150_v10 = vpack.c.bf16 %v1280_v7, %v1280_v7  ;;  %vm1156_vm2 = vcmp.eq.s32.totalorder %v838_v15, 1  ;;  %v348_v7 = vld [vmem:[%s12333_s1 + $0x338] sm:$0xff] }
  0xcc   :  { %v8143_v33 = vpack.c.bf16 %v1273_v30, %v1273_v30  ;;  %v1282_v22 = vsel %vm1156_vm2, %v526_v5, 0.0  ;;  %7947 = vmatmul.mubr.msk.bf16.gmra.mxu0 %vm2511_vm5, %v8272_v46  ;;  %vm472_vm2 = vcmp.gt.f32.partialorder %v346_v56, 0.5  ;;  %v8321_v9 = vld [vmem:[%s12336_s5 + $0xd0] ss:$8 sps:$4 sm:$0xff]  }
  0xcd   :  { %v817_v37 = vpop.permute.xlu0 %816  ;;  %1911 = vst.msk [vmem:[#allocation2 + $0x6c] sm:$0xf] %vm1883_vm3, %v8150_v10  ;;  %3959 = vmatpush1.bf16.msra.mxu1 %v8307_v14  ;;  %v8152_v25 = vpack.c.bf16 %v1282_v22, %v1282_v22  ;;  %2803 = vmatprep.mubr.bf16.mxu0 %v8474_v0  ;;  %v535_v14 = vld [vmem:[%s12335_s2 + $0x130] sm:$0xff]  ;;  %v724_v15 = vsel %vm472_vm2, 1, %v8474_v0  ;;  %v350_v22 = vld [vmem:[%s12333_s1 + $0x348] sm:$0xff]  ;;  %v8274_v41 = vld [vmem:[#allocation2 + $0x40] sm:$0xff]  }
  0xce   :  { %1904 = vst.msk [vmem:[#allocation2 + $0x50] sm:$0xf] %vm1883_vm3, %v8143_v33  ;;  %vm1149_vm9 = vcmp.eq.s32.totalorder %v817_v37, 1  ;;  %1002 = vperm.xlu0 %8252, %v707_v20   ;;  %v716_v20 = vsel %vm464_vm0, 1, %v8474_v0  ;;  %v844_v30 = vpop.permute.xlu1 %843  ;;  %3960 = vmatprep.subr.bf16.mxu1 %v8309_v24  ;;  %v529_v33 = vld [vmem:[%s12335_s2 + $0x100] sm:$0xff]  ;;  %v540_v46 = vld [vmem:[%s12335_s2 + $0x158] sm:$0xff] }
  0xcf   :  { %v1275_v44 = vsel %vm1149_vm9, %v519_v26, 0.0  ;;  %1913 = vst.msk [vmem:[#allocation2 + $0x74] sm:$0xf] %vm1883_vm3, %v8152_v25  ;;  %vm1158_vm8 = vcmp.eq.s32.totalorder %v844_v30, 1  ;;  %1029 = vperm.xlu1 %8253, %v716_v20   ;;  %v8325_v24 = vld [vmem:[%s12336_s5 + $0xc0] ss:$8 sps:$4 sm:$0xff]  }
  0xd0   :  { %v8145_v47 = vpack.c.bf16 %v1275_v44, %v1275_v44  ;;  %v1284_v36 = vsel %vm1158_vm8, %v528_v18, 0.0  ;;  %vm474_vm8 = vcmp.gt.f32.partialorder %v348_v7, 0.5 }
  0xd1   :  { %v823_v52 = vpop.permute.xlu0 %822  ;;  %3961 = vmatpush1.bf16.msra.mxu1 %v8311_v29  ;;  %v726_v29 = vsel %vm474_vm8, 1, %v8474_v0 }
  0xd2   :  { %1906 = vst.msk [vmem:[#allocation2 + $0x58] sm:$0xf] %vm1883_vm3, %v8145_v47  ;;  %vm1151_vm12 = vcmp.eq.s32.totalorder %v823_v52, 1  ;;  %1008 = vperm.xlu0 %8252, %v709_v40   ;;  %v850_v44 = vpop.permute.xlu1 %849  ;;  %3962 = vmatprep.subr.bf16.mxu1 %v8312_v38  ;;  %v532_v47 = vld [vmem:[%s12335_s2 + $0x118] sm:$0xff] }
  0xd3   :  { %v1277_v59 = vsel %vm1151_vm12, %v521_v39, 0.0  ;;  %v8154_v39 = vpack.c.bf16 %v1284_v36, %v1284_v36  ;;  %vm1160_vm12 = vcmp.eq.s32.totalorder %v850_v44, 1  ;;  %1035 = vperm.xlu1 %8253, %v718_v34   ;;  %v352_v36 = vld [vmem:[%s12333_s1 + $0x358] sm:$0xff] }
  0xd4   :  { %v8147_v62 = vpack.c.bf16 %v1277_v59, %v1277_v59  ;;  %v1286_v51 = vsel %vm1160_vm12, %v530_v32, 0.0  ;;  %7948 = vmatmul.mubr.msk.bf16.gmra.mxu0 %vm2511_vm5, %v8273_v12  ;;  %vm476_vm12 = vcmp.gt.f32.partialorder %v350_v22, 0.5  ;;  %v8328_v38 = vld [vmem:[%s12336_s5 + $0xb0] ss:$8 sps:$4 sm:$0xff]  }
  0xd5   :  { %v829_v2 = vpop.permute.xlu0 %828  ;;  %1915 = vst.msk [vmem:[#allocation2 + $0x7c] sm:$0xf] %vm1883_vm3, %v8154_v39  ;;  %3963 = vmatpush2.bf16.msra.mxu1 %v8314_v43  ;;  %v8156_v54 = vpack.c.bf16 %v1286_v51, %v1286_v51  ;;  %2813 = vmatprep.mubr.bf16.mxu0 %v8474_v0  ;;  %v353_v51 = vld [vmem:[%s12333_s1 + $0x360] sm:$0xff]  ;;  %v544_v12 = vld [vmem:[%s12335_s2 + $0x178] sm:$0xff] }
  0xd6   :  { %1908 = vst.msk [vmem:[#allocation2 + $0x60] sm:$0xf] %vm1883_vm3, %v8147_v62  ;;  %vm1153_vm15 = vcmp.eq.s32.totalorder %v829_v2, 1  ;;  %1014 = vperm.xlu0 %8252, %v711_v49   ;;  %v720_v49 = vsel %vm468_vm10, 1, %v8474_v0  ;;  %v856_v59 = vpop.permute.xlu1 %855  ;;  %3964 = vmatprep.subr.bf16.mxu1 %v8316_v53  ;;  %v533_v62 = vld [vmem:[%s12335_s2 + $0x120] sm:$0xff] }
  0xd7   :  { %v1279_v8 = vsel %vm1153_vm15, %v523_v55, 0.0  ;;  %vm469_vm15 = vcmp.gt.f32.partialorder %v343_v42, 0.5  ;;  %1917 = vst.msk [vmem:[#allocation2 + $0x84] sm:$0xf] %vm1883_vm3, %v8156_v54  ;;  %vm1162_vm0 = vcmp.eq.s32.totalorder %v856_v59, 1  ;;  %1041 = vperm.xlu1 %8253, %v720_v49   ;;  %v728_v42 = vsel %vm476_vm12, 1, %v8474_v0 }
  0xd8   :  { %v8149_v11 = vpack.c.bf16 %v1279_v8, %v1279_v8  ;;  %v721_v1 = vsel %vm469_vm15, 1, %v8474_v0  ;;  %v1288_v2 = vsel %vm1162_vm0, %v532_v47, 0.0  ;;  %v347_v8 = vld [vmem:[%s12333_s1 + $0x330] sm:$0xff]  ;;  %vm478_vm0 = vcmp.gt.f32.partialorder %v352_v36, 0.5 }
  0xd9   :  { %v835_v16 = vpop.permute.xlu0 %834  ;;  %3965 = vmatpush2.bf16.msra.mxu1 %v8318_v58  ;;  %v8158_v5 = vpack.c.bf16 %v1288_v2, %v1288_v2  ;;  %v539_v47 = vld [vmem:[%s12335_s2 + $0x150] sm:$0xff] }
  0xda   :  { %1910 = vst.msk [vmem:[#allocation2 + $0x68] sm:$0xf] %vm1883_vm3, %v8149_v11  ;;  %vm1155_vm4 = vcmp.eq.s32.totalorder %v835_v16, 1  ;;  %1020 = vperm.xlu0 %8252, %v713_v4   ;;  %v8319_v4 = vld [vmem:[%s12336_s5 + $0xd4] ss:$8 sps:$4 sm:$0xff]   ;;  %v862_v10 = vpop.permute.xlu1 %861 }
  0xdb   :  { %v1281_v23 = vsel %vm1155_vm4, %v525_v6, 0.0  ;;  %vm471_vm4 = vcmp.gt.f32.partialorder %v345_v57, 0.5  ;;  %3966 = vmatprep.subr.bf16.mxu1 %v8319_v4  ;;  %1919 = vst.msk [vmem:[#allocation2 + $0x8c] sm:$0xf] %vm1883_vm3, %v8158_v5  ;;  %vm1164_vm6 = vcmp.eq.s32.totalorder %v862_v10, 1  ;;  %1047 = vperm.xlu1 %8253, %v722_v63   ;;  %v355_v2 = vld [vmem:[%s12333_s1 + $0x370] sm:$0xff] }
  0xdc   :  { %v8151_v26 = vpack.c.bf16 %v1281_v23, %v1281_v23  ;;  %v723_v16 = vsel %vm471_vm4, 1, %v8474_v0  ;;  %v1290_v17 = vsel %vm1164_vm6, %v534_v61, 0.0  ;;  %v349_v23 = vld [vmem:[%s12333_s1 + $0x340] sm:$0xff]  ;;  %7949 = vmatmul.mubr.msk.bf16.gmra.mxu0 %vm2511_vm5, %v8274_v41 }
  0xdd   :  { %v841_v31 = vpop.permute.xlu0 %840  ;;  %3967 = vmatpush2.bf16.msra.mxu1 %v8321_v9  ;;  %v8160_v20 = vpack.c.bf16 %v1290_v17, %v1290_v17  ;;  %2823 = vmatprep.mubr.bf16.mxu0 %v8474_v0  ;;  %v8332_v57 = vld [vmem:[%s12336_s5 + $0xa0] ss:$8 sps:$4 sm:$0xff]   ;;  %v8335_v9 = vld [vmem:[%s12336_s5 + $0x90] ss:$8 sps:$4 sm:$0xff]  }
  0xde   :  { %1912 = vst.msk [vmem:[#allocation2 + $0x70] sm:$0xf] %vm1883_vm3, %v8151_v26  ;;  %vm1157_vm9 = vcmp.eq.s32.totalorder %v841_v31, 1  ;;  %1026 = vperm.xlu0 %8252, %v715_v21   ;;  %v868_v25 = vpop.permute.xlu1 %867  ;;  %v541_v61 = vld [vmem:[%s12335_s2 + $0x160] sm:$0xff] }
  0xdf   :  { %v1283_v37 = vsel %vm1157_vm9, %v527_v19, 0.0  ;;  %vm473_vm9 = vcmp.gt.f32.partialorder %v347_v8, 0.5  ;;  %v8323_v19 = vld [vmem:[%s12336_s5 + $0xc4] ss:$8 sps:$4 sm:$0xff]   ;;  %1921 = vst.msk [vmem:[#allocation2 + $0x94] sm:$0xf] %vm1883_vm3, %v8160_v20  ;;  %1053 = vperm.xlu1 %8253, %v724_v15  }
  0xe0   :  { %v8153_v40 = vpack.c.bf16 %v1283_v37, %v1283_v37  ;;  %3968 = vmatprep.subr.bf16.mxu1 %v8323_v19  ;;  %vm1166_vm10 = vcmp.eq.s32.totalorder %v868_v25, 1  ;;  %v725_v30 = vsel %vm473_vm9, 1, %v8474_v0  ;;  %v351_v37 = vld [vmem:[%s12333_s1 + $0x350] sm:$0xff]  ;;  %v357_v17 = vld [vmem:[%s12333_s1 + $0x380] sm:$0xff] }
  0xe1   :  { %v847_v45 = vpop.permute.xlu0 %846  ;;  %v1292_v31 = vsel %vm1166_vm10, %v536_v13, 0.0  ;;  %3969 = vmatpush2.bf16.msra.mxu1 %v8325_v24  ;;  %v543_v13 = vld [vmem:[%s12335_s2 + $0x170] sm:$0xff] }
  0xe2   :  { %1914 = vst.msk [vmem:[#allocation2 + $0x78] sm:$0xf] %vm1883_vm3, %v8153_v40  ;;  %vm1159_vm13 = vcmp.eq.s32.totalorder %v847_v45, 1  ;;  %1032 = vperm.xlu0 %8252, %v717_v35   ;;  %v8162_v34 = vpack.c.bf16 %v1292_v31, %v1292_v31  ;;  %v874_v39 = vpop.permute.xlu1 %873  ;;  %v359_v31 = vld [vmem:[%s12333_s1 + $0x390] sm:$0xff] }
  0xe3   :  { %v1285_v52 = vsel %vm1159_vm13, %v529_v33, 0.0  ;;  %vm475_vm13 = vcmp.gt.f32.partialorder %v349_v23, 0.5  ;;  %v8326_v33 = vld [vmem:[%s12336_s5 + $0xb4] ss:$8 sps:$4 sm:$0xff]   ;;  %vm1168_vm14 = vcmp.eq.s32.totalorder %v874_v39, 1  ;;  %1059 = vperm.xlu1 %8253, %v726_v29   ;;  %v545_v29 = vld [vmem:[%s12335_s2 + $0x180] sm:$0xff] }
  0xe4   :  { %v8155_v55 = vpack.c.bf16 %v1285_v52, %v1285_v52  ;;  %3970 = vmatprep.subr.bf16.mxu1 %v8326_v33  ;;  %1923 = vst.msk [vmem:[#allocation2 + $0x9c] sm:$0xf] %vm1883_vm3, %v8162_v34  ;;  %v727_v43 = vsel %vm475_vm13, 1, %v8474_v0  ;;  %v1294_v44 = vsel %vm1168_vm14, %v538_v27, 0.0  ;;  %v8330_v52 = vld [vmem:[%s12336_s5 + $0xa4] ss:$8 sps:$4 sm:$0xff]  }
  0xe5   :  { %v853_v60 = vpop.permute.xlu0 %852  ;;  %3971 = vmatpush2.bf16.msra.mxu1 %v8328_v38  ;;  %v8339_v23 = vld [vmem:[%s12336_s5 + $0x80] ss:$8 sps:$4 sm:$0xff]   ;;  %v8276_v34 = vld [vmem:[#allocation2 + $0x50] sm:$0xff]   ;;  %v548_v39 = vld [vmem:[%s12335_s2 + $0x198] sm:$0xff] }
  0xe6   :  { %1916 = vst.msk [vmem:[#allocation2 + $0x80] sm:$0xf] %vm1883_vm3, %v8155_v55  ;;  %vm1161_vm1 = vcmp.eq.s32.totalorder %v853_v60, 1  ;;  %1038 = vperm.xlu0 %8252, %v719_v50   ;;  %v354_v50 = vld [vmem:[%s12333_s1 + $0x368] sm:$0xff]  ;;  %v880_v53 = vpop.permute.xlu1 %879  ;;  %v730_v55 = vsel %vm478_vm0, 1, %v8474_v0  ;;  %3972 = vmatprep.subr.bf16.mxu1 %v8330_v52 }
  0xe7   :  { %v1287_v3 = vsel %vm1161_vm1, %v531_v48, 0.0  ;;  %vm477_vm1 = vcmp.gt.f32.partialorder %v351_v37, 0.5  ;;  %v8164_v48 = vpack.c.bf16 %v1294_v44, %v1294_v44  ;;  %vm1170_vm2 = vcmp.eq.s32.totalorder %v880_v53, 1  ;;  %1065 = vperm.xlu1 %8253, %v728_v42   ;;  %v542_v60 = vld [vmem:[%s12335_s2 + $0x168] sm:$0xff]  ;;  %v547_v42 = vld [vmem:[%s12335_s2 + $0x190] sm:$0xff]  ;;  %v361_v44 = vld [vmem:[%s12333_s1 + $0x3a0] sm:$0xff] }
  0xe8   :  { %v8157_v6 = vpack.c.bf16 %v1287_v3, %v1287_v3  ;;  %v729_v56 = vsel %vm477_vm1, 1, %v8474_v0  ;;  %v1296_v58 = vsel %vm1170_vm2, %v540_v46, 0.0  ;;  %vm480_vm6 = vcmp.gt.f32.partialorder %v354_v50, 0.5  ;;  %v8333_v3 = vld [vmem:[%s12336_s5 + $0x94] ss:$8 sps:$4 sm:$0xff]  }
  0xe9   :  { %v859_v11 = vpop.permute.xlu0 %858  ;;  %1925 = vst.msk [vmem:[#allocation2 + $0xa4] sm:$0xf] %vm1883_vm3, %v8164_v48  ;;  %3973 = vmatpush2.bf16.msra.mxu1 %v8332_v57  ;;  %v732_v7 = vsel %vm480_vm6, 1, %v8474_v0 }
  0xea   :  { %1918 = vst.msk [vmem:[#allocation2 + $0x88] sm:$0xf] %vm1883_vm3, %v8157_v6  ;;  %vm1163_vm7 = vcmp.eq.s32.totalorder %v859_v11, 1  ;;  %1044 = vperm.xlu0 %8252, %v721_v1   ;;  %v356_v1 = vld [vmem:[%s12333_s1 + $0x378] sm:$0xff]  ;;  %v886_v4 = vpop.permute.xlu1 %885  ;;  %v8275_v6 = vld [vmem:[#allocation2 + $0x48] sm:$0xff]   ;;  %3974 = vmatprep.subr.bf16.mxu1 %v8333_v3 }
  0xeb   :  { %v1289_v18 = vsel %vm1163_vm7, %v533_v62, 0.0  ;;  %vm479_vm7 = vcmp.gt.f32.partialorder %v353_v51, 0.5  ;;  %v8166_v62 = vpack.c.bf16 %v1296_v58, %v1296_v58  ;;  %vm1172_vm8 = vcmp.eq.s32.totalorder %v886_v4, 1  ;;  %1071 = vperm.xlu1 %8253, %v730_v55   ;;  %7950 = vmatmul.mubr.msk.bf16.gmra.mxu0 %vm2511_vm5, %v8275_v6  ;;  %v550_v51 = vld [vmem:[%s12335_s2 + $0x1a8] sm:$0xff]  ;;  %v364_v55 = vld [vmem:[%s12333_s1 + $0x3b8] sm:$0xff]  ;;  %v551_v4 = vld [vmem:[%s12335_s2 + $0x1b0] sm:$0xff] }
  0xec   :  { %v8159_v21 = vpack.c.bf16 %v1289_v18, %v1289_v18  ;;  %v731_v8 = vsel %vm479_vm7, 1, %v8474_v0  ;;  %v1298_v10 = vsel %vm1172_vm8, %v542_v60, 0.0  ;;  %vm482_vm10 = vcmp.gt.f32.partialorder %v356_v1, 0.5  ;;  %2833 = vmatprep.mubr.bf16.mxu0 %v8474_v0  ;;  %v8337_v18 = vld [vmem:[%s12336_s5 + $0x84] ss:$8 sps:$4 sm:$0xff]   ;;  %v552_v1 = vld [vmem:[%s12335_s2 + $0x1b8] sm:$0xff] }
  0xed   :  { %v865_v26 = vpop.permute.xlu0 %864  ;;  %1927 = vst.msk [vmem:[#allocation2 + $0xac] sm:$0xf] %vm1883_vm3, %v8166_v62  ;;  %3975 = vmatpush2.bf16.msra.mxu1 %v8335_v9  ;;  %v365_v6 = vld [vmem:[%s12333_s1 + $0x3c0] sm:$0xff] }
  0xee   :  { %1920 = vst.msk [vmem:[#allocation2 + $0x90] sm:$0xf] %vm1883_vm3, %v8159_v21  ;;  %vm1165_vm11 = vcmp.eq.s32.totalorder %v865_v26, 1  ;;  %1050 = vperm.xlu0 %8252, %v723_v16   ;;  %v358_v16 = vld [vmem:[%s12333_s1 + $0x388] sm:$0xff]  ;;  %v892_v19 = vpop.permute.xlu1 %891  ;;  %v734_v21 = vsel %vm482_vm10, 1, %v8474_v0  ;;  %3976 = vmatprep.subr.bf16.mxu1 %v8337_v18  ;;  %v367_v18 = vld [vmem:[%s12333_s1 + $0x3d0] sm:$0xff] }
  0xef   :  { %v1291_v32 = vsel %vm1165_vm11, %v535_v14, 0.0  ;;  %vm481_vm11 = vcmp.gt.f32.partialorder %v355_v2, 0.5  ;;  %v8168_v14 = vpack.c.bf16 %v1298_v10, %v1298_v10  ;;  %vm1174_vm12 = vcmp.eq.s32.totalorder %v892_v19, 1  ;;  %1077 = vperm.xlu1 %8253, %v732_v7   ;;  %v546_v26 = vld [vmem:[%s12335_s2 + $0x188] sm:$0xff] }
  0xf0   :  { %v8161_v35 = vpack.c.bf16 %v1291_v32, %v1291_v32  ;;  %v733_v22 = vsel %vm481_vm11, 1, %v8474_v0  ;;  %v1300_v24 = vsel %vm1174_vm12, %v544_v12, 0.0  ;;  %vm484_vm14 = vcmp.gt.f32.partialorder %v358_v16, 0.5  ;;  %v553_v16 = vld [vmem:[%s12335_s2 + $0x1c0] sm:$0xff] }
  0xf1   :  { %v871_v40 = vpop.permute.xlu0 %870  ;;  %1929 = vst.msk [vmem:[#allocation2 + $0xb4] sm:$0xf] %vm1883_vm3, %v8168_v14  ;;  %v8170_v27 = vpack.c.bf16 %v1300_v24, %v1300_v24  ;;  %3977 = vmatpush2.bf16.msra.mxu1 %v8339_v23  ;;  %vm490_vm12 = vcmp.gt.f32.partialorder %v364_v55, 0.5 }
  0xf2   :  { %1922 = vst.msk [vmem:[#allocation2 + $0x98] sm:$0xf] %vm1883_vm3, %v8161_v35  ;;  %vm1167_vm15 = vcmp.eq.s32.totalorder %v871_v40, 1  ;;  %1056 = vperm.xlu0 %8252, %v725_v30   ;;  %v360_v30 = vld [vmem:[%s12333_s1 + $0x398] sm:$0xff]  ;;  %v898_v32 = vpop.permute.xlu1 %897  ;;  %v736_v35 = vsel %vm484_vm14, 1, %v8474_v0  ;;  %v742_v9 = vsel %vm490_vm12, 1, %v8474_v0 }
  0xf3   :  { %v1293_v45 = vsel %vm1167_vm15, %v537_v28, 0.0  ;;  %vm483_vm15 = vcmp.gt.f32.partialorder %v357_v17, 0.5  ;;  %1931 = vst.msk [vmem:[#allocation2 + $0xbc] sm:$0xf] %vm1883_vm3, %v8170_v27  ;;  %vm1176_vm0 = vcmp.eq.s32.totalorder %v898_v32, 1  ;;  %1083 = vperm.xlu1 %8253, %v734_v21   ;;  %7951 = vmatmul.mubr.msk.bf16.gmra.mxu0 %vm2511_vm5, %v8276_v34  ;;  %vm486_vm2 = vcmp.gt.f32.partialorder %v360_v30, 0.5 }
  0xf4   :  { %v8163_v49 = vpack.c.bf16 %v1293_v45, %v1293_v45  ;;  %v735_v36 = vsel %vm483_vm15, 1, %v8474_v0  ;;  %v1302_v37 = vsel %vm1176_vm0, %v546_v26, 0.0  ;;  %2843 = vmatprep.mubr.bf16.mxu0 %v8474_v0  ;;  %v368_v17 = vld [vmem:[%s12333_s1 + $0x3d8] sm:$0xff]  ;;  %v8278_v21 = vld [vmem:[#allocation2 + $0x60] sm:$0xff]   ;;  %v370_v30 = vld [vmem:[%s12333_s1 + $0x3e8] sm:$0xff] }
  0xf5   :  { %v877_v54 = vpop.permute.xlu0 %876  ;;  %v8172_v40 = vpack.c.bf16 %v1302_v37, %v1302_v37 }
  0xf6   :  { %1924 = vst.msk [vmem:[#allocation2 + $0xa0] sm:$0xf] %vm1883_vm3, %v8163_v49  ;;  %vm1169_vm4 = vcmp.eq.s32.totalorder %v877_v54, 1  ;;  %1062 = vperm.xlu0 %8252, %v727_v43   ;;  %v362_v43 = vld [vmem:[%s12333_s1 + $0x3a8] sm:$0xff]  ;;  %v904_v45 = vpop.permute.xlu1 %903  ;;  %v549_v54 = vld [vmem:[%s12335_s2 + $0x1a0] sm:$0xff] }
  0xf7   :  { %v1295_v59 = vsel %vm1169_vm4, %v539_v47, 0.0  ;;  %vm485_vm4 = vcmp.gt.f32.partialorder %v359_v31, 0.5  ;;  %1933 = vst.msk [vmem:[#allocation2 + $0xc4] sm:$0xf] %vm1883_vm3, %v8172_v40  ;;  %vm1178_vm6 = vcmp.eq.s32.totalorder %v904_v45, 1  ;;  %1089 = vperm.xlu1 %8253, %v736_v35   ;;  %v738_v47 = vsel %vm486_vm2, 1, %v8474_v0 }
  0xf8   :  { %v8165_v63 = vpack.c.bf16 %v1295_v59, %v1295_v59  ;;  %v737_v48 = vsel %vm485_vm4, 1, %v8474_v0  ;;  %v1304_v49 = vsel %vm1178_vm6, %v548_v39, 0.0  ;;  %vm488_vm8 = vcmp.gt.f32.partialorder %v362_v43, 0.5  ;;  %v8277_v59 = vld [vmem:[#allocation2 + $0x58] sm:$0xff]  }
  0xf9   :  { %v883_v5 = vpop.permute.xlu0 %882  ;;  %v8174_v52 = vpack.c.bf16 %v1304_v49, %v1304_v49  ;;  %v740_v60 = vsel %vm488_vm8, 1, %v8474_v0  ;;  %vm494_vm6 = vcmp.gt.f32.partialorder %v368_v17, 0.5  ;;  %v8344_v43 = vld [vmem:[%s12337_s7 + $0x74] ss:$8 sps:$4 sm:$0xff]  }
  0xfa   :  { %1926 = vst.msk [vmem:[#allocation2 + $0xa8] sm:$0xf] %vm1883_vm3, %v8165_v63  ;;  %vm1171_vm9 = vcmp.eq.s32.totalorder %v883_v5, 1  ;;  %1068 = vperm.xlu0 %8252, %v729_v56   ;;  %v363_v56 = vld [vmem:[%s12333_s1 + $0x3b0] sm:$0xff]  ;;  %v910_v57 = vpop.permute.xlu1 %909  ;;  %v366_v5 = vld [vmem:[%s12333_s1 + $0x3c8] sm:$0xff]  ;;  %v746_v34 = vsel %vm494_vm6, 1, %v8474_v0  ;;  %5191 = vmatprep.subr.bf16.mxu0 %v8344_v43 }
  0xfb   :  { %v1297_v11 = vsel %vm1171_vm9, %v541_v61, 0.0  ;;  %vm487_vm9 = vcmp.gt.f32.partialorder %v361_v44, 0.5  ;;  %1935 = vst.msk [vmem:[#allocation2 + $0xcc] sm:$0xf] %vm1883_vm3, %v8174_v52  ;;  %vm1180_vm10 = vcmp.eq.s32.totalorder %v910_v57, 1  ;;  %1095 = vperm.xlu1 %8253, %v738_v47   ;;  %7952 = vmatmul.mubr.msk.bf16.gmra.mxu0 %vm2511_vm5, %v8277_v59  ;;  %vm492_vm0 = vcmp.gt.f32.partialorder %v366_v5, 0.5 }
  0xfc   :  { %v8167_v15 = vpack.c.bf16 %v1297_v11, %v1297_v11  ;;  %v739_v61 = vsel %vm487_vm9, 1, %v8474_v0  ;;  %v1306_v62 = vsel %vm1180_vm10, %v550_v51, 0.0  ;;  %2853 = vmatprep.mubr.bf16.mxu0 %v8474_v0  ;;  %vm496_vm10 = vcmp.gt.f32.partialorder %v370_v30, 0.5  ;;  %v562_v57 = vld [vmem:[%s12335_s2 + $0x208] sm:$0xff] }
  0xfd   :  { %v889_v20 = vpop.permute.xlu0 %888  ;;  %v8176_v2 = vpack.c.bf16 %v1306_v62, %v1306_v62  ;;  %v748_v47 = vsel %vm496_vm10, 1, %v8474_v0 }
  0xfe   :  { %1928 = vst.msk [vmem:[#allocation2 + $0xb0] sm:$0xf] %vm1883_vm3, %v8167_v15  ;;  %vm1173_vm13 = vcmp.eq.s32.totalorder %v889_v20, 1  ;;  %1074 = vperm.xlu0 %8252, %v731_v8   ;;  %v916_v7 = vpop.permute.xlu1 %915 }
  0xff   :  { %v1299_v25 = vsel %vm1173_vm13, %v543_v13, 0.0  ;;  %vm489_vm13 = vcmp.gt.f32.partialorder %v363_v56, 0.5  ;;  %1937 = vst.msk [vmem:[#allocation2 + $0xd4] sm:$0xf] %vm1883_vm3, %v8176_v2  ;;  %vm1182_vm14 = vcmp.eq.s32.totalorder %v916_v7, 1  ;;  %1101 = vperm.xlu1 %8253, %v740_v60   ;;  %v554_v13 = vld [vmem:[%s12335_s2 + $0x1c8] sm:$0xff] }
 0x100   :  { %v8169_v28 = vpack.c.bf16 %v1299_v25, %v1299_v25  ;;  %v741_v10 = vsel %vm489_vm13, 1, %v8474_v0  ;;  %v1308_v11 = vsel %vm1182_vm14, %v552_v1, 0.0  ;;  %v8280_v2 = vld [vmem:[#allocation2 + $0x70] sm:$0xff]  }
 0x101   :  { %v895_v33 = vpop.permute.xlu0 %894  ;;  %v8178_v14 = vpack.c.bf16 %v1308_v11, %v1308_v11 }
 0x102   :  { %1930 = vst.msk [vmem:[#allocation2 + $0xb8] sm:$0xf] %vm1883_vm3, %v8169_v28  ;;  %vm1175_vm1 = vcmp.eq.s32.totalorder %v895_v33, 1  ;;  %1080 = vperm.xlu0 %8252, %v733_v22   ;;  %v922_v19 = vpop.permute.xlu1 %921  ;;  %v744_v22 = vsel %vm492_vm0, 1, %v8474_v0  ;;  %v556_v28 = vld [vmem:[%s12335_s2 + $0x1d8] sm:$0xff]  ;;  %v369_v33 = vld [vmem:[%s12333_s1 + $0x3e0] sm:$0xff] }
 0x103   :  { %v1301_v38 = vsel %vm1175_vm1, %v545_v29, 0.0  ;;  %vm491_vm1 = vcmp.gt.f32.partialorder %v365_v6, 0.5  ;;  %1939 = vst.msk [vmem:[#allocation2 + $0xdc] sm:$0xf] %vm1883_vm3, %v8178_v14  ;;  %vm1184_vm2 = vcmp.eq.s32.totalorder %v922_v19, 1  ;;  %1107 = vperm.xlu1 %8253, %v742_v9   ;;  %7953 = vmatmul.mubr.msk.bf16.gmra.mxu0 %vm2511_vm5, %v8278_v21  ;;  %v555_v29 = vld [vmem:[%s12335_s2 + $0x1d0] sm:$0xff] }
 0x104   :  { %v8171_v41 = vpack.c.bf16 %v1301_v38, %v1301_v38  ;;  %v743_v23 = vsel %vm491_vm1, 1, %v8474_v0  ;;  %v1310_v24 = vsel %vm1184_vm2, %v554_v13, 0.0  ;;  %2863 = vmatprep.mubr.bf16.mxu0 %v8474_v0  ;;  %v558_v38 = vld [vmem:[%s12335_s2 + $0x1e8] sm:$0xff]  ;;  %v8281_v19 = vld [vmem:[#allocation2 + $0x78] sm:$0xff]  }
 0x105   :  { %v901_v46 = vpop.permute.xlu0 %900  ;;  %v8180_v26 = vpack.c.bf16 %v1310_v24, %v1310_v24  ;;  %v568_v24 = vld [vmem:[%s12335_s2 + $0x238] sm:$0xff] }
 0x106   :  { %1932 = vst.msk [vmem:[#allocation2 + $0xc0] sm:$0xf] %vm1883_vm3, %v8171_v41  ;;  %vm1177_vm7 = vcmp.eq.s32.totalorder %v901_v46, 1  ;;  %1086 = vperm.xlu0 %8252, %v735_v36   ;;  %v928_v31 = vpop.permute.xlu1 %927  ;;  %v557_v41 = vld [vmem:[%s12335_s2 + $0x1e0] sm:$0xff]  ;;  %v8279_v46 = vld [vmem:[#allocation2 + $0x68] sm:$0xff]  }
 0x107   :  { %v1303_v50 = vsel %vm1177_vm7, %v547_v42, 0.0  ;;  %vm493_vm7 = vcmp.gt.f32.partialorder %v367_v18, 0.5  ;;  %1941 = vst.msk [vmem:[#allocation2 + $0xe4] sm:$0xf] %vm1883_vm3, %v8180_v26  ;;  %vm1186_vm8 = vcmp.eq.s32.totalorder %v928_v31, 1  ;;  %1113 = vperm.xlu1 %8253, %v744_v22  }
 0x108   :  { %v8173_v53 = vpack.c.bf16 %v1303_v50, %v1303_v50  ;;  %v745_v35 = vsel %vm493_vm7, 1, %v8474_v0  ;;  %v1312_v36 = vsel %vm1186_vm8, %v556_v28, 0.0  ;;  %v8342_v42 = vld [vmem:[%s12337_s7 + $0x70] ss:$8 sps:$4 sm:$0xff]  }
 0x109   :  { %v907_v58 = vpop.permute.xlu0 %906  ;;  %v8182_v39 = vpack.c.bf16 %v1312_v36, %v1312_v36  ;;  %5192 = vmatpush1.bf16.msra.mxu0 %v8342_v42  ;;  %v8282_v36 = vld [vmem:[#allocation2 + $0x80] sm:$0xff]   ;;  %v571_v42 = vld [vmem:[%s12335_s2 + $0x250] sm:$0xff] }
 0x10a   :  { %1934 = vst.msk [vmem:[#allocation2 + $0xc8] sm:$0xf] %vm1883_vm3, %v8173_v53  ;;  %vm1179_vm11 = vcmp.eq.s32.totalorder %v907_v58, 1  ;;  %1092 = vperm.xlu0 %8252, %v737_v48   ;;  %v934_v44 = vpop.permute.xlu1 %933  ;;  %v560_v53 = vld [vmem:[%s12335_s2 + $0x1f8] sm:$0xff]  ;;  %v561_v58 = vld [vmem:[%s12335_s2 + $0x200] sm:$0xff] }
 0x10b   :  { %v1305_v63 = vsel %vm1179_vm11, %v549_v54, 0.0  ;;  %vm495_vm11 = vcmp.gt.f32.partialorder %v369_v33, 0.5  ;;  %1943 = vst.msk [vmem:[#allocation2 + $0xec] sm:$0xf] %vm1883_vm3, %v8182_v39  ;;  %vm1188_vm12 = vcmp.eq.s32.totalorder %v934_v44, 1  ;;  %1119 = vperm.xlu1 %8253, %v746_v34   ;;  %7954 = vmatmul.mubr.msk.bf16.gmra.mxu0 %vm2511_vm5, %v8279_v46  ;;  %v559_v54 = vld [vmem:[%s12335_s2 + $0x1f0] sm:$0xff] }
 0x10c   :  { %v8175_v3 = vpack.c.bf16 %v1305_v63, %v1305_v63  ;;  %v1314_v48 = vsel %vm1188_vm12, %v558_v38, 0.0  ;;  %v747_v50 = vsel %vm495_vm11, 1, %v8474_v0  ;;  %2873 = vmatprep.mubr.bf16.mxu0 %v8474_v0  ;;  %v569_v33 = vld [vmem:[%s12335_s2 + $0x240] sm:$0xff] }
 0x10d   :  { %v913_v8 = vpop.permute.xlu0 %912  ;;  %v8184_v51 = vpack.c.bf16 %v1314_v48, %v1314_v48  ;;  %v8351_v46 = vld [vmem:[%s12337_s7 + $0x64] ss:$8 sps:$4 sm:$0xff]  }
 0x10e   :  { %1936 = vst.msk [vmem:[#allocation2 + $0xd0] sm:$0xf] %vm1883_vm3, %v8175_v3  ;;  %vm1181_vm15 = vcmp.eq.s32.totalorder %v913_v8, 1  ;;  %1098 = vperm.xlu0 %8252, %v739_v61   ;;  %v940_v55 = vpop.permute.xlu1 %939  ;;  %v564_v3 = vld [vmem:[%s12335_s2 + $0x218] sm:$0xff]  ;;  %5193 = vmatprep.subr.bf16.mxu0 %v8351_v46 }
 0x10f   :  { %v1307_v12 = vsel %vm1181_vm15, %v551_v4, 0.0  ;;  %1945 = vst.msk [vmem:[#allocation2 + $0xf4] sm:$0xf] %vm1883_vm3, %v8184_v51  ;;  %vm1190_vm14 = vcmp.eq.s32.totalorder %v940_v55, 1  ;;  %1125 = vperm.xlu1 %8253, %v748_v47   ;;  %v563_v4 = vld [vmem:[%s12335_s2 + $0x210] sm:$0xff]  ;;  %v574_v51 = vld [vmem:[%s12335_s2 + $0x268] sm:$0xff] }
 0x110   :  { %v8177_v15 = vpack.c.bf16 %v1307_v12, %v1307_v12  ;;  %v1316_v59 = vsel %vm1190_vm14, %v560_v53, 0.0  ;;  %v8283_v55 = vld [vmem:[#allocation2 + $0x88] sm:$0xff]  }
 0x111   :  { %v919_v20 = vpop.permute.xlu0 %918  ;;  %v8186_v61 = vpack.c.bf16 %v1316_v59, %v1316_v59 }
 0x112   :  { %1938 = vst.msk [vmem:[#allocation2 + $0xd8] sm:$0xf] %vm1883_vm3, %v8177_v15  ;;  %vm1183_vm4 = vcmp.eq.s32.totalorder %v919_v20, 1  ;;  %1104 = vperm.xlu0 %8252, %v741_v10   ;;  %v946_v63 = vpop.permute.xlu1 %945  ;;  %v566_v15 = vld [vmem:[%s12335_s2 + $0x228] sm:$0xff] }
 0x113   :  { %v1309_v25 = vsel %vm1183_vm4, %v553_v16, 0.0  ;;  %1947 = vst.msk [vmem:[#allocation2 + $0xfc] sm:$0xf] %vm1883_vm3, %v8186_v61  ;;  %vm1192_vm0 = vcmp.eq.s32.totalorder %v946_v63, 1  ;;  %7955 = vmatmul.mubr.msk.bf16.gmra.mxu0 %vm2511_vm5, %v8280_v2  ;;  %v565_v16 = vld [vmem:[%s12335_s2 + $0x220] sm:$0xff]  ;;  %v575_v61 = vld [vmem:[%s12335_s2 + $0x270] sm:$0xff] }
 0x114   :  { %v8179_v27 = vpack.c.bf16 %v1309_v25, %v1309_v25  ;;  %v1318_v5 = vsel %vm1192_vm0, %v562_v57, 0.0  ;;  %2883 = vmatprep.mubr.bf16.mxu0 %v8474_v0  ;;  %v567_v25 = vld [vmem:[%s12335_s2 + $0x230] sm:$0xff] }
 0x115   :  { %v925_v32 = vpop.permute.xlu0 %924  ;;  %v8188_v7 = vpack.c.bf16 %v1318_v5, %v1318_v5  ;;  %v578_v5 = vld [vmem:[%s12335_s2 + $0x288] sm:$0xff] }
 0x116   :  { %1940 = vst.msk [vmem:[#allocation2 + $0xe0] sm:$0xf] %vm1883_vm3, %v8179_v27  ;;  %vm1185_vm9 = vcmp.eq.s32.totalorder %v925_v32, 1  ;;  %1110 = vperm.xlu0 %8252, %v743_v23   ;;  %v952_v9 = vpop.permute.xlu1 %951  ;;  %v570_v32 = vld [vmem:[%s12335_s2 + $0x248] sm:$0xff] }
 0x117   :  { %v1311_v37 = vsel %vm1185_vm9, %v555_v29, 0.0  ;;  %1949 = vst.msk [vmem:[#allocation2 + $0x104] sm:$0xf] %vm1883_vm3, %v8188_v7  ;;  %vm1194_vm2 = vcmp.eq.s32.totalorder %v952_v9, 1  ;;  %v8287_v9 = vld [vmem:[#allocation2 + $0x90] sm:$0xff]  }
 0x118   :  { %v8181_v40 = vpack.c.bf16 %v1311_v37, %v1311_v37  ;;  %v1320_v11 = vsel %vm1194_vm2, %v564_v3, 0.0 }
 0x119   :  { %v931_v45 = vpop.permute.xlu0 %930  ;;  %v8190_v13 = vpack.c.bf16 %v1320_v11, %v1320_v11 }
 0x11a   :  { %1942 = vst.msk [vmem:[#allocation2 + $0xe8] sm:$0xf] %vm1883_vm3, %v8181_v40  ;;  %vm1187_vm13 = vcmp.eq.s32.totalorder %v931_v45, 1  ;;  %1116 = vperm.xlu0 %8252, %v745_v35   ;;  %v958_v17 = vpop.permute.xlu1 %957  ;;  %v8349_v45 = vld [vmem:[%s12337_s7 + $0x60] ss:$8 sps:$4 sm:$0xff]  }
 0x11b   :  { %v1313_v49 = vsel %vm1187_vm13, %v557_v41, 0.0  ;;  %1951 = vst.msk [vmem:[#allocation2 + $0x10c] sm:$0xf] %vm1883_vm3, %v8190_v13  ;;  %vm1196_vm6 = vcmp.eq.s32.totalorder %v958_v17, 1  ;;  %7956 = vmatmul.mubr.msk.bf16.gmra.mxu0 %vm2511_vm5, %v8281_v19  ;;  %v572_v41 = vld [vmem:[%s12335_s2 + $0x258] sm:$0xff] }
 0x11c   :  { %v8183_v52 = vpack.c.bf16 %v1313_v49, %v1313_v49  ;;  %v1322_v20 = vsel %vm1196_vm6, %v566_v15, 0.0  ;;  %2893 = vmatprep.mubr.bf16.mxu0 %v8474_v0  ;;  %5194 = vmatpush1.bf16.msra.mxu0 %v8349_v45  ;;  %v579_v15 = vld [vmem:[%s12335_s2 + $0x290] sm:$0xff] }
 0x11d   :  { %v937_v56 = vpop.permute.xlu0 %936  ;;  %v8192_v22 = vpack.c.bf16 %v1322_v20, %v1322_v20 }
 0x11e   :  { %1944 = vst.msk [vmem:[#allocation2 + $0xf0] sm:$0xf] %vm1883_vm3, %v8183_v52  ;;  %vm1189_vm15 = vcmp.eq.s32.totalorder %v937_v56, 1  ;;  %1122 = vperm.xlu0 %8252, %v747_v50   ;;  %v964_v26 = vpop.permute.xlu1 %963  ;;  %v573_v52 = vld [vmem:[%s12335_s2 + $0x260] sm:$0xff] }
 0x11f   :  { %v1315_v60 = vsel %vm1189_vm15, %v559_v54, 0.0  ;;  %1953 = vst.msk [vmem:[#allocation2 + $0x114] sm:$0xf] %vm1883_vm3, %v8192_v22  ;;  %vm1198_vm8 = vcmp.eq.s32.totalorder %v964_v26, 1  ;;  %v582_v22 = vld [vmem:[%s12335_s2 + $0x2a8] sm:$0xff]  ;;  %v8294_v26 = vld [vmem:[#allocation2 + $0x98] sm:$0xff]  }
 0x120   :  { %v8185_v62 = vpack.c.bf16 %v1315_v60, %v1315_v60  ;;  %v1324_v28 = vsel %vm1198_vm8, %v568_v24, 0.0  ;;  %v576_v60 = vld [vmem:[%s12335_s2 + $0x278] sm:$0xff] }
 0x121   :  { %v943_v1 = vpop.permute.xlu0 %942  ;;  %v8194_v30 = vpack.c.bf16 %v1324_v28, %v1324_v28 }
 0x122   :  { %1946 = vst.msk [vmem:[#allocation2 + $0xf8] sm:$0xf] %vm1883_vm3, %v8185_v62  ;;  %vm1191_vm1 = vcmp.eq.s32.totalorder %v943_v1, 1  ;;  %v970_v34 = vpop.permute.xlu1 %969 }
 0x123   :  { %v1317_v6 = vsel %vm1191_vm1, %v561_v58, 0.0  ;;  %1955 = vst.msk [vmem:[#allocation2 + $0x11c] sm:$0xf] %vm1883_vm3, %v8194_v30  ;;  %vm1200_vm10 = vcmp.eq.s32.totalorder %v970_v34, 1  ;;  %7957 = vmatmul.mubr.msk.bf16.gmra.mxu0 %vm2511_vm5, %v8282_v36 }
 0x124   :  { %v8187_v8 = vpack.c.bf16 %v1317_v6, %v1317_v6  ;;  %v1326_v37 = vsel %vm1200_vm10, %v570_v32, 0.0  ;;  %2903 = vmatprep.mubr.bf16.mxu0 %v8474_v0  ;;  %v577_v6 = vld [vmem:[%s12335_s2 + $0x280] sm:$0xff]  ;;  %v583_v32 = vld [vmem:[%s12335_s2 + $0x2b0] sm:$0xff] }
 0x125   :  { %v949_v10 = vpop.permute.xlu0 %948  ;;  %v8196_v39 = vpack.c.bf16 %v1326_v37, %v1326_v37 }
 0x126   :  { %1948 = vst.msk [vmem:[#allocation2 + $0x100] sm:$0xf] %vm1883_vm3, %v8187_v8  ;;  %vm1193_vm4 = vcmp.eq.s32.totalorder %v949_v10, 1  ;;  %v976_v43 = vpop.permute.xlu1 %975 }
 0x127   :  { %v1319_v12 = vsel %vm1193_vm4, %v563_v4, 0.0  ;;  %1957 = vst.msk [vmem:[#allocation2 + $0x124] sm:$0xf] %vm1883_vm3, %v8196_v39  ;;  %vm1202_vm12 = vcmp.eq.s32.totalorder %v976_v43, 1  ;;  %v586_v39 = vld [vmem:[%s12335_s2 + $0x2c8] sm:$0xff]  ;;  %v8301_v43 = vld [vmem:[#allocation2 + $0xa0] sm:$0xff]  }
 0x128   :  { %v8189_v14 = vpack.c.bf16 %v1319_v12, %v1319_v12  ;;  %v1328_v47 = vsel %vm1202_vm12, %v572_v41, 0.0 }
 0x129   :  { %v955_v18 = vpop.permute.xlu0 %954  ;;  %v8198_v49 = vpack.c.bf16 %v1328_v47, %v1328_v47 }
 0x12a   :  { %1950 = vst.msk [vmem:[#allocation2 + $0x108] sm:$0xf] %vm1883_vm3, %v8189_v14  ;;  %vm1195_vm7 = vcmp.eq.s32.totalorder %v955_v18, 1  ;;  %v982_v53 = vpop.permute.xlu1 %981  ;;  %v580_v14 = vld [vmem:[%s12335_s2 + $0x298] sm:$0xff] }
 0x12b   :  { %v1321_v21 = vsel %vm1195_vm7, %v565_v16, 0.0  ;;  %1959 = vst.msk [vmem:[#allocation2 + $0x12c] sm:$0xf] %vm1883_vm3, %v8198_v49  ;;  %vm1204_vm14 = vcmp.eq.s32.totalorder %v982_v53, 1  ;;  %7958 = vmatmul.mubr.msk.bf16.gmra.mxu0 %vm2511_vm5, %v8283_v55  ;;  %v587_v49 = vld [vmem:[%s12335_s2 + $0x2d0] sm:$0xff] }
 0x12c   :  { %v8191_v23 = vpack.c.bf16 %v1321_v21, %v1321_v21  ;;  %v1330_v56 = vsel %vm1204_vm14, %v574_v51, 0.0  ;;  %2913 = vmatprep.mubr.bf16.mxu0 %v8474_v0  ;;  %v8358_v53 = vld [vmem:[%s12337_s7 + $0x54] ss:$8 sps:$4 sm:$0xff]  }
 0x12d   :  { %v961_v27 = vpop.permute.xlu0 %960  ;;  %v8200_v58 = vpack.c.bf16 %v1330_v56, %v1330_v56  ;;  %5195 = vmatprep.subr.bf16.mxu0 %v8358_v53 }
 0x12e   :  { %1952 = vst.msk [vmem:[#allocation2 + $0x110] sm:$0xf] %vm1883_vm3, %v8191_v23  ;;  %vm1197_vm9 = vcmp.eq.s32.totalorder %v961_v27, 1  ;;  %v988_v62 = vpop.permute.xlu1 %987  ;;  %v581_v23 = vld [vmem:[%s12335_s2 + $0x2a0] sm:$0xff] }
 0x12f   :  { %v1323_v29 = vsel %vm1197_vm9, %v567_v25, 0.0  ;;  %1961 = vst.msk [vmem:[#allocation2 + $0x134] sm:$0xf] %vm1883_vm3, %v8200_v58  ;;  %vm1206_vm0 = vcmp.eq.s32.totalorder %v988_v62, 1  ;;  %v590_v58 = vld [vmem:[%s12335_s2 + $0x2e8] sm:$0xff] }
 0x130   :  { %v8193_v31 = vpack.c.bf16 %v1323_v29, %v1323_v29  ;;  %v1332_v1 = vsel %vm1206_vm0, %v576_v60, 0.0  ;;  %v8308_v62 = vld [vmem:[#allocation2 + $0xa8] sm:$0xff]  }
 0x131   :  { %v967_v35 = vpop.permute.xlu0 %966  ;;  %v8202_v3 = vpack.c.bf16 %v1332_v1, %v1332_v1 }
 0x132   :  { %1954 = vst.msk [vmem:[#allocation2 + $0x118] sm:$0xf] %vm1883_vm3, %v8193_v31  ;;  %vm1199_vm11 = vcmp.eq.s32.totalorder %v967_v35, 1  ;;  %v994_v7 = vpop.permute.xlu1 %993  ;;  %v584_v31 = vld [vmem:[%s12335_s2 + $0x2b8] sm:$0xff] }
 0x133   :  { %v1325_v38 = vsel %vm1199_vm11, %v569_v33, 0.0  ;;  %1963 = vst.msk [vmem:[#allocation2 + $0x13c] sm:$0xf] %vm1883_vm3, %v8202_v3  ;;  %vm1208_vm2 = vcmp.eq.s32.totalorder %v994_v7, 1  ;;  %7959 = vmatmul.mubr.msk.bf16.gmra.mxu0 %vm2511_vm5, %v8287_v9 }
 0x134   :  { %v8195_v40 = vpack.c.bf16 %v1325_v38, %v1325_v38  ;;  %v1334_v10 = vsel %vm1208_vm2, %v578_v5, 0.0  ;;  %2923 = vmatprep.mubr.bf16.mxu0 %v8474_v0  ;;  %v591_v5 = vld [vmem:[%s12335_s2 + $0x2f0] sm:$0xff] }
 0x135   :  { %v973_v44 = vpop.permute.xlu0 %972  ;;  %v8204_v12 = vpack.c.bf16 %v1334_v10, %v1334_v10 }
 0x136   :  { %1956 = vst.msk [vmem:[#allocation2 + $0x120] sm:$0xf] %vm1883_vm3, %v8195_v40  ;;  %vm1201_vm13 = vcmp.eq.s32.totalorder %v973_v44, 1  ;;  %v1000_v16 = vpop.permute.xlu1 %999  ;;  %v585_v40 = vld [vmem:[%s12335_s2 + $0x2c0] sm:$0xff] }
 0x137   :  { %v1327_v48 = vsel %vm1201_vm13, %v571_v42, 0.0  ;;  %1965 = vst.msk [vmem:[#allocation2 + $0x144] sm:$0xf] %vm1883_vm3, %v8204_v12  ;;  %vm1210_vm6 = vcmp.eq.s32.totalorder %v1000_v16, 1  ;;  %v594_v12 = vld [vmem:[%s12335_s2 + $0x308] sm:$0xff]  ;;  %v8315_v16 = vld [vmem:[#allocation2 + $0xb0] sm:$0xff]  }
 0x138   :  { %v8197_v50 = vpack.c.bf16 %v1327_v48, %v1327_v48  ;;  %v1336_v18 = vsel %vm1210_vm6, %v580_v14, 0.0  ;;  %v588_v48 = vld [vmem:[%s12335_s2 + $0x2d8] sm:$0xff] }
 0x139   :  { %v979_v54 = vpop.permute.xlu0 %978  ;;  %v8206_v20 = vpack.c.bf16 %v1336_v18, %v1336_v18 }
 0x13a   :  { %1958 = vst.msk [vmem:[#allocation2 + $0x128] sm:$0xf] %vm1883_vm3, %v8197_v50  ;;  %vm1203_vm15 = vcmp.eq.s32.totalorder %v979_v54, 1  ;;  %v1006_v24 = vpop.permute.xlu1 %1005 }
 0x13b   :  { %v1329_v57 = vsel %vm1203_vm15, %v573_v52, 0.0  ;;  %1967 = vst.msk [vmem:[#allocation2 + $0x14c] sm:$0xf] %vm1883_vm3, %v8206_v20  ;;  %vm1212_vm8 = vcmp.eq.s32.totalorder %v1006_v24, 1  ;;  %7960 = vmatmul.mubr.msk.bf16.gmra.mxu0 %vm2511_vm5, %v8294_v26  ;;  %v8356_v52 = vld [vmem:[%s12337_s7 + $0x50] ss:$8 sps:$4 sm:$0xff]  }
 0x13c   :  { %v8199_v59 = vpack.c.bf16 %v1329_v57, %v1329_v57  ;;  %v1338_v27 = vsel %vm1212_vm8, %v582_v22, 0.0  ;;  %2933 = vmatprep.mubr.bf16.mxu0 %v8474_v0  ;;  %5196 = vmatpush1.bf16.msra.mxu0 %v8356_v52  ;;  %v595_v22 = vld [vmem:[%s12335_s2 + $0x310] sm:$0xff]  ;;  %v8329_v52 = vld [vmem:[#allocation2 + $0xc0] sm:$0xff]  }
 0x13d   :  { %v985_v63 = vpop.permute.xlu0 %984  ;;  %v8208_v29 = vpack.c.bf16 %v1338_v27, %v1338_v27 }
 0x13e   :  { %1960 = vst.msk [vmem:[#allocation2 + $0x130] sm:$0xf] %vm1883_vm3, %v8199_v59  ;;  %vm1205_vm1 = vcmp.eq.s32.totalorder %v985_v63, 1  ;;  %v1012_v33 = vpop.permute.xlu1 %1011  ;;  %v589_v59 = vld [vmem:[%s12335_s2 + $0x2e0] sm:$0xff] }
 0x13f   :  { %v1331_v2 = vsel %vm1205_vm1, %v575_v61, 0.0  ;;  %1969 = vst.msk [vmem:[#allocation2 + $0x154] sm:$0xf] %vm1883_vm3, %v8208_v29  ;;  %vm1214_vm10 = vcmp.eq.s32.totalorder %v1012_v33, 1  ;;  %v598_v29 = vld [vmem:[%s12335_s2 + $0x328] sm:$0xff]  ;;  %v8322_v33 = vld [vmem:[#allocation2 + $0xb8] sm:$0xff]  }
 0x140   :  { %v8201_v4 = vpack.c.bf16 %v1331_v2, %v1331_v2  ;;  %v1340_v35 = vsel %vm1214_vm10, %v584_v31, 0.0 }
 0x141   :  { %v991_v8 = vpop.permute.xlu0 %990  ;;  %v8210_v37 = vpack.c.bf16 %v1340_v35, %v1340_v35 }
 0x142   :  { %1962 = vst.msk [vmem:[#allocation2 + $0x138] sm:$0xf] %vm1883_vm3, %v8201_v4  ;;  %vm1207_vm4 = vcmp.eq.s32.totalorder %v991_v8, 1  ;;  %v1018_v41 = vpop.permute.xlu1 %1017  ;;  %v592_v4 = vld [vmem:[%s12335_s2 + $0x2f8] sm:$0xff] }
 0x143   :  { %v1333_v11 = vsel %vm1207_vm4, %v577_v6, 0.0  ;;  %1971 = vst.msk [vmem:[#allocation2 + $0x15c] sm:$0xf] %vm1883_vm3, %v8210_v37  ;;  %vm1216_vm12 = vcmp.eq.s32.totalorder %v1018_v41, 1  ;;  %7961 = vmatmul.mubr.msk.bf16.gmra.mxu0 %vm2511_vm5, %v8301_v43 }
 0x144   :  { %v8203_v13 = vpack.c.bf16 %v1333_v11, %v1333_v11  ;;  %v1342_v44 = vsel %vm1216_vm12, %v586_v39, 0.0  ;;  %2943 = vmatprep.mubr.bf16.mxu0 %v8474_v0  ;;  %v600_v39 = vld [vmem:[%s12335_s2 + $0x338] sm:$0xff] }
 0x145   :  { %v997_v17 = vpop.permute.xlu0 %996  ;;  %v8212_v46 = vpack.c.bf16 %v1342_v44, %v1342_v44 }
 0x146   :  { %1964 = vst.msk [vmem:[#allocation2 + $0x140] sm:$0xf] %vm1883_vm3, %v8203_v13  ;;  %vm1209_vm7 = vcmp.eq.s32.totalorder %v997_v17, 1  ;;  %v1024_v50 = vpop.permute.xlu1 %1023  ;;  %v593_v13 = vld [vmem:[%s12335_s2 + $0x300] sm:$0xff] }
 0x147   :  { %v1335_v19 = vsel %vm1209_vm7, %v579_v15, 0.0  ;;  %1973 = vst.msk [vmem:[#allocation2 + $0x164] sm:$0xf] %vm1883_vm3, %v8212_v46  ;;  %vm1218_vm14 = vcmp.eq.s32.totalorder %v1024_v50, 1 }
 0x148   :  { %v8205_v21 = vpack.c.bf16 %v1335_v19, %v1335_v19  ;;  %v1344_v54 = vsel %vm1218_vm14, %v588_v48, 0.0  ;;  %v602_v48 = vld [vmem:[%s12335_s2 + $0x348] sm:$0xff] }
 0x149   :  { %v1003_v25 = vpop.permute.xlu0 %1002  ;;  %v8214_v56 = vpack.c.bf16 %v1344_v54, %v1344_v54 }
 0x14a   :  { %1966 = vst.msk [vmem:[#allocation2 + $0x148] sm:$0xf] %vm1883_vm3, %v8205_v21  ;;  %vm1211_vm9 = vcmp.eq.s32.totalorder %v1003_v25, 1  ;;  %v1030_v60 = vpop.permute.xlu1 %1029  ;;  %v596_v21 = vld [vmem:[%s12335_s2 + $0x318] sm:$0xff] }
 0x14b   :  { %v1337_v28 = vsel %vm1211_vm9, %v581_v23, 0.0  ;;  %1975 = vst.msk [vmem:[#allocation2 + $0x16c] sm:$0xf] %vm1883_vm3, %v8214_v56  ;;  %vm1220_vm0 = vcmp.eq.s32.totalorder %v1030_v60, 1  ;;  %7962 = vmatmul.mubr.msk.bf16.gmra.mxu0 %vm2511_vm5, %v8308_v62  ;;  %v2144_v60 = vld [vmem:[%s12338_s4] sm:$0x3] }
 0x14c   :  { %v8207_v30 = vpack.c.bf16 %v1337_v28, %v1337_v28  ;;  %v1346_v63 = vsel %vm1220_vm0, %v590_v58, 0.0  ;;  %2953 = vmatprep.mubr.bf16.mxu0 %v8474_v0  ;;  %v603_v62 = vld [vmem:[%s12335_s2 + $0x350] sm:$0xff] }
 0x14d   :  { %v1009_v34 = vpop.permute.xlu0 %1008  ;;  %v8216_v2 = vpack.c.bf16 %v1346_v63, %v1346_v63 }
 0x14e   :  { %1968 = vst.msk [vmem:[#allocation2 + $0x150] sm:$0xf] %vm1883_vm3, %v8207_v30  ;;  %vm1213_vm11 = vcmp.eq.s32.totalorder %v1009_v34, 1  ;;  %v1036_v6 = vpop.permute.xlu1 %1035  ;;  %v597_v30 = vld [vmem:[%s12335_s2 + $0x320] sm:$0xff] }
 0x14f   :  { %v1339_v36 = vsel %vm1213_vm11, %v583_v32, 0.0  ;;  %1977 = vst.msk [vmem:[#allocation2 + $0x174] sm:$0xf] %vm1883_vm3, %v8216_v2  ;;  %vm1222_vm2 = vcmp.eq.s32.totalorder %v1036_v6, 1  ;;  %v8363_v2 = vld [vmem:[%s12337_s7 + $0x40] ss:$8 sps:$4 sm:$0xff]  }
 0x150   :  { %v8209_v38 = vpack.c.bf16 %v1339_v36, %v1339_v36  ;;  %v1348_v8 = vsel %vm1222_vm2, %v592_v4, 0.0  ;;  %v2146_v36 = vlaneseq }
 0x151   :  { %v1015_v42 = vpop.permute.xlu0 %1014  ;;  %v8218_v10 = vpack.c.bf16 %v1348_v8, %v1348_v8 }
 0x152   :  { %1970 = vst.msk [vmem:[#allocation2 + $0x158] sm:$0xf] %vm1883_vm3, %v8209_v38  ;;  %vm1215_vm13 = vcmp.eq.s32.totalorder %v1015_v42, 1  ;;  %v1042_v14 = vpop.permute.xlu1 %1041 }
 0x153   :  { %v1341_v45 = vsel %vm1215_vm13, %v585_v40, 0.0  ;;  %1979 = vst.msk [vmem:[#allocation2 + $0x17c] sm:$0xf] %vm1883_vm3, %v8218_v10  ;;  %vm1224_vm6 = vcmp.eq.s32.totalorder %v1042_v14, 1  ;;  %7963 = vmatmul.mubr.msk.bf16.gmra.mxu0 %vm2511_vm5, %v8315_v16  ;;  %v599_v40 = vld [vmem:[%s12335_s2 + $0x330] sm:$0xff] }
 0x154   :  { %v8211_v47 = vpack.c.bf16 %v1341_v45, %v1341_v45  ;;  %v1350_v17 = vsel %vm1224_vm6, %v594_v12, 0.0  ;;  %2963 = vmatprep.mubr.bf16.mxu0 %v8474_v0  ;;  %v9958_v45 = vshrl.u32 %v2146_v36, 7  ;;  %v606_v12 = vld [vmem:[%s12335_s2 + $0x368] sm:$0xff] }
 0x155   :  { %v1021_v51 = vpop.permute.xlu0 %1020  ;;  %v8220_v19 = vpack.c.bf16 %v1350_v17, %v1350_v17  ;;  %v8336_v17 = vld [vmem:[#allocation2 + $0xc8] sm:$0xff]  }
 0x156   :  { %1972 = vst.msk [vmem:[#allocation2 + $0x160] sm:$0xf] %vm1883_vm3, %v8211_v47  ;;  %vm1217_vm15 = vcmp.eq.s32.totalorder %v1021_v51, 1  ;;  %v1048_v23 = vpop.permute.xlu1 %1047  ;;  %v9969_v53 = vsub.s32 1, %v9958_v45  ;;  %v9972_v56 = vsub.s32 0, %v9958_v45 }
 0x157   :  { %v1343_v55 = vsel %vm1217_vm15, %v587_v49, 0.0  ;;  %1981 = vst.msk [vmem:[#allocation2 + $0x184] sm:$0xf] %vm1883_vm3, %v8220_v19  ;;  %vm1226_vm8 = vcmp.eq.s32.totalorder %v1048_v23, 1  ;;  %v601_v49 = vld [vmem:[%s12335_s2 + $0x340] sm:$0xff] }
 0x158   :  { %v8213_v57 = vpack.c.bf16 %v1343_v55, %v1343_v55  ;;  %v1352_v25 = vsel %vm1226_vm8, %v596_v21, 0.0  ;;  %v9994_v4 = vrot.slane %v2144_v60, %v9969_v53  ;;  %v9997_v6 = vrot.slane %v2144_v60, %v9972_v56 }
 0x159   :  { %v1027_v61 = vpop.permute.xlu0 %1026  ;;  %v8222_v27 = vpack.c.bf16 %v1352_v25, %v1352_v25 }
 0x15a   :  { %1974 = vst.msk [vmem:[#allocation2 + $0x168] sm:$0xf] %vm1883_vm3, %v8213_v57  ;;  %vm1219_vm1 = vcmp.eq.s32.totalorder %v1027_v61, 1  ;;  %v1054_v31 = vpop.permute.xlu1 %1053  ;;  %v604_v61 = vld [vmem:[%s12335_s2 + $0x358] sm:$0xff] }
 0x15b   :  { %v1345_v1 = vsel %vm1219_vm1, %v589_v59, 0.0  ;;  %1983 = vst.msk [vmem:[#allocation2 + $0x18c] sm:$0xf] %vm1883_vm3, %v8222_v27  ;;  %vm1228_vm10 = vcmp.eq.s32.totalorder %v1054_v31, 1  ;;  %7964 = vmatmul.mubr.msk.bf16.gmra.mxu0 %vm2511_vm5, %v8322_v33  ;;  %v2735_v57 = vpop.f32.mrf.mxu0  ;;  %v608_v27 = vld [vmem:[%s12335_s2 + $0x378] sm:$0xff] }
 0x15c   :  { %v8215_v3 = vpack.c.bf16 %v1345_v1, %v1345_v1  ;;  %v1354_v34 = vsel %vm1228_vm10, %v598_v29, 0.0  ;;  %2973 = vmatprep.mubr.bf16.mxu0 %v8474_v0 }
 0x15d   :  { %v1033_v7 = vpop.permute.xlu0 %1032  ;;  %v8224_v37 = vpack.c.bf16 %v1354_v34, %v1354_v34 }
 0x15e   :  { %1976 = vst.msk [vmem:[#allocation2 + $0x170] sm:$0xf] %vm1883_vm3, %v8215_v3  ;;  %vm1221_vm4 = vcmp.eq.s32.totalorder %v1033_v7, 1  ;;  %v1060_v41 = vpop.permute.xlu1 %1059  ;;  %v8365_v3 = vld [vmem:[%s12337_s7 + $0x44] ss:$8 sps:$4 sm:$0xff]  }
 0x15f   :  { %v1347_v9 = vsel %vm1221_vm4, %v591_v5, 0.0  ;;  %1985 = vst.msk [vmem:[#allocation2 + $0x194] sm:$0xf] %vm1883_vm3, %v8224_v37  ;;  %vm1230_vm12 = vcmp.eq.s32.totalorder %v1060_v41, 1  ;;  %v2737_v5 = vpop.f32.mrf.mxu0  ;;  %5197 = vmatprep.subr.bf16.mxu0 %v8365_v3  ;;  %v610_v41 = vld [vmem:[%s12335_s2 + $0x388] sm:$0xff] }
 0x160   :  { %v8217_v11 = vpack.c.bf16 %v1347_v9, %v1347_v9  ;;  %v1356_v43 = vsel %vm1230_vm12, %v600_v39, 0.0  ;;  %5198 = vmatpush1.bf16.msra.mxu0 %v8363_v2 }
 0x161   :  { %v1039_v15 = vpop.permute.xlu0 %1038  ;;  %v8226_v46 = vpack.c.bf16 %v1356_v43, %v1356_v43  ;;  %v609_v43 = vld [vmem:[%s12335_s2 + $0x380] sm:$0xff] }
 0x162   :  { %1978 = vst.msk [vmem:[#allocation2 + $0x178] sm:$0xf] %vm1883_vm3, %v8217_v11  ;;  %vm1223_vm7 = vcmp.eq.s32.totalorder %v1039_v15, 1  ;;  %v1066_v50 = vpop.permute.xlu1 %1065  ;;  %v2739_v11 = vpop.f32.mrf.mxu0 }
 0x163   :  { %v1349_v18 = vsel %vm1223_vm7, %v593_v13, 0.0  ;;  %1987 = vst.msk [vmem:[#allocation2 + $0x19c] sm:$0xf] %vm1883_vm3, %v8226_v46  ;;  %vm1232_vm14 = vcmp.eq.s32.totalorder %v1066_v50, 1  ;;  %7965 = vmatmul.mubr.msk.bf16.gmra.mxu0 %vm2511_vm5, %v8329_v52  ;;  %v605_v13 = vld [vmem:[%s12335_s2 + $0x360] sm:$0xff]  ;;  %v2740_v14 = vadd.f32 %v2739_v11, %v9997_v6 }
 0x164   :  { %v8219_v20 = vpack.c.bf16 %v1349_v18, %v1349_v18  ;;  %v1358_v54 = vsel %vm1232_vm14, %v602_v48, 0.0  ;;  %2983 = vmatprep.mubr.bf16.mxu0 %v8474_v0  ;;  %v2738_v18 = vadd.f32 %v2737_v5, %v9994_v4  ;;  %v2741_v19 = vpop.f32.mrf.mxu0 }
 0x165   :  { %v1045_v24 = vpop.permute.xlu0 %1044  ;;  %v8228_v58 = vpack.c.bf16 %v1358_v54, %v1358_v54  ;;  %v2742_v23 = vadd.f32 %v2741_v19, %v9994_v4  ;;  %v3366_v29 = vmax.f32 %v2740_v14, 0.0  ;;  %v614_v14 = vld [vmem:[%s12335_s2 + $0x3a8] sm:$0xff] }
 0x166   :  { %1980 = vst.msk [vmem:[#allocation2 + $0x180] sm:$0xf] %vm1883_vm3, %v8219_v20  ;;  %vm1225_vm9 = vcmp.eq.s32.totalorder %v1045_v24, 1  ;;  %v1072_v63 = vpop.permute.xlu1 %1071  ;;  %v2736_v20 = vadd.f32 %v2735_v57, %v9997_v6  ;;  %v3365_v33 = vmax.f32 %v2738_v18, 0.0 }
 0x167   :  { %v1351_v26 = vsel %vm1225_vm9, %v595_v22, 0.0  ;;  %1989 = vst.msk [vmem:[#allocation2 + $0x1a4] sm:$0xf] %vm1883_vm3, %v8228_v58  ;;  %vm1234_vm0 = vcmp.eq.s32.totalorder %v1072_v63, 1 }
 0x168   :  { %v8221_v28 = vpack.c.bf16 %v1351_v26, %v1351_v26  ;;  %v1360_v7 = vsel %vm1234_vm0, %v604_v61, 0.0  ;;  %v2745_v26 = vpop.f32.mrf.mxu0  ;;  %v612_v61 = vld [vmem:[%s12335_s2 + $0x398] sm:$0xff] }
 0x169   :  { %v1051_v32 = vpop.permute.xlu0 %1050  ;;  %v8230_v9 = vpack.c.bf16 %v1360_v7, %v1360_v7  ;;  %v2746_v52 = vadd.f32 %v2745_v26, %v9997_v6 }
 0x16a   :  { %1982 = vst.msk [vmem:[#allocation2 + $0x188] sm:$0xf] %vm1883_vm3, %v8221_v28  ;;  %vm1227_vm11 = vcmp.eq.s32.totalorder %v1051_v32, 1  ;;  %v1078_v15 = vpop.permute.xlu1 %1077  ;;  %v607_v28 = vld [vmem:[%s12335_s2 + $0x370] sm:$0xff]  ;;  %v3367_v32 = vmax.f32 %v2742_v23, 0.0  ;;  %v2747_v34 = vpop.f32.mrf.mxu0 }
 0x16b   :  { %v1353_v35 = vsel %vm1227_vm11, %v597_v30, 0.0  ;;  %1991 = vst.msk [vmem:[#allocation2 + $0x1ac] sm:$0xf] %vm1883_vm3, %v8230_v9  ;;  %vm1236_vm2 = vcmp.eq.s32.totalorder %v1078_v15, 1  ;;  %7966 = vmatmul.mubr.msk.bf16.gmra.mxu0 %vm2511_vm5, %v8336_v17  ;;  %v2748_v50 = vadd.f32 %v2747_v34, %v9994_v4 }
 0x16c   :  { %v8223_v38 = vpack.c.bf16 %v1353_v35, %v1353_v35  ;;  %v1362_v21 = vsel %vm1236_vm2, %v606_v12, 0.0  ;;  %2993 = vmatprep.mubr.bf16.mxu0 %v8474_v0  ;;  %v3364_v35 = vmax.f32 %v2736_v20, 0.0 }
 0x16d   :  { %v1057_v42 = vpop.permute.xlu0 %1056  ;;  %v8232_v24 = vpack.c.bf16 %v1362_v21, %v1362_v21  ;;  %v3369_v5 = vmax.f32 %v2748_v50, 0.0  ;;  %v8341_v21 = vld [vmem:[#allocation2 + $0xd8] sm:$0xff]  }
 0x16e   :  { %1984 = vst.msk [vmem:[#allocation2 + $0x190] sm:$0xf] %vm1883_vm3, %v8223_v38  ;;  %vm1229_vm13 = vcmp.eq.s32.totalorder %v1057_v42, 1  ;;  %v1084_v30 = vpop.permute.xlu1 %1083  ;;  %v3617_v42 = vpack.c.bf16 %v3367_v32, %v3365_v33  ;;  %v615_v32 = vld [vmem:[%s12335_s2 + $0x3b0] sm:$0xff] }
 0x16f   :  { %v1355_v44 = vsel %vm1229_vm13, %v599_v40, 0.0  ;;  %1993 = vst.msk [vmem:[#allocation2 + $0x1b4] sm:$0xf] %vm1883_vm3, %v8232_v24  ;;  %vm1238_vm6 = vcmp.eq.s32.totalorder %v1084_v30, 1  ;;  %v2749_v40 = vpop.f32.mrf.mxu0 }
 0x170   :  { %v8225_v47 = vpack.c.bf16 %v1355_v44, %v1355_v44  ;;  %v1364_v36 = vsel %vm1238_vm6, %v608_v27, 0.0  ;;  %v3616_v44 = vpack.c.bf16 %v3366_v29, %v3364_v35  ;;  %v2750_v46 = vadd.f32 %v2749_v40, %v9997_v6  ;;  %3978 = vmatprep.mubr.bf16.mxu1 %v3617_v42 }
 0x171   :  { %v1063_v51 = vpop.permute.xlu0 %1062  ;;  %v8234_v38 = vpack.c.bf16 %v1364_v36, %v1364_v36 }
 0x172   :  { %1986 = vst.msk [vmem:[#allocation2 + $0x198] sm:$0xf] %vm1883_vm3, %v8225_v47  ;;  %vm1231_vm15 = vcmp.eq.s32.totalorder %v1063_v51, 1  ;;  %v1090_v47 = vpop.permute.xlu1 %1089  ;;  %v2751_v51 = vpop.f32.mrf.mxu0  ;;  %3979 = vmatmul.mubr.bf16.vlgmr.msra.gmra.mxu1 %v3616_v44  ;;  %v3370_v63 = vmax.f32 %v2750_v46, 0.0 }
 0x173   :  { %v1357_v55 = vsel %vm1231_vm15, %v601_v49, 0.0  ;;  %v8340_v49 = vld [vmem:[#allocation2 + $0xd0] sm:$0xff]   ;;  %1995 = vst.msk [vmem:[#allocation2 + $0x1bc] sm:$0xf] %vm1883_vm3, %v8234_v38  ;;  %vm1240_vm8 = vcmp.eq.s32.totalorder %v1090_v47, 1  ;;  %v2752_v57 = vadd.f32 %v2751_v51, %v9994_v4  ;;  %v618_v47 = vld [vmem:[%s12335_s2 + $0x3c8] sm:$0xff] }
 0x174   :  { %v8227_v59 = vpack.c.bf16 %v1357_v55, %v1357_v55  ;;  %v1366_v54 = vsel %vm1240_vm8, %v610_v41, 0.0  ;;  %7967 = vmatmul.mubr.msk.bf16.gmra.mxu0 %vm2511_vm5, %v8340_v49  ;;  %v2755_v60 = vpop.f32.mrf.mxu0  ;;  %v617_v49 = vld [vmem:[%s12335_s2 + $0x3c0] sm:$0xff] }
 0x175   :  { %v1069_v1 = vpop.permute.xlu0 %1068  ;;  %v8236_v58 = vpack.c.bf16 %v1366_v54, %v1366_v54  ;;  %3003 = vmatprep.mubr.bf16.mxu0 %v8474_v0  ;;  %v2756_v24 = vadd.f32 %v2755_v60, %v9997_v6 }
 0x176   :  { %1988 = vst.msk [vmem:[#allocation2 + $0x1a0] sm:$0xf] %vm1883_vm3, %v8227_v59  ;;  %vm1233_vm1 = vcmp.eq.s32.totalorder %v1069_v1, 1  ;;  %v3371_v1 = vmax.f32 %v2752_v57, 0.0  ;;  %v1096_v2 = vpop.permute.xlu1 %1095  ;;  %v2757_v7 = vpop.f32.mrf.mxu0 }
 0x177   :  { %v1359_v8 = vsel %vm1233_vm1, %v603_v62, 0.0  ;;  %v611_v62 = vld [vmem:[%s12335_s2 + $0x390] sm:$0xff]  ;;  %1997 = vst.msk [vmem:[#allocation2 + $0x1c4] sm:$0xf] %vm1883_vm3, %v8236_v58  ;;  %vm1242_vm10 = vcmp.eq.s32.totalorder %v1096_v2, 1 }
 0x178   :  { %v8229_v10 = vpack.c.bf16 %v1359_v8, %v1359_v8  ;;  %v3368_v8 = vmax.f32 %v2746_v52, 0.0  ;;  %v1368_v9 = vsel %vm1242_vm10, %v612_v61, 0.0  ;;  %v3619_v15 = vpack.c.bf16 %v3371_v1, %v3369_v5  ;;  %v619_v5 = vld [vmem:[%s12335_s2 + $0x3d0] sm:$0xff] }
 0x179   :  { %v1075_v16 = vpop.permute.xlu0 %1074  ;;  %v8238_v11 = vpack.c.bf16 %v1368_v9, %v1368_v9 }
 0x17a   :  { %1990 = vst.msk [vmem:[#allocation2 + $0x1a8] sm:$0xf] %vm1883_vm3, %v8229_v10  ;;  %vm1235_vm4 = vcmp.eq.s32.totalorder %v1075_v16, 1  ;;  %v613_v16 = vld [vmem:[%s12335_s2 + $0x3a0] sm:$0xff]  ;;  %v3618_v17 = vpack.c.bf16 %v3370_v63, %v3368_v8  ;;  %v1102_v19 = vpop.permute.xlu1 %1101  ;;  %3988 = vmatprep.mubr.bf16.mxu1 %v3619_v15 }
 0x17b   :  { %v1361_v22 = vsel %vm1235_vm4, %v605_v13, 0.0  ;;  %v2759_v13 = vpop.f32.mrf.mxu0  ;;  %1999 = vst.msk [vmem:[#allocation2 + $0x1cc] sm:$0xf] %vm1883_vm3, %v8238_v11  ;;  %vm1244_vm12 = vcmp.eq.s32.totalorder %v1102_v19, 1  ;;  %v8370_v11 = vld [vmem:[%s12337_s7 + $0x30] ss:$8 sps:$4 sm:$0xff]  }
 0x17c   :  { %v8231_v25 = vpack.c.bf16 %v1361_v22, %v1361_v22  ;;  %v2760_v18 = vadd.f32 %v2759_v13, %v9997_v6  ;;  %v2758_v22 = vadd.f32 %v2757_v7, %v9994_v4  ;;  %3989 = vmatmul.mubr.bf16.gmra.mxu1 %v3618_v17  ;;  %7968 = vmatmul.mubr.msk.bf16.gmra.mxu0 %vm2511_vm5, %v8341_v21  ;;  %v622_v21 = vld [vmem:[%s12335_s2 + $0x3e8] sm:$0xff] }
 0x17d   :  { %v1081_v31 = vpop.permute.xlu0 %1080  ;;  %v2761_v23 = vpop.f32.mrf.mxu0  ;;  %3013 = vmatprep.mubr.bf16.mxu0 %v8474_v0 }
 0x17e   :  { %1992 = vst.msk [vmem:[#allocation2 + $0x1b0] sm:$0xf] %vm1883_vm3, %v8231_v25  ;;  %vm1237_vm7 = vcmp.eq.s32.totalorder %v1081_v31, 1  ;;  %v1370_v25 = vsel %vm1244_vm12, %v614_v14, 0.0  ;;  %v2762_v27 = vadd.f32 %v2761_v23, %v9994_v4  ;;  %v616_v31 = vld [vmem:[%s12335_s2 + $0x3b8] sm:$0xff]  ;;  %v3374_v33 = vmax.f32 %v2760_v18, 0.0  ;;  %v1108_v35 = vpop.permute.xlu1 %1107 }
 0x17f   :  { %v1363_v37 = vsel %vm1237_vm7, %v607_v28, 0.0  ;;  %v8240_v28 = vpack.c.bf16 %v1370_v25, %v1370_v25  ;;  %v2765_v30 = vpop.f32.mrf.mxu0  ;;  %vm1246_vm14 = vcmp.eq.s32.totalorder %v1108_v35, 1  ;;  %v621_v23 = vld [vmem:[%s12335_s2 + $0x3e0] sm:$0xff] }
 0x180   :  { %v8233_v39 = vpack.c.bf16 %v1363_v37, %v1363_v37  ;;  %v3375_v34 = vmax.f32 %v2762_v27, 0.0  ;;  %v3373_v37 = vmax.f32 %v2758_v22, 0.0  ;;  %v1372_v40 = vsel %vm1246_vm14, %v616_v31, 0.0 }
 0x181   :  { %v1087_v48 = vpop.permute.xlu0 %1086  ;;  %2001 = vst.msk [vmem:[#allocation2 + $0x1d4] sm:$0xf] %vm1883_vm3, %v8240_v28  ;;  %v2767_v38 = vpop.f32.mrf.mxu0  ;;  %v8242_v42 = vpack.c.bf16 %v1372_v40, %v1372_v40  ;;  %v2766_v58 = vadd.f32 %v2765_v30, %v9997_v6  ;;  %v8346_v28 = vld [vmem:[#allocation2 + $0xe8] sm:$0xff]  }
 0x182   :  { %1994 = vst.msk [vmem:[#allocation2 + $0x1b8] sm:$0xf] %vm1883_vm3, %v8233_v39  ;;  %vm1239_vm9 = vcmp.eq.s32.totalorder %v1087_v48, 1  ;;  %v3372_v39 = vmax.f32 %v2756_v24, 0.0  ;;  %v2768_v44 = vadd.f32 %v2767_v38, %v9994_v4  ;;  %v3621_v48 = vpack.c.bf16 %v3375_v34, %v3373_v37  ;;  %v1114_v52 = vpop.permute.xlu1 %1113 }
 0x183   :  { %v1365_v55 = vsel %vm1239_vm9, %v609_v43, 0.0  ;;  %v2769_v46 = vpop.f32.mrf.mxu0  ;;  %2003 = vst.msk [vmem:[#allocation2 + $0x1dc] sm:$0xf] %vm1883_vm3, %v8242_v42  ;;  %vm1248_vm0 = vcmp.eq.s32.totalorder %v1114_v52, 1  ;;  %v3376_v14 = vmax.f32 %v2766_v58, 0.0 }
 0x184   :  { %v8235_v59 = vpack.c.bf16 %v1365_v55, %v1365_v55  ;;  %v3620_v50 = vpack.c.bf16 %v3374_v33, %v3372_v39  ;;  %v2770_v51 = vadd.f32 %v2769_v46, %v9997_v6  ;;  %v8345_v55 = vld [vmem:[#allocation2 + $0xe0] sm:$0xff]   ;;  %3998 = vmatprep.mubr.bf16.mxu1 %v3621_v48  ;;  %v8347_v48 = vld [vmem:[#allocation2 + $0xf0] sm:$0xff]  }
 0x185   :  { %v1093_v3 = vpop.permute.xlu0 %1092  ;;  %v2771_v57 = vpop.f32.mrf.mxu0  ;;  %7969 = vmatmul.mubr.msk.bf16.gmra.mxu0 %vm2511_vm5, %v8345_v55 }
 0x186   :  { %1996 = vst.msk [vmem:[#allocation2 + $0x1c0] sm:$0xf] %vm1883_vm3, %v8235_v59  ;;  %vm1241_vm11 = vcmp.eq.s32.totalorder %v1093_v3, 1  ;;  %v1374_v59 = vsel %vm1248_vm0, %v618_v47, 0.0  ;;  %v2772_v61 = vadd.f32 %v2771_v57, %v9994_v4  ;;  %3999 = vmatmul.mubr.bf16.gmra.mxu1 %v3620_v50  ;;  %v620_v3 = vld [vmem:[%s12335_s2 + $0x3d8] sm:$0xff]  ;;  %3023 = vmatprep.mubr.bf16.mxu0 %v8474_v0  ;;  %v3378_v7 = vmax.f32 %v2770_v51, 0.0  ;;  %v1120_v9 = vpop.permute.xlu1 %1119 }
 0x187   :  { %v1367_v10 = vsel %vm1241_vm11, %v611_v62, 0.0  ;;  %v3377_v62 = vmax.f32 %v2768_v44, 0.0  ;;  %v8244_v63 = vpack.c.bf16 %v1374_v59, %v1374_v59  ;;  %v2775_v2 = vpop.f32.mrf.mxu0  ;;  %vm1250_vm2 = vcmp.eq.s32.totalorder %v1120_v9, 1 }
 0x188   :  { %v8237_v12 = vpack.c.bf16 %v1367_v10, %v1367_v10  ;;  %v3379_v8 = vmax.f32 %v2772_v61, 0.0  ;;  %v1376_v15 = vsel %vm1250_vm2, %v620_v3, 0.0  ;;  %v3622_v24 = vpack.c.bf16 %v3378_v7, %v3376_v14 }
 0x189   :  { %v1099_v20 = vpop.permute.xlu0 %1098  ;;  %2005 = vst.msk [vmem:[#allocation2 + $0x1e4] sm:$0xf] %vm1883_vm3, %v8244_v63  ;;  %v2777_v13 = vpop.f32.mrf.mxu0  ;;  %v8246_v17 = vpack.c.bf16 %v1376_v15, %v1376_v15  ;;  %v2776_v30 = vadd.f32 %v2775_v2, %v9997_v6  ;;  %v8348_v2 = vld [vmem:[#allocation2 + $0xf8] sm:$0xff]  }
 0x18a   :  { %1998 = vst.msk [vmem:[#allocation2 + $0x1c8] sm:$0xf] %vm1883_vm3, %v8237_v12  ;;  %vm1243_vm13 = vcmp.eq.s32.totalorder %v1099_v20, 1  ;;  %v8372_v12 = vld [vmem:[%s12337_s7 + $0x34] ss:$8 sps:$4 sm:$0xff]   ;;  %v2778_v19 = vadd.f32 %v2777_v13, %v9994_v4  ;;  %v3623_v22 = vpack.c.bf16 %v3379_v8, %v3377_v62 }
 0x18b   :  { %v1369_v26 = vsel %vm1243_vm13, %v613_v16, 0.0  ;;  %5199 = vmatprep.subr.bf16.mxu0 %v8372_v12  ;;  %v2779_v20 = vpop.f32.mrf.mxu0  ;;  %2007 = vst.msk [vmem:[#allocation2 + $0x1ec] sm:$0xf] %vm1883_vm3, %v8246_v17 }
 0x18c   :  { %v8239_v29 = vpack.c.bf16 %v1369_v26, %v1369_v26  ;;  %5200 = vmatpush1.bf16.msra.mxu0 %v8370_v11  ;;  %v2780_v25 = vadd.f32 %v2779_v20, %v9997_v6  ;;  %v1126_v26 = vpop.permute.xlu1 %1125  ;;  %4008 = vmatprep.mubr.bf16.mxu1 %v3623_v22  ;;  %v3381_v34 = vmax.f32 %v2778_v19, 0.0  ;;  %v8352_v19 = vld [vmem:[#allocation2 + $0x100] sm:$0xff]  }
 0x18d   :  { %v1105_v36 = vpop.permute.xlu0 %1104  ;;  %vm1252_vm6 = vcmp.eq.s32.totalorder %v1126_v26, 1  ;;  %7970 = vmatmul.mubr.msk.bf16.gmra.mxu0 %vm2511_vm5, %v8346_v28  ;;  %v8379_v28 = vld [vmem:[%s12337_s7 + $0x24] ss:$8 sps:$4 sm:$0xff]  }
 0x18e   :  { %2000 = vst.msk [vmem:[#allocation2 + $0x1d0] sm:$0xf] %vm1883_vm3, %v8239_v29  ;;  %vm1245_vm15 = vcmp.eq.s32.totalorder %v1105_v36, 1  ;;  %v2781_v29 = vpop.f32.mrf.mxu0  ;;  %v1378_v31 = vsel %vm1252_vm6, %v622_v21, 0.0  ;;  %4009 = vmatmul.mubr.bf16.gmra.mxu1 %v3622_v24  ;;  %3033 = vmatprep.mubr.bf16.mxu0 %v8474_v0  ;;  %v3382_v38 = vmax.f32 %v2780_v25, 0.0 }
 0x18f   :  { %v1371_v41 = vsel %vm1245_vm15, %v615_v32, 0.0  ;;  %v2782_v33 = vadd.f32 %v2781_v29, %v9994_v4  ;;  %v8248_v35 = vpack.c.bf16 %v1378_v31, %v1378_v31  ;;  %5201 = vmatprep.subr.bf16.mxu0 %v8379_v28 }
 0x190   :  { %v8241_v43 = vpack.c.bf16 %v1371_v41, %v1371_v41  ;;  %v2785_v37 = vpop.f32.mrf.mxu0  ;;  %v3380_v41 = vmax.f32 %v2776_v30, 0.0 }
 0x191   :  { %v1111_v54 = vpop.permute.xlu0 %1110  ;;  %v3383_v39 = vmax.f32 %v2782_v33, 0.0  ;;  %2009 = vst.msk [vmem:[#allocation2 + $0x1f4] sm:$0xf] %vm1883_vm3, %v8248_v35  ;;  %v2786_v50 = vadd.f32 %v2785_v37, %v9997_v6 }
 0x192   :  { %2002 = vst.msk [vmem:[#allocation2 + $0x1d8] sm:$0xf] %vm1883_vm3, %v8241_v43  ;;  %vm1247_vm1 = vcmp.eq.s32.totalorder %v1111_v54, 1  ;;  %v2787_v40 = vpop.f32.mrf.mxu0  ;;  %v3624_v46 = vpack.c.bf16 %v3382_v38, %v3380_v41 }
 0x193   :  { %v1373_v60 = vsel %vm1247_vm1, %v617_v49, 0.0  ;;  %v3625_v42 = vpack.c.bf16 %v3383_v39, %v3381_v34  ;;  %v2788_v43 = vadd.f32 %v2787_v40, %v9994_v4  ;;  %v3384_v59 = vmax.f32 %v2786_v50, 0.0 }
 0x194   :  { %v8243_v1 = vpack.c.bf16 %v1373_v60, %v1373_v60  ;;  %v2789_v44 = vpop.f32.mrf.mxu0  ;;  %vm7546_vm1 = vcmask 916480  }
 0x195   :  { %v1117_v10 = vpop.permute.xlu0 %1116  ;;  %v2790_v47 = vadd.f32 %v2789_v44, %v9997_v6  ;;  %4018 = vmatprep.mubr.bf16.mxu1 %v3625_v42  ;;  %7971 = vmatmul.mubr.msk.bf16.gmra.mxu0 %vm2511_vm5, %v8347_v48  ;;  %v3385_v52 = vmax.f32 %v2788_v43, 0.0 }
 0x196   :  { %2004 = vst.msk [vmem:[#allocation2 + $0x1e0] sm:$0xf] %vm1883_vm3, %v8243_v1  ;;  %vm1249_vm4 = vcmp.eq.s32.totalorder %v1117_v10, 1  ;;  %v2791_v49 = vpop.f32.mrf.mxu0  ;;  %4019 = vmatmul.mubr.bf16.gmra.mxu1 %v3624_v46  ;;  %3043 = vmatprep.mubr.bf16.mxu0 %v8474_v0 }
 0x197   :  { %v1375_v16 = vsel %vm1249_vm4, %v619_v5, 0.0  ;;  %v2792_v51 = vadd.f32 %v2791_v49, %v9994_v4  ;;  %v3386_v55 = vmax.f32 %v2790_v47, 0.0 }
 0x198   :  { %v8245_v18 = vpack.c.bf16 %v1375_v16, %v1375_v16  ;;  %v2795_v54 = vpop.f32.mrf.mxu0 }
 0x199   :  { %v1123_v27 = vpop.permute.xlu0 %1122  ;;  %v3387_v57 = vmax.f32 %v2792_v51, 0.0  ;;  %v3626_v62 = vpack.c.bf16 %v3386_v55, %v3384_v59  ;;  %v2796_v5 = vadd.f32 %v2795_v54, %v9997_v6 }
 0x19a   :  { %2006 = vst.msk [vmem:[#allocation2 + $0x1e8] sm:$0xf] %vm1883_vm3, %v8245_v18  ;;  %vm1251_vm7 = vcmp.eq.s32.totalorder %v1123_v27, 1  ;;  %v2797_v58 = vpop.f32.mrf.mxu0  ;;  %v8377_v27 = vld [vmem:[%s12337_s7 + $0x20] ss:$8 sps:$4 sm:$0xff]  }
 0x19b   :  { %v1377_v32 = vsel %vm1251_vm7, %v621_v23, 0.0  ;;  %v3627_v60 = vpack.c.bf16 %v3387_v57, %v3385_v52  ;;  %v2798_v63 = vadd.f32 %v2797_v58, %v9994_v4  ;;  %v3388_v13 = vmax.f32 %v2796_v5, 0.0  ;;  %5202 = vmatpush1.bf16.msra.mxu0 %v8377_v27  ;;  %v8354_v52 = vld [vmem:[#allocation2 + $0x110] sm:$0xff]  }
 0x19c   :  { %v8247_v36 = vpack.c.bf16 %v1377_v32, %v1377_v32  ;;  %v2799_v61 = vpop.f32.mrf.mxu0 }
 0x19d   :  { %v2800_v1 = vadd.f32 %v2799_v61, %v9997_v6  ;;  %4028 = vmatprep.mubr.bf16.mxu1 %v3627_v60  ;;  %7972 = vmatmul.mubr.msk.bf16.gmra.mxu0 %vm2511_vm5, %v8348_v2  ;;  %v3389_v9 = vmax.f32 %v2798_v63, 0.0 }
 0x19e   :  { %2008 = vst.msk [vmem:[#allocation2 + $0x1f0] sm:$0xf] %vm1883_vm3, %v8247_v36  ;;  %v2801_v3 = vpop.f32.mrf.mxu0  ;;  %4029 = vmatmul.mubr.bf16.gmra.mxu1 %v3626_v62  ;;  %3053 = vmatprep.mubr.bf16.mxu0 %v8474_v0  ;;  %v8353_v36 = vld [vmem:[#allocation2 + $0x108] sm:$0xff]  }
 0x19f   :  { %v2802_v7 = vadd.f32 %v2801_v3, %v9994_v4  ;;  %v3390_v10 = vmax.f32 %v2800_v1, 0.0 }
 0x1a0   :  { %v2805_v8 = vpop.f32.mrf.mxu0 }
 0x1a1   :  { %v3391_v11 = vmax.f32 %v2802_v7, 0.0  ;;  %v3628_v17 = vpack.c.bf16 %v3390_v10, %v3388_v13  ;;  %v2806_v21 = vadd.f32 %v2805_v8, %v9997_v6  ;;  %v8355_v8 = vld [vmem:[#allocation2 + $0x118] sm:$0xff]  }
 0x1a2   :  { %v2807_v12 = vpop.f32.mrf.mxu0 }
 0x1a3   :  { %v3629_v14 = vpack.c.bf16 %v3391_v11, %v3389_v9  ;;  %v2808_v15 = vadd.f32 %v2807_v12, %v9994_v4  ;;  %v3392_v30 = vmax.f32 %v2806_v21, 0.0 }
 0x1a4   :  { %v2809_v16 = vpop.f32.mrf.mxu0 }
 0x1a5   :  { %v2810_v18 = vadd.f32 %v2809_v16, %v9997_v6  ;;  %4038 = vmatprep.mubr.bf16.mxu1 %v3629_v14  ;;  %7973 = vmatmul.mubr.msk.bf16.gmra.mxu0 %vm2511_vm5, %v8352_v19  ;;  %v3393_v23 = vmax.f32 %v2808_v15, 0.0 }
 0x1a6   :  { %v2811_v20 = vpop.f32.mrf.mxu0  ;;  %4039 = vmatmul.mubr.bf16.gmra.mxu1 %v3628_v17  ;;  %3063 = vmatprep.mubr.bf16.mxu0 %v8474_v0 }
 0x1a7   :  { %v2812_v22 = vadd.f32 %v2811_v20, %v9994_v4  ;;  %v3394_v25 = vmax.f32 %v2810_v18, 0.0 }
 0x1a8   :  { %v2815_v24 = vpop.f32.mrf.mxu0 }
 0x1a9   :  { %v3395_v26 = vmax.f32 %v2812_v22, 0.0  ;;  %v3630_v33 = vpack.c.bf16 %v3394_v25, %v3392_v30  ;;  %v2816_v38 = vadd.f32 %v2815_v24, %v9997_v6 }
 0x1aa   :  { %v2817_v29 = vpop.f32.mrf.mxu0 }
 0x1ab   :  { %v3631_v31 = vpack.c.bf16 %v3395_v26, %v3393_v23  ;;  %v2818_v34 = vadd.f32 %v2817_v29, %v9994_v4  ;;  %v3396_v46 = vmax.f32 %v2816_v38, 0.0  ;;  %v8359_v23 = vld [vmem:[#allocation2 + $0x120] sm:$0xff]  }
 0x1ac   :  { %v2819_v32 = vpop.f32.mrf.mxu0 }
 0x1ad   :  { %v2820_v35 = vadd.f32 %v2819_v32, %v9997_v6  ;;  %4048 = vmatprep.mubr.bf16.mxu1 %v3631_v31  ;;  %7974 = vmatmul.mubr.msk.bf16.gmra.mxu0 %vm2511_vm5, %v8353_v36  ;;  %v3397_v41 = vmax.f32 %v2818_v34, 0.0  ;;  %v8384_v31 = vld [vmem:[%s12337_s7 + $0x10] ss:$8 sps:$4 sm:$0xff]   ;;  %v8386_v32 = vld [vmem:[%s12337_s7 + $0x14] ss:$8 sps:$4 sm:$0xff]  }
 0x1ae   :  { %v2821_v37 = vpop.f32.mrf.mxu0  ;;  %4049 = vmatmul.mubr.bf16.gmra.mxu1 %v3630_v33  ;;  %3073 = vmatprep.mubr.bf16.mxu0 %v8474_v0 }
 0x1af   :  { %v2822_v39 = vadd.f32 %v2821_v37, %v9994_v4  ;;  %v3398_v42 = vmax.f32 %v2820_v35, 0.0  ;;  %5203 = vmatprep.subr.bf16.mxu0 %v8386_v32 }
 0x1b0   :  { %v2825_v40 = vpop.f32.mrf.mxu0  ;;  %5204 = vmatpush1.bf16.msra.mxu0 %v8384_v31 }
 0x1b1   :  { %v3399_v43 = vmax.f32 %v2822_v39, 0.0  ;;  %v3632_v49 = vpack.c.bf16 %v3398_v42, %v3396_v46  ;;  %v2826_v55 = vadd.f32 %v2825_v40, %v9997_v6  ;;  %v8360_v40 = vld [vmem:[#allocation2 + $0x128] sm:$0xff]  }
 0x1b2   :  { %v2827_v44 = vpop.f32.mrf.mxu0 }
 0x1b3   :  { %v3633_v47 = vpack.c.bf16 %v3399_v43, %v3397_v41  ;;  %v2828_v50 = vadd.f32 %v2827_v44, %v9994_v4  ;;  %v3400_v63 = vmax.f32 %v2826_v55, 0.0 }
 0x1b4   :  { %v2829_v48 = vpop.f32.mrf.mxu0 }
 0x1b5   :  { %v2830_v51 = vadd.f32 %v2829_v48, %v9997_v6  ;;  %4058 = vmatprep.mubr.bf16.mxu1 %v3633_v47  ;;  %7975 = vmatmul.mubr.msk.bf16.gmra.mxu0 %vm2511_vm5, %v8354_v52  ;;  %v3401_v59 = vmax.f32 %v2828_v50, 0.0 }
 0x1b6   :  { %v2831_v54 = vpop.f32.mrf.mxu0  ;;  %4059 = vmatmul.mubr.bf16.gmra.mxu1 %v3632_v49  ;;  %3083 = vmatprep.mubr.bf16.mxu0 %v8474_v0 }
 0x1b7   :  { %v2832_v57 = vadd.f32 %v2831_v54, %v9994_v4  ;;  %v3402_v60 = vmax.f32 %v2830_v51, 0.0 }
 0x1b8   :  { %v2835_v58 = vpop.f32.mrf.mxu0 }
 0x1b9   :  { %v3403_v61 = vmax.f32 %v2832_v57, 0.0  ;;  %v3634_v3 = vpack.c.bf16 %v3402_v60, %v3400_v63  ;;  %v2836_v10 = vadd.f32 %v2835_v58, %v9997_v6  ;;  %v8361_v58 = vld [vmem:[#allocation2 + $0x130] sm:$0xff]  }
 0x1ba   :  { %v2837_v62 = vpop.f32.mrf.mxu0 }
 0x1bb   :  { %v3635_v1 = vpack.c.bf16 %v3403_v61, %v3401_v59  ;;  %v2838_v5 = vadd.f32 %v2837_v62, %v9994_v4  ;;  %v3404_v17 = vmax.f32 %v2836_v10, 0.0  ;;  %v8391_v10 = vld [vmem:[%s12339_s9 + $0x74] ss:$8 sps:$4 sm:$0xff]  }
 0x1bc   :  { %v2839_v2 = vpop.f32.mrf.mxu0  ;;  %6436 = vmatprep.subr.bf16.mxu1 %v8391_v10 }
 0x1bd   :  { %v2840_v7 = vadd.f32 %v2839_v2, %v9997_v6  ;;  %4068 = vmatprep.mubr.bf16.mxu1 %v3635_v1  ;;  %7976 = vmatmul.mubr.msk.bf16.gmra.mxu0 %vm2511_vm5, %v8355_v8  ;;  %v3405_v13 = vmax.f32 %v2838_v5, 0.0  ;;  %v8389_v5 = vld [vmem:[%s12339_s9 + $0x70] ss:$8 sps:$4 sm:$0xff]  }
 0x1be   :  { %v2841_v9 = vpop.f32.mrf.mxu0  ;;  %4069 = vmatmul.mubr.bf16.gmra.mxu1 %v3634_v3  ;;  %3093 = vmatprep.mubr.bf16.mxu0 %v8474_v0 }
 0x1bf   :  { %v2842_v11 = vadd.f32 %v2841_v9, %v9994_v4  ;;  %v3406_v14 = vmax.f32 %v2840_v7, 0.0  ;;  %v8362_v9 = vld [vmem:[#allocation2 + $0x138] sm:$0xff]   ;;  %6437 = vmatpush1.bf16.msra.mxu1 %v8389_v5 }
 0x1c0   :  { %v2845_v12 = vpop.f32.mrf.mxu0 }
 0x1c1   :  { %v3407_v15 = vmax.f32 %v2842_v11, 0.0  ;;  %v3636_v21 = vpack.c.bf16 %v3406_v14, %v3404_v17  ;;  %v2846_v25 = vadd.f32 %v2845_v12, %v9997_v6 }
 0x1c2   :  { %v2847_v16 = vpop.f32.mrf.mxu0 }
 0x1c3   :  { %v3637_v18 = vpack.c.bf16 %v3407_v15, %v3405_v13  ;;  %v2848_v19 = vadd.f32 %v2847_v16, %v9994_v4  ;;  %v3408_v34 = vmax.f32 %v2846_v25, 0.0 }
 0x1c4   :  { %v2849_v20 = vpop.f32.mrf.mxu0 }
 0x1c5   :  { %v2850_v22 = vadd.f32 %v2849_v20, %v9997_v6  ;;  %4078 = vmatprep.mubr.bf16.mxu1 %v3637_v18  ;;  %7977 = vmatmul.mubr.msk.bf16.gmra.mxu0 %vm2511_vm5, %v8359_v23  ;;  %v3409_v27 = vmax.f32 %v2848_v19, 0.0 }
 0x1c6   :  { %v2851_v24 = vpop.f32.mrf.mxu0  ;;  %4079 = vmatmul.mubr.bf16.gmra.mxu1 %v3636_v21  ;;  %3103 = vmatprep.mubr.bf16.mxu0 %v8474_v0 }
 0x1c7   :  { %v2852_v26 = vadd.f32 %v2851_v24, %v9994_v4  ;;  %v3410_v29 = vmax.f32 %v2850_v22, 0.0 }
 0x1c8   :  { %v2855_v28 = vpop.f32.mrf.mxu0 }
 0x1c9   :  { %v3411_v30 = vmax.f32 %v2852_v26, 0.0  ;;  %v3638_v37 = vpack.c.bf16 %v3410_v29, %v3408_v34  ;;  %v2856_v42 = vadd.f32 %v2855_v28, %v9997_v6  ;;  %v8366_v29 = vld [vmem:[#allocation2 + $0x140] sm:$0xff]  }
 0x1ca   :  { %v2857_v33 = vpop.f32.mrf.mxu0 }
 0x1cb   :  { %v3639_v35 = vpack.c.bf16 %v3411_v30, %v3409_v27  ;;  %v2858_v38 = vadd.f32 %v2857_v33, %v9994_v4  ;;  %v3412_v50 = vmax.f32 %v2856_v42, 0.0 }
 0x1cc   :  { %v2859_v36 = vpop.f32.mrf.mxu0 }
 0x1cd   :  { %v2860_v39 = vadd.f32 %v2859_v36, %v9997_v6  ;;  %4088 = vmatprep.mubr.bf16.mxu1 %v3639_v35  ;;  %7978 = vmatmul.mubr.msk.bf16.gmra.mxu0 %vm2511_vm5, %v8360_v40  ;;  %v3413_v46 = vmax.f32 %v2858_v38, 0.0  ;;  %v8396_v38 = vld [vmem:[%s12337_s7 + $0x4] ss:$8 sps:$4 sm:$0xff]  }
 0x1ce   :  { %v2861_v41 = vpop.f32.mrf.mxu0  ;;  %4089 = vmatmul.mubr.bf16.gmra.mxu1 %v3638_v37  ;;  %3113 = vmatprep.mubr.bf16.mxu0 %v8474_v0  ;;  %v8394_v37 = vld [vmem:[%s12337_s7] ss:$8 sps:$4 sm:$0xff]  }
 0x1cf   :  { %v2862_v43 = vadd.f32 %v2861_v41, %v9994_v4  ;;  %v3414_v47 = vmax.f32 %v2860_v39, 0.0  ;;  %5205 = vmatprep.subr.bf16.mxu0 %v8396_v38 }
 0x1d0   :  { %v2865_v44 = vpop.f32.mrf.mxu0  ;;  %5206 = vmatpush1.bf16.msra.mxu0 %v8394_v37 }
 0x1d1   :  { %v3415_v48 = vmax.f32 %v2862_v43, 0.0  ;;  %v3640_v54 = vpack.c.bf16 %v3414_v47, %v3412_v50  ;;  %v2866_v60 = vadd.f32 %v2865_v44, %v9997_v6  ;;  %v8367_v47 = vld [vmem:[#allocation2 + $0x148] sm:$0xff]  }
 0x1d2   :  { %v2867_v49 = vpop.f32.mrf.mxu0 }
 0x1d3   :  { %v3641_v51 = vpack.c.bf16 %v3415_v48, %v3413_v46  ;;  %v2868_v55 = vadd.f32 %v2867_v49, %v9994_v4  ;;  %v3416_v7 = vmax.f32 %v2866_v60, 0.0 }
 0x1d4   :  { %v2869_v52 = vpop.f32.mrf.mxu0 }
 0x1d5   :  { %v2870_v57 = vadd.f32 %v2869_v52, %v9997_v6  ;;  %4098 = vmatprep.mubr.bf16.mxu1 %v3641_v51  ;;  %7979 = vmatmul.mubr.msk.bf16.gmra.mxu0 %vm2511_vm5, %v8361_v58  ;;  %v3417_v63 = vmax.f32 %v2868_v55, 0.0 }
 0x1d6   :  { %v2871_v59 = vpop.f32.mrf.mxu0  ;;  %4099 = vmatmul.mubr.bf16.gmra.mxu1 %v3640_v54  ;;  %3123 = vmatprep.mubr.bf16.mxu0 %v8474_v0 }
 0x1d7   :  { %v2872_v61 = vadd.f32 %v2871_v59, %v9994_v4  ;;  %v3418_v1 = vmax.f32 %v2870_v57, 0.0 }
 0x1d8   :  { %v2875_v62 = vpop.f32.mrf.mxu0 }
 0x1d9   :  { %v3419_v2 = vmax.f32 %v2872_v61, 0.0  ;;  %v3642_v12 = vpack.c.bf16 %v3418_v1, %v3416_v7  ;;  %v2876_v16 = vadd.f32 %v2875_v62, %v9997_v6  ;;  %v8368_v1 = vld [vmem:[#allocation2 + $0x150] sm:$0xff]  }
 0x1da   :  { %v2877_v3 = vpop.f32.mrf.mxu0 }
 0x1db   :  { %v3643_v8 = vpack.c.bf16 %v3419_v2, %v3417_v63  ;;  %v2878_v13 = vadd.f32 %v2877_v3, %v9994_v4  ;;  %v3420_v23 = vmax.f32 %v2876_v16, 0.0 }
 0x1dc   :  { %v2879_v11 = vpop.f32.mrf.mxu0 }
 0x1dd   :  { %v2880_v14 = vadd.f32 %v2879_v11, %v9997_v6  ;;  %4108 = vmatprep.mubr.bf16.mxu1 %v3643_v8  ;;  %7980 = vmatmul.mubr.msk.bf16.gmra.mxu0 %vm2511_vm5, %v8362_v9  ;;  %v3421_v19 = vmax.f32 %v2878_v13, 0.0  ;;  %v8399_v11 = vld [vmem:[%s12339_s9 + $0x60] ss:$8 sps:$4 sm:$0xff]  }
 0x1de   :  { %v2881_v15 = vpop.f32.mrf.mxu0  ;;  %4109 = vmatmul.mubr.bf16.gmra.mxu1 %v3642_v12  ;;  %3133 = vmatprep.mubr.bf16.mxu0 %v8474_v0  ;;  %v8401_v12 = vld [vmem:[%s12339_s9 + $0x64] ss:$8 sps:$4 sm:$0xff]  }
 0x1df   :  { %v2882_v17 = vadd.f32 %v2881_v15, %v9994_v4  ;;  %v3422_v20 = vmax.f32 %v2880_v14, 0.0  ;;  %6438 = vmatprep.subr.bf16.mxu1 %v8401_v12 }
 0x1e0   :  { %v2885_v18 = vpop.f32.mrf.mxu0  ;;  %6439 = vmatpush1.bf16.msra.mxu1 %v8399_v11 }
 0x1e1   :  { %v3423_v21 = vmax.f32 %v2882_v17, 0.0  ;;  %v3644_v27 = vpack.c.bf16 %v3422_v20, %v3420_v23  ;;  %v2886_v31 = vadd.f32 %v2885_v18, %v9997_v6  ;;  %v8369_v20 = vld [vmem:[#allocation2 + $0x158] sm:$0xff]  }
 0x1e2   :  { %v2887_v22 = vpop.f32.mrf.mxu0 }
 0x1e3   :  { %v3645_v24 = vpack.c.bf16 %v3423_v21, %v3421_v19  ;;  %v2888_v25 = vadd.f32 %v2887_v22, %v9994_v4  ;;  %v3424_v40 = vmax.f32 %v2886_v31, 0.0 }
 0x1e4   :  { %v2889_v26 = vpop.f32.mrf.mxu0 }
 0x1e5   :  { %v2890_v28 = vadd.f32 %v2889_v26, %v9997_v6  ;;  %4118 = vmatprep.mubr.bf16.mxu1 %v3645_v24  ;;  %7981 = vmatmul.mubr.msk.bf16.gmra.mxu0 %vm2511_vm5, %v8366_v29  ;;  %v3425_v33 = vmax.f32 %v2888_v25, 0.0  ;;  %v8406_v24 = vld [vmem:[%s12337_s7 + $0xf4] ss:$8 sps:$4 sm:$0xff]   ;;  %v8404_v26 = vld [vmem:[%s12337_s7 + $0xf0] ss:$8 sps:$4 sm:$0xff]  }
 0x1e6   :  { %v2891_v30 = vpop.f32.mrf.mxu0  ;;  %4119 = vmatmul.mubr.bf16.gmra.mxu1 %v3644_v27  ;;  %3143 = vmatprep.mubr.bf16.mxu0 %v8474_v0 }
 0x1e7   :  { %v2892_v32 = vadd.f32 %v2891_v30, %v9994_v4  ;;  %v3426_v35 = vmax.f32 %v2890_v28, 0.0  ;;  %5207 = vmatprep.subr.bf16.mxu0 %v8406_v24 }
 0x1e8   :  { %v2895_v34 = vpop.f32.mrf.mxu0  ;;  %5208 = vmatpush2.bf16.msra.mxu0 %v8404_v26  ;;  %v8428_v26 = vld [vmem:[%s12337_s7 + $0x90] ss:$8 sps:$4 sm:$0xff]  }
 0x1e9   :  { %v3427_v36 = vmax.f32 %v2892_v32, 0.0  ;;  %v3646_v43 = vpack.c.bf16 %v3426_v35, %v3424_v40  ;;  %v2896_v49 = vadd.f32 %v2895_v34, %v9997_v6  ;;  %v8407_v35 = vld [vmem:[%s12337_s7 + $0xe0] ss:$8 sps:$4 sm:$0xff]  }
 0x1ea   :  { %v2897_v39 = vpop.f32.mrf.mxu0 }
 0x1eb   :  { %v3647_v41 = vpack.c.bf16 %v3427_v36, %v3425_v33  ;;  %v2898_v44 = vadd.f32 %v2897_v39, %v9994_v4  ;;  %v3428_v58 = vmax.f32 %v2896_v49, 0.0  ;;  %v8409_v33 = vld [vmem:[%s12337_s7 + $0xe4] ss:$8 sps:$4 sm:$0xff]  }
 0x1ec   :  { %v2899_v42 = vpop.f32.mrf.mxu0  ;;  %v8373_v39 = vld [vmem:[#allocation2 + $0x160] sm:$0xff]   ;;  %5209 = vmatprep.subr.bf16.mxu0 %v8409_v33 }
 0x1ed   :  { %v2900_v46 = vadd.f32 %v2899_v42, %v9997_v6  ;;  %4128 = vmatprep.mubr.bf16.mxu1 %v3647_v41  ;;  %7982 = vmatmul.mubr.msk.bf16.gmra.mxu0 %vm2511_vm5, %v8367_v47  ;;  %v3429_v52 = vmax.f32 %v2898_v44, 0.0 }
 0x1ee   :  { %v2901_v48 = vpop.f32.mrf.mxu0  ;;  %4129 = vmatmul.mubr.bf16.gmra.mxu1 %v3646_v43  ;;  %3153 = vmatprep.mubr.bf16.mxu0 %v8474_v0  ;;  %v8413_v43 = vld [vmem:[%s12337_s7 + $0xd4] ss:$8 sps:$4 sm:$0xff]  }
 0x1ef   :  { %v2902_v50 = vadd.f32 %v2901_v48, %v9994_v4  ;;  %v3430_v54 = vmax.f32 %v2900_v46, 0.0  ;;  %5210 = vmatpush2.bf16.msra.mxu0 %v8407_v35  ;;  %v8411_v46 = vld [vmem:[%s12337_s7 + $0xd0] ss:$8 sps:$4 sm:$0xff]  }
 0x1f0   :  { %v2905_v51 = vpop.f32.mrf.mxu0  ;;  %5211 = vmatprep.subr.bf16.mxu0 %v8413_v43 }
 0x1f1   :  { %v3431_v55 = vmax.f32 %v2902_v50, 0.0  ;;  %v3648_v62 = vpack.c.bf16 %v3430_v54, %v3428_v58  ;;  %v2906_v3 = vadd.f32 %v2905_v51, %v9997_v6  ;;  %v8416_v54 = vld [vmem:[%s12337_s7 + $0xc4] ss:$8 sps:$4 sm:$0xff]  }
 0x1f2   :  { %v2907_v57 = vpop.f32.mrf.mxu0 }
 0x1f3   :  { %v3649_v59 = vpack.c.bf16 %v3431_v55, %v3429_v52  ;;  %v2908_v60 = vadd.f32 %v2907_v57, %v9994_v4  ;;  %v3432_v14 = vmax.f32 %v2906_v3, 0.0  ;;  %5212 = vmatpush2.bf16.msra.mxu0 %v8411_v46  ;;  %v8414_v57 = vld [vmem:[%s12337_s7 + $0xc0] ss:$8 sps:$4 sm:$0xff]  }
 0x1f4   :  { %v2909_v61 = vpop.f32.mrf.mxu0  ;;  %5213 = vmatprep.subr.bf16.mxu0 %v8416_v54 }
 0x1f5   :  { %v2910_v63 = vadd.f32 %v2909_v61, %v9997_v6  ;;  %4138 = vmatprep.mubr.bf16.mxu1 %v3649_v59  ;;  %7983 = vmatmul.mubr.msk.bf16.gmra.mxu0 %vm2511_vm5, %v8368_v1  ;;  %v3433_v7 = vmax.f32 %v2908_v60, 0.0  ;;  %v8374_v61 = vld [vmem:[#allocation2 + $0x168] sm:$0xff]  }
 0x1f6   :  { %v2911_v2 = vpop.f32.mrf.mxu0  ;;  %4139 = vmatmul.mubr.bf16.gmra.mxu1 %v3648_v62  ;;  %3163 = vmatprep.mubr.bf16.mxu0 %v8474_v0 }
 0x1f7   :  { %v2912_v5 = vadd.f32 %v2911_v2, %v9994_v4  ;;  %v3434_v9 = vmax.f32 %v2910_v63, 0.0  ;;  %5214 = vmatpush2.bf16.msra.mxu0 %v8414_v57  ;;  %v8420_v2 = vld [vmem:[%s12337_s7 + $0xb4] ss:$8 sps:$4 sm:$0xff]  }
 0x1f8   :  { %v2915_v8 = vpop.f32.mrf.mxu0  ;;  %5215 = vmatprep.subr.bf16.mxu0 %v8420_v2 }
 0x1f9   :  { %v3435_v10 = vmax.f32 %v2912_v5, 0.0  ;;  %v3650_v17 = vpack.c.bf16 %v3434_v9, %v3432_v14  ;;  %v2916_v22 = vadd.f32 %v2915_v8, %v9997_v6  ;;  %v8418_v5 = vld [vmem:[%s12337_s7 + $0xb0] ss:$8 sps:$4 sm:$0xff]  }
 0x1fa   :  { %v2917_v13 = vpop.f32.mrf.mxu0 }
 0x1fb   :  { %v3651_v15 = vpack.c.bf16 %v3435_v10, %v3433_v7  ;;  %v2918_v18 = vadd.f32 %v2917_v13, %v9994_v4  ;;  %v3436_v31 = vmax.f32 %v2916_v22, 0.0  ;;  %5216 = vmatpush2.bf16.msra.mxu0 %v8418_v5  ;;  %v8423_v13 = vld [vmem:[%s12337_s7 + $0xa4] ss:$8 sps:$4 sm:$0xff]  }
 0x1fc   :  { %v2919_v16 = vpop.f32.mrf.mxu0  ;;  %5217 = vmatprep.subr.bf16.mxu0 %v8423_v13 }
 0x1fd   :  { %v2920_v19 = vadd.f32 %v2919_v16, %v9997_v6  ;;  %4148 = vmatprep.mubr.bf16.mxu1 %v3651_v15  ;;  %7984 = vmatmul.mubr.msk.bf16.gmra.mxu0 %vm2511_vm5, %v8369_v20  ;;  %v3437_v27 = vmax.f32 %v2918_v18, 0.0  ;;  %v8421_v16 = vld [vmem:[%s12337_s7 + $0xa0] ss:$8 sps:$4 sm:$0xff]  }
 0x1fe   :  { %v2921_v21 = vpop.f32.mrf.mxu0  ;;  %4149 = vmatmul.mubr.bf16.gmra.mxu1 %v3650_v17  ;;  %3173 = vmatprep.mubr.bf16.mxu0 %v8474_v0 }
 0x1ff   :  { %v2922_v23 = vadd.f32 %v2921_v21, %v9994_v4  ;;  %v3438_v28 = vmax.f32 %v2920_v19, 0.0  ;;  %v8375_v19 = vld [vmem:[#allocation2 + $0x170] sm:$0xff]   ;;  %5218 = vmatpush2.bf16.msra.mxu0 %v8421_v16 }
 0x200   :  { %v2925_v25 = vpop.f32.mrf.mxu0 }
 0x201   :  { %v3439_v29 = vmax.f32 %v2922_v23, 0.0  ;;  %v3652_v36 = vpack.c.bf16 %v3438_v28, %v3436_v31  ;;  %v2926_v41 = vadd.f32 %v2925_v25, %v9997_v6  ;;  %v8430_v23 = vld [vmem:[%s12337_s7 + $0x94] ss:$8 sps:$4 sm:$0xff]  }
 0x202   :  { %v2927_v30 = vpop.f32.mrf.mxu0  ;;  %5219 = vmatprep.subr.bf16.mxu0 %v8430_v23  ;;  %v3774_v23 = vld [vmem:[%s12340_s6] sm:$0x3] }
 0x203   :  { %v3653_v32 = vpack.c.bf16 %v3439_v29, %v3437_v27  ;;  %v2928_v37 = vadd.f32 %v2927_v30, %v9994_v4  ;;  %v3440_v51 = vmax.f32 %v2926_v41, 0.0  ;;  %v8424_v29 = vld [vmem:[%s12339_s9 + $0x50] ss:$8 sps:$4 sm:$0xff]   ;;  %v8426_v30 = vld [vmem:[%s12339_s9 + $0x54] ss:$8 sps:$4 sm:$0xff]   ;;  %5220 = vmatpush2.bf16.msra.mxu0 %v8428_v26 }
 0x204   :  { %v2929_v34 = vpop.f32.mrf.mxu0  ;;  %6440 = vmatprep.subr.bf16.mxu1 %v8426_v30  ;;  %v10319_v30 = vrot.slane %v3774_v23, %v9972_v56 }
 0x205   :  { %v2930_v38 = vadd.f32 %v2929_v34, %v9997_v6  ;;  %4158 = vmatprep.mubr.bf16.mxu1 %v3653_v32  ;;  %7985 = vmatmul.mubr.msk.bf16.gmra.mxu0 %vm2511_vm5, %v8373_v39  ;;  %v3441_v47 = vmax.f32 %v2928_v37, 0.0  ;;  %v8433_v34 = vld [vmem:[%s12337_s7 + $0x84] ss:$8 sps:$4 sm:$0xff]  }
 0x206   :  { %v2931_v40 = vpop.f32.mrf.mxu0  ;;  %4159 = vmatmul.mubr.bf16.gmra.mxu1 %v3652_v36  ;;  %3183 = vmatprep.mubr.bf16.mxu0 %v8474_v0  ;;  %v8431_v36 = vld [vmem:[%s12337_s7 + $0x80] ss:$8 sps:$4 sm:$0xff]  }
 0x207   :  { %v2932_v42 = vadd.f32 %v2931_v40, %v9994_v4  ;;  %v3442_v48 = vmax.f32 %v2930_v38, 0.0  ;;  %6441 = vmatpush1.bf16.msra.mxu1 %v8424_v29  ;;  %v8376_v40 = vld [vmem:[#allocation2 + $0x178] sm:$0xff]   ;;  %5221 = vmatprep.subr.bf16.mxu0 %v8433_v34 }
 0x208   :  { %v2935_v44 = vpop.f32.mrf.mxu0  ;;  %5222 = vmatpush2.bf16.msra.mxu0 %v8431_v36  ;;  %v10325_v36 = vrot.slane %v3774_v23, %v9969_v53 }
 0x209   :  { %v3443_v49 = vmax.f32 %v2932_v42, 0.0  ;;  %v3654_v58 = vpack.c.bf16 %v3442_v48, %v3440_v51  ;;  %v2936_v63 = vadd.f32 %v2935_v44, %v9997_v6 }
 0x20a   :  { %v2937_v50 = vpop.f32.mrf.mxu0 }
 0x20b   :  { %v3655_v52 = vpack.c.bf16 %v3443_v49, %v3441_v47  ;;  %v2938_v59 = vadd.f32 %v2937_v50, %v9994_v4  ;;  %v3444_v11 = vmax.f32 %v2936_v63, 0.0 }
 0x20c   :  { %v2939_v55 = vpop.f32.mrf.mxu0 }
 0x20d   :  { %v2940_v60 = vadd.f32 %v2939_v55, %v9997_v6  ;;  %4168 = vmatprep.mubr.bf16.mxu1 %v3655_v52  ;;  %7986 = vmatmul.mubr.msk.bf16.gmra.mxu0 %vm2511_vm5, %v8374_v61  ;;  %v3445_v7 = vmax.f32 %v2938_v59, 0.0 }
 0x20e   :  { %v2941_v62 = vpop.f32.mrf.mxu0  ;;  %4169 = vmatmul.mubr.bf16.gmra.mxu1 %v3654_v58  ;;  %3193 = vmatprep.mubr.bf16.mxu0 %v8474_v0  ;;  %v8380_v58 = vld [vmem:[#allocation2 + $0x180] sm:$0xff]  }
 0x20f   :  { %v2942_v1 = vadd.f32 %v2941_v62, %v9994_v4  ;;  %v3446_v8 = vmax.f32 %v2940_v60, 0.0 }
 0x210   :  { %v2945_v3 = vpop.f32.mrf.mxu0 }
 0x211   :  { %v3447_v9 = vmax.f32 %v2942_v1, 0.0  ;;  %v3656_v17 = vpack.c.bf16 %v3446_v8, %v3444_v11  ;;  %v2946_v21 = vadd.f32 %v2945_v3, %v9997_v6 }
 0x212   :  { %v2947_v10 = vpop.f32.mrf.mxu0 }
 0x213   :  { %v3657_v12 = vpack.c.bf16 %v3447_v9, %v3445_v7  ;;  %v2948_v14 = vadd.f32 %v2947_v10, %v9994_v4  ;;  %v3448_v32 = vmax.f32 %v2946_v21, 0.0 }
 0x214   :  { %v2949_v15 = vpop.f32.mrf.mxu0 }
 0x215   :  { %v2950_v18 = vadd.f32 %v2949_v15, %v9997_v6  ;;  %4178 = vmatprep.mubr.bf16.mxu1 %v3657_v12  ;;  %7987 = vmatmul.mubr.msk.bf16.gmra.mxu0 %vm2511_vm5, %v8375_v19  ;;  %v3449_v24 = vmax.f32 %v2948_v14, 0.0  ;;  %v8381_v12 = vld [vmem:[#allocation2 + $0x188] sm:$0xff]  }
 0x216   :  { %v2951_v20 = vpop.f32.mrf.mxu0  ;;  %4179 = vmatmul.mubr.bf16.gmra.mxu1 %v3656_v17  ;;  %3203 = vmatprep.mubr.bf16.mxu0 %v8474_v0 }
 0x217   :  { %v2952_v22 = vadd.f32 %v2951_v20, %v9994_v4  ;;  %v3450_v27 = vmax.f32 %v2950_v18, 0.0 }
 0x218   :  { %v2955_v25 = vpop.f32.mrf.mxu0 }
 0x219   :  { %v3451_v28 = vmax.f32 %v2952_v22, 0.0  ;;  %v3658_v37 = vpack.c.bf16 %v3450_v27, %v3448_v32  ;;  %v2956_v42 = vadd.f32 %v2955_v25, %v9997_v6 }
 0x21a   :  { %v2957_v31 = vpop.f32.mrf.mxu0 }
 0x21b   :  { %v3659_v33 = vpack.c.bf16 %v3451_v28, %v3449_v24  ;;  %v2958_v38 = vadd.f32 %v2957_v31, %v9994_v4  ;;  %v3452_v50 = vmax.f32 %v2956_v42, 0.0  ;;  %v8382_v28 = vld [vmem:[#allocation2 + $0x190] sm:$0xff]  }
 0x21c   :  { %v2959_v35 = vpop.f32.mrf.mxu0 }
 0x21d   :  { %v2960_v39 = vadd.f32 %v2959_v35, %v9997_v6  ;;  %4188 = vmatprep.mubr.bf16.mxu1 %v3659_v33  ;;  %7988 = vmatmul.mubr.msk.bf16.gmra.mxu0 %vm2511_vm5, %v8376_v40  ;;  %v3453_v46 = vmax.f32 %v2958_v38, 0.0  ;;  %v8434_v40 = vld [vmem:[%s12339_s9 + $0x40] ss:$8 sps:$4 sm:$0xff]  }
 0x21e   :  { %v2961_v41 = vpop.f32.mrf.mxu0  ;;  %4189 = vmatmul.mubr.bf16.gmra.mxu1 %v3658_v37  ;;  %3213 = vmatprep.mubr.bf16.mxu0 %v8474_v0 }
 0x21f   :  { %v2962_v43 = vadd.f32 %v2961_v41, %v9994_v4  ;;  %v3454_v47 = vmax.f32 %v2960_v39, 0.0  ;;  %v8436_v41 = vld [vmem:[%s12339_s9 + $0x44] ss:$8 sps:$4 sm:$0xff]  }
 0x220   :  { %v2965_v44 = vpop.f32.mrf.mxu0  ;;  %6442 = vmatprep.subr.bf16.mxu1 %v8436_v41 }
 0x221   :  { %v3455_v48 = vmax.f32 %v2962_v43, 0.0  ;;  %v3660_v54 = vpack.c.bf16 %v3454_v47, %v3452_v50  ;;  %v2966_v60 = vadd.f32 %v2965_v44, %v9997_v6  ;;  %6443 = vmatpush1.bf16.msra.mxu1 %v8434_v40 }
 0x222   :  { %v2967_v49 = vpop.f32.mrf.mxu0 }
 0x223   :  { %v3661_v51 = vpack.c.bf16 %v3455_v48, %v3453_v46  ;;  %v2968_v55 = vadd.f32 %v2967_v49, %v9994_v4  ;;  %v3456_v5 = vmax.f32 %v2966_v60, 0.0 }
 0x224   :  { %v2969_v52 = vpop.f32.mrf.mxu0 }
 0x225   :  { %v2970_v57 = vadd.f32 %v2969_v52, %v9997_v6  ;;  %4198 = vmatprep.mubr.bf16.mxu1 %v3661_v51  ;;  %7989 = vmatmul.mubr.msk.bf16.gmra.mxu0 %vm2511_vm5, %v8380_v58  ;;  %v3457_v63 = vmax.f32 %v2968_v55, 0.0 }
 0x226   :  { %v2971_v59 = vpop.f32.mrf.mxu0  ;;  %4199 = vmatmul.mubr.bf16.gmra.mxu1 %v3660_v54  ;;  %3223 = vmatprep.mubr.bf16.mxu0 %v8474_v0 }
 0x227   :  { %v2972_v61 = vadd.f32 %v2971_v59, %v9994_v4  ;;  %v3458_v1 = vmax.f32 %v2970_v57, 0.0  ;;  %v8383_v57 = vld [vmem:[#allocation2 + $0x198] sm:$0xff]  }
 0x228   :  { %v2975_v62 = vpop.f32.mrf.mxu0 }
 0x229   :  { %v3459_v2 = vmax.f32 %v2972_v61, 0.0  ;;  %v3662_v9 = vpack.c.bf16 %v3458_v1, %v3456_v5  ;;  %v2976_v14 = vadd.f32 %v2975_v62, %v9997_v6 }
 0x22a   :  { %v2977_v3 = vpop.f32.mrf.mxu0 }
 0x22b   :  { %v3663_v7 = vpack.c.bf16 %v3459_v2, %v3457_v63  ;;  %v2978_v10 = vadd.f32 %v2977_v3, %v9994_v4  ;;  %v3460_v21 = vmax.f32 %v2976_v14, 0.0 }
 0x22c   :  { %v2979_v8 = vpop.f32.mrf.mxu0 }
 0x22d   :  { %v2980_v11 = vadd.f32 %v2979_v8, %v9997_v6  ;;  %4208 = vmatprep.mubr.bf16.mxu1 %v3663_v7  ;;  %7990 = vmatmul.mubr.msk.bf16.gmra.mxu0 %vm2511_vm5, %v8381_v12  ;;  %v3461_v17 = vmax.f32 %v2978_v10, 0.0 }
 0x22e   :  { %v2981_v13 = vpop.f32.mrf.mxu0  ;;  %4209 = vmatmul.mubr.bf16.gmra.mxu1 %v3662_v9  ;;  %3233 = vmatprep.mubr.bf16.mxu0 %v8474_v0 }
 0x22f   :  { %v2982_v15 = vadd.f32 %v2981_v13, %v9994_v4  ;;  %v3462_v18 = vmax.f32 %v2980_v11, 0.0 }
 0x230   :  { %v2985_v16 = vpop.f32.mrf.mxu0 }
 0x231   :  { %v3463_v19 = vmax.f32 %v2982_v15, 0.0  ;;  %v3664_v26 = vpack.c.bf16 %v3462_v18, %v3460_v21  ;;  %v2986_v31 = vadd.f32 %v2985_v16, %v9997_v6 }
 0x232   :  { %v2987_v20 = vpop.f32.mrf.mxu0  ;;  %v3980_v33 = vpop.f32.mrf.mxu1 }
 0x233   :  { %v3665_v22 = vpack.c.bf16 %v3463_v19, %v3461_v17  ;;  %v2988_v24 = vadd.f32 %v2987_v20, %v9994_v4  ;;  %v3981_v42 = vadd.f32 %v3980_v33, %v10319_v30  ;;  %v3464_v44 = vmax.f32 %v2986_v31, 0.0 }
 0x234   :  { %v2989_v25 = vpop.f32.mrf.mxu0  ;;  %v3982_v39 = vpop.f32.mrf.mxu1 }
 0x235   :  { %v2990_v27 = vadd.f32 %v2989_v25, %v9997_v6  ;;  %4218 = vmatprep.mubr.bf16.mxu1 %v3665_v22  ;;  %7991 = vmatmul.mubr.msk.bf16.gmra.mxu0 %vm2511_vm5, %v8382_v28  ;;  %v3465_v34 = vmax.f32 %v2988_v24, 0.0  ;;  %v3983_v48 = vadd.f32 %v3982_v39, %v10325_v36  ;;  %v4609_v58 = vmax.f32 %v3981_v42, 0.0  ;;  %v8387_v25 = vld [vmem:[#allocation2 + $0x1a0] sm:$0xff]  }
 0x236   :  { %v2991_v29 = vpop.f32.mrf.mxu0  ;;  %4219 = vmatmul.mubr.bf16.gmra.mxu1 %v3664_v26  ;;  %3243 = vmatprep.mubr.bf16.mxu0 %v8474_v0  ;;  %v3984_v46 = vpop.f32.mrf.mxu1 }
 0x237   :  { %v2992_v32 = vadd.f32 %v2991_v29, %v9994_v4  ;;  %v3466_v37 = vmax.f32 %v2990_v27, 0.0  ;;  %v3985_v49 = vadd.f32 %v3984_v46, %v10319_v30  ;;  %v4610_v2 = vmax.f32 %v3983_v48, 0.0 }
 0x238   :  { %v2995_v35 = vpop.f32.mrf.mxu0  ;;  %v3986_v55 = vpop.f32.mrf.mxu1 }
 0x239   :  { %v3467_v38 = vmax.f32 %v2992_v32, 0.0  ;;  %v3666_v51 = vpack.c.bf16 %v3466_v37, %v3464_v44  ;;  %v4611_v59 = vmax.f32 %v3985_v49, 0.0  ;;  %v3987_v60 = vadd.f32 %v3986_v55, %v10325_v36 }
 0x23a   :  { %v2997_v43 = vpop.f32.mrf.mxu0  ;;  %v2996_v62 = vadd.f32 %v2995_v35, %v9997_v6 }
 0x23b   :  { %v3667_v47 = vpack.c.bf16 %v3467_v38, %v3465_v34  ;;  %v2998_v52 = vadd.f32 %v2997_v43, %v9994_v4  ;;  %v10343_v3 = vpack.c.bf16 %v4611_v59, %v4609_v58  ;;  %v4612_v5 = vmax.f32 %v3987_v60, 0.0  ;;  %v8388_v59 = vld [vmem:[#allocation2 + $0x1a8] sm:$0xff]  }
 0x23c   :  { %v2999_v50 = vpop.f32.mrf.mxu0  ;;  %v3990_v1 = vpop.f32.mrf.mxu1  ;;  %v3468_v15 = vmax.f32 %v2996_v62, 0.0 }
 0x23d   :  { %v3000_v54 = vadd.f32 %v2999_v50, %v9997_v6  ;;  %4228 = vmatprep.mubr.bf16.mxu1 %v3667_v47  ;;  %7992 = vmatmul.mubr.msk.bf16.gmra.mxu0 %vm2511_vm5, %v8383_v57  ;;  %v3469_v8 = vmax.f32 %v2998_v52, 0.0  ;;  %v3991_v12 = vadd.f32 %v3990_v1, %v10319_v30  ;;  %v10347_v14 = vpack.c.bf16 %v4612_v5, %v4610_v2 }
 0x23e   :  { %v3001_v61 = vpop.f32.mrf.mxu0  ;;  %4229 = vmatmul.mubr.bf16.gmra.mxu1 %v3666_v51  ;;  %3253 = vmatprep.mubr.bf16.mxu0 %v8474_v0  ;;  %v3992_v11 = vpop.f32.mrf.mxu1 }
 0x23f   :  { %v3002_v63 = vadd.f32 %v3001_v61, %v9994_v4  ;;  %v3470_v9 = vmax.f32 %v3000_v54, 0.0  ;;  %v3993_v18 = vadd.f32 %v3992_v11, %v10325_v36  ;;  %v4613_v26 = vmax.f32 %v3991_v12, 0.0 }
 0x240   :  { %v3005_v7 = vpop.f32.mrf.mxu0  ;;  %v3994_v16 = vpop.f32.mrf.mxu1 }
 0x241   :  { %v3471_v10 = vmax.f32 %v3002_v63, 0.0  ;;  %v3995_v19 = vadd.f32 %v3994_v16, %v10319_v30  ;;  %v3668_v21 = vpack.c.bf16 %v3470_v9, %v3468_v15  ;;  %v3006_v31 = vadd.f32 %v3005_v7, %v9997_v6 }
 0x242   :  { %v3007_v13 = vpop.f32.mrf.mxu0  ;;  %v3996_v24 = vpop.f32.mrf.mxu1  ;;  %v4614_v34 = vmax.f32 %v3993_v18, 0.0 }
 0x243   :  { %v3669_v17 = vpack.c.bf16 %v3471_v10, %v3469_v8  ;;  %v3008_v22 = vadd.f32 %v3007_v13, %v9994_v4  ;;  %v4615_v27 = vmax.f32 %v3995_v19, 0.0  ;;  %v3997_v28 = vadd.f32 %v3996_v24, %v10325_v36 }
 0x244   :  { %v3009_v20 = vpop.f32.mrf.mxu0  ;;  %v3472_v47 = vmax.f32 %v3006_v31, 0.0 }
 0x245   :  { %v3010_v23 = vadd.f32 %v3009_v20, %v9997_v6  ;;  %4238 = vmatprep.mubr.bf16.mxu1 %v3669_v17  ;;  %7993 = vmatmul.mubr.msk.bf16.gmra.mxu0 %vm2511_vm5, %v8387_v25  ;;  %v10357_v35 = vpack.c.bf16 %v4615_v27, %v4613_v26  ;;  %v4616_v37 = vmax.f32 %v3997_v28, 0.0  ;;  %v3473_v39 = vmax.f32 %v3008_v22, 0.0 }
 0x246   :  { %v3011_v29 = vpop.f32.mrf.mxu0  ;;  %v4000_v33 = vpop.f32.mrf.mxu1  ;;  %4239 = vmatmul.mubr.bf16.gmra.mxu1 %v3668_v21  ;;  %3263 = vmatprep.mubr.bf16.mxu0 %v8474_v0 }
 0x247   :  { %v3012_v32 = vadd.f32 %v3011_v29, %v9994_v4  ;;  %v3474_v40 = vmax.f32 %v3010_v23, 0.0  ;;  %v4001_v43 = vadd.f32 %v4000_v33, %v10319_v30  ;;  %v10361_v46 = vpack.c.bf16 %v4616_v37, %v4614_v34  ;;  %v8392_v29 = vld [vmem:[#allocation2 + $0x1b0] sm:$0xff]  }
 0x248   :  { %v3015_v38 = vpop.f32.mrf.mxu0  ;;  %v4002_v42 = vpop.f32.mrf.mxu1 }
 0x249   :  { %v3475_v41 = vmax.f32 %v3012_v32, 0.0  ;;  %v4003_v50 = vadd.f32 %v4002_v42, %v10325_v36  ;;  %v3670_v54 = vpack.c.bf16 %v3474_v40, %v3472_v47  ;;  %v4617_v60 = vmax.f32 %v4001_v43, 0.0  ;;  %v8439_v47 = vld [vmem:[%s12339_s9 + $0x34] ss:$8 sps:$4 sm:$0xff]  }
 0x24a   :  { %v3017_v44 = vpop.f32.mrf.mxu0  ;;  %v4004_v48 = vpop.f32.mrf.mxu1  ;;  %v3016_v1 = vadd.f32 %v3015_v38, %v9997_v6  ;;  %6444 = vmatprep.subr.bf16.mxu1 %v8439_v47 }
 0x24b   :  { %v3671_v49 = vpack.c.bf16 %v3475_v41, %v3473_v39  ;;  %v4005_v51 = vadd.f32 %v4004_v48, %v10319_v30  ;;  %v3018_v55 = vadd.f32 %v3017_v44, %v9994_v4  ;;  %v4618_v7 = vmax.f32 %v4003_v50, 0.0  ;;  %v8437_v44 = vld [vmem:[%s12339_s9 + $0x30] ss:$8 sps:$4 sm:$0xff]  }
 0x24c   :  { %v3019_v52 = vpop.f32.mrf.mxu0  ;;  %v4006_v58 = vpop.f32.mrf.mxu1  ;;  %v3476_v19 = vmax.f32 %v3016_v1, 0.0  ;;  %6445 = vmatpush1.bf16.msra.mxu1 %v8437_v44 }
 0x24d   :  { %v3020_v57 = vadd.f32 %v3019_v52, %v9997_v6  ;;  %4248 = vmatprep.mubr.bf16.mxu1 %v3671_v49  ;;  %v4619_v61 = vmax.f32 %v4005_v51, 0.0  ;;  %v4007_v62 = vadd.f32 %v4006_v58, %v10325_v36  ;;  %7994 = vmatmul.mubr.msk.bf16.gmra.mxu0 %vm2511_vm5, %v8388_v59  ;;  %v3477_v11 = vmax.f32 %v3018_v55, 0.0 }
 0x24e   :  { %v3021_v63 = vpop.f32.mrf.mxu0  ;;  %v4010_v5 = vpop.f32.mrf.mxu1  ;;  %4249 = vmatmul.mubr.bf16.gmra.mxu1 %v3670_v54  ;;  %3273 = vmatprep.mubr.bf16.mxu0 %v8474_v0 }
 0x24f   :  { %v3022_v2 = vadd.f32 %v3021_v63, %v9994_v4  ;;  %v10371_v8 = vpack.c.bf16 %v4619_v61, %v4617_v60  ;;  %v4620_v9 = vmax.f32 %v4007_v62, 0.0  ;;  %v3478_v12 = vmax.f32 %v3020_v57, 0.0 }
 0x250   :  { %v3025_v10 = vpop.f32.mrf.mxu0  ;;  %v4012_v15 = vpop.f32.mrf.mxu1  ;;  %v4011_v16 = vadd.f32 %v4010_v5, %v10319_v30 }
 0x251   :  { %v3479_v13 = vmax.f32 %v3022_v2, 0.0  ;;  %v10375_v18 = vpack.c.bf16 %v4620_v9, %v4618_v7  ;;  %v4013_v22 = vadd.f32 %v4012_v15, %v10325_v36  ;;  %v3672_v25 = vpack.c.bf16 %v3478_v12, %v3476_v19  ;;  %v8393_v7 = vld [vmem:[#allocation2 + $0x1b8] sm:$0xff]  }
 0x252   :  { %v3027_v17 = vpop.f32.mrf.mxu0  ;;  %v4014_v20 = vpop.f32.mrf.mxu1  ;;  %v4621_v31 = vmax.f32 %v4011_v16, 0.0  ;;  %v3026_v37 = vadd.f32 %v3025_v10, %v9997_v6 }
 0x253   :  { %v3673_v21 = vpack.c.bf16 %v3479_v13, %v3477_v11  ;;  %v4015_v23 = vadd.f32 %v4014_v20, %v10319_v30  ;;  %v3028_v26 = vadd.f32 %v3027_v17, %v9994_v4  ;;  %v4622_v40 = vmax.f32 %v4013_v22, 0.0 }
 0x254   :  { %v3029_v24 = vpop.f32.mrf.mxu0  ;;  %v4016_v28 = vpop.f32.mrf.mxu1  ;;  %v3480_v57 = vmax.f32 %v3026_v37, 0.0 }
 0x255   :  { %v3030_v27 = vadd.f32 %v3029_v24, %v9997_v6  ;;  %4258 = vmatprep.mubr.bf16.mxu1 %v3673_v21  ;;  %v4623_v32 = vmax.f32 %v4015_v23, 0.0  ;;  %v4017_v33 = vadd.f32 %v4016_v28, %v10325_v36  ;;  %7995 = vmatmul.mubr.msk.bf16.gmra.mxu0 %vm2511_vm5, %v8392_v29  ;;  %v3481_v48 = vmax.f32 %v3028_v26, 0.0 }
 0x256   :  { %v3031_v34 = vpop.f32.mrf.mxu0  ;;  %v4020_v39 = vpop.f32.mrf.mxu1  ;;  %4259 = vmatmul.mubr.bf16.gmra.mxu1 %v3672_v25  ;;  %3283 = vmatprep.mubr.bf16.mxu0 %v8474_v0 }
 0x257   :  { %v3032_v38 = vadd.f32 %v3031_v34, %v9994_v4  ;;  %v10385_v41 = vpack.c.bf16 %v4623_v32, %v4621_v31  ;;  %v4624_v42 = vmax.f32 %v4017_v33, 0.0  ;;  %v3482_v49 = vmax.f32 %v3030_v27, 0.0 }
 0x258   :  { %v3035_v43 = vpop.f32.mrf.mxu0  ;;  %v4022_v51 = vpop.f32.mrf.mxu1  ;;  %v4021_v52 = vadd.f32 %v4020_v39, %v10319_v30 }
 0x259   :  { %v3483_v50 = vmax.f32 %v3032_v38, 0.0  ;;  %v10395_v55 = vpack.c.bf16 %v4624_v42, %v4622_v40  ;;  %v4023_v60 = vadd.f32 %v4022_v51, %v10325_v36  ;;  %v3674_v63 = vpack.c.bf16 %v3482_v49, %v3480_v57 }
 0x25a   :  { %v3037_v54 = vpop.f32.mrf.mxu0  ;;  %v4024_v58 = vpop.f32.mrf.mxu1  ;;  %v4625_v9 = vmax.f32 %v4021_v52, 0.0  ;;  %v3036_v13 = vadd.f32 %v3035_v43, %v9997_v6  ;;  %v8397_v43 = vld [vmem:[#allocation2 + $0x1c0] sm:$0xff]  }
 0x25b   :  { %v3675_v59 = vpack.c.bf16 %v3483_v50, %v3481_v48  ;;  %v4025_v61 = vadd.f32 %v4024_v58, %v10319_v30  ;;  %v3038_v1 = vadd.f32 %v3037_v54, %v9994_v4  ;;  %v4626_v17 = vmax.f32 %v4023_v60, 0.0 }
 0x25c   :  { %v3039_v62 = vpop.f32.mrf.mxu0  ;;  %v4026_v5 = vpop.f32.mrf.mxu1  ;;  %v3484_v29 = vmax.f32 %v3036_v13, 0.0 }
 0x25d   :  { %v3040_v2 = vadd.f32 %v3039_v62, %v9997_v6  ;;  %4268 = vmatprep.mubr.bf16.mxu1 %v3675_v59  ;;  %v4627_v10 = vmax.f32 %v4025_v61, 0.0  ;;  %v4027_v11 = vadd.f32 %v4026_v5, %v10325_v36  ;;  %7996 = vmatmul.mubr.msk.bf16.gmra.mxu0 %vm2511_vm5, %v8393_v7  ;;  %v3485_v22 = vmax.f32 %v3038_v1, 0.0 }
 0x25e   :  { %v3041_v12 = vpop.f32.mrf.mxu0  ;;  %v4030_v16 = vpop.f32.mrf.mxu1  ;;  %4269 = vmatmul.mubr.bf16.gmra.mxu1 %v3674_v63  ;;  %3293 = vmatprep.mubr.bf16.mxu0 %v8474_v0 }
 0x25f   :  { %v3042_v15 = vadd.f32 %v3041_v12, %v9994_v4  ;;  %v10405_v19 = vpack.c.bf16 %v4627_v10, %v4625_v9  ;;  %v4628_v20 = vmax.f32 %v4027_v11, 0.0  ;;  %v3486_v23 = vmax.f32 %v3040_v2, 0.0 }
 0x260   :  { %v3045_v21 = vpop.f32.mrf.mxu0  ;;  %v4032_v25 = vpop.f32.mrf.mxu1  ;;  %v4031_v26 = vadd.f32 %v4030_v16, %v10319_v30 }
 0x261   :  { %v3487_v24 = vmax.f32 %v3042_v15, 0.0  ;;  %v10409_v28 = vpack.c.bf16 %v4628_v20, %v4626_v17  ;;  %v4033_v33 = vadd.f32 %v4032_v25, %v10325_v36  ;;  %v3676_v38 = vpack.c.bf16 %v3486_v23, %v3484_v29 }
 0x262   :  { %v3047_v27 = vpop.f32.mrf.mxu0  ;;  %v4034_v31 = vpop.f32.mrf.mxu1  ;;  %v4629_v44 = vmax.f32 %v4031_v26, 0.0  ;;  %v3046_v50 = vadd.f32 %v3045_v21, %v9997_v6  ;;  %v8398_v21 = vld [vmem:[#allocation2 + $0x1c8] sm:$0xff]  }
 0x263   :  { %v3677_v32 = vpack.c.bf16 %v3487_v24, %v3485_v22  ;;  %v4035_v34 = vadd.f32 %v4034_v31, %v10319_v30  ;;  %v3048_v39 = vadd.f32 %v3047_v27, %v9994_v4  ;;  %v4630_v54 = vmax.f32 %v4033_v33, 0.0 }
 0x264   :  { %v3049_v37 = vpop.f32.mrf.mxu0  ;;  %v4036_v42 = vpop.f32.mrf.mxu1  ;;  %v3488_v7 = vmax.f32 %v3046_v50, 0.0 }
 0x265   :  { %v3050_v40 = vadd.f32 %v3049_v37, %v9997_v6  ;;  %4278 = vmatprep.mubr.bf16.mxu1 %v3677_v32  ;;  %v4631_v47 = vmax.f32 %v4035_v34, 0.0  ;;  %v4037_v48 = vadd.f32 %v4036_v42, %v10325_v36  ;;  %7997 = vmatmul.mubr.msk.bf16.gmra.mxu0 %vm2511_vm5, %v8397_v43  ;;  %v3489_v60 = vmax.f32 %v3048_v39, 0.0 }
 0x266   :  { %v3051_v49 = vpop.f32.mrf.mxu0  ;;  %v4040_v52 = vpop.f32.mrf.mxu1  ;;  %4279 = vmatmul.mubr.bf16.gmra.mxu1 %v3676_v38  ;;  %3303 = vmatprep.mubr.bf16.mxu0 %v8474_v0 }
 0x267   :  { %v3052_v51 = vadd.f32 %v3051_v49, %v9994_v4  ;;  %v10419_v57 = vpack.c.bf16 %v4631_v47, %v4629_v44  ;;  %v4632_v58 = vmax.f32 %v4037_v48, 0.0  ;;  %v3490_v61 = vmax.f32 %v3050_v40, 0.0 }
 0x268   :  { %v3055_v59 = vpop.f32.mrf.mxu0  ;;  %v4042_v63 = vpop.f32.mrf.mxu1  ;;  %v4041_v1 = vadd.f32 %v4040_v52, %v10319_v30 }
 0x269   :  { %v3491_v62 = vmax.f32 %v3052_v51, 0.0  ;;  %v10423_v5 = vpack.c.bf16 %v4632_v58, %v4630_v54  ;;  %v4043_v11 = vadd.f32 %v4042_v63, %v10325_v36  ;;  %v3678_v15 = vpack.c.bf16 %v3490_v61, %v3488_v7  ;;  %v8402_v61 = vld [vmem:[#allocation2 + $0x1d0] sm:$0xff]  }
 0x26a   :  { %v3057_v2 = vpop.f32.mrf.mxu0  ;;  %v4044_v9 = vpop.f32.mrf.mxu1  ;;  %v4633_v22 = vmax.f32 %v4041_v1, 0.0  ;;  %v3056_v26 = vadd.f32 %v3055_v59, %v9997_v6 }
 0x26b   :  { %v3679_v10 = vpack.c.bf16 %v3491_v62, %v3489_v60  ;;  %v4045_v12 = vadd.f32 %v4044_v9, %v10319_v30  ;;  %v3058_v16 = vadd.f32 %v3057_v2, %v9994_v4  ;;  %v4634_v31 = vmax.f32 %v4043_v11, 0.0 }
 0x26c   :  { %v3059_v13 = vpop.f32.mrf.mxu0  ;;  %v4046_v20 = vpop.f32.mrf.mxu1  ;;  %v3492_v47 = vmax.f32 %v3056_v26, 0.0 }
 0x26d   :  { %v3060_v17 = vadd.f32 %v3059_v13, %v9997_v6  ;;  %4288 = vmatprep.mubr.bf16.mxu1 %v3679_v10  ;;  %v4635_v23 = vmax.f32 %v4045_v12, 0.0  ;;  %v4047_v24 = vadd.f32 %v4046_v20, %v10325_v36  ;;  %7998 = vmatmul.mubr.msk.bf16.gmra.mxu0 %vm2511_vm5, %v8398_v21  ;;  %v3493_v37 = vmax.f32 %v3058_v16, 0.0  ;;  %v8440_v16 = vld [vmem:[%s12339_s9 + $0x20] ss:$8 sps:$4 sm:$0xff]  }
 0x26e   :  { %v3061_v25 = vpop.f32.mrf.mxu0  ;;  %v4050_v29 = vpop.f32.mrf.mxu1  ;;  %4289 = vmatmul.mubr.bf16.gmra.mxu1 %v3678_v15  ;;  %3313 = vmatprep.mubr.bf16.mxu0 %v8474_v0 }
 0x26f   :  { %v3062_v27 = vadd.f32 %v3061_v25, %v9994_v4  ;;  %v10433_v32 = vpack.c.bf16 %v4635_v23, %v4633_v22  ;;  %v4636_v33 = vmax.f32 %v4047_v24, 0.0  ;;  %v3494_v38 = vmax.f32 %v3060_v17, 0.0  ;;  %v8442_v17 = vld [vmem:[%s12339_s9 + $0x24] ss:$8 sps:$4 sm:$0xff]  }
 0x270   :  { %v3065_v34 = vpop.f32.mrf.mxu0  ;;  %v4052_v40 = vpop.f32.mrf.mxu1  ;;  %v4051_v42 = vadd.f32 %v4050_v29, %v10319_v30  ;;  %6446 = vmatprep.subr.bf16.mxu1 %v8442_v17 }
 0x271   :  { %v3495_v39 = vmax.f32 %v3062_v27, 0.0  ;;  %v10437_v44 = vpack.c.bf16 %v4636_v33, %v4634_v31  ;;  %v4053_v50 = vadd.f32 %v4052_v40, %v10325_v36  ;;  %v3680_v54 = vpack.c.bf16 %v3494_v38, %v3492_v47  ;;  %6447 = vmatpush1.bf16.msra.mxu1 %v8440_v16 }
 0x272   :  { %v3067_v43 = vpop.f32.mrf.mxu0  ;;  %v4054_v48 = vpop.f32.mrf.mxu1  ;;  %v4637_v62 = vmax.f32 %v4051_v42, 0.0  ;;  %v3066_v7 = vadd.f32 %v3065_v34, %v9997_v6 }
 0x273   :  { %v3681_v49 = vpack.c.bf16 %v3495_v39, %v3493_v37  ;;  %v4055_v51 = vadd.f32 %v4054_v48, %v10319_v30  ;;  %v3068_v58 = vadd.f32 %v3067_v43, %v9994_v4  ;;  %v4638_v11 = vmax.f32 %v4053_v50, 0.0  ;;  %v8403_v43 = vld [vmem:[#allocation2 + $0x1d8] sm:$0xff]  }
 0x274   :  { %v3069_v52 = vpop.f32.mrf.mxu0  ;;  %v4056_v60 = vpop.f32.mrf.mxu1  ;;  %v3496_v27 = vmax.f32 %v3066_v7, 0.0 }
 0x275   :  { %v3070_v59 = vadd.f32 %v3069_v52, %v9997_v6  ;;  %4298 = vmatprep.mubr.bf16.mxu1 %v3681_v49  ;;  %v4639_v63 = vmax.f32 %v4055_v51, 0.0  ;;  %v4057_v1 = vadd.f32 %v4056_v60, %v10325_v36  ;;  %7999 = vmatmul.mubr.msk.bf16.gmra.mxu0 %vm2511_vm5, %v8402_v61  ;;  %v3497_v20 = vmax.f32 %v3068_v58, 0.0 }
 0x276   :  { %v3071_v2 = vpop.f32.mrf.mxu0  ;;  %v4060_v10 = vpop.f32.mrf.mxu1  ;;  %4299 = vmatmul.mubr.bf16.gmra.mxu1 %v3680_v54  ;;  %3323 = vmatprep.mubr.bf16.mxu0 %v8474_v0 }
 0x277   :  { %v3072_v9 = vadd.f32 %v3071_v2, %v9994_v4  ;;  %v10447_v12 = vpack.c.bf16 %v4639_v63, %v4637_v62  ;;  %v4640_v13 = vmax.f32 %v4057_v1, 0.0  ;;  %v3498_v21 = vmax.f32 %v3070_v59, 0.0 }
 0x278   :  { %v3075_v15 = vpop.f32.mrf.mxu0  ;;  %v4062_v23 = vpop.f32.mrf.mxu1  ;;  %v4061_v24 = vadd.f32 %v4060_v10, %v10319_v30 }
 0x279   :  { %v3499_v22 = vmax.f32 %v3072_v9, 0.0  ;;  %v10457_v26 = vpack.c.bf16 %v4640_v13, %v4638_v11  ;;  %v4063_v33 = vadd.f32 %v4062_v23, %v10325_v36  ;;  %v3682_v38 = vpack.c.bf16 %v3498_v21, %v3496_v27 }
 0x27a   :  { %v3077_v25 = vpop.f32.mrf.mxu0  ;;  %v4064_v29 = vpop.f32.mrf.mxu1  ;;  %v4641_v47 = vmax.f32 %v4061_v24, 0.0  ;;  %v3076_v51 = vadd.f32 %v3075_v15, %v9997_v6 }
 0x27b   :  { %v3683_v31 = vpack.c.bf16 %v3499_v22, %v3497_v20  ;;  %v4065_v34 = vadd.f32 %v4064_v29, %v10319_v30  ;;  %v3078_v39 = vadd.f32 %v3077_v25, %v9994_v4  ;;  %v4642_v58 = vmax.f32 %v4063_v33, 0.0  ;;  %v8410_v25 = vld [vmem:[#allocation2 + $0x1e0] sm:$0xff]  }
 0x27c   :  { %v3079_v37 = vpop.f32.mrf.mxu0  ;;  %v4066_v42 = vpop.f32.mrf.mxu1  ;;  %v3500_v11 = vmax.f32 %v3076_v51, 0.0 }
 0x27d   :  { %v3080_v40 = vadd.f32 %v3079_v37, %v9997_v6  ;;  %4308 = vmatprep.mubr.bf16.mxu1 %v3683_v31  ;;  %v4643_v48 = vmax.f32 %v4065_v34, 0.0  ;;  %v4067_v49 = vadd.f32 %v4066_v42, %v10325_v36  ;;  %8000 = vmatmul.mubr.msk.bf16.gmra.mxu0 %vm2511_vm5, %v8403_v43  ;;  %v3501_v62 = vmax.f32 %v3078_v39, 0.0 }
 0x27e   :  { %v3081_v50 = vpop.f32.mrf.mxu0  ;;  %v4070_v54 = vpop.f32.mrf.mxu1  ;;  %4309 = vmatmul.mubr.bf16.gmra.mxu1 %v3682_v38  ;;  %3333 = vmatprep.mubr.bf16.mxu0 %v8474_v0 }
 0x27f   :  { %v3082_v52 = vadd.f32 %v3081_v50, %v9994_v4  ;;  %v10467_v59 = vpack.c.bf16 %v4643_v48, %v4641_v47  ;;  %v4644_v60 = vmax.f32 %v4067_v49, 0.0  ;;  %v3502_v63 = vmax.f32 %v3080_v40, 0.0 }
 0x280   :  { %v3085_v61 = vpop.f32.mrf.mxu0  ;;  %v4072_v2 = vpop.f32.mrf.mxu1  ;;  %v4071_v7 = vadd.f32 %v4070_v54, %v10319_v30 }
 0x281   :  { %v3503_v1 = vmax.f32 %v3082_v52, 0.0  ;;  %v10471_v10 = vpack.c.bf16 %v4644_v60, %v4642_v58  ;;  %v4073_v16 = vadd.f32 %v4072_v2, %v10325_v36  ;;  %v3684_v21 = vpack.c.bf16 %v3502_v63, %v3500_v11 }
 0x282   :  { %v3087_v9 = vpop.f32.mrf.mxu0  ;;  %v4074_v13 = vpop.f32.mrf.mxu1  ;;  %v4645_v27 = vmax.f32 %v4071_v7, 0.0  ;;  %v3086_v34 = vadd.f32 %v3085_v61, %v9997_v6 }
 0x283   :  { %v3685_v15 = vpack.c.bf16 %v3503_v1, %v3501_v62  ;;  %v4075_v17 = vadd.f32 %v4074_v13, %v10319_v30  ;;  %v3088_v22 = vadd.f32 %v3087_v9, %v9994_v4  ;;  %v4646_v39 = vmax.f32 %v4073_v16, 0.0  ;;  %v8417_v13 = vld [vmem:[#allocation2 + $0x1e8] sm:$0xff]  }
 0x284   :  { %v3089_v20 = vpop.f32.mrf.mxu0  ;;  %v4076_v24 = vpop.f32.mrf.mxu1  ;;  %v3504_v58 = vmax.f32 %v3086_v34, 0.0 }
 0x285   :  { %v3090_v23 = vadd.f32 %v3089_v20, %v9997_v6  ;;  %4318 = vmatprep.mubr.bf16.mxu1 %v3685_v15  ;;  %v4647_v29 = vmax.f32 %v4075_v17, 0.0  ;;  %v4077_v31 = vadd.f32 %v4076_v24, %v10325_v36  ;;  %8001 = vmatmul.mubr.msk.bf16.gmra.mxu0 %vm2511_vm5, %v8410_v25  ;;  %v3505_v47 = vmax.f32 %v3088_v22, 0.0 }
 0x286   :  { %v3091_v33 = vpop.f32.mrf.mxu0  ;;  %v4080_v38 = vpop.f32.mrf.mxu1  ;;  %4319 = vmatmul.mubr.bf16.gmra.mxu1 %v3684_v21  ;;  %3343 = vmatprep.mubr.bf16.mxu0 %v8474_v0 }
 0x287   :  { %v3092_v37 = vadd.f32 %v3091_v33, %v9994_v4  ;;  %v10481_v40 = vpack.c.bf16 %v4647_v29, %v4645_v27  ;;  %v4648_v42 = vmax.f32 %v4077_v31, 0.0  ;;  %v3506_v48 = vmax.f32 %v3090_v23, 0.0 }
 0x288   :  { %v3095_v43 = vpop.f32.mrf.mxu0  ;;  %v4082_v50 = vpop.f32.mrf.mxu1  ;;  %v4081_v51 = vadd.f32 %v4080_v38, %v10319_v30 }
 0x289   :  { %v3507_v49 = vmax.f32 %v3092_v37, 0.0  ;;  %v10485_v54 = vpack.c.bf16 %v4648_v42, %v4646_v39  ;;  %v4083_v62 = vadd.f32 %v4082_v50, %v10325_v36  ;;  %v3686_v2 = vpack.c.bf16 %v3506_v48, %v3504_v58 }
 0x28a   :  { %v3097_v52 = vpop.f32.mrf.mxu0  ;;  %v4084_v60 = vpop.f32.mrf.mxu1  ;;  %v4649_v15 = vmax.f32 %v4081_v51, 0.0  ;;  %v3096_v21 = vadd.f32 %v3095_v43, %v9997_v6 }
 0x28b   :  { %v3687_v61 = vpack.c.bf16 %v3507_v49, %v3505_v47  ;;  %v4085_v63 = vadd.f32 %v4084_v60, %v10319_v30  ;;  %v3098_v7 = vadd.f32 %v3097_v52, %v9994_v4  ;;  %v4650_v24 = vmax.f32 %v4083_v62, 0.0 }
 0x28c   :  { %v3099_v1 = vpop.f32.mrf.mxu0  ;;  %v4086_v11 = vpop.f32.mrf.mxu1  ;;  %v3508_v43 = vmax.f32 %v3096_v21, 0.0  ;;  %v8445_v21 = vld [vmem:[%s12339_s9 + $0x14] ss:$8 sps:$4 sm:$0xff]  }
 0x28d   :  { %v3100_v9 = vadd.f32 %v3099_v1, %v9997_v6  ;;  %4328 = vmatprep.mubr.bf16.mxu1 %v3687_v61  ;;  %v4651_v16 = vmax.f32 %v4085_v63, 0.0  ;;  %v4087_v17 = vadd.f32 %v4086_v11, %v10325_v36  ;;  %8002 = vmatmul.mubr.msk.bf16.gmra.mxu0 %vm2511_vm5, %v8417_v13  ;;  %v3509_v31 = vmax.f32 %v3098_v7, 0.0  ;;  %v8427_v61 = vld [vmem:[#allocation2 + $0x1f0] sm:$0xff]  }
 0x28e   :  { %v3101_v20 = vpop.f32.mrf.mxu0  ;;  %v4090_v23 = vpop.f32.mrf.mxu1  ;;  %4329 = vmatmul.mubr.bf16.gmra.mxu1 %v3686_v2  ;;  %3353 = vmatprep.mubr.bf16.mxu0 %v8474_v0 }
 0x28f   :  { %v3102_v22 = vadd.f32 %v3101_v20, %v9994_v4  ;;  %v10495_v25 = vpack.c.bf16 %v4651_v16, %v4649_v15  ;;  %v4652_v27 = vmax.f32 %v4087_v17, 0.0  ;;  %v3510_v33 = vmax.f32 %v3100_v9, 0.0  ;;  %v8443_v20 = vld [vmem:[%s12339_s9 + $0x10] ss:$8 sps:$4 sm:$0xff]   ;;  %6448 = vmatprep.subr.bf16.mxu1 %v8445_v21 }
 0x290   :  { %v3105_v29 = vpop.f32.mrf.mxu0  ;;  %v4092_v37 = vpop.f32.mrf.mxu1  ;;  %v4091_v38 = vadd.f32 %v4090_v23, %v10319_v30  ;;  %6449 = vmatpush1.bf16.msra.mxu1 %v8443_v20 }
 0x291   :  { %v3511_v34 = vmax.f32 %v3102_v22, 0.0  ;;  %v10499_v42 = vpack.c.bf16 %v4652_v27, %v4650_v24  ;;  %v4093_v49 = vadd.f32 %v4092_v37, %v10325_v36  ;;  %v3688_v52 = vpack.c.bf16 %v3510_v33, %v3508_v43 }
 0x292   :  { %v3107_v39 = vpop.f32.mrf.mxu0  ;;  %v4094_v47 = vpop.f32.mrf.mxu1  ;;  %v4653_v62 = vmax.f32 %v4091_v38, 0.0  ;;  %v3106_v7 = vadd.f32 %v3105_v29, %v9997_v6 }
 0x293   :  { %v3689_v48 = vpack.c.bf16 %v3511_v34, %v3509_v31  ;;  %v4095_v50 = vadd.f32 %v4094_v47, %v10319_v30  ;;  %v3108_v0 = vadd.f32 %v3107_v39, %v9994_v4  ;;  %v4654_v13 = vmax.f32 %v4093_v49, 0.0 }
 0x294   :  { %v3109_v51 = vpop.f32.mrf.mxu0  ;;  %v4096_v60 = vpop.f32.mrf.mxu1  ;;  %v3512_v34 = vmax.f32 %v3106_v7, 0.0 }
 0x295   :  { %v3110_v58 = vadd.f32 %v3109_v51, %v9997_v6  ;;  %4338 = vmatprep.mubr.bf16.mxu1 %v3689_v48  ;;  %v4655_v63 = vmax.f32 %v4095_v50, 0.0  ;;  %v4097_v1 = vadd.f32 %v4096_v60, %v10325_v36  ;;  %8003 = vmatmul.mubr.msk.bf16.gmra.mxu0 %vm2511_vm5, %v8427_v61  ;;  %v3513_v22 = vmax.f32 %v3108_v0, 0.0 }
 0x296   :  { %v3111_v2 = vpop.f32.mrf.mxu0  ;;  %v4100_v11 = vpop.f32.mrf.mxu1  ;;  %4339 = vmatmul.mubr.bf16.gmra.mxu1 %v3688_v52  ;;  %5223 = vmatprep.mubr.bf16.mxu0 %v10347_v14 }
 0x297   :  { %v3112_v9 = vadd.f32 %v3111_v2, %v9994_v4  ;;  %v10509_v15 = vpack.c.bf16 %v4655_v63, %v4653_v62  ;;  %v4656_v16 = vmax.f32 %v4097_v1, 0.0  ;;  %v3514_v23 = vmax.f32 %v3110_v58, 0.0 }
 0x298   :  { %v3115_v17 = vpop.f32.mrf.mxu0  ;;  %v4102_v27 = vpop.f32.mrf.mxu1  ;;  %v4101_v29 = vadd.f32 %v4100_v11, %v10319_v30 }
 0x299   :  { %v3515_v24 = vmax.f32 %v3112_v9, 0.0  ;;  %v10519_v33 = vpack.c.bf16 %v4656_v16, %v4654_v13  ;;  %v4103_v38 = vadd.f32 %v4102_v27, %v10325_v36  ;;  %v3690_v47 = vpack.c.bf16 %v3514_v23, %v3512_v34 }
 0x29a   :  { %v3117_v31 = vpop.f32.mrf.mxu0  ;;  %v4104_v14 = vpop.f32.mrf.mxu1  ;;  %v4657_v51 = vmax.f32 %v4101_v29, 0.0  ;;  %v3116_v60 = vadd.f32 %v3115_v17, %v9997_v6 }
 0x29b   :  { %v3691_v37 = vpack.c.bf16 %v3515_v24, %v3513_v22  ;;  %v4105_v39 = vadd.f32 %v4104_v14, %v10319_v30  ;;  %v3118_v48 = vadd.f32 %v3117_v31, %v9994_v4  ;;  %v4658_v63 = vmax.f32 %v4103_v38, 0.0 }
 0x29c   :  { %v3119_v43 = vpop.f32.mrf.mxu0  ;;  %v4106_v50 = vpop.f32.mrf.mxu1  ;;  %v3516_v22 = vmax.f32 %v3116_v60, 0.0 }
 0x29d   :  { %v3120_v49 = vadd.f32 %v3119_v43, %v9997_v6  ;;  %4348 = vmatprep.mubr.bf16.mxu1 %v3691_v37  ;;  %v4659_v52 = vmax.f32 %v4105_v39, 0.0  ;;  %v4107_v0 = vadd.f32 %v4106_v50, %v10325_v36  ;;  %5224 = vmatmul.mubr.bf16.vlgmr.msra.gmra.mxu0 %v10343_v3  ;;  %v3517_v9 = vmax.f32 %v3118_v48, 0.0 }
 0x29e   :  { %v3121_v58 = vpop.f32.mrf.mxu0  ;;  %v4110_v62 = vpop.f32.mrf.mxu1  ;;  %4349 = vmatmul.mubr.bf16.gmra.mxu1 %v3690_v47  ;;  %5233 = vmatprep.mubr.bf16.mxu0 %v10361_v46 }
 0x29f   :  { %v3122_v61 = vadd.f32 %v3121_v58, %v9994_v4  ;;  %v10529_v1 = vpack.c.bf16 %v4659_v52, %v4657_v51  ;;  %v4660_v2 = vmax.f32 %v4107_v0, 0.0  ;;  %v3518_v11 = vmax.f32 %v3120_v49, 0.0 }
 0x2a0   :  { %v3125_v7 = vpop.f32.mrf.mxu0  ;;  %v4112_v16 = vpop.f32.mrf.mxu1  ;;  %v4111_v20 = vadd.f32 %v4110_v62, %v10319_v30 }
 0x2a1   :  { %v3519_v13 = vmax.f32 %v3122_v61, 0.0  ;;  %v10533_v21 = vpack.c.bf16 %v4660_v2, %v4658_v63  ;;  %v4113_v3 = vadd.f32 %v4112_v16, %v10325_v36  ;;  %v3692_v31 = vpack.c.bf16 %v3518_v11, %v3516_v22 }
 0x2a2   :  { %v3127_v17 = vpop.f32.mrf.mxu0  ;;  %v4114_v23 = vpop.f32.mrf.mxu1  ;;  %v4661_v37 = vmax.f32 %v4111_v20, 0.0  ;;  %v3126_v47 = vadd.f32 %v3125_v7, %v9997_v6 }
 0x2a3   :  { %v3693_v24 = vpack.c.bf16 %v3519_v13, %v3517_v9  ;;  %v4115_v27 = vadd.f32 %v4114_v23, %v10319_v30  ;;  %v3128_v46 = vadd.f32 %v3127_v17, %v9994_v4  ;;  %v4662_v50 = vmax.f32 %v4113_v3, 0.0 }
 0x2a4   :  { %v3129_v29 = vpop.f32.mrf.mxu0  ;;  %v4116_v14 = vpop.f32.mrf.mxu1  ;;  %v3520_v9 = vmax.f32 %v3126_v47, 0.0 }
 0x2a5   :  { %v3130_v34 = vadd.f32 %v3129_v29, %v9997_v6  ;;  %4358 = vmatprep.mubr.bf16.mxu1 %v3693_v24  ;;  %v4663_v38 = vmax.f32 %v4115_v27, 0.0  ;;  %v4117_v39 = vadd.f32 %v4116_v14, %v10325_v36  ;;  %5234 = vmatmul.mubr.bf16.gmra.mxu0 %v10357_v35  ;;  %v3521_v58 = vmax.f32 %v3128_v46, 0.0 }
 0x2a6   :  { %v3131_v43 = vpop.f32.mrf.mxu0  ;;  %v4120_v49 = vpop.f32.mrf.mxu1  ;;  %4359 = vmatmul.mubr.bf16.gmra.mxu1 %v3692_v31  ;;  %5243 = vmatprep.mubr.bf16.mxu0 %v10375_v18 }
 0x2a7   :  { %v3132_v48 = vadd.f32 %v3131_v43, %v9994_v4  ;;  %v10543_v51 = vpack.c.bf16 %v4663_v38, %v4661_v37  ;;  %v4664_v52 = vmax.f32 %v4117_v39, 0.0  ;;  %v3522_v60 = vmax.f32 %v3130_v34, 0.0 }
 0x2a8   :  { %v3135_v0 = vpop.f32.mrf.mxu0  ;;  %v4122_v62 = vpop.f32.mrf.mxu1  ;;  %v4121_v63 = vadd.f32 %v4120_v49, %v10319_v30 }
 0x2a9   :  { %v3523_v61 = vmax.f32 %v3132_v48, 0.0  ;;  %v10547_v7 = vpack.c.bf16 %v4664_v52, %v4662_v50  ;;  %v4123_v35 = vadd.f32 %v4122_v62, %v10325_v36  ;;  %v3694_v17 = vpack.c.bf16 %v3522_v60, %v3520_v9 }
 0x2aa   :  { %v3137_v2 = vpop.f32.mrf.mxu0  ;;  %v4124_v11 = vpop.f32.mrf.mxu1  ;;  %v4665_v24 = vmax.f32 %v4121_v63, 0.0  ;;  %v3136_v31 = vadd.f32 %v3135_v0, %v9997_v6 }
 0x2ab   :  { %v3695_v13 = vpack.c.bf16 %v3523_v61, %v3521_v58  ;;  %v4125_v16 = vadd.f32 %v4124_v11, %v10319_v30  ;;  %v3138_v18 = vadd.f32 %v3137_v2, %v9994_v4  ;;  %v4666_v14 = vmax.f32 %v4123_v35, 0.0 }
 0x2ac   :  { %v3139_v20 = vpop.f32.mrf.mxu0  ;;  %v4126_v23 = vpop.f32.mrf.mxu1  ;;  %v3524_v58 = vmax.f32 %v3136_v31, 0.0  ;;  %v8448_v31 = vld [vmem:[%s12339_s9 + $0x4] ss:$8 sps:$4 sm:$0xff]  }
 0x2ad   :  { %v3140_v22 = vadd.f32 %v3139_v20, %v9997_v6  ;;  %4368 = vmatprep.mubr.bf16.mxu1 %v3695_v13  ;;  %v4667_v3 = vmax.f32 %v4125_v16, 0.0  ;;  %v4127_v27 = vadd.f32 %v4126_v23, %v10325_v36  ;;  %5244 = vmatmul.mubr.bf16.gmra.mxu0 %v10371_v8  ;;  %v3525_v43 = vmax.f32 %v3138_v18, 0.0 }
 0x2ae   :  { %v3141_v29 = vpop.f32.mrf.mxu0  ;;  %v4130_v34 = vpop.f32.mrf.mxu1  ;;  %4369 = vmatmul.mubr.bf16.gmra.mxu1 %v3694_v17  ;;  %5253 = vmatprep.mubr.bf16.mxu0 %v10395_v55 }
 0x2af   :  { %v3142_v46 = vadd.f32 %v3141_v29, %v9994_v4  ;;  %v10557_v37 = vpack.c.bf16 %v4667_v3, %v4665_v24  ;;  %v4668_v38 = vmax.f32 %v4127_v27, 0.0  ;;  %v3526_v47 = vmax.f32 %v3140_v22, 0.0  ;;  %v8446_v29 = vld [vmem:[%s12339_s9] ss:$8 sps:$4 sm:$0xff]   ;;  %6450 = vmatprep.subr.bf16.mxu1 %v8448_v31 }
 0x2b0   :  { %v3145_v39 = vpop.f32.mrf.mxu0  ;;  %v4132_v49 = vpop.f32.mrf.mxu1  ;;  %v4131_v50 = vadd.f32 %v4130_v34, %v10319_v30  ;;  %6451 = vmatpush1.bf16.msra.mxu1 %v8446_v29 }
 0x2b1   :  { %v3527_v48 = vmax.f32 %v3142_v46, 0.0  ;;  %v10561_v0 = vpack.c.bf16 %v4668_v38, %v4666_v14  ;;  %v4133_v8 = vadd.f32 %v4132_v49, %v10325_v36  ;;  %v3696_v2 = vpack.c.bf16 %v3526_v47, %v3524_v58 }
 0x2b2   :  { %v3147_v52 = vpop.f32.mrf.mxu0  ;;  %v4134_v60 = vpop.f32.mrf.mxu1  ;;  %v4669_v13 = vmax.f32 %v4131_v50, 0.0  ;;  %v3146_v17 = vadd.f32 %v3145_v39, %v9997_v6 }
 0x2b3   :  { %v3697_v61 = vpack.c.bf16 %v3527_v48, %v3525_v43  ;;  %v4135_v62 = vadd.f32 %v4134_v60, %v10319_v30  ;;  %v3148_v55 = vadd.f32 %v3147_v52, %v9994_v4  ;;  %v4670_v23 = vmax.f32 %v4133_v8, 0.0 }
 0x2b4   :  { %v3149_v63 = vpop.f32.mrf.mxu0  ;;  %v4136_v11 = vpop.f32.mrf.mxu1  ;;  %v3528_v47 = vmax.f32 %v3146_v17, 0.0 }
 0x2b5   :  { %v3150_v9 = vadd.f32 %v3149_v63, %v9997_v6  ;;  %4378 = vmatprep.mubr.bf16.mxu1 %v3697_v61  ;;  %v4671_v35 = vmax.f32 %v4135_v62, 0.0  ;;  %v4137_v16 = vadd.f32 %v4136_v11, %v10325_v36  ;;  %5254 = vmatmul.mubr.bf16.gmra.mxu0 %v10385_v41  ;;  %v3529_v46 = vmax.f32 %v3148_v55, 0.0 }
 0x2b6   :  { %v3151_v20 = vpop.f32.mrf.mxu0  ;;  %v4140_v22 = vpop.f32.mrf.mxu1  ;;  %4379 = vmatmul.mubr.bf16.gmra.mxu1 %v3696_v2  ;;  %5263 = vmatprep.mubr.bf16.mxu0 %v10409_v28 }
 0x2b7   :  { %v3152_v18 = vadd.f32 %v3151_v20, %v9994_v4  ;;  %v10571_v24 = vpack.c.bf16 %v4671_v35, %v4669_v13  ;;  %v4672_v3 = vmax.f32 %v4137_v16, 0.0  ;;  %v3530_v34 = vmax.f32 %v3150_v9, 0.0 }
 0x2b8   :  { %v3155_v27 = vpop.f32.mrf.mxu0  ;;  %v4142_v38 = vpop.f32.mrf.mxu1  ;;  %v4141_v41 = vadd.f32 %v4140_v22, %v10319_v30 }
 0x2b9   :  { %v3531_v14 = vmax.f32 %v3152_v18, 0.0  ;;  %v10581_v43 = vpack.c.bf16 %v4672_v3, %v4670_v23  ;;  %v4143_v49 = vadd.f32 %v4142_v38, %v10325_v36  ;;  %v3698_v58 = vpack.c.bf16 %v3530_v34, %v3528_v47 }
 0x2ba   :  { %v3157_v39 = vpop.f32.mrf.mxu0  ;;  %v4144_v28 = vpop.f32.mrf.mxu1  ;;  %v4673_v62 = vmax.f32 %v4141_v41, 0.0  ;;  %v3156_v9 = vadd.f32 %v3155_v27, %v9997_v6 }
 0x2bb   :  { %v3699_v48 = vpack.c.bf16 %v3531_v14, %v3529_v46  ;;  %v4145_v50 = vadd.f32 %v4144_v28, %v10319_v30  ;;  %v3158_v60 = vadd.f32 %v3157_v39, %v9994_v4  ;;  %v4674_v35 = vmax.f32 %v4143_v49, 0.0 }
 0x2bc   :  { %v3159_v52 = vpop.f32.mrf.mxu0  ;;  %v4146_v8 = vpop.f32.mrf.mxu1  ;;  %v3532_v46 = vmax.f32 %v3156_v9, 0.0 }
 0x2bd   :  { %v3160_v61 = vadd.f32 %v3159_v52, %v9997_v6  ;;  %4388 = vmatprep.mubr.bf16.mxu1 %v3699_v48  ;;  %v4675_v63 = vmax.f32 %v4145_v50, 0.0  ;;  %v4147_v2 = vadd.f32 %v4146_v8, %v10325_v36  ;;  %5264 = vmatmul.mubr.bf16.gmra.mxu0 %v10405_v19  ;;  %v3533_v18 = vmax.f32 %v3158_v60, 0.0 }
 0x2be   :  { %v3161_v55 = vpop.f32.mrf.mxu0  ;;  %v4150_v13 = vpop.f32.mrf.mxu1  ;;  %4389 = vmatmul.mubr.bf16.gmra.mxu1 %v3698_v58  ;;  %5273 = vmatprep.mubr.bf16.mxu0 %v10423_v5 }
 0x2bf   :  { %v3162_v11 = vadd.f32 %v3161_v55, %v9994_v4  ;;  %v10591_v16 = vpack.c.bf16 %v4675_v63, %v4673_v62  ;;  %v4676_v20 = vmax.f32 %v4147_v2, 0.0  ;;  %v3534_v22 = vmax.f32 %v3160_v61, 0.0 }
 0x2c0   :  { %v3165_v17 = vpop.f32.mrf.mxu0  ;;  %v4152_v3 = vpop.f32.mrf.mxu1  ;;  %v4151_v29 = vadd.f32 %v4150_v13, %v10319_v30 }
 0x2c1   :  { %v3535_v23 = vmax.f32 %v3162_v11, 0.0  ;;  %v10595_v31 = vpack.c.bf16 %v4676_v20, %v4674_v35  ;;  %v4153_v19 = vadd.f32 %v4152_v3, %v10325_v36  ;;  %v3700_v39 = vpack.c.bf16 %v3534_v22, %v3532_v46 }
 0x2c2   :  { %v3167_v27 = vpop.f32.mrf.mxu0  ;;  %v4154_v34 = vpop.f32.mrf.mxu1  ;;  %v4677_v48 = vmax.f32 %v4151_v29, 0.0  ;;  %v3166_v58 = vadd.f32 %v3165_v17, %v9997_v6 }
 0x2c3   :  { %v3701_v14 = vpack.c.bf16 %v3535_v23, %v3533_v18  ;;  %v4155_v38 = vadd.f32 %v4154_v34, %v10319_v30  ;;  %v3168_v5 = vadd.f32 %v3167_v27, %v9994_v4  ;;  %v4678_v8 = vmax.f32 %v4153_v19, 0.0 }
 0x2c4   :  { %v3169_v41 = vpop.f32.mrf.mxu0  ;;  %v4156_v28 = vpop.f32.mrf.mxu1  ;;  %v3536_v18 = vmax.f32 %v3166_v58, 0.0 }
 0x2c5   :  { %v3170_v47 = vadd.f32 %v3169_v41, %v9997_v6  ;;  %4398 = vmatprep.mubr.bf16.mxu1 %v3701_v14  ;;  %v4679_v49 = vmax.f32 %v4155_v38, 0.0  ;;  %v4157_v50 = vadd.f32 %v4156_v28, %v10325_v36  ;;  %5274 = vmatmul.mubr.bf16.gmra.mxu0 %v10419_v57  ;;  %v3537_v55 = vmax.f32 %v3168_v5, 0.0  ;;  %v8451_v14 = vld [vmem:[%s12339_s9 + $0xf4] ss:$8 sps:$4 sm:$0xff]   ;;  %v8449_v5 = vld [vmem:[%s12339_s9 + $0xf0] ss:$8 sps:$4 sm:$0xff]  }
 0x2c6   :  { %v3171_v52 = vpop.f32.mrf.mxu0  ;;  %v4160_v61 = vpop.f32.mrf.mxu1  ;;  %4399 = vmatmul.mubr.bf16.gmra.mxu1 %v3700_v39  ;;  %5283 = vmatprep.mubr.bf16.mxu0 %v10437_v44 }
 0x2c7   :  { %v3172_v60 = vadd.f32 %v3171_v52, %v9994_v4  ;;  %v10605_v62 = vpack.c.bf16 %v4679_v49, %v4677_v48  ;;  %v4680_v63 = vmax.f32 %v4157_v50, 0.0  ;;  %v3538_v9 = vmax.f32 %v3170_v47, 0.0  ;;  %6452 = vmatprep.subr.bf16.mxu1 %v8451_v14 }
 0x2c8   :  { %v3175_v2 = vpop.f32.mrf.mxu0  ;;  %v4162_v13 = vpop.f32.mrf.mxu1  ;;  %v4161_v35 = vadd.f32 %v4160_v61, %v10319_v30  ;;  %6453 = vmatpush2.bf16.msra.mxu1 %v8449_v5 }
 0x2c9   :  { %v3539_v11 = vmax.f32 %v3172_v60, 0.0  ;;  %v10609_v17 = vpack.c.bf16 %v4680_v63, %v4678_v8  ;;  %v4163_v57 = vadd.f32 %v4162_v13, %v10325_v36  ;;  %v3702_v27 = vpack.c.bf16 %v3538_v9, %v3536_v18 }
 0x2ca   :  { %v3177_v20 = vpop.f32.mrf.mxu0  ;;  %v4164_v22 = vpop.f32.mrf.mxu1  ;;  %v4681_v19 = vmax.f32 %v4161_v35, 0.0  ;;  %v3176_v47 = vadd.f32 %v3175_v2, %v9997_v6  ;;  %v8454_v2 = vld [vmem:[%s12339_s9 + $0xe4] ss:$8 sps:$4 sm:$0xff]  }
 0x2cb   :  { %v3703_v23 = vpack.c.bf16 %v3539_v11, %v3537_v55  ;;  %v4165_v3 = vadd.f32 %v4164_v22, %v10319_v30  ;;  %v3178_v44 = vadd.f32 %v3177_v20, %v9994_v4  ;;  %v4682_v49 = vmax.f32 %v4163_v57, 0.0  ;;  %v8452_v11 = vld [vmem:[%s12339_s9 + $0xe0] ss:$8 sps:$4 sm:$0xff]   ;;  %6454 = vmatprep.subr.bf16.mxu1 %v8454_v2 }
 0x2cc   :  { %v3179_v29 = vpop.f32.mrf.mxu0  ;;  %v4166_v34 = vpop.f32.mrf.mxu1  ;;  %6455 = vmatpush2.bf16.msra.mxu1 %v8452_v11  ;;  %v8458_v2 = vld [vmem:[%s12339_s9 + $0xc0] ss:$8 sps:$4 sm:$0xff]  }
 0x2cd   :  { %v3180_v46 = vadd.f32 %v3179_v29, %v9997_v6  ;;  %4408 = vmatprep.mubr.bf16.mxu1 %v3703_v23  ;;  %v4683_v38 = vmax.f32 %v4165_v3, 0.0  ;;  %v4167_v41 = vadd.f32 %v4166_v34, %v10325_v36  ;;  %5284 = vmatmul.mubr.bf16.gmra.mxu0 %v10433_v32  ;;  %v3541_v60 = vmax.f32 %v3178_v44, 0.0 }
 0x2ce   :  { %v3181_v39 = vpop.f32.mrf.mxu0  ;;  %v4170_v48 = vpop.f32.mrf.mxu1  ;;  %4409 = vmatmul.mubr.bf16.gmra.mxu1 %v3702_v27  ;;  %5293 = vmatprep.mubr.bf16.mxu0 %v10457_v26  ;;  %v3540_v26 = vmax.f32 %v3176_v47, 0.0  ;;  %v8457_v27 = vld [vmem:[%s12339_s9 + $0xd4] ss:$8 sps:$4 sm:$0xff]  }
 0x2cf   :  { %v3182_v28 = vadd.f32 %v3181_v39, %v9994_v4  ;;  %v10625_v50 = vpack.c.bf16 %v4683_v38, %v4681_v19  ;;  %v4684_v52 = vmax.f32 %v4167_v41, 0.0  ;;  %v3542_v61 = vmax.f32 %v3180_v46, 0.0  ;;  %v8455_v19 = vld [vmem:[%s12339_s9 + $0xd0] ss:$8 sps:$4 sm:$0xff]   ;;  %6456 = vmatprep.subr.bf16.mxu1 %v8457_v27 }
 0x2d0   :  { %v3185_v58 = vpop.f32.mrf.mxu0  ;;  %v4172_v63 = vpop.f32.mrf.mxu1  ;;  %v4171_v55 = vadd.f32 %v4170_v48, %v10319_v30  ;;  %6457 = vmatpush2.bf16.msra.mxu1 %v8455_v19 }
 0x2d1   :  { %v3543_v8 = vmax.f32 %v3182_v28, 0.0  ;;  %v10632_v9 = vpack.c.bf16 %v4684_v52, %v4682_v49  ;;  %v4173_v20 = vadd.f32 %v4172_v63, %v10325_v36  ;;  %v3704_v23 = vpack.c.bf16 %v3542_v61, %v3540_v26 }
 0x2d2   :  { %v3187_v32 = vpop.f32.mrf.mxu0  ;;  %v4174_v13 = vpop.f32.mrf.mxu1  ;;  %v4685_v44 = vmax.f32 %v4171_v55, 0.0  ;;  %v3186_v38 = vadd.f32 %v3185_v58, %v9997_v6  ;;  %v8460_v58 = vld [vmem:[%s12339_s9 + $0xc4] ss:$8 sps:$4 sm:$0xff]  }
 0x2d3   :  { %v3705_v35 = vpack.c.bf16 %v3543_v8, %v3541_v60  ;;  %v4175_v18 = vadd.f32 %v4174_v13, %v10319_v30  ;;  %v3188_v57 = vadd.f32 %v3187_v32, %v9994_v4  ;;  %v4686_v5 = vmax.f32 %v4173_v20, 0.0  ;;  %6458 = vmatprep.subr.bf16.mxu1 %v8460_v58  ;;  %v8464_v58 = vld [vmem:[%s12339_s9 + $0xa0] ss:$8 sps:$4 sm:$0xff]  }
 0x2d4   :  { %v3189_v22 = vpop.f32.mrf.mxu0  ;;  %v4176_v29 = vpop.f32.mrf.mxu1  ;;  %6459 = vmatpush2.bf16.msra.mxu1 %v8458_v2 }
 0x2d5   :  { %v3190_v3 = vadd.f32 %v3189_v22, %v9997_v6  ;;  %4418 = vmatprep.mubr.bf16.mxu1 %v3705_v35  ;;  %v4687_v46 = vmax.f32 %v4175_v18, 0.0  ;;  %v4177_v34 = vadd.f32 %v4176_v29, %v10325_v36  ;;  %5294 = vmatmul.mubr.bf16.gmra.mxu0 %v10447_v12  ;;  %v3545_v49 = vmax.f32 %v3188_v57, 0.0 }
 0x2d6   :  { %v3191_v14 = vpop.f32.mrf.mxu0  ;;  %v4180_v39 = vpop.f32.mrf.mxu1  ;;  %4419 = vmatmul.mubr.bf16.gmra.mxu1 %v3704_v23  ;;  %5303 = vmatprep.mubr.bf16.mxu0 %v10471_v10  ;;  %v3544_v10 = vmax.f32 %v3186_v38, 0.0  ;;  %v8463_v23 = vld [vmem:[%s12339_s9 + $0xb4] ss:$8 sps:$4 sm:$0xff]  }
 0x2d7   :  { %v3192_v41 = vadd.f32 %v3191_v14, %v9994_v4  ;;  %v10651_v47 = vpack.c.bf16 %v4687_v46, %v4685_v44  ;;  %v4688_v28 = vmax.f32 %v4177_v34, 0.0  ;;  %v3546_v52 = vmax.f32 %v3190_v3, 0.0  ;;  %v8461_v44 = vld [vmem:[%s12339_s9 + $0xb0] ss:$8 sps:$4 sm:$0xff]   ;;  %6460 = vmatprep.subr.bf16.mxu1 %v8463_v23 }
 0x2d8   :  { %v3195_v48 = vpop.f32.mrf.mxu0  ;;  %v4182_v61 = vpop.f32.mrf.mxu1  ;;  %v4181_v8 = vadd.f32 %v4180_v39, %v10319_v30  ;;  %6461 = vmatpush2.bf16.msra.mxu1 %v8461_v44 }
 0x2d9   :  { %v3547_v60 = vmax.f32 %v3192_v41, 0.0  ;;  %v10658_v63 = vpack.c.bf16 %v4688_v28, %v4686_v5  ;;  %v4183_v11 = vadd.f32 %v4182_v61, %v10325_v36  ;;  %v3706_v35 = vpack.c.bf16 %v3546_v52, %v3544_v10 }
 0x2da   :  { %v3197_v12 = vpop.f32.mrf.mxu0  ;;  %v4184_v55 = vpop.f32.mrf.mxu1  ;;  %v4689_v57 = vmax.f32 %v4181_v8, 0.0  ;;  %v3196_v46 = vadd.f32 %v3195_v48, %v9997_v6  ;;  %v8466_v48 = vld [vmem:[%s12339_s9 + $0xa4] ss:$8 sps:$4 sm:$0xff]  }
 0x2db   :  { %v3707_v32 = vpack.c.bf16 %v3547_v60, %v3545_v49  ;;  %v4185_v26 = vadd.f32 %v4184_v55, %v10319_v30  ;;  %v3198_v20 = vadd.f32 %v3197_v12, %v9994_v4  ;;  %v4690_v19 = vmax.f32 %v4183_v11, 0.0  ;;  %6462 = vmatprep.subr.bf16.mxu1 %v8466_v48  ;;  %v8470_v48 = vld [vmem:[%s12339_s9 + $0x80] ss:$8 sps:$4 sm:$0xff]  }
 0x2dc   :  { %v3199_v13 = vpop.f32.mrf.mxu0  ;;  %v4186_v22 = vpop.f32.mrf.mxu1  ;;  %6463 = vmatpush2.bf16.msra.mxu1 %v8464_v58 }
 0x2dd   :  { %v3200_v18 = vadd.f32 %v3199_v13, %v9997_v6  ;;  %4428 = vmatprep.mubr.bf16.mxu1 %v3707_v32  ;;  %v4691_v3 = vmax.f32 %v4185_v26, 0.0  ;;  %v4187_v29 = vadd.f32 %v4186_v22, %v10325_v36  ;;  %5304 = vmatmul.mubr.bf16.gmra.mxu0 %v10467_v59  ;;  %v3549_v5 = vmax.f32 %v3198_v20, 0.0 }
 0x2de   :  { %v3201_v27 = vpop.f32.mrf.mxu0  ;;  %v4190_v14 = vpop.f32.mrf.mxu1  ;;  %4429 = vmatmul.mubr.bf16.gmra.mxu1 %v3706_v35  ;;  %5313 = vmatprep.mubr.bf16.mxu0 %v10485_v54  ;;  %v3548_v54 = vmax.f32 %v3196_v46, 0.0  ;;  %v8469_v35 = vld [vmem:[%s12339_s9 + $0x94] ss:$8 sps:$4 sm:$0xff]  }
 0x2df   :  { %v3202_v34 = vadd.f32 %v3201_v27, %v9994_v4  ;;  %v10677_v38 = vpack.c.bf16 %v4691_v3, %v4689_v57  ;;  %v4692_v41 = vmax.f32 %v4187_v29, 0.0  ;;  %v3550_v28 = vmax.f32 %v3200_v18, 0.0  ;;  %v8467_v57 = vld [vmem:[%s12339_s9 + $0x90] ss:$8 sps:$4 sm:$0xff]   ;;  %6464 = vmatprep.subr.bf16.mxu1 %v8469_v35 }
 0x2e0   :  { %v3205_v39 = vpop.f32.mrf.mxu0  ;;  %v4192_v52 = vpop.f32.mrf.mxu1  ;;  %v4191_v60 = vadd.f32 %v4190_v14, %v10319_v30  ;;  %6465 = vmatpush2.bf16.msra.mxu1 %v8467_v57 }
 0x2e1   :  { %v3551_v49 = vmax.f32 %v3202_v34, 0.0  ;;  %v10684_v61 = vpack.c.bf16 %v4692_v41, %v4690_v19  ;;  %v4193_v2 = vadd.f32 %v4192_v52, %v10325_v36  ;;  %v3708_v32 = vpack.c.bf16 %v3550_v28, %v3548_v54 }
 0x2e2   :  { %v3207_v59 = vpop.f32.mrf.mxu0  ;;  %v4194_v8 = vpop.f32.mrf.mxu1  ;;  %v4693_v20 = vmax.f32 %v4191_v60, 0.0  ;;  %v3206_v3 = vadd.f32 %v3205_v39, %v9997_v6  ;;  %v8472_v39 = vld [vmem:[%s12339_s9 + $0x84] ss:$8 sps:$4 sm:$0xff]  }
 0x2e3   :  { %v3709_v12 = vpack.c.bf16 %v3551_v49, %v3549_v5  ;;  %v4195_v10 = vadd.f32 %v4194_v8, %v10319_v30  ;;  %v3208_v11 = vadd.f32 %v3207_v59, %v9994_v4  ;;  %v4694_v44 = vmax.f32 %v4193_v2, 0.0  ;;  %6466 = vmatprep.subr.bf16.mxu1 %v8472_v39 }
 0x2e4   :  { %v3209_v55 = vpop.f32.mrf.mxu0  ;;  %v4196_v13 = vpop.f32.mrf.mxu1  ;;  %6467 = vmatpush2.bf16.msra.mxu1 %v8470_v48 }
 0x2e5   :  { %v3210_v26 = vadd.f32 %v3209_v55, %v9997_v6  ;;  %4438 = vmatprep.mubr.bf16.mxu1 %v3709_v12  ;;  %v4695_v18 = vmax.f32 %v4195_v10, 0.0  ;;  %v4197_v22 = vadd.f32 %v4196_v13, %v10325_v36  ;;  %5314 = vmatmul.mubr.bf16.gmra.mxu0 %v10481_v40  ;;  %v3553_v19 = vmax.f32 %v3208_v11, 0.0 }
 0x2e6   :  { %v3211_v23 = vpop.f32.mrf.mxu0  ;;  %v4200_v27 = vpop.f32.mrf.mxu1  ;;  %4439 = vmatmul.mubr.bf16.gmra.mxu1 %v3708_v32  ;;  %5323 = vmatprep.mubr.bf16.mxu0 %v10499_v42  ;;  %v3552_v42 = vmax.f32 %v3206_v3, 0.0 }
 0x2e7   :  { %v3212_v29 = vadd.f32 %v3211_v23, %v9994_v4  ;;  %v10703_v46 = vpack.c.bf16 %v4695_v18, %v4693_v20  ;;  %v4696_v34 = vmax.f32 %v4197_v22, 0.0  ;;  %v3554_v41 = vmax.f32 %v3210_v26, 0.0 }
 0x2e8   :  { %v3215_v14 = vpop.f32.mrf.mxu0  ;;  %v4202_v28 = vpop.f32.mrf.mxu1  ;;  %v4201_v49 = vadd.f32 %v4200_v27, %v10319_v30 }
 0x2e9   :  { %v3555_v5 = vmax.f32 %v3212_v29, 0.0  ;;  %v10710_v52 = vpack.c.bf16 %v4696_v34, %v4694_v44  ;;  %v4203_v58 = vadd.f32 %v4202_v28, %v10325_v36  ;;  %v3710_v12 = vpack.c.bf16 %v3554_v41, %v3552_v42 }
 0x2ea   :  { %v3217_v40 = vpop.f32.mrf.mxu0  ;;  %v4204_v60 = vpop.f32.mrf.mxu1  ;;  %v4697_v32 = vmax.f32 %v4201_v49, 0.0  ;;  %v3216_v35 = vadd.f32 %v3215_v14, %v9997_v6 }
 0x2eb   :  { %v3711_v59 = vpack.c.bf16 %v3555_v5, %v3553_v19  ;;  %v4205_v54 = vadd.f32 %v4204_v60, %v10319_v30  ;;  %v3218_v2 = vadd.f32 %v3217_v40, %v9994_v4  ;;  %v4698_v22 = vmax.f32 %v4203_v58, 0.0 }
 0x2ec   :  { %v3219_v8 = vpop.f32.mrf.mxu0  ;;  %v4206_v55 = vpop.f32.mrf.mxu1  ;;  %v3556_v5 = vmax.f32 %v3216_v35, 0.0 }
 0x2ed   :  { %v3220_v10 = vadd.f32 %v3219_v8, %v9997_v6  ;;  %4448 = vmatprep.mubr.bf16.mxu1 %v3711_v59  ;;  %v4699_v11 = vmax.f32 %v4205_v54, 0.0  ;;  %v4207_v26 = vadd.f32 %v4206_v55, %v10325_v36  ;;  %5324 = vmatmul.mubr.bf16.gmra.mxu0 %v10495_v25  ;;  %v3557_v29 = vmax.f32 %v3218_v2, 0.0 }
 0x2ee   :  { %v3221_v13 = vpop.f32.mrf.mxu0  ;;  %v4210_v18 = vpop.f32.mrf.mxu1  ;;  %4449 = vmatmul.mubr.bf16.gmra.mxu1 %v3710_v12  ;;  %5333 = vmatprep.mubr.bf16.mxu0 %v10519_v33 }
 0x2ef   :  { %v3222_v20 = vadd.f32 %v3221_v13, %v9994_v4  ;;  %v10723_v23 = vpack.c.bf16 %v4699_v11, %v4697_v32  ;;  %v4700_v57 = vmax.f32 %v4207_v26, 0.0  ;;  %v3558_v27 = vmax.f32 %v3220_v10, 0.0 }
 0x2f0   :  { %v3225_v3 = vpop.f32.mrf.mxu0  ;;  %v4212_v34 = vpop.f32.mrf.mxu1  ;;  %v4211_v19 = vadd.f32 %v4210_v18, %v10319_v30 }
 0x2f1   :  { %v3559_v44 = vmax.f32 %v3222_v20, 0.0  ;;  %v10727_v41 = vpack.c.bf16 %v4700_v57, %v4698_v22  ;;  %v4213_v25 = vadd.f32 %v4212_v34, %v10325_v36  ;;  %v3712_v48 = vpack.c.bf16 %v3558_v27, %v3556_v5 }
 0x2f2   :  { %v3227_v14 = vpop.f32.mrf.mxu0  ;;  %v4214_v28 = vpop.f32.mrf.mxu1  ;;  %v4701_v59 = vmax.f32 %v4211_v19, 0.0  ;;  %v3226_v12 = vadd.f32 %v3225_v3, %v9997_v6 }
 0x2f3   :  { %v3713_v39 = vpack.c.bf16 %v3559_v44, %v3557_v29  ;;  %v4215_v49 = vadd.f32 %v4214_v28, %v10319_v30  ;;  %v3228_v33 = vadd.f32 %v3227_v14, %v9994_v4  ;;  %v4702_v55 = vmax.f32 %v4213_v25, 0.0 }
 0x2f4   :  { %v3229_v40 = vpop.f32.mrf.mxu0  ;;  %v4216_v60 = vpop.f32.mrf.mxu1  ;;  %v3560_v29 = vmax.f32 %v3226_v12, 0.0 }
 0x2f5   :  { %v3230_v42 = vadd.f32 %v3229_v40, %v9997_v6  ;;  %4458 = vmatprep.mubr.bf16.mxu1 %v3713_v39  ;;  %v4703_v58 = vmax.f32 %v4215_v49, 0.0  ;;  %v4217_v54 = vadd.f32 %v4216_v60, %v10325_v36  ;;  %5334 = vmatmul.mubr.bf16.gmra.mxu0 %v10509_v15  ;;  %v3561_v13 = vmax.f32 %v3228_v33, 0.0 }
 0x2f6   :  { %v3231_v8 = vpop.f32.mrf.mxu0  ;;  %v4220_v10 = vpop.f32.mrf.mxu1  ;;  %4459 = vmatmul.mubr.bf16.gmra.mxu1 %v3712_v48  ;;  %5343 = vmatprep.mubr.bf16.mxu0 %v10533_v21 }
 0x2f7   :  { %v3232_v2 = vadd.f32 %v3231_v8, %v9994_v4  ;;  %v10737_v32 = vpack.c.bf16 %v4703_v58, %v4701_v59  ;;  %v4704_v11 = vmax.f32 %v4217_v54, 0.0  ;;  %v3562_v35 = vmax.f32 %v3230_v42, 0.0 }
 0x2f8   :  { %v3235_v26 = vpop.f32.mrf.mxu0  ;;  %v4222_v18 = vpop.f32.mrf.mxu1  ;;  %v4221_v22 = vadd.f32 %v4220_v10, %v10319_v30 }
 0x2f9   :  { %v3563_v20 = vmax.f32 %v3232_v2, 0.0  ;;  %v10741_v3 = vpack.c.bf16 %v4704_v11, %v4702_v55  ;;  %v4223_v15 = vadd.f32 %v4222_v18, %v10325_v36  ;;  %v3714_v14 = vpack.c.bf16 %v3562_v35, %v3560_v29 }
 0x2fa   :  { %v3237_v57 = vpop.f32.mrf.mxu0  ;;  %v4224_v27 = vpop.f32.mrf.mxu1  ;;  %v4705_v39 = vmax.f32 %v4221_v22, 0.0  ;;  %v3236_v48 = vadd.f32 %v3235_v26, %v9997_v6 }
 0x2fb   :  { %v3715_v44 = vpack.c.bf16 %v3563_v20, %v3561_v13  ;;  %v4225_v34 = vadd.f32 %v4224_v27, %v10319_v30  ;;  %v3238_v21 = vadd.f32 %v3237_v57, %v9994_v4  ;;  %v4706_v60 = vmax.f32 %v4223_v15, 0.0 }
 0x2fc   :  { %v3239_v19 = vpop.f32.mrf.mxu0  ;;  %v4226_v28 = vpop.f32.mrf.mxu1  ;;  %v3564_v13 = vmax.f32 %v3236_v48, 0.0 }
 0x2fd   :  { %v3240_v5 = vadd.f32 %v3239_v19, %v9997_v6  ;;  %4468 = vmatprep.mubr.bf16.mxu1 %v3715_v44  ;;  %v4707_v25 = vmax.f32 %v4225_v34, 0.0  ;;  %v4227_v49 = vadd.f32 %v4226_v28, %v10325_v36  ;;  %5344 = vmatmul.mubr.bf16.gmra.mxu0 %v10529_v1  ;;  %v3565_v8 = vmax.f32 %v3238_v21, 0.0 }
 0x2fe   :  { %v3241_v40 = vpop.f32.mrf.mxu0  ;;  %v4230_v42 = vpop.f32.mrf.mxu1  ;;  %4469 = vmatmul.mubr.bf16.gmra.mxu1 %v3714_v14  ;;  %5353 = vmatprep.mubr.bf16.mxu0 %v10547_v7 }
 0x2ff   :  { %v3242_v33 = vadd.f32 %v3241_v40, %v9994_v4  ;;  %v10751_v59 = vpack.c.bf16 %v4707_v25, %v4705_v39  ;;  %v4708_v58 = vmax.f32 %v4227_v49, 0.0  ;;  %v3566_v12 = vmax.f32 %v3240_v5, 0.0 }
 0x300   :  { %v3245_v54 = vpop.f32.mrf.mxu0  ;;  %v4232_v10 = vpop.f32.mrf.mxu1  ;;  %v4231_v55 = vadd.f32 %v4230_v42, %v10319_v30 }
 0x301   :  { %v3567_v2 = vmax.f32 %v3242_v33, 0.0  ;;  %v10755_v26 = vpack.c.bf16 %v4708_v58, %v4706_v60  ;;  %v4233_v1 = vadd.f32 %v4232_v10, %v10325_v36  ;;  %v3716_v57 = vpack.c.bf16 %v3566_v12, %v3564_v13 }
 0x302   :  { %v3247_v11 = vpop.f32.mrf.mxu0  ;;  %v4234_v35 = vpop.f32.mrf.mxu1  ;;  %v4709_v44 = vmax.f32 %v4231_v55, 0.0  ;;  %v3246_v14 = vadd.f32 %v3245_v54, %v9997_v6 }
 0x303   :  { %v3717_v20 = vpack.c.bf16 %v3567_v2, %v3565_v8  ;;  %v4235_v18 = vadd.f32 %v4234_v35, %v10319_v30  ;;  %v3248_v7 = vadd.f32 %v3247_v11, %v9994_v4  ;;  %v4710_v28 = vmax.f32 %v4233_v1, 0.0 }
 0x304   :  { %v3249_v22 = vpop.f32.mrf.mxu0  ;;  %v4236_v27 = vpop.f32.mrf.mxu1  ;;  %v3568_v8 = vmax.f32 %v3246_v14, 0.0 }
 0x305   :  { %v3250_v29 = vadd.f32 %v3249_v22, %v9997_v6  ;;  %4478 = vmatprep.mubr.bf16.mxu1 %v3717_v20  ;;  %v4711_v15 = vmax.f32 %v4235_v18, 0.0  ;;  %v4237_v34 = vadd.f32 %v4236_v27, %v10325_v36  ;;  %5354 = vmatmul.mubr.bf16.gmra.mxu0 %v10543_v51  ;;  %v3569_v40 = vmax.f32 %v3248_v7, 0.0 }
 0x306   :  { %v3251_v19 = vpop.f32.mrf.mxu0  ;;  %v4240_v5 = vpop.f32.mrf.mxu1  ;;  %4479 = vmatmul.mubr.bf16.gmra.mxu1 %v3716_v57  ;;  %5363 = vmatprep.mubr.bf16.mxu0 %v10561_v0 }
 0x307   :  { %v3252_v21 = vadd.f32 %v3251_v19, %v9994_v4  ;;  %v10765_v39 = vpack.c.bf16 %v4711_v15, %v4709_v44  ;;  %v4712_v25 = vmax.f32 %v4237_v34, 0.0  ;;  %v3570_v48 = vmax.f32 %v3250_v29, 0.0 }
 0x308   :  { %v3255_v49 = vpop.f32.mrf.mxu0  ;;  %v4242_v42 = vpop.f32.mrf.mxu1  ;;  %v4241_v60 = vadd.f32 %v4240_v5, %v10319_v30 }
 0x309   :  { %v3571_v33 = vmax.f32 %v3252_v21, 0.0  ;;  %v10769_v54 = vpack.c.bf16 %v4712_v25, %v4710_v28  ;;  %v4243_v51 = vadd.f32 %v4242_v42, %v10325_v36  ;;  %v3718_v11 = vpack.c.bf16 %v3570_v48, %v3568_v8 }
 0x30a   :  { %v3257_v58 = vpop.f32.mrf.mxu0  ;;  %v4244_v12 = vpop.f32.mrf.mxu1  ;;  %v4713_v20 = vmax.f32 %v4241_v60, 0.0  ;;  %v3256_v57 = vadd.f32 %v3255_v49, %v9997_v6 }
 0x30b   :  { %v3719_v2 = vpack.c.bf16 %v3571_v33, %v3569_v40  ;;  %v4245_v10 = vadd.f32 %v4244_v12, %v10319_v30  ;;  %v3258_v0 = vadd.f32 %v3257_v58, %v9994_v4  ;;  %v4714_v27 = vmax.f32 %v4243_v51, 0.0 }
 0x30c   :  { %v3259_v55 = vpop.f32.mrf.mxu0  ;;  %v4246_v35 = vpop.f32.mrf.mxu1  ;;  %v3572_v40 = vmax.f32 %v3256_v57, 0.0 }
 0x30d   :  { %v3260_v13 = vadd.f32 %v3259_v55, %v9997_v6  ;;  %4488 = vmatprep.mubr.bf16.mxu1 %v3719_v2  ;;  %v4715_v1 = vmax.f32 %v4245_v10, 0.0  ;;  %v4247_v18 = vadd.f32 %v4246_v35, %v10325_v36  ;;  %5364 = vmatmul.mubr.bf16.gmra.mxu0 %v10557_v37  ;;  %v3573_v19 = vmax.f32 %v3258_v0, 0.0 }
 0x30e   :  { %v3261_v22 = vpop.f32.mrf.mxu0  ;;  %v4250_v29 = vpop.f32.mrf.mxu1  ;;  %4489 = vmatmul.mubr.bf16.gmra.mxu1 %v3718_v11  ;;  %5373 = vmatprep.mubr.bf16.mxu0 %v10581_v43 }
 0x30f   :  { %v3262_v7 = vadd.f32 %v3261_v22, %v9994_v4  ;;  %v10779_v44 = vpack.c.bf16 %v4715_v1, %v4713_v20  ;;  %v4716_v15 = vmax.f32 %v4247_v18, 0.0  ;;  %v3574_v14 = vmax.f32 %v3260_v13, 0.0 }
 0x310   :  { %v3265_v34 = vpop.f32.mrf.mxu0  ;;  %v4252_v5 = vpop.f32.mrf.mxu1  ;;  %v4251_v28 = vadd.f32 %v4250_v29, %v10319_v30 }
 0x311   :  { %v3575_v21 = vmax.f32 %v3262_v7, 0.0  ;;  %v10783_v49 = vpack.c.bf16 %v4716_v15, %v4714_v27  ;;  %v4253_v37 = vadd.f32 %v4252_v5, %v10325_v36  ;;  %v3720_v58 = vpack.c.bf16 %v3574_v14, %v3572_v40 }
 0x312   :  { %v3267_v25 = vpop.f32.mrf.mxu0  ;;  %v4254_v48 = vpop.f32.mrf.mxu1  ;;  %v4717_v2 = vmax.f32 %v4251_v28, 0.0  ;;  %v3266_v11 = vadd.f32 %v3265_v34, %v9997_v6 }
 0x313   :  { %v3721_v33 = vpack.c.bf16 %v3575_v21, %v3573_v19  ;;  %v4255_v42 = vadd.f32 %v4254_v48, %v10319_v30  ;;  %v3268_v43 = vadd.f32 %v3267_v25, %v9994_v4  ;;  %v4718_v35 = vmax.f32 %v4253_v37, 0.0 }
 0x314   :  { %v3269_v60 = vpop.f32.mrf.mxu0  ;;  %v4256_v12 = vpop.f32.mrf.mxu1  ;;  %v3576_v19 = vmax.f32 %v3266_v11, 0.0 }
 0x315   :  { %v3270_v8 = vadd.f32 %v3269_v60, %v9997_v6  ;;  %4498 = vmatprep.mubr.bf16.mxu1 %v3721_v33  ;;  %v4719_v51 = vmax.f32 %v4255_v42, 0.0  ;;  %v4257_v10 = vadd.f32 %v4256_v12, %v10325_v36  ;;  %5374 = vmatmul.mubr.bf16.gmra.mxu0 %v10571_v24  ;;  %v3577_v22 = vmax.f32 %v3268_v43, 0.0 }
 0x316   :  { %v3271_v55 = vpop.f32.mrf.mxu0  ;;  %v4260_v13 = vpop.f32.mrf.mxu1  ;;  %4499 = vmatmul.mubr.bf16.gmra.mxu1 %v3720_v58  ;;  %5383 = vmatprep.mubr.bf16.mxu0 %v10595_v31 }
 0x317   :  { %v3272_v0 = vadd.f32 %v3271_v55, %v9994_v4  ;;  %v10793_v20 = vpack.c.bf16 %v4719_v51, %v4717_v2  ;;  %v4720_v1 = vmax.f32 %v4257_v10, 0.0  ;;  %v3578_v57 = vmax.f32 %v3270_v8, 0.0 }
 0x318   :  { %v3275_v18 = vpop.f32.mrf.mxu0  ;;  %v4262_v29 = vpop.f32.mrf.mxu1  ;;  %v4261_v27 = vadd.f32 %v4260_v13, %v10319_v30 }
 0x319   :  { %v3579_v7 = vmax.f32 %v3272_v0, 0.0  ;;  %v10797_v34 = vpack.c.bf16 %v4720_v1, %v4718_v35  ;;  %v4263_v24 = vadd.f32 %v4262_v29, %v10325_v36  ;;  %v3722_v25 = vpack.c.bf16 %v3578_v57, %v3576_v19 }
 0x31a   :  { %v3277_v15 = vpop.f32.mrf.mxu0  ;;  %v4264_v14 = vpop.f32.mrf.mxu1  ;;  %v4721_v33 = vmax.f32 %v4261_v27, 0.0  ;;  %v3276_v58 = vadd.f32 %v3275_v18, %v9997_v6 }
 0x31b   :  { %v3723_v21 = vpack.c.bf16 %v3579_v7, %v3577_v22  ;;  %v4265_v5 = vadd.f32 %v4264_v14, %v10319_v30  ;;  %v3278_v31 = vadd.f32 %v3277_v15, %v9994_v4  ;;  %v4722_v12 = vmax.f32 %v4263_v24, 0.0 }
 0x31c   :  { %v3279_v28 = vpop.f32.mrf.mxu0  ;;  %v4266_v48 = vpop.f32.mrf.mxu1  ;;  %v3580_v22 = vmax.f32 %v3276_v58, 0.0 }
 0x31d   :  { %v3280_v40 = vadd.f32 %v3279_v28, %v9997_v6  ;;  %4508 = vmatprep.mubr.bf16.mxu1 %v3723_v21  ;;  %v4723_v37 = vmax.f32 %v4265_v5, 0.0  ;;  %v4267_v42 = vadd.f32 %v4266_v48, %v10325_v36  ;;  %5384 = vmatmul.mubr.bf16.gmra.mxu0 %v10591_v16  ;;  %v3581_v55 = vmax.f32 %v3278_v31, 0.0 }
 0x31e   :  { %v3281_v60 = vpop.f32.mrf.mxu0  ;;  %v4270_v8 = vpop.f32.mrf.mxu1  ;;  %4509 = vmatmul.mubr.bf16.gmra.mxu1 %v3722_v25  ;;  %5393 = vmatprep.mubr.bf16.mxu0 %v10609_v17 }
 0x31f   :  { %v3282_v43 = vadd.f32 %v3281_v60, %v9994_v4  ;;  %v10807_v2 = vpack.c.bf16 %v4723_v37, %v4721_v33  ;;  %v4724_v51 = vmax.f32 %v4267_v42, 0.0  ;;  %v3582_v11 = vmax.f32 %v3280_v40, 0.0 }
 0x320   :  { %v3285_v10 = vpop.f32.mrf.mxu0  ;;  %v4272_v13 = vpop.f32.mrf.mxu1  ;;  %v4271_v35 = vadd.f32 %v4270_v8, %v10319_v30 }
 0x321   :  { %v3583_v0 = vmax.f32 %v3282_v43, 0.0  ;;  %v10811_v18 = vpack.c.bf16 %v4724_v51, %v4722_v12  ;;  %v4273_v16 = vadd.f32 %v4272_v13, %v10325_v36  ;;  %v3724_v15 = vpack.c.bf16 %v3582_v11, %v3580_v22 }
 0x322   :  { %v3287_v1 = vpop.f32.mrf.mxu0  ;;  %v4274_v57 = vpop.f32.mrf.mxu1  ;;  %v4725_v21 = vmax.f32 %v4271_v35, 0.0  ;;  %v3286_v25 = vadd.f32 %v3285_v10, %v9997_v6 }
 0x323   :  { %v3725_v7 = vpack.c.bf16 %v3583_v0, %v3581_v55  ;;  %v4275_v29 = vadd.f32 %v4274_v57, %v10319_v30  ;;  %v3288_v17 = vadd.f32 %v3287_v1, %v9994_v4  ;;  %v4726_v48 = vmax.f32 %v4273_v16, 0.0 }
 0x324   :  { %v3289_v27 = vpop.f32.mrf.mxu0  ;;  %v4276_v14 = vpop.f32.mrf.mxu1  ;;  %v3584_v55 = vmax.f32 %v3286_v25, 0.0 }
 0x325   :  { %v3290_v19 = vadd.f32 %v3289_v27, %v9997_v6  ;;  %4518 = vmatprep.mubr.bf16.mxu1 %v3725_v7  ;;  %v4727_v24 = vmax.f32 %v4275_v29, 0.0  ;;  %v4277_v5 = vadd.f32 %v4276_v14, %v10325_v36  ;;  %5394 = vmatmul.mubr.bf16.gmra.mxu0 %v10605_v62  ;;  %v3585_v60 = vmax.f32 %v3288_v17, 0.0 }
 0x326   :  { %v3291_v28 = vpop.f32.mrf.mxu0  ;;  %v4280_v40 = vpop.f32.mrf.mxu1  ;;  %4519 = vmatmul.mubr.bf16.gmra.mxu1 %v3724_v15  ;;  %5403 = vmatprep.mubr.bf16.mxu0 %v10632_v9 }
 0x327   :  { %v3292_v31 = vadd.f32 %v3291_v28, %v9994_v4  ;;  %v10821_v33 = vpack.c.bf16 %v4727_v24, %v4725_v21  ;;  %v4728_v37 = vmax.f32 %v4277_v5, 0.0  ;;  %v3586_v58 = vmax.f32 %v3290_v19, 0.0 }
 0x328   :  { %v3295_v42 = vpop.f32.mrf.mxu0  ;;  %v4282_v8 = vpop.f32.mrf.mxu1  ;;  %v4281_v12 = vadd.f32 %v4280_v40, %v10319_v30 }
 0x329   :  { %v3587_v43 = vmax.f32 %v3292_v31, 0.0  ;;  %v10825_v10 = vpack.c.bf16 %v4728_v37, %v4726_v48  ;;  %v4283_v62 = vadd.f32 %v4282_v8, %v10325_v36  ;;  %v3726_v1 = vpack.c.bf16 %v3586_v58, %v3584_v55 }
 0x32a   :  { %v3297_v51 = vpop.f32.mrf.mxu0  ;;  %v4284_v11 = vpop.f32.mrf.mxu1  ;;  %v4729_v7 = vmax.f32 %v4281_v12, 0.0  ;;  %v3296_v15 = vadd.f32 %v3295_v42, %v9997_v6 }
 0x32b   :  { %v3727_v0 = vpack.c.bf16 %v3587_v43, %v3585_v60  ;;  %v4285_v13 = vadd.f32 %v4284_v11, %v10319_v30  ;;  %v3298_v9 = vadd.f32 %v3297_v51, %v9994_v4  ;;  %v4730_v14 = vmax.f32 %v4283_v62, 0.0 }
 0x32c   :  { %v3299_v35 = vpop.f32.mrf.mxu0  ;;  %v4286_v57 = vpop.f32.mrf.mxu1  ;;  %v3588_v60 = vmax.f32 %v3296_v15, 0.0 }
 0x32d   :  { %v3300_v22 = vadd.f32 %v3299_v35, %v9997_v6  ;;  %4528 = vmatprep.mubr.bf16.mxu1 %v3727_v0  ;;  %v4731_v16 = vmax.f32 %v4285_v13, 0.0  ;;  %v4287_v29 = vadd.f32 %v4286_v57, %v10325_v36  ;;  %5404 = vmatmul.mubr.bf16.gmra.mxu0 %v10625_v50  ;;  %v3589_v28 = vmax.f32 %v3298_v9, 0.0 }
 0x32e   :  { %v3301_v27 = vpop.f32.mrf.mxu0  ;;  %v4290_v19 = vpop.f32.mrf.mxu1  ;;  %4529 = vmatmul.mubr.bf16.gmra.mxu1 %v3726_v1  ;;  %5413 = vmatprep.mubr.bf16.mxu0 %v10658_v63 }
 0x32f   :  { %v3302_v17 = vadd.f32 %v3301_v27, %v9994_v4  ;;  %v10835_v21 = vpack.c.bf16 %v4731_v16, %v4729_v7  ;;  %v4732_v24 = vmax.f32 %v4287_v29, 0.0  ;;  %v3590_v25 = vmax.f32 %v3300_v22, 0.0 }
 0x330   :  { %v3305_v5 = vpop.f32.mrf.mxu0  ;;  %v4292_v40 = vpop.f32.mrf.mxu1  ;;  %v4291_v48 = vadd.f32 %v4290_v19, %v10319_v30 }
 0x331   :  { %v3591_v31 = vmax.f32 %v3302_v17, 0.0  ;;  %v10839_v42 = vpack.c.bf16 %v4732_v24, %v4730_v14  ;;  %v4293_v50 = vadd.f32 %v4292_v40, %v10325_v36  ;;  %v3728_v51 = vpack.c.bf16 %v3590_v25, %v3588_v60 }
 0x332   :  { %v3307_v37 = vpop.f32.mrf.mxu0  ;;  %v4294_v58 = vpop.f32.mrf.mxu1  ;;  %v4733_v0 = vmax.f32 %v4291_v48, 0.0  ;;  %v3306_v1 = vadd.f32 %v3305_v5, %v9997_v6 }
 0x333   :  { %v3729_v43 = vpack.c.bf16 %v3591_v31, %v3589_v28  ;;  %v4295_v8 = vadd.f32 %v4294_v58, %v10319_v30  ;;  %v3308_v63 = vadd.f32 %v3307_v37, %v9994_v4  ;;  %v4734_v57 = vmax.f32 %v4293_v50, 0.0 }
 0x334   :  { %v3309_v12 = vpop.f32.mrf.mxu0  ;;  %v4296_v11 = vpop.f32.mrf.mxu1  ;;  %v3592_v28 = vmax.f32 %v3306_v1, 0.0 }
 0x335   :  { %v3310_v55 = vadd.f32 %v3309_v12, %v9997_v6  ;;  %4538 = vmatprep.mubr.bf16.mxu1 %v3729_v43  ;;  %v4735_v62 = vmax.f32 %v4295_v8, 0.0  ;;  %v4297_v13 = vadd.f32 %v4296_v11, %v10325_v36  ;;  %5414 = vmatmul.mubr.bf16.gmra.mxu0 %v10651_v47  ;;  %v3593_v27 = vmax.f32 %v3308_v63, 0.0 }
 0x336   :  { %v3311_v35 = vpop.f32.mrf.mxu0  ;;  %v4300_v22 = vpop.f32.mrf.mxu1  ;;  %4539 = vmatmul.mubr.bf16.gmra.mxu1 %v3728_v51  ;;  %5423 = vmatprep.mubr.bf16.mxu0 %v10684_v61 }
 0x337   :  { %v3312_v9 = vadd.f32 %v3311_v35, %v9994_v4  ;;  %v10849_v7 = vpack.c.bf16 %v4735_v62, %v4733_v0  ;;  %v4736_v16 = vmax.f32 %v4297_v13, 0.0  ;;  %v3594_v15 = vmax.f32 %v3310_v55, 0.0 }
 0x338   :  { %v3315_v29 = vpop.f32.mrf.mxu0  ;;  %v4302_v19 = vpop.f32.mrf.mxu1  ;;  %v4301_v14 = vadd.f32 %v4300_v22, %v10319_v30 }
 0x339   :  { %v3595_v17 = vmax.f32 %v3312_v9, 0.0  ;;  %v10853_v5 = vpack.c.bf16 %v4736_v16, %v4734_v57  ;;  %v4303_v47 = vadd.f32 %v4302_v19, %v10325_v36  ;;  %v3730_v37 = vpack.c.bf16 %v3594_v15, %v3592_v28 }
 0x33a   :  { %v3317_v24 = vpop.f32.mrf.mxu0  ;;  %v4304_v25 = vpop.f32.mrf.mxu1  ;;  %v4737_v43 = vmax.f32 %v4301_v14, 0.0  ;;  %v3316_v51 = vadd.f32 %v3315_v29, %v9997_v6 }
 0x33b   :  { %v3731_v31 = vpack.c.bf16 %v3595_v17, %v3593_v27  ;;  %v4305_v40 = vadd.f32 %v4304_v25, %v10319_v30  ;;  %v3318_v61 = vadd.f32 %v3317_v24, %v9994_v4  ;;  %v4738_v11 = vmax.f32 %v4303_v47, 0.0 }
 0x33c   :  { %v3319_v48 = vpop.f32.mrf.mxu0  ;;  %v4306_v58 = vpop.f32.mrf.mxu1  ;;  %v3596_v27 = vmax.f32 %v3316_v51, 0.0 }
 0x33d   :  { %v3320_v60 = vadd.f32 %v3319_v48, %v9997_v6  ;;  %4548 = vmatprep.mubr.bf16.mxu1 %v3731_v31  ;;  %v4739_v50 = vmax.f32 %v4305_v40, 0.0  ;;  %v4307_v8 = vadd.f32 %v4306_v58, %v10325_v36  ;;  %5424 = vmatmul.mubr.bf16.gmra.mxu0 %v10677_v38  ;;  %v3597_v35 = vmax.f32 %v3318_v61, 0.0 }
 0x33e   :  { %v3321_v12 = vpop.f32.mrf.mxu0  ;;  %v4310_v55 = vpop.f32.mrf.mxu1  ;;  %4549 = vmatmul.mubr.bf16.gmra.mxu1 %v3730_v37  ;;  %5433 = vmatprep.mubr.bf16.mxu0 %v10710_v52 }
 0x33f   :  { %v3322_v63 = vadd.f32 %v3321_v12, %v9994_v4  ;;  %v10863_v0 = vpack.c.bf16 %v4739_v50, %v4737_v43  ;;  %v4740_v62 = vmax.f32 %v4307_v8, 0.0  ;;  %v3598_v1 = vmax.f32 %v3320_v60, 0.0 }
 0x340   :  { %v3325_v13 = vpop.f32.mrf.mxu0  ;;  %v4312_v22 = vpop.f32.mrf.mxu1  ;;  %v4311_v57 = vadd.f32 %v4310_v55, %v10319_v30 }
 0x341   :  { %v3599_v9 = vmax.f32 %v3322_v63, 0.0  ;;  %v10867_v29 = vpack.c.bf16 %v4740_v62, %v4738_v11  ;;  %v4313_v38 = vadd.f32 %v4312_v22, %v10325_v36  ;;  %v3732_v24 = vpack.c.bf16 %v3598_v1, %v3596_v27 }
 0x342   :  { %v3327_v16 = vpop.f32.mrf.mxu0  ;;  %v4314_v15 = vpop.f32.mrf.mxu1  ;;  %v4741_v31 = vmax.f32 %v4311_v57, 0.0  ;;  %v3326_v37 = vadd.f32 %v3325_v13, %v9997_v6 }
 0x343   :  { %v3733_v17 = vpack.c.bf16 %v3599_v9, %v3597_v35  ;;  %v4315_v19 = vadd.f32 %v4314_v15, %v10319_v30  ;;  %v3328_v52 = vadd.f32 %v3327_v16, %v9994_v4  ;;  %v4742_v58 = vmax.f32 %v4313_v38, 0.0 }
 0x344   :  { %v3329_v14 = vpop.f32.mrf.mxu0  ;;  %v4316_v25 = vpop.f32.mrf.mxu1  ;;  %v3600_v35 = vmax.f32 %v3326_v37, 0.0 }
 0x345   :  { %v3330_v28 = vadd.f32 %v3329_v14, %v9997_v6  ;;  %4558 = vmatprep.mubr.bf16.mxu1 %v3733_v17  ;;  %v4743_v47 = vmax.f32 %v4315_v19, 0.0  ;;  %v4317_v40 = vadd.f32 %v4316_v25, %v10325_v36  ;;  %5434 = vmatmul.mubr.bf16.gmra.mxu0 %v10703_v46  ;;  %v3601_v12 = vmax.f32 %v3328_v52, 0.0 }
 0x346   :  { %v3331_v48 = vpop.f32.mrf.mxu0  ;;  %v4320_v60 = vpop.f32.mrf.mxu1  ;;  %4559 = vmatmul.mubr.bf16.gmra.mxu1 %v3732_v24  ;;  %5443 = vmatprep.mubr.bf16.mxu0 %v10727_v41 }
 0x347   :  { %v3332_v61 = vadd.f32 %v3331_v48, %v9994_v4  ;;  %v10877_v43 = vpack.c.bf16 %v4743_v47, %v4741_v31  ;;  %v4744_v50 = vmax.f32 %v4317_v40, 0.0  ;;  %v3602_v51 = vmax.f32 %v3330_v28, 0.0 }
 0x348   :  { %v3335_v8 = vpop.f32.mrf.mxu0  ;;  %v4322_v55 = vpop.f32.mrf.mxu1  ;;  %v4321_v11 = vadd.f32 %v4320_v60, %v10319_v30 }
 0x349   :  { %v3603_v63 = vmax.f32 %v3332_v61, 0.0  ;;  %v10881_v13 = vpack.c.bf16 %v4744_v50, %v4742_v58  ;;  %v4323_v46 = vadd.f32 %v4322_v55, %v10325_v36  ;;  %v3734_v16 = vpack.c.bf16 %v3602_v51, %v3600_v35 }
 0x34a   :  { %v3337_v62 = vpop.f32.mrf.mxu0  ;;  %v4324_v1 = vpop.f32.mrf.mxu1  ;;  %v4745_v17 = vmax.f32 %v4321_v11, 0.0  ;;  %v3336_v24 = vadd.f32 %v3335_v8, %v9997_v6 }
 0x34b   :  { %v3735_v9 = vpack.c.bf16 %v3603_v63, %v3601_v12  ;;  %v4325_v22 = vadd.f32 %v4324_v1, %v10319_v30  ;;  %v3338_v41 = vadd.f32 %v3337_v62, %v9994_v4  ;;  %v4746_v25 = vmax.f32 %v4323_v46, 0.0 }
 0x34c   :  { %v3339_v57 = vpop.f32.mrf.mxu0  ;;  %v4326_v15 = vpop.f32.mrf.mxu1  ;;  %v3604_v12 = vmax.f32 %v3336_v24, 0.0 }
 0x34d   :  { %v3340_v27 = vadd.f32 %v3339_v57, %v9997_v6  ;;  %4568 = vmatprep.mubr.bf16.mxu1 %v3735_v9  ;;  %v4747_v38 = vmax.f32 %v4325_v22, 0.0  ;;  %v4327_v19 = vadd.f32 %v4326_v15, %v10325_v36  ;;  %5444 = vmatmul.mubr.bf16.gmra.mxu0 %v10723_v23  ;;  %v3605_v48 = vmax.f32 %v3338_v41, 0.0 }
 0x34e   :  { %v3341_v14 = vpop.f32.mrf.mxu0  ;;  %v4330_v28 = vpop.f32.mrf.mxu1  ;;  %4569 = vmatmul.mubr.bf16.gmra.mxu1 %v3734_v16  ;;  %5453 = vmatprep.mubr.bf16.mxu0 %v10741_v3 }
 0x34f   :  { %v3342_v52 = vadd.f32 %v3341_v14, %v9994_v4  ;;  %v10891_v31 = vpack.c.bf16 %v4747_v38, %v4745_v17  ;;  %v4748_v47 = vmax.f32 %v4327_v19, 0.0  ;;  %v3606_v37 = vmax.f32 %v3340_v27, 0.0 }
 0x350   :  { %v3345_v40 = vpop.f32.mrf.mxu0  ;;  %v4332_v60 = vpop.f32.mrf.mxu1  ;;  %v4331_v58 = vadd.f32 %v4330_v28, %v10319_v30 }
 0x351   :  { %v3607_v61 = vmax.f32 %v3342_v52, 0.0  ;;  %v10895_v8 = vpack.c.bf16 %v4748_v47, %v4746_v25  ;;  %v4333_v23 = vadd.f32 %v4332_v60, %v10325_v36  ;;  %v3736_v62 = vpack.c.bf16 %v3606_v37, %v3604_v12 }
 0x352   :  { %v3347_v50 = vpop.f32.mrf.mxu0  ;;  %v4334_v51 = vpop.f32.mrf.mxu1  ;;  %v4749_v9 = vmax.f32 %v4331_v58, 0.0  ;;  %v3346_v16 = vadd.f32 %v3345_v40, %v9997_v6 }
 0x353   :  { %v3737_v63 = vpack.c.bf16 %v3607_v61, %v3605_v48  ;;  %v4335_v55 = vadd.f32 %v4334_v51, %v10319_v30  ;;  %v3348_v3 = vadd.f32 %v3347_v50, %v9994_v4  ;;  %v4750_v15 = vmax.f32 %v4333_v23, 0.0 }
 0x354   :  { %v3349_v11 = vpop.f32.mrf.mxu0  ;;  %v4336_v1 = vpop.f32.mrf.mxu1  ;;  %v3608_v48 = vmax.f32 %v3346_v16, 0.0 }
 0x355   :  { %v3350_v35 = vadd.f32 %v3349_v11, %v9997_v6  ;;  %4578 = vmatprep.mubr.bf16.mxu1 %v3737_v63  ;;  %v4751_v46 = vmax.f32 %v4335_v55, 0.0  ;;  %v4337_v22 = vadd.f32 %v4336_v1, %v10325_v36  ;;  %5454 = vmatmul.mubr.bf16.gmra.mxu0 %v10737_v32  ;;  %v3609_v14 = vmax.f32 %v3348_v3, 0.0 }
 0x356   :  { %v3351_v57 = vpop.f32.mrf.mxu0  ;;  %v4340_v27 = vpop.f32.mrf.mxu1  ;;  %4579 = vmatmul.mubr.bf16.gmra.mxu1 %v3736_v62  ;;  %5463 = vmatprep.mubr.bf16.mxu0 %v10755_v26 }
 0x357   :  { %v3352_v41 = vadd.f32 %v3351_v57, %v9994_v4  ;;  %v10905_v17 = vpack.c.bf16 %v4751_v46, %v4749_v9  ;;  %v4752_v38 = vmax.f32 %v4337_v22, 0.0  ;;  %v3610_v24 = vmax.f32 %v3350_v35, 0.0  ;;  %v5019_v22 = vld [vmem:[%s12341_s8] sm:$0x3] }
 0x358   :  { %v3355_v19 = vpop.f32.mrf.mxu0  ;;  %v4342_v28 = vpop.f32.mrf.mxu1  ;;  %v4341_v25 = vadd.f32 %v4340_v27, %v10319_v30 }
 0x359   :  { %v3611_v52 = vmax.f32 %v3352_v41, 0.0  ;;  %v10909_v40 = vpack.c.bf16 %v4752_v38, %v4750_v15  ;;  %v4343_v32 = vadd.f32 %v4342_v28, %v10325_v36  ;;  %v3738_v50 = vpack.c.bf16 %v3610_v24, %v3608_v48 }
 0x35a   :  { %v3357_v47 = vpop.f32.mrf.mxu0  ;;  %v4344_v37 = vpop.f32.mrf.mxu1  ;;  %v4753_v63 = vmax.f32 %v4341_v25, 0.0  ;;  %v3356_v62 = vadd.f32 %v3355_v19, %v9997_v6 }
 0x35b   :  { %v3739_v61 = vpack.c.bf16 %v3611_v52, %v3609_v14  ;;  %v4345_v60 = vadd.f32 %v4344_v37, %v10319_v30  ;;  %v3358_v26 = vadd.f32 %v3357_v47, %v9994_v4  ;;  %v4754_v1 = vmax.f32 %v4343_v32, 0.0 }
 0x35c   :  { %v3359_v58 = vpop.f32.mrf.mxu0  ;;  %v4346_v51 = vpop.f32.mrf.mxu1  ;;  %v3612_v19 = vmax.f32 %v3356_v62, 0.0  ;;  %v10932_v14 = vrot.slane %v5019_v22, %v9972_v56 }
 0x35d   :  { %v3360_v12 = vadd.f32 %v3359_v58, %v9997_v6  ;;  %4588 = vmatprep.mubr.bf16.mxu1 %v3739_v61  ;;  %v4755_v23 = vmax.f32 %v4345_v60, 0.0  ;;  %v4347_v55 = vadd.f32 %v4346_v51, %v10325_v36  ;;  %5464 = vmatmul.mubr.bf16.gmra.mxu0 %v10751_v59  ;;  %v3613_v16 = vmax.f32 %v3358_v26, 0.0 }
 0x35e   :  { %v3361_v11 = vpop.f32.mrf.mxu0  ;;  %v4350_v35 = vpop.f32.mrf.mxu1  ;;  %4589 = vmatmul.mubr.bf16.gmra.mxu1 %v3738_v50  ;;  %5473 = vmatprep.mubr.bf16.mxu0 %v10769_v54 }
 0x35f   :  { %v3362_v3 = vadd.f32 %v3361_v11, %v9994_v4  ;;  %v10919_v9 = vpack.c.bf16 %v4755_v23, %v4753_v63  ;;  %v4756_v46 = vmax.f32 %v4347_v55, 0.0  ;;  %v3614_v41 = vmax.f32 %v3360_v12, 0.0 }
 0x360   :  { %v5225_v57 = vpop.f32.mrf.mxu0  ;;  %v4352_v27 = vpop.f32.mrf.mxu1  ;;  %v10926_v4 = vrot.slane %v5019_v22, %v9969_v53  ;;  %v4351_v59 = vadd.f32 %v4350_v35, %v10319_v30 }
 0x361   :  { %v3615_v6 = vmax.f32 %v3362_v3, 0.0  ;;  %v10929_v38 = vpack.c.bf16 %v4756_v46, %v4754_v1  ;;  %v4353_v54 = vadd.f32 %v4352_v27, %v10325_v36  ;;  %v3740_v47 = vpack.c.bf16 %v3614_v41, %v3612_v19 }
 0x362   :  { %v5227_v15 = vpop.f32.mrf.mxu0  ;;  %v4354_v24 = vpop.f32.mrf.mxu1  ;;  %v4757_v32 = vmax.f32 %v4351_v59, 0.0  ;;  %v5226_v26 = vadd.f32 %v5225_v57, %v10932_v14 }
 0x363   :  { %v3741_v52 = vpack.c.bf16 %v3615_v6, %v3613_v16  ;;  %v4355_v28 = vadd.f32 %v4354_v24, %v10319_v30  ;;  %v5228_v48 = vadd.f32 %v5227_v15, %v10926_v4  ;;  %v4758_v63 = vmax.f32 %v4353_v54, 0.0 }
 0x364   :  { %v5229_v25 = vpop.f32.mrf.mxu0  ;;  %v4356_v37 = vpop.f32.mrf.mxu1  ;;  %v5854_v16 = vmax.f32 %v5226_v26, 0.0 }
 0x365   :  { %v5230_v61 = vadd.f32 %v5229_v25, %v10932_v14  ;;  %4598 = vmatprep.mubr.bf16.mxu1 %v3741_v52  ;;  %v4759_v60 = vmax.f32 %v4355_v28, 0.0  ;;  %v4357_v58 = vadd.f32 %v4356_v37, %v10325_v36  ;;  %5474 = vmatmul.mubr.bf16.gmra.mxu0 %v10765_v39  ;;  %v5855_v62 = vmax.f32 %v5228_v48, 0.0 }
 0x366   :  { %v5231_v50 = vpop.f32.mrf.mxu0  ;;  %v4360_v12 = vpop.f32.mrf.mxu1  ;;  %4599 = vmatmul.mubr.bf16.gmra.mxu1 %v3740_v47  ;;  %5483 = vmatprep.mubr.bf16.mxu0 %v10783_v49 }
 0x367   :  { %v5232_v51 = vadd.f32 %v5231_v50, %v10926_v4  ;;  %v10942_v23 = vpack.c.bf16 %v4759_v60, %v4757_v32  ;;  %v4760_v55 = vmax.f32 %v4357_v58, 0.0  ;;  %v5856_v3 = vmax.f32 %v5230_v61, 0.0 }
 0x368   :  { %v5235_v11 = vpop.f32.mrf.mxu0  ;;  %v4362_v1 = vpop.f32.mrf.mxu1  ;;  %v4361_v46 = vadd.f32 %v4360_v12, %v10319_v30 }
 0x369   :  { %v5857_v35 = vmax.f32 %v5232_v51, 0.0  ;;  %v10946_v57 = vpack.c.bf16 %v4760_v55, %v4758_v63  ;;  %v4363_v39 = vadd.f32 %v4362_v1, %v10325_v36  ;;  %v6106_v15 = vpack.c.bf16 %v5856_v3, %v5854_v16 }
 0x36a   :  { %v5237_v22 = vpop.f32.mrf.mxu0  ;;  %v4364_v41 = vpop.f32.mrf.mxu1  ;;  %v4761_v52 = vmax.f32 %v4361_v46, 0.0  ;;  %v5236_v47 = vadd.f32 %v5235_v11, %v10932_v14 }
 0x36b   :  { %v6107_v6 = vpack.c.bf16 %v5857_v35, %v5855_v62  ;;  %v4365_v27 = vadd.f32 %v4364_v41, %v10319_v30  ;;  %v5238_v49 = vadd.f32 %v5237_v22, %v10926_v4  ;;  %v4762_v61 = vmax.f32 %v4363_v39, 0.0 }
 0x36c   :  { %v5239_v59 = vpop.f32.mrf.mxu0  ;;  %v4366_v19 = vpop.f32.mrf.mxu1  ;;  %v5858_v62 = vmax.f32 %v5236_v47, 0.0 }
 0x36d   :  { %v5240_v24 = vadd.f32 %v5239_v59, %v10932_v14  ;;  %6468 = vmatprep.mubr.bf16.mxu1 %v6107_v6  ;;  %v4763_v54 = vmax.f32 %v4365_v27, 0.0  ;;  %v4367_v28 = vadd.f32 %v4366_v19, %v10325_v36  ;;  %5484 = vmatmul.mubr.bf16.gmra.mxu0 %v10779_v44  ;;  %v5859_v50 = vmax.f32 %v5238_v49, 0.0 }
 0x36e   :  { %v5241_v25 = vpop.f32.mrf.mxu0  ;;  %v4370_v48 = vpop.f32.mrf.mxu1  ;;  %6469 = vmatmul.mubr.bf16.vlgmr.msra.gmra.mxu1 %v6106_v15  ;;  %5493 = vmatprep.mubr.bf16.mxu0 %v10797_v34 }
 0x36f   :  { %v5242_v37 = vadd.f32 %v5241_v25, %v10926_v4  ;;  %v10956_v32 = vpack.c.bf16 %v4763_v54, %v4761_v52  ;;  %v4764_v60 = vmax.f32 %v4367_v28, 0.0  ;;  %v5860_v26 = vmax.f32 %v5240_v24, 0.0 }
 0x370   :  { %v5245_v58 = vpop.f32.mrf.mxu0  ;;  %v4372_v51 = vpop.f32.mrf.mxu1  ;;  %v4371_v63 = vadd.f32 %v4370_v48, %v10319_v30 }
 0x371   :  { %v5861_v12 = vmax.f32 %v5242_v37, 0.0  ;;  %v10960_v11 = vpack.c.bf16 %v4764_v60, %v4762_v61  ;;  %v4373_v44 = vadd.f32 %v4372_v51, %v10325_v36  ;;  %v6108_v22 = vpack.c.bf16 %v5860_v26, %v5858_v62 }
 0x372   :  { %v5247_v55 = vpop.f32.mrf.mxu0  ;;  %v4374_v3 = vpop.f32.mrf.mxu1  ;;  %v4765_v6 = vmax.f32 %v4371_v63, 0.0  ;;  %v5246_v15 = vadd.f32 %v5245_v58, %v10932_v14 }
 0x373   :  { %v6109_v35 = vpack.c.bf16 %v5861_v12, %v5859_v50  ;;  %v4375_v1 = vadd.f32 %v4374_v3, %v10319_v30  ;;  %v5248_v34 = vadd.f32 %v5247_v55, %v10926_v4  ;;  %v4766_v24 = vmax.f32 %v4373_v44, 0.0 }
 0x374   :  { %v5249_v46 = vpop.f32.mrf.mxu0  ;;  %v4376_v16 = vpop.f32.mrf.mxu1  ;;  %v5862_v50 = vmax.f32 %v5246_v15, 0.0 }
 0x375   :  { %v5250_v41 = vadd.f32 %v5249_v46, %v10932_v14  ;;  %6478 = vmatprep.mubr.bf16.mxu1 %v6109_v35  ;;  %v4767_v39 = vmax.f32 %v4375_v1, 0.0  ;;  %v4377_v27 = vadd.f32 %v4376_v16, %v10325_v36  ;;  %5494 = vmatmul.mubr.bf16.gmra.mxu0 %v10793_v20  ;;  %v5863_v25 = vmax.f32 %v5248_v34, 0.0 }
 0x376   :  { %v5251_v59 = vpop.f32.mrf.mxu0  ;;  %v4380_v49 = vpop.f32.mrf.mxu1  ;;  %6479 = vmatmul.mubr.bf16.gmra.mxu1 %v6108_v22  ;;  %5503 = vmatprep.mubr.bf16.mxu0 %v10811_v18 }
 0x377   :  { %v5252_v19 = vadd.f32 %v5251_v59, %v10926_v4  ;;  %v10970_v52 = vpack.c.bf16 %v4767_v39, %v4765_v6  ;;  %v4768_v54 = vmax.f32 %v4377_v27, 0.0  ;;  %v5864_v47 = vmax.f32 %v5250_v41, 0.0 }
 0x378   :  { %v5255_v28 = vpop.f32.mrf.mxu0  ;;  %v4382_v37 = vpop.f32.mrf.mxu1  ;;  %v4381_v61 = vadd.f32 %v4380_v49, %v10319_v30 }
 0x379   :  { %v5865_v48 = vmax.f32 %v5252_v19, 0.0  ;;  %v10974_v58 = vpack.c.bf16 %v4768_v54, %v4766_v24  ;;  %v4383_v20 = vadd.f32 %v4382_v37, %v10325_v36  ;;  %v6110_v55 = vpack.c.bf16 %v5864_v47, %v5862_v50 }
 0x37a   :  { %v5257_v60 = vpop.f32.mrf.mxu0  ;;  %v4384_v26 = vpop.f32.mrf.mxu1  ;;  %v4769_v35 = vmax.f32 %v4381_v61, 0.0  ;;  %v5256_v22 = vadd.f32 %v5255_v28, %v10932_v14 }
 0x37b   :  { %v6111_v12 = vpack.c.bf16 %v5865_v48, %v5863_v25  ;;  %v4385_v51 = vadd.f32 %v4384_v26, %v10319_v30  ;;  %v5258_v18 = vadd.f32 %v5257_v60, %v10926_v4  ;;  %v4770_v41 = vmax.f32 %v4383_v20, 0.0 }
 0x37c   :  { %v5259_v63 = vpop.f32.mrf.mxu0  ;;  %v4386_v62 = vpop.f32.mrf.mxu1  ;;  %v5866_v25 = vmax.f32 %v5256_v22, 0.0 }
 0x37d   :  { %v5260_v3 = vadd.f32 %v5259_v63, %v10932_v14  ;;  %6488 = vmatprep.mubr.bf16.mxu1 %v6111_v12  ;;  %v4771_v44 = vmax.f32 %v4385_v51, 0.0  ;;  %v4387_v1 = vadd.f32 %v4386_v62, %v10325_v36  ;;  %5504 = vmatmul.mubr.bf16.gmra.mxu0 %v10807_v2  ;;  %v5867_v59 = vmax.f32 %v5258_v18, 0.0 }
 0x37e   :  { %v5261_v46 = vpop.f32.mrf.mxu0  ;;  %v4390_v34 = vpop.f32.mrf.mxu1  ;;  %6489 = vmatmul.mubr.bf16.gmra.mxu1 %v6110_v55  ;;  %5513 = vmatprep.mubr.bf16.mxu0 %v10825_v10 }
 0x37f   :  { %v5262_v16 = vadd.f32 %v5261_v46, %v10926_v4  ;;  %v10984_v6 = vpack.c.bf16 %v4771_v44, %v4769_v35  ;;  %v4772_v39 = vmax.f32 %v4387_v1, 0.0  ;;  %v5868_v15 = vmax.f32 %v5260_v3, 0.0 }
 0x380   :  { %v5265_v27 = vpop.f32.mrf.mxu0  ;;  %v4392_v19 = vpop.f32.mrf.mxu1  ;;  %v4391_v24 = vadd.f32 %v4390_v34, %v10319_v30 }
 0x381   :  { %v5869_v49 = vmax.f32 %v5262_v16, 0.0  ;;  %v10988_v28 = vpack.c.bf16 %v4772_v39, %v4770_v41  ;;  %v4393_v2 = vadd.f32 %v4392_v19, %v10325_v36  ;;  %v6112_v60 = vpack.c.bf16 %v5868_v15, %v5866_v25 }
 0x382   :  { %v5267_v54 = vpop.f32.mrf.mxu0  ;;  %v4394_v47 = vpop.f32.mrf.mxu1  ;;  %v4773_v12 = vmax.f32 %v4391_v24, 0.0  ;;  %v5266_v55 = vadd.f32 %v5265_v27, %v10932_v14 }
 0x383   :  { %v6113_v48 = vpack.c.bf16 %v5869_v49, %v5867_v59  ;;  %v4395_v37 = vadd.f32 %v4394_v47, %v10319_v30  ;;  %v5268_v10 = vadd.f32 %v5267_v54, %v10926_v4  ;;  %v4774_v3 = vmax.f32 %v4393_v2, 0.0 }
 0x384   :  { %v5269_v61 = vpop.f32.mrf.mxu0  ;;  %v4396_v50 = vpop.f32.mrf.mxu1  ;;  %v5870_v59 = vmax.f32 %v5266_v55, 0.0 }
 0x385   :  { %v5270_v26 = vadd.f32 %v5269_v61, %v10932_v14  ;;  %6498 = vmatprep.mubr.bf16.mxu1 %v6113_v48  ;;  %v4775_v20 = vmax.f32 %v4395_v37, 0.0  ;;  %v4397_v51 = vadd.f32 %v4396_v50, %v10325_v36  ;;  %5514 = vmatmul.mubr.bf16.gmra.mxu0 %v10821_v33  ;;  %v5871_v46 = vmax.f32 %v5268_v10, 0.0 }
 0x386   :  { %v5271_v63 = vpop.f32.mrf.mxu0  ;;  %v4400_v18 = vpop.f32.mrf.mxu1  ;;  %6499 = vmatmul.mubr.bf16.gmra.mxu1 %v6112_v60  ;;  %5523 = vmatprep.mubr.bf16.mxu0 %v10839_v42 }
 0x387   :  { %v5272_v62 = vadd.f32 %v5271_v63, %v10926_v4  ;;  %v10998_v35 = vpack.c.bf16 %v4775_v20, %v4773_v12  ;;  %v4776_v44 = vmax.f32 %v4397_v51, 0.0  ;;  %v5872_v22 = vmax.f32 %v5270_v26, 0.0 }
 0x388   :  { %v5275_v1 = vpop.f32.mrf.mxu0  ;;  %v4402_v16 = vpop.f32.mrf.mxu1  ;;  %v4401_v41 = vadd.f32 %v4400_v18, %v10319_v30 }
 0x389   :  { %v5873_v34 = vmax.f32 %v5272_v62, 0.0  ;;  %v11002_v27 = vpack.c.bf16 %v4776_v44, %v4774_v3  ;;  %v4403_v33 = vadd.f32 %v4402_v16, %v10325_v36  ;;  %v6114_v54 = vpack.c.bf16 %v5872_v22, %v5870_v59 }
 0x38a   :  { %v5277_v39 = vpop.f32.mrf.mxu0  ;;  %v4404_v15 = vpop.f32.mrf.mxu1  ;;  %v4777_v48 = vmax.f32 %v4401_v41, 0.0  ;;  %v5276_v60 = vadd.f32 %v5275_v1, %v10932_v14 }
 0x38b   :  { %v6115_v49 = vpack.c.bf16 %v5873_v34, %v5871_v46  ;;  %v4405_v19 = vadd.f32 %v4404_v15, %v10319_v30  ;;  %v5278_v42 = vadd.f32 %v5277_v39, %v10926_v4  ;;  %v4778_v26 = vmax.f32 %v4403_v33, 0.0 }
 0x38c   :  { %v5279_v24 = vpop.f32.mrf.mxu0  ;;  %v4406_v25 = vpop.f32.mrf.mxu1  ;;  %v5874_v46 = vmax.f32 %v5276_v60, 0.0 }
 0x38d   :  { %v5280_v47 = vadd.f32 %v5279_v24, %v10932_v14  ;;  %6508 = vmatprep.mubr.bf16.mxu1 %v6115_v49  ;;  %v4779_v2 = vmax.f32 %v4405_v19, 0.0  ;;  %v4407_v37 = vadd.f32 %v4406_v25, %v10325_v36  ;;  %5524 = vmatmul.mubr.bf16.gmra.mxu0 %v10835_v21  ;;  %v5875_v63 = vmax.f32 %v5278_v42, 0.0 }
 0x38e   :  { %v5281_v61 = vpop.f32.mrf.mxu0  ;;  %v4410_v10 = vpop.f32.mrf.mxu1  ;;  %6509 = vmatmul.mubr.bf16.gmra.mxu1 %v6114_v54  ;;  %5533 = vmatprep.mubr.bf16.mxu0 %v10853_v5 }
 0x38f   :  { %v5282_v50 = vadd.f32 %v5281_v61, %v10926_v4  ;;  %v11012_v12 = vpack.c.bf16 %v4779_v2, %v4777_v48  ;;  %v4780_v20 = vmax.f32 %v4407_v37, 0.0  ;;  %v5876_v55 = vmax.f32 %v5280_v47, 0.0 }
 0x390   :  { %v5285_v51 = vpop.f32.mrf.mxu0  ;;  %v4412_v62 = vpop.f32.mrf.mxu1  ;;  %v4411_v3 = vadd.f32 %v4410_v10, %v10319_v30 }
 0x391   :  { %v5877_v18 = vmax.f32 %v5282_v50, 0.0  ;;  %v11016_v1 = vpack.c.bf16 %v4780_v20, %v4778_v26  ;;  %v4413_v21 = vadd.f32 %v4412_v62, %v10325_v36  ;;  %v6116_v39 = vpack.c.bf16 %v5876_v55, %v5874_v46 }
 0x392   :  { %v5287_v44 = vpop.f32.mrf.mxu0  ;;  %v4414_v22 = vpop.f32.mrf.mxu1  ;;  %v4781_v49 = vmax.f32 %v4411_v3, 0.0  ;;  %v5286_v54 = vadd.f32 %v5285_v51, %v10932_v14 }
 0x393   :  { %v6117_v34 = vpack.c.bf16 %v5877_v18, %v5875_v63  ;;  %v4415_v16 = vadd.f32 %v4414_v22, %v10319_v30  ;;  %v5288_v5 = vadd.f32 %v5287_v44, %v10926_v4  ;;  %v4782_v47 = vmax.f32 %v4413_v21, 0.0 }
 0x394   :  { %v5289_v41 = vpop.f32.mrf.mxu0  ;;  %v4416_v59 = vpop.f32.mrf.mxu1  ;;  %v5878_v63 = vmax.f32 %v5286_v54, 0.0 }
 0x395   :  { %v5290_v15 = vadd.f32 %v5289_v41, %v10932_v14  ;;  %6518 = vmatprep.mubr.bf16.mxu1 %v6117_v34  ;;  %v4783_v33 = vmax.f32 %v4415_v16, 0.0  ;;  %v4417_v19 = vadd.f32 %v4416_v59, %v10325_v36  ;;  %5534 = vmatmul.mubr.bf16.gmra.mxu0 %v10849_v7  ;;  %v5879_v61 = vmax.f32 %v5288_v5, 0.0 }
 0x396   :  { %v5291_v24 = vpop.f32.mrf.mxu0  ;;  %v4420_v42 = vpop.f32.mrf.mxu1  ;;  %6519 = vmatmul.mubr.bf16.gmra.mxu1 %v6116_v39  ;;  %5543 = vmatprep.mubr.bf16.mxu0 %v10867_v29 }
 0x397   :  { %v5292_v25 = vadd.f32 %v5291_v24, %v10926_v4  ;;  %v11026_v48 = vpack.c.bf16 %v4783_v33, %v4781_v49  ;;  %v4784_v2 = vmax.f32 %v4417_v19, 0.0  ;;  %v5880_v60 = vmax.f32 %v5290_v15, 0.0 }
 0x398   :  { %v5295_v37 = vpop.f32.mrf.mxu0  ;;  %v4422_v50 = vpop.f32.mrf.mxu1  ;;  %v4421_v26 = vadd.f32 %v4420_v42, %v10319_v30 }
 0x399   :  { %v5881_v10 = vmax.f32 %v5292_v25, 0.0  ;;  %v11030_v51 = vpack.c.bf16 %v4784_v2, %v4782_v47  ;;  %v4423_v7 = vadd.f32 %v4422_v50, %v10325_v36  ;;  %v6118_v44 = vpack.c.bf16 %v5880_v60, %v5878_v63 }
 0x39a   :  { %v5297_v20 = vpop.f32.mrf.mxu0  ;;  %v4424_v55 = vpop.f32.mrf.mxu1  ;;  %v4785_v34 = vmax.f32 %v4421_v26, 0.0  ;;  %v5296_v39 = vadd.f32 %v5295_v37, %v10932_v14 }
 0x39b   :  { %v6119_v18 = vpack.c.bf16 %v5881_v10, %v5879_v61  ;;  %v4425_v62 = vadd.f32 %v4424_v55, %v10319_v30  ;;  %v5298_v29 = vadd.f32 %v5297_v20, %v10926_v4  ;;  %v4786_v15 = vmax.f32 %v4423_v7, 0.0 }
 0x39c   :  { %v5299_v3 = vpop.f32.mrf.mxu0  ;;  %v4426_v46 = vpop.f32.mrf.mxu1  ;;  %v5882_v61 = vmax.f32 %v5296_v39, 0.0 }
 0x39d   :  { %v5300_v22 = vadd.f32 %v5299_v3, %v10932_v14  ;;  %6528 = vmatprep.mubr.bf16.mxu1 %v6119_v18  ;;  %v4787_v21 = vmax.f32 %v4425_v62, 0.0  ;;  %v4427_v16 = vadd.f32 %v4426_v46, %v10325_v36  ;;  %5544 = vmatmul.mubr.bf16.gmra.mxu0 %v10863_v0  ;;  %v5883_v24 = vmax.f32 %v5298_v29, 0.0 }
 0x39e   :  { %v5301_v41 = vpop.f32.mrf.mxu0  ;;  %v4430_v5 = vpop.f32.mrf.mxu1  ;;  %6529 = vmatmul.mubr.bf16.gmra.mxu1 %v6118_v44  ;;  %5553 = vmatprep.mubr.bf16.mxu0 %v10881_v13 }
 0x39f   :  { %v5302_v59 = vadd.f32 %v5301_v41, %v10926_v4  ;;  %v11040_v49 = vpack.c.bf16 %v4787_v21, %v4785_v34  ;;  %v4788_v33 = vmax.f32 %v4427_v16, 0.0  ;;  %v5884_v54 = vmax.f32 %v5300_v22, 0.0 }
 0x3a0   :  { %v5305_v19 = vpop.f32.mrf.mxu0  ;;  %v4432_v25 = vpop.f32.mrf.mxu1  ;;  %v4431_v47 = vadd.f32 %v4430_v5, %v10319_v30 }
 0x3a1   :  { %v5885_v42 = vmax.f32 %v5302_v59, 0.0  ;;  %v11044_v37 = vpack.c.bf16 %v4788_v33, %v4786_v15  ;;  %v4433_v0 = vadd.f32 %v4432_v25, %v10325_v36  ;;  %v6120_v20 = vpack.c.bf16 %v5884_v54, %v5882_v61 }
 0x3a2   :  { %v5307_v2 = vpop.f32.mrf.mxu0  ;;  %v4434_v60 = vpop.f32.mrf.mxu1  ;;  %v4789_v18 = vmax.f32 %v4431_v47, 0.0  ;;  %v5306_v44 = vadd.f32 %v5305_v19, %v10932_v14 }
 0x3a3   :  { %v6121_v10 = vpack.c.bf16 %v5885_v42, %v5883_v24  ;;  %v4435_v50 = vadd.f32 %v4434_v60, %v10319_v30  ;;  %v5308_v13 = vadd.f32 %v5307_v2, %v10926_v4  ;;  %v4790_v22 = vmax.f32 %v4433_v0, 0.0 }
 0x3a4   :  { %v5309_v26 = vpop.f32.mrf.mxu0  ;;  %v4436_v63 = vpop.f32.mrf.mxu1  ;;  %v5886_v24 = vmax.f32 %v5306_v44, 0.0 }
 0x3a5   :  { %v5310_v55 = vadd.f32 %v5309_v26, %v10932_v14  ;;  %6538 = vmatprep.mubr.bf16.mxu1 %v6121_v10  ;;  %v4791_v7 = vmax.f32 %v4435_v50, 0.0  ;;  %v4437_v62 = vadd.f32 %v4436_v63, %v10325_v36  ;;  %5554 = vmatmul.mubr.bf16.gmra.mxu0 %v10877_v43  ;;  %v5887_v41 = vmax.f32 %v5308_v13, 0.0 }
 0x3a6   :  { %v5311_v3 = vpop.f32.mrf.mxu0  ;;  %v4440_v29 = vpop.f32.mrf.mxu1  ;;  %6539 = vmatmul.mubr.bf16.gmra.mxu1 %v6120_v20  ;;  %5563 = vmatprep.mubr.bf16.mxu0 %v10895_v8 }
 0x3a7   :  { %v5312_v46 = vadd.f32 %v5311_v3, %v10926_v4  ;;  %v11054_v34 = vpack.c.bf16 %v4791_v7, %v4789_v18  ;;  %v4792_v21 = vmax.f32 %v4437_v62, 0.0  ;;  %v5888_v39 = vmax.f32 %v5310_v55, 0.0 }
 0x3a8   :  { %v5315_v16 = vpop.f32.mrf.mxu0  ;;  %v4442_v59 = vpop.f32.mrf.mxu1  ;;  %v4441_v15 = vadd.f32 %v4440_v29, %v10319_v30 }
 0x3a9   :  { %v5889_v5 = vmax.f32 %v5312_v46, 0.0  ;;  %v11058_v19 = vpack.c.bf16 %v4792_v21, %v4790_v22  ;;  %v4443_v43 = vadd.f32 %v4442_v59, %v10325_v36  ;;  %v6122_v2 = vpack.c.bf16 %v5888_v39, %v5886_v24 }
 0x3aa   :  { %v5317_v33 = vpop.f32.mrf.mxu0  ;;  %v4444_v54 = vpop.f32.mrf.mxu1  ;;  %v4793_v10 = vmax.f32 %v4441_v15, 0.0  ;;  %v5316_v20 = vadd.f32 %v5315_v16, %v10932_v14 }
 0x3ab   :  { %v6123_v42 = vpack.c.bf16 %v5889_v5, %v5887_v41  ;;  %v4445_v25 = vadd.f32 %v4444_v54, %v10319_v30  ;;  %v5318_v8 = vadd.f32 %v5317_v33, %v10926_v4  ;;  %v4794_v55 = vmax.f32 %v4443_v43, 0.0 }
 0x3ac   :  { %v5319_v47 = vpop.f32.mrf.mxu0  ;;  %v4446_v61 = vpop.f32.mrf.mxu1  ;;  %v5890_v41 = vmax.f32 %v5316_v20, 0.0 }
 0x3ad   :  { %v5320_v60 = vadd.f32 %v5319_v47, %v10932_v14  ;;  %6548 = vmatprep.mubr.bf16.mxu1 %v6123_v42  ;;  %v4795_v0 = vmax.f32 %v4445_v25, 0.0  ;;  %v4447_v50 = vadd.f32 %v4446_v61, %v10325_v36  ;;  %5564 = vmatmul.mubr.bf16.gmra.mxu0 %v10891_v31  ;;  %v5891_v3 = vmax.f32 %v5318_v8, 0.0 }
 0x3ae   :  { %v5321_v26 = vpop.f32.mrf.mxu0  ;;  %v4450_v13 = vpop.f32.mrf.mxu1  ;;  %6549 = vmatmul.mubr.bf16.gmra.mxu1 %v6122_v2  ;;  %5573 = vmatprep.mubr.bf16.mxu0 %v10909_v40 }
 0x3af   :  { %v5322_v63 = vadd.f32 %v5321_v26, %v10926_v4  ;;  %v11068_v18 = vpack.c.bf16 %v4795_v0, %v4793_v10  ;;  %v4796_v7 = vmax.f32 %v4447_v50, 0.0  ;;  %v5892_v44 = vmax.f32 %v5320_v60, 0.0 }
 0x3b0   :  { %v5325_v62 = vpop.f32.mrf.mxu0  ;;  %v4452_v46 = vpop.f32.mrf.mxu1  ;;  %v4451_v22 = vadd.f32 %v4450_v13, %v10319_v30 }
 0x3b1   :  { %v5893_v29 = vmax.f32 %v5322_v63, 0.0  ;;  %v11072_v16 = vpack.c.bf16 %v4796_v7, %v4794_v55  ;;  %v4453_v31 = vadd.f32 %v4452_v46, %v10325_v36  ;;  %v6124_v33 = vpack.c.bf16 %v5892_v44, %v5890_v41 }
 0x3b2   :  { %v5327_v21 = vpop.f32.mrf.mxu0  ;;  %v4454_v39 = vpop.f32.mrf.mxu1  ;;  %v4797_v42 = vmax.f32 %v4451_v22, 0.0  ;;  %v5326_v2 = vadd.f32 %v5325_v62, %v10932_v14 }
 0x3b3   :  { %v6125_v5 = vpack.c.bf16 %v5893_v29, %v5891_v3  ;;  %v4455_v59 = vadd.f32 %v4454_v39, %v10319_v30  ;;  %v5328_v40 = vadd.f32 %v5327_v21, %v10926_v4  ;;  %v4798_v60 = vmax.f32 %v4453_v31, 0.0 }
 0x3b4   :  { %v5329_v15 = vpop.f32.mrf.mxu0  ;;  %v4456_v24 = vpop.f32.mrf.mxu1  ;;  %v5894_v3 = vmax.f32 %v5326_v2, 0.0 }
 0x3b5   :  { %v5330_v54 = vadd.f32 %v5329_v15, %v10932_v14  ;;  %6558 = vmatprep.mubr.bf16.mxu1 %v6125_v5  ;;  %v4799_v43 = vmax.f32 %v4455_v59, 0.0  ;;  %v4457_v25 = vadd.f32 %v4456_v24, %v10325_v36  ;;  %5574 = vmatmul.mubr.bf16.gmra.mxu0 %v10905_v17  ;;  %v5895_v26 = vmax.f32 %v5328_v40, 0.0 }
 0x3b6   :  { %v5331_v47 = vpop.f32.mrf.mxu0  ;;  %v4460_v8 = vpop.f32.mrf.mxu1  ;;  %6559 = vmatmul.mubr.bf16.gmra.mxu1 %v6124_v33  ;;  %5583 = vmatprep.mubr.bf16.mxu0 %v10929_v38 }
 0x3b7   :  { %v5332_v61 = vadd.f32 %v5331_v47, %v10926_v4  ;;  %v11082_v10 = vpack.c.bf16 %v4799_v43, %v4797_v42  ;;  %v4800_v0 = vmax.f32 %v4457_v25, 0.0  ;;  %v5896_v20 = vmax.f32 %v5330_v54, 0.0 }
 0x3b8   :  { %v5335_v50 = vpop.f32.mrf.mxu0  ;;  %v4462_v63 = vpop.f32.mrf.mxu1  ;;  %v4461_v55 = vadd.f32 %v4460_v8, %v10319_v30 }
 0x3b9   :  { %v5897_v13 = vmax.f32 %v5332_v61, 0.0  ;;  %v11086_v62 = vpack.c.bf16 %v4800_v0, %v4798_v60  ;;  %v4463_v17 = vadd.f32 %v4462_v63, %v10325_v36  ;;  %v6126_v21 = vpack.c.bf16 %v5896_v20, %v5894_v3 }
 0x3ba   :  { %v5337_v7 = vpop.f32.mrf.mxu0  ;;  %v4464_v44 = vpop.f32.mrf.mxu1  ;;  %v4801_v5 = vmax.f32 %v4461_v55, 0.0  ;;  %v5336_v33 = vadd.f32 %v5335_v50, %v10932_v14 }
 0x3bb   :  { %v6127_v29 = vpack.c.bf16 %v5897_v13, %v5895_v26  ;;  %v4465_v46 = vadd.f32 %v4464_v44, %v10319_v30  ;;  %v5338_v38 = vadd.f32 %v5337_v7, %v10926_v4  ;;  %v4802_v54 = vmax.f32 %v4463_v17, 0.0 }
 0x3bc   :  { %v5339_v22 = vpop.f32.mrf.mxu0  ;;  %v4466_v41 = vpop.f32.mrf.mxu1  ;;  %v5898_v26 = vmax.f32 %v5336_v33, 0.0 }
 0x3bd   :  { %v5340_v39 = vadd.f32 %v5339_v22, %v10932_v14  ;;  %6568 = vmatprep.mubr.bf16.mxu1 %v6127_v29  ;;  %v4803_v31 = vmax.f32 %v4465_v46, 0.0  ;;  %v4467_v59 = vadd.f32 %v4466_v41, %v10325_v36  ;;  %5584 = vmatmul.mubr.bf16.gmra.mxu0 %v10919_v9  ;;  %v5899_v47 = vmax.f32 %v5338_v38, 0.0 }
 0x3be   :  { %v5341_v15 = vpop.f32.mrf.mxu0  ;;  %v4470_v40 = vpop.f32.mrf.mxu1  ;;  %6569 = vmatmul.mubr.bf16.gmra.mxu1 %v6126_v21  ;;  %5593 = vmatprep.mubr.bf16.mxu0 %v10946_v57 }
 0x3bf   :  { %v5342_v24 = vadd.f32 %v5341_v15, %v10926_v4  ;;  %v11096_v42 = vpack.c.bf16 %v4803_v31, %v4801_v5  ;;  %v4804_v43 = vmax.f32 %v4467_v59, 0.0  ;;  %v5900_v2 = vmax.f32 %v5340_v39, 0.0 }
 0x3c0   :  { %v5345_v25 = vpop.f32.mrf.mxu0  ;;  %v4472_v61 = vpop.f32.mrf.mxu1  ;;  %v4471_v60 = vadd.f32 %v4470_v40, %v10319_v30 }
 0x3c1   :  { %v5901_v8 = vmax.f32 %v5342_v24, 0.0  ;;  %v11100_v50 = vpack.c.bf16 %v4804_v43, %v4802_v54  ;;  %v4473_v9 = vadd.f32 %v4472_v61, %v10325_v36  ;;  %v6128_v7 = vpack.c.bf16 %v5900_v2, %v5898_v26 }
 0x3c2   :  { %v5347_v0 = vpop.f32.mrf.mxu0  ;;  %v4474_v20 = vpop.f32.mrf.mxu1  ;;  %v4805_v29 = vmax.f32 %v4471_v60, 0.0  ;;  %v5346_v21 = vadd.f32 %v5345_v25, %v10932_v14 }
 0x3c3   :  { %v6129_v13 = vpack.c.bf16 %v5901_v8, %v5899_v47  ;;  %v4475_v63 = vadd.f32 %v4474_v20, %v10319_v30  ;;  %v5348_v57 = vadd.f32 %v5347_v0, %v10926_v4  ;;  %v4806_v39 = vmax.f32 %v4473_v9, 0.0 }
 0x3c4   :  { %v5349_v55 = vpop.f32.mrf.mxu0  ;;  %v4476_v3 = vpop.f32.mrf.mxu1  ;;  %v5902_v47 = vmax.f32 %v5346_v21, 0.0 }
 0x3c5   :  { %v5350_v44 = vadd.f32 %v5349_v55, %v10932_v14  ;;  %6578 = vmatprep.mubr.bf16.mxu1 %v6129_v13  ;;  %v4807_v17 = vmax.f32 %v4475_v63, 0.0  ;;  %v4477_v46 = vadd.f32 %v4476_v3, %v10325_v36  ;;  %5594 = vmatmul.mubr.bf16.gmra.mxu0 %v10942_v23  ;;  %v5903_v15 = vmax.f32 %v5348_v57, 0.0 }
 0x3c6   :  { %v5351_v22 = vpop.f32.mrf.mxu0  ;;  %v4480_v38 = vpop.f32.mrf.mxu1  ;;  %6579 = vmatmul.mubr.bf16.gmra.mxu1 %v6128_v7  ;;  %5603 = vmatprep.mubr.bf16.mxu0 %v10960_v11 }
 0x3c7   :  { %v5352_v41 = vadd.f32 %v5351_v22, %v10926_v4  ;;  %v11110_v5 = vpack.c.bf16 %v4807_v17, %v4805_v29  ;;  %v4808_v31 = vmax.f32 %v4477_v46, 0.0  ;;  %v5904_v33 = vmax.f32 %v5350_v44, 0.0 }
 0x3c8   :  { %v5355_v59 = vpop.f32.mrf.mxu0  ;;  %v4482_v24 = vpop.f32.mrf.mxu1  ;;  %v4481_v54 = vadd.f32 %v4480_v38, %v10319_v30 }
 0x3c9   :  { %v5905_v40 = vmax.f32 %v5352_v41, 0.0  ;;  %v11114_v25 = vpack.c.bf16 %v4808_v31, %v4806_v39  ;;  %v4483_v23 = vadd.f32 %v4482_v24, %v10325_v36  ;;  %v6130_v0 = vpack.c.bf16 %v5904_v33, %v5902_v47 }
 0x3ca   :  { %v5357_v43 = vpop.f32.mrf.mxu0  ;;  %v4484_v2 = vpop.f32.mrf.mxu1  ;;  %v4809_v13 = vmax.f32 %v4481_v54, 0.0  ;;  %v5356_v7 = vadd.f32 %v5355_v59, %v10932_v14 }
 0x3cb   :  { %v6131_v8 = vpack.c.bf16 %v5905_v40, %v5903_v15  ;;  %v4485_v61 = vadd.f32 %v4484_v2, %v10319_v30  ;;  %v5358_v11 = vadd.f32 %v5357_v43, %v10926_v4  ;;  %v4810_v44 = vmax.f32 %v4483_v23, 0.0 }
 0x3cc   :  { %v5359_v60 = vpop.f32.mrf.mxu0  ;;  %v4486_v26 = vpop.f32.mrf.mxu1  ;;  %v5906_v15 = vmax.f32 %v5356_v7, 0.0 }
 0x3cd   :  { %v5360_v20 = vadd.f32 %v5359_v60, %v10932_v14  ;;  %6588 = vmatprep.mubr.bf16.mxu1 %v6131_v8  ;;  %v4811_v9 = vmax.f32 %v4485_v61, 0.0  ;;  %v4487_v63 = vadd.f32 %v4486_v26, %v10325_v36  ;;  %5604 = vmatmul.mubr.bf16.gmra.mxu0 %v10956_v32  ;;  %v5907_v22 = vmax.f32 %v5358_v11, 0.0 }
 0x3ce   :  { %v5361_v55 = vpop.f32.mrf.mxu0  ;;  %v4490_v57 = vpop.f32.mrf.mxu1  ;;  %6589 = vmatmul.mubr.bf16.gmra.mxu1 %v6130_v0  ;;  %5613 = vmatprep.mubr.bf16.mxu0 %v10974_v58 }
 0x3cf   :  { %v5362_v3 = vadd.f32 %v5361_v55, %v10926_v4  ;;  %v11124_v29 = vpack.c.bf16 %v4811_v9, %v4809_v13  ;;  %v4812_v17 = vmax.f32 %v4487_v63, 0.0  ;;  %v5908_v21 = vmax.f32 %v5360_v20, 0.0 }
 0x3d0   :  { %v5365_v46 = vpop.f32.mrf.mxu0  ;;  %v4492_v41 = vpop.f32.mrf.mxu1  ;;  %v4491_v39 = vadd.f32 %v4490_v57, %v10319_v30 }
 0x3d1   :  { %v5909_v38 = vmax.f32 %v5362_v3, 0.0  ;;  %v11128_v59 = vpack.c.bf16 %v4812_v17, %v4810_v44  ;;  %v4493_v32 = vadd.f32 %v4492_v41, %v10325_v36  ;;  %v6132_v43 = vpack.c.bf16 %v5908_v21, %v5906_v15 }
 0x3d2   :  { %v5367_v31 = vpop.f32.mrf.mxu0  ;;  %v4494_v33 = vpop.f32.mrf.mxu1  ;;  %v4813_v8 = vmax.f32 %v4491_v39, 0.0  ;;  %v5366_v0 = vadd.f32 %v5365_v46, %v10932_v14 }
 0x3d3   :  { %v6133_v40 = vpack.c.bf16 %v5909_v38, %v5907_v22  ;;  %v4495_v24 = vadd.f32 %v4494_v33, %v10319_v30  ;;  %v5368_v58 = vadd.f32 %v5367_v31, %v10926_v4  ;;  %v4814_v20 = vmax.f32 %v4493_v32, 0.0 }
 0x3d4   :  { %v5369_v54 = vpop.f32.mrf.mxu0  ;;  %v4496_v47 = vpop.f32.mrf.mxu1  ;;  %v5910_v22 = vmax.f32 %v5366_v0, 0.0 }
 0x3d5   :  { %v5370_v2 = vadd.f32 %v5369_v54, %v10932_v14  ;;  %6598 = vmatprep.mubr.bf16.mxu1 %v6133_v40  ;;  %v4815_v23 = vmax.f32 %v4495_v24, 0.0  ;;  %v4497_v61 = vadd.f32 %v4496_v47, %v10325_v36  ;;  %5614 = vmatmul.mubr.bf16.gmra.mxu0 %v10970_v52  ;;  %v5911_v55 = vmax.f32 %v5368_v58, 0.0 }
 0x3d6   :  { %v5371_v60 = vpop.f32.mrf.mxu0  ;;  %v4500_v11 = vpop.f32.mrf.mxu1  ;;  %6599 = vmatmul.mubr.bf16.gmra.mxu1 %v6132_v43  ;;  %5623 = vmatprep.mubr.bf16.mxu0 %v10988_v28 }
 0x3d7   :  { %v5372_v26 = vadd.f32 %v5371_v60, %v10926_v4  ;;  %v11138_v13 = vpack.c.bf16 %v4815_v23, %v4813_v8  ;;  %v4816_v9 = vmax.f32 %v4497_v61, 0.0  ;;  %v5912_v7 = vmax.f32 %v5370_v2, 0.0 }
 0x3d8   :  { %v5375_v63 = vpop.f32.mrf.mxu0  ;;  %v4502_v3 = vpop.f32.mrf.mxu1  ;;  %v4501_v44 = vadd.f32 %v4500_v11, %v10319_v30 }
 0x3d9   :  { %v5913_v57 = vmax.f32 %v5372_v26, 0.0  ;;  %v11142_v46 = vpack.c.bf16 %v4816_v9, %v4814_v20  ;;  %v4503_v52 = vadd.f32 %v4502_v3, %v10325_v36  ;;  %v6134_v31 = vpack.c.bf16 %v5912_v7, %v5910_v22 }
 0x3da   :  { %v5377_v17 = vpop.f32.mrf.mxu0  ;;  %v4504_v21 = vpop.f32.mrf.mxu1  ;;  %v4817_v40 = vmax.f32 %v4501_v44, 0.0  ;;  %v5376_v43 = vadd.f32 %v5375_v63, %v10932_v14 }
 0x3db   :  { %v6135_v38 = vpack.c.bf16 %v5913_v57, %v5911_v55  ;;  %v4505_v41 = vadd.f32 %v4504_v21, %v10319_v30  ;;  %v5378_v28 = vadd.f32 %v5377_v17, %v10926_v4  ;;  %v4818_v2 = vmax.f32 %v4503_v52, 0.0 }
 0x3dc   :  { %v5379_v39 = vpop.f32.mrf.mxu0  ;;  %v4506_v15 = vpop.f32.mrf.mxu1  ;;  %v5914_v55 = vmax.f32 %v5376_v43, 0.0 }
 0x3dd   :  { %v5380_v33 = vadd.f32 %v5379_v39, %v10932_v14  ;;  %6608 = vmatprep.mubr.bf16.mxu1 %v6135_v38  ;;  %v4819_v32 = vmax.f32 %v4505_v41, 0.0  ;;  %v4507_v24 = vadd.f32 %v4506_v15, %v10325_v36  ;;  %5624 = vmatmul.mubr.bf16.gmra.mxu0 %v10984_v6  ;;  %v5915_v60 = vmax.f32 %v5378_v28, 0.0 }
 0x3de   :  { %v5381_v54 = vpop.f32.mrf.mxu0  ;;  %v4510_v58 = vpop.f32.mrf.mxu1  ;;  %6609 = vmatmul.mubr.bf16.gmra.mxu1 %v6134_v31  ;;  %5633 = vmatprep.mubr.bf16.mxu0 %v11002_v27 }
 0x3df   :  { %v5382_v47 = vadd.f32 %v5381_v54, %v10926_v4  ;;  %v11152_v8 = vpack.c.bf16 %v4819_v32, %v4817_v40  ;;  %v4820_v23 = vmax.f32 %v4507_v24, 0.0  ;;  %v5916_v0 = vmax.f32 %v5380_v33, 0.0 }
 0x3e0   :  { %v5385_v61 = vpop.f32.mrf.mxu0  ;;  %v4512_v26 = vpop.f32.mrf.mxu1  ;;  %v4511_v20 = vadd.f32 %v4510_v58, %v10319_v30 }
 0x3e1   :  { %v5917_v11 = vmax.f32 %v5382_v47, 0.0  ;;  %v11156_v63 = vpack.c.bf16 %v4820_v23, %v4818_v2  ;;  %v4513_v6 = vadd.f32 %v4512_v26, %v10325_v36  ;;  %v6136_v17 = vpack.c.bf16 %v5916_v0, %v5914_v55 }
 0x3e2   :  { %v5387_v9 = vpop.f32.mrf.mxu0  ;;  %v4514_v7 = vpop.f32.mrf.mxu1  ;;  %v4821_v38 = vmax.f32 %v4511_v20, 0.0  ;;  %v5386_v31 = vadd.f32 %v5385_v61, %v10932_v14 }
 0x3e3   :  { %v6137_v57 = vpack.c.bf16 %v5917_v11, %v5915_v60  ;;  %v4515_v3 = vadd.f32 %v4514_v7, %v10319_v30  ;;  %v5388_v27 = vadd.f32 %v5387_v9, %v10926_v4  ;;  %v4822_v33 = vmax.f32 %v4513_v6, 0.0 }
 0x3e4   :  { %v5389_v44 = vpop.f32.mrf.mxu0  ;;  %v4516_v22 = vpop.f32.mrf.mxu1  ;;  %v5918_v60 = vmax.f32 %v5386_v31, 0.0 }
 0x3e5   :  { %v5390_v21 = vadd.f32 %v5389_v44, %v10932_v14  ;;  %6618 = vmatprep.mubr.bf16.mxu1 %v6137_v57  ;;  %v4823_v52 = vmax.f32 %v4515_v3, 0.0  ;;  %v4517_v41 = vadd.f32 %v4516_v22, %v10325_v36  ;;  %5634 = vmatmul.mubr.bf16.gmra.mxu0 %v10998_v35  ;;  %v5919_v54 = vmax.f32 %v5388_v27, 0.0 }
 0x3e6   :  { %v5391_v39 = vpop.f32.mrf.mxu0  ;;  %v4520_v28 = vpop.f32.mrf.mxu1  ;;  %6619 = vmatmul.mubr.bf16.gmra.mxu1 %v6136_v17  ;;  %5643 = vmatprep.mubr.bf16.mxu0 %v11016_v1 }
 0x3e7   :  { %v5392_v15 = vadd.f32 %v5391_v39, %v10926_v4  ;;  %v11166_v40 = vpack.c.bf16 %v4823_v52, %v4821_v38  ;;  %v4824_v32 = vmax.f32 %v4517_v41, 0.0  ;;  %v5920_v43 = vmax.f32 %v5390_v21, 0.0 }
 0x3e8   :  { %v5395_v24 = vpop.f32.mrf.mxu0  ;;  %v4522_v47 = vpop.f32.mrf.mxu1  ;;  %v4521_v2 = vadd.f32 %v4520_v28, %v10319_v30 }
 0x3e9   :  { %v5921_v58 = vmax.f32 %v5392_v15, 0.0  ;;  %v11170_v61 = vpack.c.bf16 %v4824_v32, %v4822_v33  ;;  %v4523_v35 = vadd.f32 %v4522_v47, %v10325_v36  ;;  %v6138_v9 = vpack.c.bf16 %v5920_v43, %v5918_v60 }
 0x3ea   :  { %v5397_v23 = vpop.f32.mrf.mxu0  ;;  %v4524_v0 = vpop.f32.mrf.mxu1  ;;  %v4825_v57 = vmax.f32 %v4521_v2, 0.0  ;;  %v5396_v17 = vadd.f32 %v5395_v24, %v10932_v14 }
 0x3eb   :  { %v6139_v11 = vpack.c.bf16 %v5921_v58, %v5919_v54  ;;  %v4525_v26 = vadd.f32 %v4524_v0, %v10319_v30  ;;  %v5398_v1 = vadd.f32 %v5397_v23, %v10926_v4  ;;  %v4826_v21 = vmax.f32 %v4523_v35, 0.0 }
 0x3ec   :  { %v5399_v20 = vpop.f32.mrf.mxu0  ;;  %v4526_v55 = vpop.f32.mrf.mxu1  ;;  %v5922_v54 = vmax.f32 %v5396_v17, 0.0 }
 0x3ed   :  { %v5400_v7 = vadd.f32 %v5399_v20, %v10932_v14  ;;  %6628 = vmatprep.mubr.bf16.mxu1 %v6139_v11  ;;  %v4827_v6 = vmax.f32 %v4525_v26, 0.0  ;;  %v4527_v3 = vadd.f32 %v4526_v55, %v10325_v36  ;;  %5644 = vmatmul.mubr.bf16.gmra.mxu0 %v11012_v12  ;;  %v5923_v39 = vmax.f32 %v5398_v1, 0.0 }
 0x3ee   :  { %v5401_v44 = vpop.f32.mrf.mxu0  ;;  %v4530_v27 = vpop.f32.mrf.mxu1  ;;  %6629 = vmatmul.mubr.bf16.gmra.mxu1 %v6138_v9  ;;  %5653 = vmatprep.mubr.bf16.mxu0 %v11030_v51 }
 0x3ef   :  { %v5402_v22 = vadd.f32 %v5401_v44, %v10926_v4  ;;  %v11180_v38 = vpack.c.bf16 %v4827_v6, %v4825_v57  ;;  %v4828_v52 = vmax.f32 %v4527_v3, 0.0  ;;  %v5924_v31 = vmax.f32 %v5400_v7, 0.0 }
 0x3f0   :  { %v5405_v41 = vpop.f32.mrf.mxu0  ;;  %v4532_v15 = vpop.f32.mrf.mxu1  ;;  %v4531_v33 = vadd.f32 %v4530_v27, %v10319_v30 }
 0x3f1   :  { %v5925_v28 = vmax.f32 %v5402_v22, 0.0  ;;  %v11184_v24 = vpack.c.bf16 %v4828_v52, %v4826_v21  ;;  %v4533_v12 = vadd.f32 %v4532_v15, %v10325_v36  ;;  %v6140_v23 = vpack.c.bf16 %v5924_v31, %v5922_v54 }
 0x3f2   :  { %v5407_v32 = vpop.f32.mrf.mxu0  ;;  %v4534_v43 = vpop.f32.mrf.mxu1  ;;  %v4829_v11 = vmax.f32 %v4531_v33, 0.0  ;;  %v5406_v9 = vadd.f32 %v5405_v41, %v10932_v14 }
 0x3f3   :  { %v6141_v58 = vpack.c.bf16 %v5925_v28, %v5923_v39  ;;  %v4535_v47 = vadd.f32 %v4534_v43, %v10319_v30  ;;  %v5408_v51 = vadd.f32 %v5407_v32, %v10926_v4  ;;  %v4830_v7 = vmax.f32 %v4533_v12, 0.0 }
 0x3f4   :  { %v5409_v2 = vpop.f32.mrf.mxu0  ;;  %v4536_v60 = vpop.f32.mrf.mxu1  ;;  %v5926_v39 = vmax.f32 %v5406_v9, 0.0 }
 0x3f5   :  { %v5410_v0 = vadd.f32 %v5409_v2, %v10932_v14  ;;  %6638 = vmatprep.mubr.bf16.mxu1 %v6141_v58  ;;  %v4831_v35 = vmax.f32 %v4535_v47, 0.0  ;;  %v4537_v26 = vadd.f32 %v4536_v60, %v10325_v36  ;;  %5654 = vmatmul.mubr.bf16.gmra.mxu0 %v11026_v48  ;;  %v5927_v44 = vmax.f32 %v5408_v51, 0.0 }
 0x3f6   :  { %v5411_v20 = vpop.f32.mrf.mxu0  ;;  %v4540_v1 = vpop.f32.mrf.mxu1  ;;  %6639 = vmatmul.mubr.bf16.gmra.mxu1 %v6140_v23  ;;  %5663 = vmatprep.mubr.bf16.mxu0 %v11044_v37 }
 0x3f7   :  { %v5412_v55 = vadd.f32 %v5411_v20, %v10926_v4  ;;  %v11194_v57 = vpack.c.bf16 %v4831_v35, %v4829_v11  ;;  %v4832_v6 = vmax.f32 %v4537_v26, 0.0  ;;  %v5928_v17 = vmax.f32 %v5410_v0, 0.0 }
 0x3f8   :  { %v5415_v3 = vpop.f32.mrf.mxu0  ;;  %v4542_v22 = vpop.f32.mrf.mxu1  ;;  %v4541_v21 = vadd.f32 %v4540_v1, %v10319_v30 }
 0x3f9   :  { %v5929_v27 = vmax.f32 %v5412_v55, 0.0  ;;  %v11198_v41 = vpack.c.bf16 %v4832_v6, %v4830_v7  ;;  %v4543_v48 = vadd.f32 %v4542_v22, %v10325_v36  ;;  %v6142_v32 = vpack.c.bf16 %v5928_v17, %v5926_v39 }
 0x3fa   :  { %v5417_v52 = vpop.f32.mrf.mxu0  ;;  %v4544_v31 = vpop.f32.mrf.mxu1  ;;  %v4833_v58 = vmax.f32 %v4541_v21, 0.0  ;;  %v5416_v23 = vadd.f32 %v5415_v3, %v10932_v14 }
 0x3fb   :  { %v6143_v28 = vpack.c.bf16 %v5929_v27, %v5927_v44  ;;  %v4545_v15 = vadd.f32 %v4544_v31, %v10319_v30  ;;  %v5418_v37 = vadd.f32 %v5417_v52, %v10926_v4  ;;  %v4834_v0 = vmax.f32 %v4543_v48, 0.0 }
 0x3fc   :  { %v5419_v33 = vpop.f32.mrf.mxu0  ;;  %v4546_v54 = vpop.f32.mrf.mxu1  ;;  %v5930_v44 = vmax.f32 %v5416_v23, 0.0 }
 0x3fd   :  { %v5420_v43 = vadd.f32 %v5419_v33, %v10932_v14  ;;  %6648 = vmatprep.mubr.bf16.mxu1 %v6143_v28  ;;  %v4835_v12 = vmax.f32 %v4545_v15, 0.0  ;;  %v4547_v47 = vadd.f32 %v4546_v54, %v10325_v36  ;;  %5664 = vmatmul.mubr.bf16.gmra.mxu0 %v11040_v49  ;;  %v5931_v20 = vmax.f32 %v5418_v37, 0.0 }
 0x3fe   :  { %v5421_v2 = vpop.f32.mrf.mxu0  ;;  %v4550_v51 = vpop.f32.mrf.mxu1  ;;  %6649 = vmatmul.mubr.bf16.gmra.mxu1 %v6142_v32  ;;  %5673 = vmatprep.mubr.bf16.mxu0 %v11058_v19 }
 0x3ff   :  { %v5422_v60 = vadd.f32 %v5421_v2, %v10926_v4  ;;  %v11208_v11 = vpack.c.bf16 %v4835_v12, %v4833_v58  ;;  %v4836_v35 = vmax.f32 %v4547_v47, 0.0  ;;  %v5932_v9 = vmax.f32 %v5420_v43, 0.0 }
 0x400   :  { %v5425_v26 = vpop.f32.mrf.mxu0  ;;  %v4552_v55 = vpop.f32.mrf.mxu1  ;;  %v4551_v7 = vadd.f32 %v4550_v51, %v10319_v30 }
 0x401   :  { %v5933_v1 = vmax.f32 %v5422_v60, 0.0  ;;  %v11212_v3 = vpack.c.bf16 %v4836_v35, %v4834_v0  ;;  %v4553_v49 = vadd.f32 %v4552_v55, %v10325_v36  ;;  %v6144_v52 = vpack.c.bf16 %v5932_v9, %v5930_v44 }
 0x402   :  { %v5427_v6 = vpop.f32.mrf.mxu0  ;;  %v4554_v17 = vpop.f32.mrf.mxu1  ;;  %v4837_v28 = vmax.f32 %v4551_v7, 0.0  ;;  %v5426_v32 = vadd.f32 %v5425_v26, %v10932_v14 }
 0x403   :  { %v6145_v27 = vpack.c.bf16 %v5933_v1, %v5931_v20  ;;  %v4555_v22 = vadd.f32 %v4554_v17, %v10319_v30  ;;  %v5428_v19 = vadd.f32 %v5427_v6, %v10926_v4  ;;  %v4838_v43 = vmax.f32 %v4553_v49, 0.0 }
 0x404   :  { %v5429_v21 = vpop.f32.mrf.mxu0  ;;  %v4556_v39 = vpop.f32.mrf.mxu1  ;;  %v5934_v20 = vmax.f32 %v5426_v32, 0.0 }
 0x405   :  { %v5430_v31 = vadd.f32 %v5429_v21, %v10932_v14  ;;  %6658 = vmatprep.mubr.bf16.mxu1 %v6145_v27  ;;  %v4839_v48 = vmax.f32 %v4555_v22, 0.0  ;;  %v4557_v15 = vadd.f32 %v4556_v39, %v10325_v36  ;;  %5674 = vmatmul.mubr.bf16.gmra.mxu0 %v11054_v34  ;;  %v5935_v2 = vmax.f32 %v5428_v19, 0.0 }
 0x406   :  { %v5431_v33 = vpop.f32.mrf.mxu0  ;;  %v4560_v37 = vpop.f32.mrf.mxu1  ;;  %6659 = vmatmul.mubr.bf16.gmra.mxu1 %v6144_v52  ;;  %5683 = vmatprep.mubr.bf16.mxu0 %v11072_v16 }
 0x407   :  { %v5432_v54 = vadd.f32 %v5431_v33, %v10926_v4  ;;  %v11222_v58 = vpack.c.bf16 %v4839_v48, %v4837_v28  ;;  %v4840_v12 = vmax.f32 %v4557_v15, 0.0  ;;  %v5936_v23 = vmax.f32 %v5430_v31, 0.0 }
 0x408   :  { %v5435_v47 = vpop.f32.mrf.mxu0  ;;  %v4562_v60 = vpop.f32.mrf.mxu1  ;;  %v4561_v0 = vadd.f32 %v4560_v37, %v10319_v30 }
 0x409   :  { %v5937_v51 = vmax.f32 %v5432_v54, 0.0  ;;  %v11226_v26 = vpack.c.bf16 %v4840_v12, %v4838_v43  ;;  %v4563_v34 = vadd.f32 %v4562_v60, %v10325_v36  ;;  %v6146_v6 = vpack.c.bf16 %v5936_v23, %v5934_v20 }
 0x40a   :  { %v5437_v35 = vpop.f32.mrf.mxu0  ;;  %v4564_v9 = vpop.f32.mrf.mxu1  ;;  %v4841_v27 = vmax.f32 %v4561_v0, 0.0  ;;  %v5436_v52 = vadd.f32 %v5435_v47, %v10932_v14 }
 0x40b   :  { %v6147_v1 = vpack.c.bf16 %v5937_v51, %v5935_v2  ;;  %v4565_v55 = vadd.f32 %v4564_v9, %v10319_v30  ;;  %v5438_v16 = vadd.f32 %v5437_v35, %v10926_v4  ;;  %v4842_v31 = vmax.f32 %v4563_v34, 0.0 }
 0x40c   :  { %v5439_v7 = vpop.f32.mrf.mxu0  ;;  %v4566_v44 = vpop.f32.mrf.mxu1  ;;  %v5938_v2 = vmax.f32 %v5436_v52, 0.0 }
 0x40d   :  { %v5440_v17 = vadd.f32 %v5439_v7, %v10932_v14  ;;  %6668 = vmatprep.mubr.bf16.mxu1 %v6147_v1  ;;  %v4843_v49 = vmax.f32 %v4565_v55, 0.0  ;;  %v4567_v22 = vadd.f32 %v4566_v44, %v10325_v36  ;;  %5684 = vmatmul.mubr.bf16.gmra.mxu0 %v11068_v18  ;;  %v5939_v33 = vmax.f32 %v5438_v16, 0.0 }
 0x40e   :  { %v5441_v21 = vpop.f32.mrf.mxu0  ;;  %v4570_v19 = vpop.f32.mrf.mxu1  ;;  %6669 = vmatmul.mubr.bf16.gmra.mxu1 %v6146_v6  ;;  %5693 = vmatprep.mubr.bf16.mxu0 %v11086_v62 }
 0x40f   :  { %v5442_v39 = vadd.f32 %v5441_v21, %v10926_v4  ;;  %v11236_v28 = vpack.c.bf16 %v4843_v49, %v4841_v27  ;;  %v4844_v48 = vmax.f32 %v4567_v22, 0.0  ;;  %v5940_v32 = vmax.f32 %v5440_v17, 0.0 }
 0x410   :  { %v5445_v15 = vpop.f32.mrf.mxu0  ;;  %v4572_v54 = vpop.f32.mrf.mxu1  ;;  %v4571_v43 = vadd.f32 %v4570_v19, %v10319_v30 }
 0x411   :  { %v5941_v37 = vmax.f32 %v5442_v39, 0.0  ;;  %v11240_v47 = vpack.c.bf16 %v4844_v48, %v4842_v31  ;;  %v4573_v18 = vadd.f32 %v4572_v54, %v10325_v36  ;;  %v6148_v35 = vpack.c.bf16 %v5940_v32, %v5938_v2 }
 0x412   :  { %v5447_v12 = vpop.f32.mrf.mxu0  ;;  %v4574_v23 = vpop.f32.mrf.mxu1  ;;  %v4845_v1 = vmax.f32 %v4571_v43, 0.0  ;;  %v5446_v6 = vadd.f32 %v5445_v15, %v10932_v14 }
 0x413   :  { %v6149_v51 = vpack.c.bf16 %v5941_v37, %v5939_v33  ;;  %v4575_v60 = vadd.f32 %v4574_v23, %v10319_v30  ;;  %v5448_v62 = vadd.f32 %v5447_v12, %v10926_v4  ;;  %v4846_v17 = vmax.f32 %v4573_v18, 0.0 }
 0x414   :  { %v5449_v0 = vpop.f32.mrf.mxu0  ;;  %v4576_v20 = vpop.f32.mrf.mxu1  ;;  %v5942_v33 = vmax.f32 %v5446_v6, 0.0 }
 0x415   :  { %v5450_v9 = vadd.f32 %v5449_v0, %v10932_v14  ;;  %6678 = vmatprep.mubr.bf16.mxu1 %v6149_v51  ;;  %v4847_v34 = vmax.f32 %v4575_v60, 0.0  ;;  %v4577_v55 = vadd.f32 %v4576_v20, %v10325_v36  ;;  %5694 = vmatmul.mubr.bf16.gmra.mxu0 %v11082_v10  ;;  %v5943_v21 = vmax.f32 %v5448_v62, 0.0 }
 0x416   :  { %v5451_v7 = vpop.f32.mrf.mxu0  ;;  %v4580_v16 = vpop.f32.mrf.mxu1  ;;  %6679 = vmatmul.mubr.bf16.gmra.mxu1 %v6148_v35  ;;  %5703 = vmatprep.mubr.bf16.mxu0 %v11100_v50 }
 0x417   :  { %v5452_v44 = vadd.f32 %v5451_v7, %v10926_v4  ;;  %v11250_v27 = vpack.c.bf16 %v4847_v34, %v4845_v1  ;;  %v4848_v49 = vmax.f32 %v4577_v55, 0.0  ;;  %v5944_v52 = vmax.f32 %v5450_v9, 0.0 }
 0x418   :  { %v5455_v22 = vpop.f32.mrf.mxu0  ;;  %v4582_v39 = vpop.f32.mrf.mxu1  ;;  %v4581_v31 = vadd.f32 %v4580_v16, %v10319_v30 }
 0x419   :  { %v5945_v19 = vmax.f32 %v5452_v44, 0.0  ;;  %v11254_v15 = vpack.c.bf16 %v4848_v49, %v4846_v17  ;;  %v4583_v10 = vadd.f32 %v4582_v39, %v10325_v36  ;;  %v6150_v12 = vpack.c.bf16 %v5944_v52, %v5942_v33 }
 0x41a   :  { %v5457_v48 = vpop.f32.mrf.mxu0  ;;  %v4584_v32 = vpop.f32.mrf.mxu1  ;;  %v4849_v51 = vmax.f32 %v4581_v31, 0.0  ;;  %v5456_v35 = vadd.f32 %v5455_v22, %v10932_v14 }
 0x41b   :  { %v6151_v37 = vpack.c.bf16 %v5945_v19, %v5943_v21  ;;  %v4585_v54 = vadd.f32 %v4584_v32, %v10319_v30  ;;  %v5458_v50 = vadd.f32 %v5457_v48, %v10926_v4  ;;  %v4850_v9 = vmax.f32 %v4583_v10, 0.0 }
 0x41c   :  { %v5459_v43 = vpop.f32.mrf.mxu0  ;;  %v4586_v2 = vpop.f32.mrf.mxu1  ;;  %v5946_v21 = vmax.f32 %v5456_v35, 0.0 }
 0x41d   :  { %v5460_v23 = vadd.f32 %v5459_v43, %v10932_v14  ;;  %6688 = vmatprep.mubr.bf16.mxu1 %v6151_v37  ;;  %v4851_v18 = vmax.f32 %v4585_v54, 0.0  ;;  %v4587_v60 = vadd.f32 %v4586_v2, %v10325_v36  ;;  %5704 = vmatmul.mubr.bf16.gmra.mxu0 %v11096_v42  ;;  %v5947_v7 = vmax.f32 %v5458_v50, 0.0 }
 0x41e   :  { %v5461_v0 = vpop.f32.mrf.mxu0  ;;  %v4590_v62 = vpop.f32.mrf.mxu1  ;;  %6689 = vmatmul.mubr.bf16.gmra.mxu1 %v6150_v12  ;;  %5713 = vmatprep.mubr.bf16.mxu0 %v11114_v25 }
 0x41f   :  { %v5462_v20 = vadd.f32 %v5461_v0, %v10926_v4  ;;  %v11264_v1 = vpack.c.bf16 %v4851_v18, %v4849_v51  ;;  %v4852_v34 = vmax.f32 %v4587_v60, 0.0  ;;  %v5948_v6 = vmax.f32 %v5460_v23, 0.0 }
 0x420   :  { %v5465_v55 = vpop.f32.mrf.mxu0  ;;  %v4592_v44 = vpop.f32.mrf.mxu1  ;;  %v4591_v17 = vadd.f32 %v4590_v62, %v10319_v30 }
 0x421   :  { %v5949_v16 = vmax.f32 %v5462_v20, 0.0  ;;  %v11268_v22 = vpack.c.bf16 %v4852_v34, %v4850_v9  ;;  %v4593_v42 = vadd.f32 %v4592_v44, %v10325_v36  ;;  %v6152_v48 = vpack.c.bf16 %v5948_v6, %v5946_v21 }
 0x422   :  { %v5467_v49 = vpop.f32.mrf.mxu0  ;;  %v4594_v52 = vpop.f32.mrf.mxu1  ;;  %v4853_v37 = vmax.f32 %v4591_v17, 0.0  ;;  %v5466_v12 = vadd.f32 %v5465_v55, %v10932_v14 }
 0x423   :  { %v6153_v19 = vpack.c.bf16 %v5949_v16, %v5947_v7  ;;  %v4595_v39 = vadd.f32 %v4594_v52, %v10319_v30  ;;  %v5468_v25 = vadd.f32 %v5467_v49, %v10926_v4  ;;  %v4854_v23 = vmax.f32 %v4593_v42, 0.0 }
 0x424   :  { %v5469_v31 = vpop.f32.mrf.mxu0  ;;  %v4596_v33 = vpop.f32.mrf.mxu1  ;;  %v5950_v7 = vmax.f32 %v5466_v12, 0.0 }
 0x425   :  { %v5470_v32 = vadd.f32 %v5469_v31, %v10932_v14  ;;  %6698 = vmatprep.mubr.bf16.mxu1 %v6153_v19  ;;  %v4855_v10 = vmax.f32 %v4595_v39, 0.0  ;;  %v4597_v54 = vadd.f32 %v4596_v33, %v10325_v36  ;;  %5714 = vmatmul.mubr.bf16.gmra.mxu0 %v11110_v5  ;;  %v5951_v0 = vmax.f32 %v5468_v25, 0.0  ;;  %v6264_v5 = vld [vmem:[%s12342_s10] sm:$0x3] }
 0x426   :  { %v5471_v43 = vpop.f32.mrf.mxu0  ;;  %v4600_v50 = vpop.f32.mrf.mxu1  ;;  %6699 = vmatmul.mubr.bf16.gmra.mxu1 %v6152_v48  ;;  %5723 = vmatprep.mubr.bf16.mxu0 %v11128_v59  ;;  %v11293_v25 = vrot.slane %v6264_v5, %v9972_v56  ;;  %v11301_v12 = vrot.slane %v6264_v5, %v9969_v53 }
 0x427   :  { %v5472_v2 = vadd.f32 %v5471_v43, %v10926_v4  ;;  %v11278_v51 = vpack.c.bf16 %v4855_v10, %v4853_v37  ;;  %v4856_v18 = vmax.f32 %v4597_v54, 0.0  ;;  %v5952_v35 = vmax.f32 %v5470_v32, 0.0 }
 0x428   :  { %v5475_v60 = vpop.f32.mrf.mxu0  ;;  %v4602_v20 = vpop.f32.mrf.mxu1  ;;  %v4601_v9 = vadd.f32 %v4600_v50, %v10319_v30 }
 0x429   :  { %v5953_v62 = vmax.f32 %v5472_v2, 0.0  ;;  %v11282_v55 = vpack.c.bf16 %v4856_v18, %v4854_v23  ;;  %v4603_v44 = vadd.f32 %v4602_v20, %v10325_v36  ;;  %v6154_v49 = vpack.c.bf16 %v5952_v35, %v5950_v7 }
 0x42a   :  { %v5477_v34 = vpop.f32.mrf.mxu0  ;;  %v4604_v6 = vpop.f32.mrf.mxu1  ;;  %v4857_v42 = vmax.f32 %v4601_v9, 0.0  ;;  %v5476_v33 = vadd.f32 %v5475_v60, %v10932_v14 }
 0x42b   :  { %v6155_v16 = vpack.c.bf16 %v5953_v62, %v5951_v0  ;;  %v4605_v59 = vadd.f32 %v4604_v6, %v10319_v30  ;;  %v5478_v21 = vadd.f32 %v5477_v34, %v10926_v4  ;;  %v4858_v37 = vmax.f32 %v4603_v44, 0.0 }
 0x42c   :  { %v5479_v17 = vpop.f32.mrf.mxu0  ;;  %v4606_v52 = vpop.f32.mrf.mxu1 }
 0x42d   :  { %v5480_v19 = vadd.f32 %v5479_v17, %v10932_v14  ;;  %6708 = vmatprep.mubr.bf16.mxu1 %v6155_v16  ;;  %v4859_v39 = vmax.f32 %v4605_v59, 0.0  ;;  %v4607_v31 = vadd.f32 %v4606_v52, %v10325_v36  ;;  %5724 = vmatmul.mubr.bf16.gmra.mxu0 %v11124_v29  ;;  %v5955_v36 = vmax.f32 %v5478_v21, 0.0 }
 0x42e   :  { %v5481_v48 = vpop.f32.mrf.mxu0  ;;  %v6470_v32 = vpop.f32.mrf.mxu1  ;;  %6709 = vmatmul.mubr.bf16.gmra.mxu1 %v6154_v49  ;;  %5733 = vmatprep.mubr.bf16.mxu0 %v11142_v46  ;;  %v5954_v29 = vmax.f32 %v5476_v33, 0.0 }
 0x42f   :  { %v5482_v30 = vadd.f32 %v5481_v48, %v10926_v4  ;;  %v11298_v10 = vpack.c.bf16 %v4859_v39, %v4857_v42  ;;  %v4860_v54 = vmax.f32 %v4607_v31, 0.0  ;;  %v5956_v50 = vmax.f32 %v5480_v19, 0.0 }
 0x430   :  { %v5485_v43 = vpop.f32.mrf.mxu0  ;;  %v6472_v23 = vpop.f32.mrf.mxu1  ;;  %v6471_v18 = vadd.f32 %v6470_v32, %v11293_v25 }
 0x431   :  { %v5957_v2 = vmax.f32 %v5482_v30, 0.0  ;;  %v11305_v0 = vpack.c.bf16 %v4860_v54, %v4858_v37  ;;  %v6473_v20 = vadd.f32 %v6472_v23, %v11301_v12  ;;  %v6156_v7 = vpack.c.bf16 %v5956_v50, %v5954_v29 }
 0x432   :  { %v5487_v60 = vpop.f32.mrf.mxu0  ;;  %v6474_v35 = vpop.f32.mrf.mxu1  ;;  %v7099_v5 = vmax.f32 %v6471_v18, 0.0  ;;  %v5486_v49 = vadd.f32 %v5485_v43, %v10932_v14 }
 0x433   :  { %v6157_v62 = vpack.c.bf16 %v5957_v2, %v5955_v36  ;;  %v6475_v9 = vadd.f32 %v6474_v35, %v11293_v25  ;;  %v5488_v46 = vadd.f32 %v5487_v60, %v10926_v4  ;;  %v7100_v19 = vmax.f32 %v6473_v20, 0.0 }
 0x434   :  { %v5489_v34 = vpop.f32.mrf.mxu0  ;;  %v6476_v16 = vpop.f32.mrf.mxu1  ;;  %v5958_v36 = vmax.f32 %v5486_v49, 0.0 }
 0x435   :  { %v5490_v6 = vadd.f32 %v5489_v34, %v10932_v14  ;;  %6718 = vmatprep.mubr.bf16.mxu1 %v6157_v62  ;;  %v7101_v44 = vmax.f32 %v6475_v9, 0.0  ;;  %v6477_v59 = vadd.f32 %v6476_v16, %v11301_v12  ;;  %5734 = vmatmul.mubr.bf16.gmra.mxu0 %v11138_v13  ;;  %v5959_v48 = vmax.f32 %v5488_v46, 0.0 }
 0x436   :  { %v5491_v17 = vpop.f32.mrf.mxu0  ;;  %v6480_v52 = vpop.f32.mrf.mxu1  ;;  %6719 = vmatmul.mubr.bf16.gmra.mxu1 %v6156_v7  ;;  %5743 = vmatprep.mubr.bf16.mxu0 %v11156_v63 }
 0x437   :  { %v5492_v21 = vadd.f32 %v5491_v17, %v10926_v4  ;;  %v11315_v42 = vpack.c.bf16 %v7101_v44, %v7099_v5  ;;  %v7102_v39 = vmax.f32 %v6477_v59, 0.0  ;;  %v5960_v33 = vmax.f32 %v5490_v6, 0.0 }
 0x438   :  { %v5495_v31 = vpop.f32.mrf.mxu0  ;;  %v6482_v32 = vpop.f32.mrf.mxu1  ;;  %v6481_v37 = vadd.f32 %v6480_v52, %v11293_v25 }
 0x439   :  { %v5961_v30 = vmax.f32 %v5492_v21, 0.0  ;;  %v11319_v43 = vpack.c.bf16 %v7102_v39, %v7100_v19  ;;  %v6483_v13 = vadd.f32 %v6482_v32, %v11301_v12  ;;  %v6158_v60 = vpack.c.bf16 %v5960_v33, %v5958_v36 }
 0x43a   :  { %v5497_v54 = vpop.f32.mrf.mxu0  ;;  %v6484_v50 = vpop.f32.mrf.mxu1  ;;  %v7103_v62 = vmax.f32 %v6481_v37, 0.0  ;;  %v5496_v7 = vadd.f32 %v5495_v31, %v10932_v14 }
 0x43b   :  { %v6159_v2 = vpack.c.bf16 %v5961_v30, %v5959_v48  ;;  %v6485_v23 = vadd.f32 %v6484_v50, %v11293_v25  ;;  %v5498_v63 = vadd.f32 %v5497_v54, %v10926_v4  ;;  %v7104_v16 = vmax.f32 %v6483_v13, 0.0 }
 0x43c   :  { %v5499_v18 = vpop.f32.mrf.mxu0  ;;  %v6486_v35 = vpop.f32.mrf.mxu1  ;;  %v5962_v31 = vmax.f32 %v5496_v7, 0.0 }
 0x43d   :  { %v5500_v29 = vadd.f32 %v5499_v18, %v10932_v14  ;;  %6728 = vmatprep.mubr.bf16.mxu1 %v6159_v2  ;;  %v7105_v20 = vmax.f32 %v6485_v23, 0.0  ;;  %v6487_v9 = vadd.f32 %v6486_v35, %v11301_v12  ;;  %5744 = vmatmul.mubr.bf16.gmra.mxu0 %v11152_v8  ;;  %v5963_v17 = vmax.f32 %v5498_v63, 0.0 }
 0x43e   :  { %v5501_v34 = vpop.f32.mrf.mxu0  ;;  %v11328_v6 = vpop.f32.mrf.mxu1  ;;  %6729 = vmatmul.mubr.bf16.gmra.mxu1 %v6158_v60  ;;  %5753 = vmatprep.mubr.bf16.mxu0 %v11170_v61 }
 0x43f   :  { %v5502_v46 = vadd.f32 %v5501_v34, %v10926_v4  ;;  %v11331_v5 = vpack.c.bf16 %v7105_v20, %v7103_v62  ;;  %v7106_v44 = vmax.f32 %v6487_v9, 0.0  ;;  %v5964_v49 = vmax.f32 %v5500_v29, 0.0 }
 0x440   :  { %v5505_v59 = vpop.f32.mrf.mxu0  ;;  %v11334_v52 = vpop.f32.mrf.mxu1 }
 0x441   :  { %v5965_v21 = vmax.f32 %v5502_v46, 0.0  ;;  %v11336_v39 = vpack.c.bf16 %v7106_v44, %v7104_v16  ;;  %v6160_v30 = vpack.c.bf16 %v5964_v49, %v5962_v31  ;;  %v5506_v36 = vadd.f32 %v5505_v59, %v10932_v14 }
 0x442   :  { %v5507_v19 = vpop.f32.mrf.mxu0  ;;  %v11338_v48 = vpop.f32.mrf.mxu1 }
 0x443   :  { %v6161_v33 = vpack.c.bf16 %v5965_v21, %v5963_v17  ;;  %v5508_v32 = vadd.f32 %v5507_v19, %v10926_v4  ;;  %v5966_v35 = vmax.f32 %v5506_v36, 0.0 }
 0x444   :  { %v5509_v8 = vpop.f32.mrf.mxu0  ;;  %v11342_v54 = vpop.f32.mrf.mxu1 }
 0x445   :  { %v5510_v37 = vadd.f32 %v5509_v8, %v10932_v14  ;;  %6738 = vmatprep.mubr.bf16.mxu1 %v6161_v33  ;;  %5754 = vmatmul.mubr.bf16.gmra.mxu0 %v11166_v40  ;;  %v5967_v23 = vmax.f32 %v5508_v32, 0.0 }
 0x446   :  { %v5511_v61 = vpop.f32.mrf.mxu0  ;;  %v11346_v2 = vpop.f32.mrf.mxu1  ;;  %6739 = vmatmul.mubr.bf16.gmra.mxu1 %v6160_v30  ;;  %5763 = vmatprep.mubr.bf16.mxu0 %v11184_v24 }
 0x447   :  { %v5512_v50 = vadd.f32 %v5511_v61, %v10926_v4  ;;  %v5968_v18 = vmax.f32 %v5510_v37, 0.0 }
 0x448   :  { %v5515_v13 = vpop.f32.mrf.mxu0  ;;  %v11350_v63 = vpop.f32.mrf.mxu1 }
 0x449   :  { %v5969_v60 = vmax.f32 %v5512_v50, 0.0  ;;  %v6162_v34 = vpack.c.bf16 %v5968_v18, %v5966_v35  ;;  %v5516_v16 = vadd.f32 %v5515_v13, %v10932_v14 }
 0x44a   :  { %v5517_v29 = vpop.f32.mrf.mxu0  ;;  %v11352_v62 = vpop.f32.mrf.mxu1 }
 0x44b   :  { %v6163_v20 = vpack.c.bf16 %v5969_v60, %v5967_v23  ;;  %v5518_v7 = vadd.f32 %v5517_v29, %v10926_v4  ;;  %v5970_v8 = vmax.f32 %v5516_v16, 0.0 }
 0x44c   :  { %v5519_v9 = vpop.f32.mrf.mxu0  ;;  %v11356_v40 = vpop.f32.mrf.mxu1 }
 0x44d   :  { %v5520_v46 = vadd.f32 %v5519_v9, %v10932_v14  ;;  %6748 = vmatprep.mubr.bf16.mxu1 %v6163_v20  ;;  %5764 = vmatmul.mubr.bf16.gmra.mxu0 %v11180_v38  ;;  %v5971_v49 = vmax.f32 %v5518_v7, 0.0 }
 0x44e   :  { %v5521_v24 = vpop.f32.mrf.mxu0  ;;  %v11360_v59 = vpop.f32.mrf.mxu1  ;;  %6749 = vmatmul.mubr.bf16.gmra.mxu1 %v6162_v34  ;;  %5773 = vmatprep.mubr.bf16.mxu0 %v11198_v41 }
 0x44f   :  { %v5522_v44 = vadd.f32 %v5521_v24, %v10926_v4  ;;  %v5972_v21 = vmax.f32 %v5520_v46, 0.0 }
 0x450   :  { %v5525_v17 = vpop.f32.mrf.mxu0  ;;  %v11364_v31 = vpop.f32.mrf.mxu1 }
 0x451   :  { %v5973_v19 = vmax.f32 %v5522_v44, 0.0  ;;  %v6164_v61 = vpack.c.bf16 %v5972_v21, %v5970_v8  ;;  %v5526_v41 = vadd.f32 %v5525_v17, %v10932_v14 }
 0x452   :  { %v5527_v33 = vpop.f32.mrf.mxu0  ;;  %v11366_v30 = vpop.f32.mrf.mxu1 }
 0x453   :  { %v6165_v32 = vpack.c.bf16 %v5973_v19, %v5971_v49  ;;  %v5528_v36 = vadd.f32 %v5527_v33, %v10926_v4  ;;  %v5974_v7 = vmax.f32 %v5526_v41, 0.0 }
 0x454   :  { %v5529_v37 = vpop.f32.mrf.mxu0  ;;  %v6516_v38 = vpop.f32.mrf.mxu1 }
 0x455   :  { %v5530_v50 = vadd.f32 %v5529_v37, %v10932_v14  ;;  %6758 = vmatprep.mubr.bf16.mxu1 %v6165_v32  ;;  %5774 = vmatmul.mubr.bf16.gmra.mxu0 %v11194_v57  ;;  %v5975_v29 = vmax.f32 %v5528_v36, 0.0 }
 0x456   :  { %v5531_v13 = vpop.f32.mrf.mxu0  ;;  %v11372_v18 = vpop.f32.mrf.mxu1  ;;  %6759 = vmatmul.mubr.bf16.gmra.mxu1 %v6164_v61  ;;  %5783 = vmatprep.mubr.bf16.mxu0 %v11212_v3 }
 0x457   :  { %v5532_v23 = vadd.f32 %v5531_v13, %v10926_v4  ;;  %v5976_v35 = vmax.f32 %v5530_v50, 0.0 }
 0x458   :  { %v5535_v60 = vpop.f32.mrf.mxu0  ;;  %v11376_v9 = vpop.f32.mrf.mxu1 }
 0x459   :  { %v5977_v20 = vmax.f32 %v5532_v23, 0.0  ;;  %v6166_v44 = vpack.c.bf16 %v5976_v35, %v5974_v7  ;;  %v5536_v21 = vadd.f32 %v5535_v60, %v10932_v14  ;;  %v11392_v60 = vadd.f32 %v11342_v54, %v11301_v12 }
 0x45a   :  { %v5537_v34 = vpop.f32.mrf.mxu0  ;;  %v11378_v46 = vpop.f32.mrf.mxu1  ;;  %v11397_v7 = vadd.f32 %v6516_v38, %v11301_v12  ;;  %v11404_v54 = vadd.f32 %v11328_v6, %v11293_v25  ;;  %v11412_v38 = vadd.f32 %v11338_v48, %v11293_v25  ;;  %v11426_v48 = vadd.f32 %v11356_v40, %v11301_v12 }
 0x45b   :  { %v6167_v24 = vpack.c.bf16 %v5977_v20, %v5975_v29  ;;  %v5538_v17 = vadd.f32 %v5537_v34, %v10926_v4  ;;  %v5978_v13 = vmax.f32 %v5536_v21, 0.0  ;;  %v11443_v40 = vadd.f32 %v11372_v18, %v11293_v25 }
 0x45c   :  { %v5539_v16 = vpop.f32.mrf.mxu0  ;;  %v11382_v57 = vpop.f32.mrf.mxu1  ;;  %v11453_v18 = vadd.f32 %v11376_v9, %v11301_v12 }
 0x45d   :  { %v5540_v49 = vadd.f32 %v5539_v16, %v10932_v14  ;;  %6768 = vmatprep.mubr.bf16.mxu1 %v6167_v24  ;;  %5784 = vmatmul.mubr.bf16.gmra.mxu0 %v11208_v11  ;;  %v5979_v32 = vmax.f32 %v5538_v17, 0.0  ;;  %v11408_v17 = vadd.f32 %v11334_v52, %v11301_v12  ;;  %v11422_v52 = vadd.f32 %v11350_v63, %v11301_v12 }
 0x45e   :  { %v5541_v3 = vpop.f32.mrf.mxu0  ;;  %v11386_v33 = vpop.f32.mrf.mxu1  ;;  %6769 = vmatmul.mubr.bf16.gmra.mxu1 %v6166_v44  ;;  %5793 = vmatprep.mubr.bf16.mxu0 %v11226_v26 }
 0x45f   :  { %v5542_v19 = vadd.f32 %v5541_v3, %v10926_v4  ;;  %v5980_v37 = vmax.f32 %v5540_v49, 0.0  ;;  %v6531_v9 = vadd.f32 %v11386_v33, %v11293_v25 }
 0x460   :  { %v5545_v8 = vpop.f32.mrf.mxu0  ;;  %v6532_v36 = vpop.f32.mrf.mxu1 }
 0x461   :  { %v5981_v61 = vmax.f32 %v5542_v19, 0.0  ;;  %v6168_v35 = vpack.c.bf16 %v5980_v37, %v5978_v13  ;;  %v5546_v24 = vadd.f32 %v5545_v8, %v10932_v14  ;;  %v11438_v37 = vadd.f32 %v11366_v30, %v11293_v25 }
 0x462   :  { %v5547_v50 = vpop.f32.mrf.mxu0  ;;  %v6534_v41 = vpop.f32.mrf.mxu1 }
 0x463   :  { %v6169_v23 = vpack.c.bf16 %v5981_v61, %v5979_v32  ;;  %v5548_v20 = vadd.f32 %v5547_v50, %v10926_v4  ;;  %v11430_v32 = vadd.f32 %v11360_v59, %v11293_v25  ;;  %v5982_v61 = vmax.f32 %v5546_v24, 0.0 }
 0x464   :  { %v5549_v29 = vpop.f32.mrf.mxu0  ;;  %v6536_v34 = vpop.f32.mrf.mxu1  ;;  %v6533_v24 = vadd.f32 %v6532_v36, %v11301_v12 }
 0x465   :  { %v5550_v11 = vadd.f32 %v5549_v29, %v10932_v14  ;;  %6778 = vmatprep.mubr.bf16.mxu1 %v6169_v23  ;;  %5794 = vmatmul.mubr.bf16.gmra.mxu0 %v11222_v58  ;;  %v11418_v58 = vadd.f32 %v11346_v2, %v11293_v25  ;;  %v5983_v21 = vmax.f32 %v5548_v20, 0.0  ;;  %v6537_v59 = vadd.f32 %v6536_v34, %v11301_v12 }
 0x466   :  { %v5551_v26 = vpop.f32.mrf.mxu0  ;;  %v6540_v44 = vpop.f32.mrf.mxu1  ;;  %6779 = vmatmul.mubr.bf16.gmra.mxu1 %v6168_v35  ;;  %5803 = vmatprep.mubr.bf16.mxu0 %v11240_v47  ;;  %v11434_v47 = vadd.f32 %v11364_v31, %v11301_v12  ;;  %v11457_v34 = vadd.f32 %v11382_v57, %v11301_v12 }
 0x467   :  { %v5552_v16 = vadd.f32 %v5551_v26, %v10926_v4  ;;  %v5984_v6 = vmax.f32 %v5550_v11, 0.0  ;;  %v6541_v30 = vadd.f32 %v6540_v44, %v11293_v25  ;;  %v6535_v44 = vadd.f32 %v6534_v41, %v11293_v25 }
 0x468   :  { %v5555_v3 = vpop.f32.mrf.mxu0  ;;  %v6542_v8 = vpop.f32.mrf.mxu1  ;;  %v7126_v57 = vmax.f32 %v6537_v59, 0.0 }
 0x469   :  { %v5985_v19 = vmax.f32 %v5552_v16, 0.0  ;;  %v6543_v23 = vadd.f32 %v6542_v8, %v11301_v12  ;;  %v6170_v35 = vpack.c.bf16 %v5984_v6, %v5982_v61  ;;  %v5556_v6 = vadd.f32 %v5555_v3, %v10932_v14 }
 0x46a   :  { %v5557_v2 = vpop.f32.mrf.mxu0  ;;  %v6544_v50 = vpop.f32.mrf.mxu1  ;;  %v7125_v33 = vmax.f32 %v6535_v44, 0.0 }
 0x46b   :  { %v6171_v13 = vpack.c.bf16 %v5985_v19, %v5983_v21  ;;  %v6545_v31 = vadd.f32 %v6544_v50, %v11293_v25  ;;  %v5558_v20 = vadd.f32 %v5557_v2, %v10926_v4  ;;  %v7128_v61 = vmax.f32 %v6543_v23, 0.0 }
 0x46c   :  { %v5559_v29 = vpop.f32.mrf.mxu0  ;;  %v6546_v26 = vpop.f32.mrf.mxu1  ;;  %v5986_v59 = vmax.f32 %v5556_v6, 0.0  ;;  %v7120_v6 = vmax.f32 %v11453_v18, 0.0 }
 0x46d   :  { %v5560_v11 = vadd.f32 %v5559_v29, %v10932_v14  ;;  %6788 = vmatprep.mubr.bf16.mxu1 %v6171_v13  ;;  %v6547_v16 = vadd.f32 %v6546_v26, %v11301_v12  ;;  %v7129_v19 = vmax.f32 %v6545_v31, 0.0  ;;  %5804 = vmatmul.mubr.bf16.gmra.mxu0 %v11236_v28  ;;  %v7127_v13 = vmax.f32 %v6541_v30, 0.0 }
 0x46e   :  { %v5561_v21 = vpop.f32.mrf.mxu0  ;;  %v6550_v2 = vpop.f32.mrf.mxu1  ;;  %6789 = vmatmul.mubr.bf16.gmra.mxu1 %v6170_v35  ;;  %5813 = vmatprep.mubr.bf16.mxu0 %v11254_v15  ;;  %v5987_v41 = vmax.f32 %v5558_v20, 0.0  ;;  %v6525_v26 = vadd.f32 %v11378_v46, %v11293_v25  ;;  %v7124_v35 = vmax.f32 %v6533_v24, 0.0  ;;  %v7122_v15 = vmax.f32 %v11457_v34, 0.0 }
 0x46f   :  { %v5562_v8 = vadd.f32 %v5561_v21, %v10926_v4  ;;  %v7130_v36 = vmax.f32 %v6547_v16, 0.0  ;;  %v5988_v29 = vmax.f32 %v5560_v11, 0.0  ;;  %v6551_v28 = vadd.f32 %v6550_v2, %v11293_v25 }
 0x470   :  { %v5565_v50 = vpop.f32.mrf.mxu0  ;;  %v6552_v31 = vpop.f32.mrf.mxu1  ;;  %v7365_v23 = vpack.c.bf16 %v7129_v19, %v7127_v13  ;;  %v7123_v46 = vmax.f32 %v6531_v9, 0.0 }
 0x471   :  { %v5989_v3 = vmax.f32 %v5562_v8, 0.0  ;;  %v7366_v49 = vpack.c.bf16 %v7130_v36, %v7128_v61  ;;  %v6553_v30 = vadd.f32 %v6552_v31, %v11301_v12  ;;  %v7364_v8 = vpack.c.bf16 %v7126_v57, %v7124_v35 }
 0x472   :  { %v5567_v21 = vpop.f32.mrf.mxu0  ;;  %v6554_v16 = vpop.f32.mrf.mxu1  ;;  %v6172_v24 = vpack.c.bf16 %v5988_v29, %v5986_v59  ;;  %v7131_v19 = vmax.f32 %v6551_v28, 0.0  ;;  %v5566_v9 = vadd.f32 %v5565_v50, %v10932_v14  ;;  %v7362_v35 = vpack.c.bf16 %v7122_v15, %v7120_v6 }
 0x473   :  { %v6173_v63 = vpack.c.bf16 %v5989_v3, %v5987_v41  ;;  %v6555_v20 = vadd.f32 %v6554_v16, %v11293_v25  ;;  %7550 = vmatprep.subr.bf16.mxu0 %v7366_v49  ;;  %v5568_v2 = vadd.f32 %v5567_v21, %v10926_v4  ;;  %v7121_v49 = vmax.f32 %v6525_v26, 0.0 }
 0x474   :  { %v5569_v11 = vpop.f32.mrf.mxu0  ;;  %v6556_v44 = vpop.f32.mrf.mxu1  ;;  %7551 = vmatpush1.bf16.msra.mxu0 %v7365_v23  ;;  %v7363_v41 = vpack.c.bf16 %v7125_v33, %v7123_v46  ;;  %v7132_v3 = vmax.f32 %v6553_v30, 0.0  ;;  %v7119_v28 = vmax.f32 %v11443_v40, 0.0  ;;  %v6505_v59 = vadd.f32 %v11352_v62, %v11293_v25 }
 0x475   :  { %v5570_v61 = vadd.f32 %v5569_v11, %v10932_v14  ;;  %6798 = vmatprep.mubr.bf16.mxu1 %v6173_v63  ;;  %v7133_v34 = vmax.f32 %v6555_v20, 0.0  ;;  %v6557_v36 = vadd.f32 %v6556_v44, %v11301_v12  ;;  %7552 = vmatprep.subr.bf16.mxu0 %v7364_v8  ;;  %v5991_v26 = vmax.f32 %v5568_v2, 0.0 }
 0x476   :  { %v5571_v13 = vpop.f32.mrf.mxu0  ;;  %v6560_v29 = vpop.f32.mrf.mxu1  ;;  %6799 = vmatmul.mubr.bf16.gmra.mxu1 %v6172_v24  ;;  %5814 = vmatmul.mubr.bf16.gmra.mxu0 %v11250_v27  ;;  %v7116_v27 = vmax.f32 %v11434_v47, 0.0  ;;  %v7361_v15 = vpack.c.bf16 %v7121_v49, %v7119_v28  ;;  %v5990_v40 = vmax.f32 %v5566_v9, 0.0  ;;  %v7114_v8 = vmax.f32 %v11426_v48, 0.0 }
 0x477   :  { %v5572_v57 = vadd.f32 %v5571_v13, %v10926_v4  ;;  %v11481_v63 = vpack.c.bf16 %v7133_v34, %v7131_v19  ;;  %v7134_v18 = vmax.f32 %v6557_v36, 0.0  ;;  %5823 = vmatprep.mubr.bf16.mxu0 %v11268_v22  ;;  %v5992_v21 = vmax.f32 %v5570_v61, 0.0 }
 0x478   :  { %v5575_v31 = vpop.f32.mrf.mxu0  ;;  %v6562_v50 = vpop.f32.mrf.mxu1  ;;  %7553 = vmatpush1.bf16.msra.mxu0 %v7363_v41  ;;  %v6561_v23 = vadd.f32 %v6560_v29, %v11293_v25  ;;  %v7117_v22 = vmax.f32 %v11438_v37, 0.0  ;;  %v12345_v47 = vmax.f32 %v11397_v7, 0.0  ;;  %v7115_v61 = vmax.f32 %v11430_v32, 0.0 }
 0x479   :  { %v5993_v33 = vmax.f32 %v5572_v57, 0.0  ;;  %7554 = vmatprep.subr.bf16.mxu0 %v7362_v35  ;;  %v11489_v30 = vpack.c.bf16 %v7134_v18, %v7132_v3  ;;  %v6563_v46 = vadd.f32 %v6562_v50, %v11301_v12  ;;  %v6174_v44 = vpack.c.bf16 %v5992_v21, %v5990_v40 }
 0x47a   :  { %v5577_v16 = vpop.f32.mrf.mxu0  ;;  %v6564_v20 = vpop.f32.mrf.mxu1  ;;  %v7360_v2 = vpack.c.bf16 %v12345_v47, %v7116_v27  ;;  %v7112_v48 = vmax.f32 %v11422_v52, 0.0  ;;  %v7135_v34 = vmax.f32 %v6561_v23, 0.0  ;;  %v7113_v7 = vmax.f32 %v6505_v59, 0.0 }
 0x47b   :  { %v6175_v11 = vpack.c.bf16 %v5993_v33, %v5991_v26  ;;  %v6565_v62 = vadd.f32 %v6564_v20, %v11293_v25  ;;  %v5578_v6 = vadd.f32 %v5577_v16, %v10926_v4  ;;  %v7359_v41 = vpack.c.bf16 %v7117_v22, %v7115_v61 }
 0x47c   :  { %v5579_v24 = vpop.f32.mrf.mxu0  ;;  %v6566_v19 = vpop.f32.mrf.mxu1  ;;  %7555 = vmatpush1.bf16.msra.mxu0 %v7361_v15  ;;  %v5576_v32 = vadd.f32 %v5575_v31, %v10932_v14  ;;  %v7136_v29 = vmax.f32 %v6563_v46, 0.0  ;;  %v7358_v35 = vpack.c.bf16 %v7114_v8, %v7112_v48  ;;  %v7111_v28 = vmax.f32 %v11418_v58, 0.0 }
 0x47d   :  { %v5580_v37 = vadd.f32 %v5579_v24, %v10932_v14  ;;  %6808 = vmatprep.mubr.bf16.mxu1 %v6175_v11  ;;  %v7137_v36 = vmax.f32 %v6565_v62, 0.0  ;;  %v6567_v13 = vadd.f32 %v6566_v19, %v11301_v12  ;;  %7556 = vmatprep.subr.bf16.mxu0 %v7360_v2  ;;  %v5995_v26 = vmax.f32 %v5578_v6, 0.0 }
 0x47e   :  { %v5581_v49 = vpop.f32.mrf.mxu0  ;;  %v11504_v57 = vpop.f32.mrf.mxu1  ;;  %6809 = vmatmul.mubr.bf16.gmra.mxu1 %v6174_v44  ;;  %5824 = vmatmul.mubr.bf16.gmra.mxu0 %v11264_v1  ;;  %v7108_v50 = vmax.f32 %v11408_v17, 0.0  ;;  %v7109_v27 = vmax.f32 %v11412_v38, 0.0  ;;  %v7357_v23 = vpack.c.bf16 %v7113_v7, %v7111_v28  ;;  %v5994_v16 = vmax.f32 %v5576_v32, 0.0 }
 0x47f   :  { %v5582_v9 = vadd.f32 %v5581_v49, %v10926_v4  ;;  %v11507_v3 = vpack.c.bf16 %v7137_v36, %v7135_v34  ;;  %v7138_v52 = vmax.f32 %v6567_v13, 0.0  ;;  %5833 = vmatprep.mubr.bf16.mxu0 %v11282_v55  ;;  %v5996_v21 = vmax.f32 %v5580_v37, 0.0 }
 0x480   :  { %v5585_v18 = vpop.f32.mrf.mxu0  ;;  %v11511_v33 = vpop.f32.mrf.mxu1  ;;  %7557 = vmatpush1.bf16.msra.mxu0 %v7359_v41  ;;  %v12346_v15 = vmax.f32 %v11392_v60, 0.0  ;;  %v7107_v20 = vmax.f32 %v11404_v54, 0.0 }
 0x481   :  { %v5997_v31 = vmax.f32 %v5582_v9, 0.0  ;;  %7558 = vmatprep.subr.bf16.mxu0 %v7358_v35  ;;  %v11514_v59 = vpack.c.bf16 %v7138_v52, %v7136_v29  ;;  %v6176_v11 = vpack.c.bf16 %v5996_v21, %v5994_v16  ;;  %v5586_v24 = vadd.f32 %v5585_v18, %v10932_v14 }
 0x482   :  { %v5587_v1 = vpop.f32.mrf.mxu0  ;;  %v11517_v55 = vpop.f32.mrf.mxu1  ;;  %v7356_v40 = vpack.c.bf16 %v12346_v15, %v7108_v50  ;;  %v7355_v62 = vpack.c.bf16 %v7109_v27, %v7107_v20 }
 0x483   :  { %v6177_v22 = vpack.c.bf16 %v5997_v31, %v5995_v26  ;;  %v5588_v17 = vadd.f32 %v5587_v1, %v10926_v4  ;;  %v5998_v19 = vmax.f32 %v5586_v24, 0.0 }
 0x484   :  { %v5589_v58 = vpop.f32.mrf.mxu0  ;;  %v11524_v46 = vpop.f32.mrf.mxu1  ;;  %7559 = vmatpush1.bf16.msra.mxu0 %v7357_v23 }
 0x485   :  { %v5590_v8 = vadd.f32 %v5589_v58, %v10932_v14  ;;  %6818 = vmatprep.mubr.bf16.mxu1 %v6177_v22  ;;  %7560 = vmatprep.subr.bf16.mxu0 %v7356_v40  ;;  %v5999_v2 = vmax.f32 %v5588_v17, 0.0 }
 0x486   :  { %v5591_v38 = vpop.f32.mrf.mxu0  ;;  %v11528_v60 = vpop.f32.mrf.mxu1  ;;  %6819 = vmatmul.mubr.bf16.gmra.mxu1 %v6176_v11  ;;  %5834 = vmatmul.mubr.bf16.gmra.mxu0 %v11278_v51 }
 0x487   :  { %v5592_v47 = vadd.f32 %v5591_v38, %v10926_v4  ;;  %5843 = vmatprep.mubr.bf16.mxu0 %v11305_v0  ;;  %v6000_v61 = vmax.f32 %v5590_v8, 0.0 }
 0x488   :  { %v5595_v54 = vpop.f32.mrf.mxu0  ;;  %v11532_v6 = vpop.f32.mrf.mxu1  ;;  %7561 = vmatpush1.bf16.msra.mxu0 %v7355_v62 }
 0x489   :  { %v6001_v44 = vmax.f32 %v5592_v47, 0.0  ;;  %7562 = vmatprep.subr.bf16.mxu0 %v11336_v39  ;;  %v6178_v13 = vpack.c.bf16 %v6000_v61, %v5998_v19  ;;  %v5596_v39 = vadd.f32 %v5595_v54, %v10932_v14 }
 0x48a   :  { %v5597_v37 = vpop.f32.mrf.mxu0  ;;  %v11535_v48 = vpop.f32.mrf.mxu1 }
 0x48b   :  { %v6179_v34 = vpack.c.bf16 %v6001_v44, %v5999_v2  ;;  %v5598_v51 = vadd.f32 %v5597_v37, %v10926_v4 }
 0x48c   :  { %v5599_v36 = vpop.f32.mrf.mxu0  ;;  %v11539_v0 = vpop.f32.mrf.mxu1  ;;  %7563 = vmatpush1.bf16.msra.mxu0 %v11331_v5 }
 0x48d   :  { %v5600_v49 = vadd.f32 %v5599_v36, %v10932_v14  ;;  %6828 = vmatprep.mubr.bf16.mxu1 %v6179_v34  ;;  %7564 = vmatprep.subr.bf16.mxu0 %v11319_v43  ;;  %v6003_v29 = vmax.f32 %v5598_v51, 0.0  ;;  %v6002_v43 = vmax.f32 %v5596_v39, 0.0 }
 0x48e   :  { %v5601_v7 = vpop.f32.mrf.mxu0  ;;  %v11545_v32 = vpop.f32.mrf.mxu1  ;;  %6829 = vmatmul.mubr.bf16.gmra.mxu1 %v6178_v13  ;;  %5844 = vmatmul.mubr.bf16.gmra.mxu0 %v11298_v10 }
 0x48f   :  { %v5602_v41 = vadd.f32 %v5601_v7, %v10926_v4  ;;  %v6004_v52 = vmax.f32 %v5600_v49, 0.0 }
 0x490   :  { %v5605_v9 = vpop.f32.mrf.mxu0  ;;  %v11548_v35 = vpop.f32.mrf.mxu1  ;;  %7565 = vmatpush1.bf16.msra.mxu0 %v11315_v42 }
 0x491   :  { %v6005_v18 = vmax.f32 %v5602_v41, 0.0  ;;  %v6180_v31 = vpack.c.bf16 %v6004_v52, %v6002_v43  ;;  %v5606_v23 = vadd.f32 %v5605_v9, %v10932_v14 }
 0x492   :  { %v5607_v5 = vpop.f32.mrf.mxu0  ;;  %v11551_v26 = vpop.f32.mrf.mxu1 }
 0x493   :  { %v6181_v28 = vpack.c.bf16 %v6005_v18, %v6003_v29  ;;  %v5608_v50 = vadd.f32 %v5607_v5, %v10926_v4  ;;  %v6006_v17 = vmax.f32 %v5606_v23, 0.0  ;;  %v11571_v29 = vadd.f32 %v11524_v46, %v11301_v12 }
 0x494   :  { %v5609_v21 = vpop.f32.mrf.mxu0  ;;  %v6596_v10 = vpop.f32.mrf.mxu1  ;;  %v11582_v46 = vadd.f32 %v11504_v57, %v11293_v25  ;;  %v11586_v23 = vadd.f32 %v11511_v33, %v11301_v12  ;;  %v11603_v33 = vadd.f32 %v11539_v0, %v11301_v12 }
 0x495   :  { %v5610_v1 = vadd.f32 %v5609_v21, %v10932_v14  ;;  %6838 = vmatprep.mubr.bf16.mxu1 %v6181_v28  ;;  %v6007_v58 = vmax.f32 %v5608_v50, 0.0 }
 0x496   :  { %v5611_v27 = vpop.f32.mrf.mxu0  ;;  %v11557_v22 = vpop.f32.mrf.mxu1  ;;  %6839 = vmatmul.mubr.bf16.gmra.mxu1 %v6180_v31  ;;  %v11576_v31 = vadd.f32 %v6596_v10, %v11301_v12  ;;  %v7142_v10 = vmax.f32 %v11571_v29, 0.0 }
 0x497   :  { %v5612_v16 = vadd.f32 %v5611_v27, %v10926_v4  ;;  %v6008_v15 = vmax.f32 %v5610_v1, 0.0  ;;  %v11620_v0 = vadd.f32 %v11557_v22, %v11293_v25 }
 0x498   :  { %v5615_v42 = vpop.f32.mrf.mxu0  ;;  %v11559_v20 = vpop.f32.mrf.mxu1 }
 0x499   :  { %v6009_v40 = vmax.f32 %v5612_v16, 0.0  ;;  %v6182_v24 = vpack.c.bf16 %v6008_v15, %v6006_v17  ;;  %v5616_v44 = vadd.f32 %v5615_v42, %v10932_v14  ;;  %v11590_v16 = vadd.f32 %v11517_v55, %v11293_v25 }
 0x49a   :  { %v5617_v11 = vpop.f32.mrf.mxu0  ;;  %v11561_v38 = vpop.f32.mrf.mxu1  ;;  %v11599_v17 = vadd.f32 %v11532_v6, %v11301_v12  ;;  %v11607_v55 = vadd.f32 %v11545_v32, %v11293_v25  ;;  %v7150_v6 = vmax.f32 %v11576_v31, 0.0  ;;  %v6603_v22 = vadd.f32 %v11559_v20, %v11301_v12 }
 0x49b   :  { %v6183_v8 = vpack.c.bf16 %v6009_v40, %v6007_v58  ;;  %v5618_v47 = vadd.f32 %v5617_v11, %v10926_v4  ;;  %v6010_v39 = vmax.f32 %v5616_v44, 0.0  ;;  %v11595_v58 = vadd.f32 %v11528_v60, %v11293_v25 }
 0x49c   :  { %v5619_v62 = vpop.f32.mrf.mxu0  ;;  %v6606_v2 = vpop.f32.mrf.mxu1  ;;  %v11611_v60 = vadd.f32 %v11548_v35, %v11301_v12 }
 0x49d   :  { %v5620_v54 = vadd.f32 %v5619_v62, %v10932_v14  ;;  %6848 = vmatprep.mubr.bf16.mxu1 %v6183_v8  ;;  %v6011_v36 = vmax.f32 %v5618_v47, 0.0  ;;  %v11615_v62 = vadd.f32 %v11551_v26, %v11293_v25 }
 0x49e   :  { %v5621_v61 = vpop.f32.mrf.mxu0  ;;  %v11567_v19 = vpop.f32.mrf.mxu1  ;;  %6849 = vmatmul.mubr.bf16.gmra.mxu1 %v6182_v24 }
 0x49f   :  { %v5622_v37 = vadd.f32 %v5621_v61, %v10926_v4  ;;  %v6012_v13 = vmax.f32 %v5620_v54, 0.0 }
 0x4a0   :  { %v5625_v34 = vpop.f32.mrf.mxu0  ;;  %v6612_v49 = vpop.f32.mrf.mxu1 }
 0x4a1   :  { %v6013_v51 = vmax.f32 %v5622_v37, 0.0  ;;  %v6184_v18 = vpack.c.bf16 %v6012_v13, %v6010_v39  ;;  %v5626_v50 = vadd.f32 %v5625_v34, %v10932_v14 }
 0x4a2   :  { %v5627_v7 = vpop.f32.mrf.mxu0  ;;  %v6614_v9 = vpop.f32.mrf.mxu1 }
 0x4a3   :  { %v6185_v41 = vpack.c.bf16 %v6013_v51, %v6011_v36  ;;  %v5628_v5 = vadd.f32 %v5627_v7, %v10926_v4  ;;  %v6014_v24 = vmax.f32 %v5626_v50, 0.0  ;;  %v6607_v51 = vadd.f32 %v6606_v2, %v11301_v12 }
 0x4a4   :  { %v5629_v52 = vpop.f32.mrf.mxu0  ;;  %v6616_v28 = vpop.f32.mrf.mxu1  ;;  %v6613_v7 = vadd.f32 %v6612_v49, %v11301_v12 }
 0x4a5   :  { %v5630_v43 = vadd.f32 %v5629_v52, %v10932_v14  ;;  %6858 = vmatprep.mubr.bf16.mxu1 %v6185_v41  ;;  %v6015_v15 = vmax.f32 %v5628_v5, 0.0  ;;  %v6617_v32 = vadd.f32 %v6616_v28, %v11301_v12  ;;  %v6615_v52 = vadd.f32 %v6614_v9, %v11293_v25 }
 0x4a6   :  { %v5631_v21 = vpop.f32.mrf.mxu0  ;;  %v6620_v27 = vpop.f32.mrf.mxu1  ;;  %6859 = vmatmul.mubr.bf16.gmra.mxu1 %v6184_v18  ;;  %v6605_v9 = vadd.f32 %v11561_v38, %v11293_v25 }
 0x4a7   :  { %v5632_v1 = vadd.f32 %v5631_v21, %v10926_v4  ;;  %v6016_v40 = vmax.f32 %v5630_v43, 0.0  ;;  %v6621_v26 = vadd.f32 %v6620_v27, %v11293_v25  ;;  %v6611_v21 = vadd.f32 %v11567_v19, %v11293_v25 }
 0x4a8   :  { %v5635_v42 = vpop.f32.mrf.mxu0  ;;  %v6622_v57 = vpop.f32.mrf.mxu1  ;;  %v7158_v20 = vmax.f32 %v6617_v32, 0.0 }
 0x4a9   :  { %v6017_v11 = vmax.f32 %v5632_v1, 0.0  ;;  %v6623_v61 = vadd.f32 %v6622_v57, %v11301_v12  ;;  %v6186_v37 = vpack.c.bf16 %v6016_v40, %v6014_v24  ;;  %v5636_v18 = vadd.f32 %v5635_v42, %v10932_v14 }
 0x4aa   :  { %v5637_v8 = vpop.f32.mrf.mxu0  ;;  %v6624_v54 = vpop.f32.mrf.mxu1  ;;  %v7159_v49 = vmax.f32 %v6621_v26, 0.0  ;;  %v7156_v42 = vmax.f32 %v6613_v7, 0.0 }
 0x4ab   :  { %v6187_v47 = vpack.c.bf16 %v6017_v11, %v6015_v15  ;;  %v6625_v35 = vadd.f32 %v6624_v54, %v11293_v25  ;;  %v5638_v34 = vadd.f32 %v5637_v8, %v10926_v4  ;;  %v7160_v50 = vmax.f32 %v6623_v61, 0.0 }
 0x4ac   :  { %v5639_v44 = vpop.f32.mrf.mxu0  ;;  %v6626_v13 = vpop.f32.mrf.mxu1  ;;  %v6018_v54 = vmax.f32 %v5636_v18, 0.0 }
 0x4ad   :  { %v5640_v36 = vadd.f32 %v5639_v44, %v10932_v14  ;;  %6868 = vmatprep.mubr.bf16.mxu1 %v6187_v47  ;;  %v6627_v39 = vadd.f32 %v6626_v13, %v11301_v12  ;;  %v7161_v5 = vmax.f32 %v6625_v35, 0.0  ;;  %v6019_v27 = vmax.f32 %v5638_v34, 0.0 }
 0x4ae   :  { %v5641_v41 = vpop.f32.mrf.mxu0  ;;  %v6630_v28 = vpop.f32.mrf.mxu1  ;;  %6869 = vmatmul.mubr.bf16.gmra.mxu1 %v6186_v37  ;;  %v7157_v47 = vmax.f32 %v6615_v52, 0.0  ;;  %v7154_v35 = vmax.f32 %v6607_v51, 0.0  ;;  %v7380_v34 = vpack.c.bf16 %v7158_v20, %v7156_v42 }
 0x4af   :  { %v5642_v43 = vadd.f32 %v5641_v41, %v10926_v4  ;;  %v7162_v2 = vmax.f32 %v6627_v39, 0.0  ;;  %v6020_v15 = vmax.f32 %v5640_v36, 0.0  ;;  %v6631_v57 = vadd.f32 %v6630_v28, %v11293_v25 }
 0x4b0   :  { %v5645_v1 = vpop.f32.mrf.mxu0  ;;  %v6632_v11 = vpop.f32.mrf.mxu1  ;;  %v7381_v19 = vpack.c.bf16 %v7161_v5, %v7159_v49  ;;  %v7155_v36 = vmax.f32 %v6611_v21, 0.0  ;;  %v7152_v41 = vmax.f32 %v6603_v22, 0.0 }
 0x4b1   :  { %v6021_v40 = vmax.f32 %v5642_v43, 0.0  ;;  %v7382_v24 = vpack.c.bf16 %v7162_v2, %v7160_v50  ;;  %v6633_v44 = vadd.f32 %v6632_v11, %v11301_v12  ;;  %v6188_v38 = vpack.c.bf16 %v6020_v15, %v6018_v54 }
 0x4b2   :  { %v5647_v8 = vpop.f32.mrf.mxu0  ;;  %v6634_v61 = vpop.f32.mrf.mxu1  ;;  %v7163_v52 = vmax.f32 %v6631_v57, 0.0  ;;  %v7153_v43 = vmax.f32 %v6605_v9, 0.0  ;;  %v7379_v28 = vpack.c.bf16 %v7157_v47, %v7155_v36  ;;  %v5646_v20 = vadd.f32 %v5645_v1, %v10932_v14 }
 0x4b3   :  { %v6189_v32 = vpack.c.bf16 %v6021_v40, %v6019_v27  ;;  %v6635_v37 = vadd.f32 %v6634_v61, %v11293_v25  ;;  %7566 = vmatprep.subr.bf16.mxu0 %v7382_v24  ;;  %v5648_v13 = vadd.f32 %v5647_v8, %v10926_v4  ;;  %v7164_v2 = vmax.f32 %v6633_v44, 0.0 }
 0x4b4   :  { %v5649_v26 = vpop.f32.mrf.mxu0  ;;  %v6636_v39 = vpop.f32.mrf.mxu1  ;;  %7567 = vmatpush2.bf16.msra.mxu0 %v7381_v19  ;;  %v7378_v22 = vpack.c.bf16 %v7154_v35, %v7152_v41  ;;  %v7151_v40 = vmax.f32 %v11620_v0, 0.0  ;;  %v6585_v1 = vadd.f32 %v11535_v48, %v11293_v25  ;;  %v7148_v9 = vmax.f32 %v11611_v60, 0.0 }
 0x4b5   :  { %v5650_v7 = vadd.f32 %v5649_v26, %v10932_v14  ;;  %6878 = vmatprep.mubr.bf16.mxu1 %v6189_v32  ;;  %v7165_v18 = vmax.f32 %v6635_v37, 0.0  ;;  %v6637_v51 = vadd.f32 %v6636_v39, %v11301_v12  ;;  %7568 = vmatprep.subr.bf16.mxu0 %v7380_v34  ;;  %v6023_v11 = vmax.f32 %v5648_v13, 0.0 }
 0x4b6   :  { %v5651_v5 = vpop.f32.mrf.mxu0  ;;  %v6640_v50 = vpop.f32.mrf.mxu1  ;;  %6879 = vmatmul.mubr.bf16.gmra.mxu1 %v6188_v38  ;;  %v7149_v19 = vmax.f32 %v11615_v62, 0.0  ;;  %v7377_v32 = vpack.c.bf16 %v7153_v43, %v7151_v40  ;;  %v6022_v0 = vmax.f32 %v5646_v20, 0.0  ;;  %v7146_v44 = vmax.f32 %v11603_v33, 0.0 }
 0x4b7   :  { %v5652_v21 = vadd.f32 %v5651_v5, %v10926_v4  ;;  %v11648_v49 = vpack.c.bf16 %v7165_v18, %v7163_v52  ;;  %v7166_v27 = vmax.f32 %v6637_v51, 0.0  ;;  %v6024_v42 = vmax.f32 %v5650_v7, 0.0 }
 0x4b8   :  { %v5655_v15 = vpop.f32.mrf.mxu0  ;;  %v6642_v8 = vpop.f32.mrf.mxu1  ;;  %7569 = vmatpush2.bf16.msra.mxu0 %v7379_v28  ;;  %v6641_v24 = vadd.f32 %v6640_v50, %v11293_v25  ;;  %v7376_v60 = vpack.c.bf16 %v7150_v6, %v7148_v9  ;;  %v7147_v34 = vmax.f32 %v11607_v55, 0.0  ;;  %v7144_v33 = vmax.f32 %v11599_v17, 0.0 }
 0x4b9   :  { %v6025_v57 = vmax.f32 %v5652_v21, 0.0  ;;  %7570 = vmatprep.subr.bf16.mxu0 %v7378_v22  ;;  %v11655_v54 = vpack.c.bf16 %v7166_v27, %v7164_v2  ;;  %v6643_v37 = vadd.f32 %v6642_v8, %v11301_v12  ;;  %v6190_v36 = vpack.c.bf16 %v6024_v42, %v6022_v0 }
 0x4ba   :  { %v5657_v47 = vpop.f32.mrf.mxu0  ;;  %v6644_v35 = vpop.f32.mrf.mxu1  ;;  %v7167_v7 = vmax.f32 %v6641_v24, 0.0  ;;  %v7145_v31 = vmax.f32 %v6585_v1, 0.0  ;;  %v7375_v6 = vpack.c.bf16 %v7149_v19, %v7147_v34  ;;  %v5656_v55 = vadd.f32 %v5655_v15, %v10932_v14 }
 0x4bb   :  { %v6191_v61 = vpack.c.bf16 %v6025_v57, %v6023_v11  ;;  %v6645_v48 = vadd.f32 %v6644_v35, %v11293_v25  ;;  %v5658_v38 = vadd.f32 %v5657_v47, %v10926_v4  ;;  %v7168_v5 = vmax.f32 %v6643_v37, 0.0 }
 0x4bc   :  { %v5659_v26 = vpop.f32.mrf.mxu0  ;;  %v6646_v13 = vpop.f32.mrf.mxu1  ;;  %7571 = vmatpush2.bf16.msra.mxu0 %v7377_v32  ;;  %v7374_v20 = vpack.c.bf16 %v7146_v44, %v7144_v33  ;;  %v7143_v21 = vmax.f32 %v11595_v58, 0.0  ;;  %v7140_v15 = vmax.f32 %v11586_v23, 0.0  ;;  %v7141_v42 = vmax.f32 %v11590_v16, 0.0 }
 0x4bd   :  { %v5660_v62 = vadd.f32 %v5659_v26, %v10932_v14  ;;  %6888 = vmatprep.mubr.bf16.mxu1 %v6191_v61  ;;  %v7169_v39 = vmax.f32 %v6645_v48, 0.0  ;;  %v6647_v41 = vadd.f32 %v6646_v13, %v11301_v12  ;;  %7572 = vmatprep.subr.bf16.mxu0 %v7376_v60  ;;  %v6027_v50 = vmax.f32 %v5658_v38, 0.0 }
 0x4be   :  { %v5661_v52 = vpop.f32.mrf.mxu0  ;;  %v11670_v51 = vpop.f32.mrf.mxu1  ;;  %6889 = vmatmul.mubr.bf16.gmra.mxu1 %v6190_v36  ;;  %v7373_v57 = vpack.c.bf16 %v7145_v31, %v7143_v21  ;;  %v6026_v8 = vmax.f32 %v5656_v55, 0.0  ;;  %v7372_v24 = vpack.c.bf16 %v7142_v10, %v7140_v15  ;;  %v7139_v47 = vmax.f32 %v11582_v46, 0.0 }
 0x4bf   :  { %v5662_v18 = vadd.f32 %v5661_v52, %v10926_v4  ;;  %v11672_v43 = vpack.c.bf16 %v7169_v39, %v7167_v7  ;;  %v7170_v28 = vmax.f32 %v6647_v41, 0.0  ;;  %v6028_v2 = vmax.f32 %v5660_v62, 0.0 }
 0x4c0   :  { %v5665_v17 = vpop.f32.mrf.mxu0  ;;  %v11675_v22 = vpop.f32.mrf.mxu1  ;;  %7573 = vmatpush2.bf16.msra.mxu0 %v7375_v6  ;;  %v7371_v61 = vpack.c.bf16 %v7141_v42, %v7139_v47 }
 0x4c1   :  { %v6029_v27 = vmax.f32 %v5662_v18, 0.0  ;;  %7574 = vmatprep.subr.bf16.mxu0 %v7374_v20  ;;  %v11678_v11 = vpack.c.bf16 %v7170_v28, %v7168_v5  ;;  %v6192_v19 = vpack.c.bf16 %v6028_v2, %v6026_v8  ;;  %v5666_v35 = vadd.f32 %v5665_v17, %v10932_v14 }
 0x4c2   :  { %v5667_v40 = vpop.f32.mrf.mxu0  ;;  %v11681_v9 = vpop.f32.mrf.mxu1 }
 0x4c3   :  { %v6193_v1 = vpack.c.bf16 %v6029_v27, %v6027_v50  ;;  %v5668_v23 = vadd.f32 %v5667_v40, %v10926_v4  ;;  %v6030_v34 = vmax.f32 %v5666_v35, 0.0 }
 0x4c4   :  { %v5669_v58 = vpop.f32.mrf.mxu0  ;;  %v11688_v0 = vpop.f32.mrf.mxu1  ;;  %7575 = vmatpush2.bf16.msra.mxu0 %v7373_v57 }
 0x4c5   :  { %v5670_v32 = vadd.f32 %v5669_v58, %v10932_v14  ;;  %6898 = vmatprep.mubr.bf16.mxu1 %v6193_v1  ;;  %7576 = vmatprep.subr.bf16.mxu0 %v7372_v24  ;;  %v6031_v10 = vmax.f32 %v5668_v23, 0.0 }
 0x4c6   :  { %v5671_v16 = vpop.f32.mrf.mxu0  ;;  %v11692_v29 = vpop.f32.mrf.mxu1  ;;  %6899 = vmatmul.mubr.bf16.gmra.mxu1 %v6192_v19 }
 0x4c7   :  { %v5672_v44 = vadd.f32 %v5671_v16, %v10926_v4  ;;  %v6032_v37 = vmax.f32 %v5670_v32, 0.0 }
 0x4c8   :  { %v5675_v46 = vpop.f32.mrf.mxu0  ;;  %v11694_v26 = vpop.f32.mrf.mxu1  ;;  %7577 = vmatpush2.bf16.msra.mxu0 %v7371_v61 }
 0x4c9   :  { %v6033_v48 = vmax.f32 %v5672_v44, 0.0  ;;  %7578 = vmatprep.subr.bf16.mxu0 %v11514_v59  ;;  %v6194_v13 = vpack.c.bf16 %v6032_v37, %v6030_v34  ;;  %v5676_v59 = vadd.f32 %v5675_v46, %v10932_v14 }
 0x4ca   :  { %v5677_v60 = vpop.f32.mrf.mxu0  ;;  %v11697_v38 = vpop.f32.mrf.mxu1 }
 0x4cb   :  { %v6195_v36 = vpack.c.bf16 %v6033_v48, %v6031_v10  ;;  %v5678_v33 = vadd.f32 %v5677_v60, %v10926_v4  ;;  %v6034_v17 = vmax.f32 %v5676_v59, 0.0  ;;  %v11724_v59 = vadd.f32 %v11688_v0, %v11301_v12 }
 0x4cc   :  { %v5679_v62 = vpop.f32.mrf.mxu0  ;;  %v11701_v39 = vpop.f32.mrf.mxu1  ;;  %7579 = vmatpush2.bf16.msra.mxu0 %v11507_v3  ;;  %v11738_v0 = vadd.f32 %v11681_v9, %v11293_v25  ;;  %v11752_v9 = vadd.f32 %v11694_v26, %v11301_v12 }
 0x4cd   :  { %v5680_v7 = vadd.f32 %v5679_v62, %v10932_v14  ;;  %6908 = vmatprep.mubr.bf16.mxu1 %v6195_v36  ;;  %7580 = vmatprep.subr.bf16.mxu0 %v11489_v30  ;;  %v6035_v55 = vmax.f32 %v5678_v33, 0.0 }
 0x4ce   :  { %v5681_v41 = vpop.f32.mrf.mxu0  ;;  %v11707_v31 = vpop.f32.mrf.mxu1  ;;  %6909 = vmatmul.mubr.bf16.gmra.mxu1 %v6194_v13 }
 0x4cf   :  { %v5682_v52 = vadd.f32 %v5681_v41, %v10926_v4  ;;  %v6036_v18 = vmax.f32 %v5680_v7, 0.0 }
 0x4d0   :  { %v5685_v6 = vpop.f32.mrf.mxu0  ;;  %v11709_v28 = vpop.f32.mrf.mxu1  ;;  %7581 = vmatpush2.bf16.msra.mxu0 %v11481_v63 }
 0x4d1   :  { %v6037_v5 = vmax.f32 %v5682_v52, 0.0  ;;  %v6196_v50 = vpack.c.bf16 %v6036_v18, %v6034_v17  ;;  %v5686_v42 = vadd.f32 %v5685_v6, %v10932_v14 }
 0x4d2   :  { %v5687_v3 = vpop.f32.mrf.mxu0  ;;  %v11712_v30 = vpop.f32.mrf.mxu1 }
 0x4d3   :  { %v6197_v20 = vpack.c.bf16 %v6037_v5, %v6035_v55  ;;  %v5688_v2 = vadd.f32 %v5687_v3, %v10926_v4  ;;  %v6038_v23 = vmax.f32 %v5686_v42, 0.0  ;;  %v11746_v42 = vadd.f32 %v11692_v29, %v11293_v25 }
 0x4d4   :  { %v5689_v21 = vpop.f32.mrf.mxu0  ;;  %v6676_v15 = vpop.f32.mrf.mxu1  ;;  %v11764_v29 = vadd.f32 %v11709_v28, %v11301_v12 }
 0x4d5   :  { %v5690_v27 = vadd.f32 %v5689_v21, %v10932_v14  ;;  %6918 = vmatprep.mubr.bf16.mxu1 %v6197_v20  ;;  %v6039_v1 = vmax.f32 %v5688_v2, 0.0  ;;  %v11730_v21 = vadd.f32 %v11670_v51, %v11293_v25  ;;  %v11741_v2 = vadd.f32 %v6676_v15, %v11301_v12 }
 0x4d6   :  { %v5691_v40 = vpop.f32.mrf.mxu0  ;;  %v6680_v8 = vpop.f32.mrf.mxu1  ;;  %6919 = vmatmul.mubr.bf16.gmra.mxu1 %v6196_v50  ;;  %v11734_v50 = vadd.f32 %v11675_v22, %v11301_v12  ;;  %v11756_v15 = vadd.f32 %v11701_v39, %v11301_v12 }
 0x4d7   :  { %v5692_v57 = vadd.f32 %v5691_v40, %v10926_v4  ;;  %v6040_v58 = vmax.f32 %v5690_v27, 0.0  ;;  %v7174_v40 = vmax.f32 %v11724_v59, 0.0  ;;  %v7182_v39 = vmax.f32 %v11741_v2, 0.0 }
 0x4d8   :  { %v5695_v63 = vpop.f32.mrf.mxu0  ;;  %v6682_v47 = vpop.f32.mrf.mxu1 }
 0x4d9   :  { %v6041_v24 = vmax.f32 %v5692_v57, 0.0  ;;  %v6198_v35 = vpack.c.bf16 %v6040_v58, %v6038_v23  ;;  %v5696_v48 = vadd.f32 %v5695_v63, %v10932_v14  ;;  %v11760_v63 = vadd.f32 %v11707_v31, %v11293_v25 }
 0x4da   :  { %v5697_v19 = vpop.f32.mrf.mxu0  ;;  %v6684_v16 = vpop.f32.mrf.mxu1  ;;  %v11768_v58 = vadd.f32 %v11712_v30, %v11293_v25 }
 0x4db   :  { %v6199_v32 = vpack.c.bf16 %v6041_v24, %v6039_v1  ;;  %v5698_v44 = vadd.f32 %v5697_v19, %v10926_v4  ;;  %v6042_v52 = vmax.f32 %v5696_v48, 0.0  ;;  %v11783_v48 = vadd.f32 %v6684_v16, %v11293_v25 }
 0x4dc   :  { %v5699_v61 = vpop.f32.mrf.mxu0  ;;  %v6686_v10 = vpop.f32.mrf.mxu1 }
 0x4dd   :  { %v5700_v46 = vadd.f32 %v5699_v61, %v10932_v14  ;;  %6928 = vmatprep.mubr.bf16.mxu1 %v6199_v32  ;;  %v6043_v62 = vmax.f32 %v5698_v44, 0.0  ;;  %v11772_v32 = vadd.f32 %v6680_v8, %v11293_v25 }
 0x4de   :  { %v5701_v37 = vpop.f32.mrf.mxu0  ;;  %v6690_v34 = vpop.f32.mrf.mxu1  ;;  %6929 = vmatmul.mubr.bf16.gmra.mxu1 %v6198_v35  ;;  %v11777_v35 = vadd.f32 %v6682_v47, %v11301_v12 }
 0x4df   :  { %v5702_v60 = vadd.f32 %v5701_v37, %v10926_v4  ;;  %v6044_v13 = vmax.f32 %v5700_v46, 0.0  ;;  %v6691_v16 = vadd.f32 %v6690_v34, %v11293_v25 }
 0x4e0   :  { %v5705_v36 = vpop.f32.mrf.mxu0  ;;  %v6692_v7 = vpop.f32.mrf.mxu1 }
 0x4e1   :  { %v6045_v33 = vmax.f32 %v5702_v60, 0.0  ;;  %v6200_v5 = vpack.c.bf16 %v6044_v13, %v6042_v52  ;;  %v5706_v51 = vadd.f32 %v5705_v36, %v10932_v14  ;;  %v6693_v31 = vadd.f32 %v6692_v7, %v11301_v12 }
 0x4e2   :  { %v5707_v41 = vpop.f32.mrf.mxu0  ;;  %v6694_v55 = vpop.f32.mrf.mxu1  ;;  %v11789_v13 = vadd.f32 %v6686_v10, %v11301_v12 }
 0x4e3   :  { %v6201_v6 = vpack.c.bf16 %v6045_v33, %v6043_v62  ;;  %v5708_v3 = vadd.f32 %v5707_v41, %v10926_v4  ;;  %v6046_v44 = vmax.f32 %v5706_v51, 0.0  ;;  %v11780_v30 = vadd.f32 %v6694_v55, %v11293_v25 }
 0x4e4   :  { %v5709_v18 = vpop.f32.mrf.mxu0  ;;  %v6696_v20 = vpop.f32.mrf.mxu1  ;;  %v7188_v52 = vmax.f32 %v6693_v31, 0.0 }
 0x4e5   :  { %v5710_v17 = vadd.f32 %v5709_v18, %v10932_v14  ;;  %6938 = vmatprep.mubr.bf16.mxu1 %v6201_v6  ;;  %v6047_v24 = vmax.f32 %v5708_v3, 0.0  ;;  %v6697_v61 = vadd.f32 %v6696_v20, %v11301_v12 }
 0x4e6   :  { %v5711_v27 = vpop.f32.mrf.mxu0  ;;  %v6700_v22 = vpop.f32.mrf.mxu1  ;;  %6939 = vmatmul.mubr.bf16.gmra.mxu1 %v6200_v5  ;;  %v7189_v5 = vmax.f32 %v11780_v30, 0.0 }
 0x4e7   :  { %v5712_v57 = vadd.f32 %v5711_v27, %v10926_v4  ;;  %v6048_v26 = vmax.f32 %v5710_v17, 0.0  ;;  %v6701_v8 = vadd.f32 %v6700_v22, %v11293_v25  ;;  %v7190_v6 = vmax.f32 %v6697_v61, 0.0  ;;  %v11801_v27 = vld [vmem:[%s12343_s0] sm:$0xff] }
 0x4e8   :  { %v5715_v1 = vpop.f32.mrf.mxu0  ;;  %v6702_v23 = vpop.f32.mrf.mxu1  ;;  %v7483_v31 = vrot.slane %v11801_v27, %v9972_v56 }
 0x4e9   :  { %v6049_v19 = vmax.f32 %v5712_v57, 0.0  ;;  %v6703_v60 = vadd.f32 %v6702_v23, %v11301_v12  ;;  %v6202_v47 = vpack.c.bf16 %v6048_v26, %v6046_v44  ;;  %v5716_v3 = vadd.f32 %v5715_v1, %v10932_v14 }
 0x4ea   :  { %v5717_v28 = vpop.f32.mrf.mxu0  ;;  %v6704_v37 = vpop.f32.mrf.mxu1  ;;  %v7191_v34 = vmax.f32 %v6701_v8, 0.0  ;;  %v7396_v30 = vpack.c.bf16 %v7190_v6, %v7188_v52  ;;  %vm11814_vm8 = vcmp.eq.s32.totalorder %v7483_v31, %v9958_v45 }
 0x4eb   :  { %v6203_v46 = vpack.c.bf16 %v6049_v19, %v6047_v24  ;;  %v6705_v36 = vadd.f32 %v6704_v37, %v11293_v25  ;;  %v5718_v33 = vadd.f32 %v5717_v28, %v10926_v4  ;;  %v7192_v51 = vmax.f32 %v6703_v60, 0.0  ;;  %vm8110_vm9 = vmpackc.low %vm11814_vm8, %vm11814_vm8 }
 0x4ec   :  { %v5719_v62 = vpop.f32.mrf.mxu0  ;;  %v6706_v41 = vpop.f32.mrf.mxu1  ;;  %v7487_v24 = vrot.slane %v11801_v27, %v9969_v53  ;;  %v7186_v53 = vmax.f32 %v11789_v13, 0.0 }
 0x4ed   :  { %v5720_v7 = vadd.f32 %v5719_v62, %v10932_v14  ;;  %6948 = vmatprep.mubr.bf16.mxu1 %v6203_v46  ;;  %v6707_v55 = vadd.f32 %v6706_v41, %v11301_v12  ;;  %v7193_v10 = vmax.f32 %v6705_v36, 0.0  ;;  %v6051_v26 = vmax.f32 %v5718_v33, 0.0 }
 0x4ee   :  { %v5721_v18 = vpop.f32.mrf.mxu0  ;;  %v6710_v20 = vpop.f32.mrf.mxu1  ;;  %6949 = vmatmul.mubr.bf16.gmra.mxu1 %v6202_v47  ;;  %vm7513_vm3 = vcmp.eq.s32.totalorder %v7487_v24, %v9958_v45  ;;  %v6050_v46 = vmax.f32 %v5716_v3, 0.0  ;;  %v8475_v47 = vmov 1.0|1.0   ;;  %v7179_v33 = vmax.f32 %v11760_v63, 0.0 }
 0x4ef   :  { %v5722_v17 = vadd.f32 %v5721_v18, %v10926_v4  ;;  %v7194_v57 = vmax.f32 %v6707_v55, 0.0  ;;  %v6052_v19 = vmax.f32 %v5720_v7, 0.0  ;;  %v6711_v61 = vadd.f32 %v6710_v20, %v11293_v25  ;;  %vm8108_vm5 = vmpackc.low %vm7513_vm3, %vm7513_vm3 }
 0x4f0   :  { %v5725_v22 = vpop.f32.mrf.mxu0  ;;  %v6712_v23 = vpop.f32.mrf.mxu1  ;;  %v7397_v37 = vpack.c.bf16 %v7193_v10, %v7191_v34  ;;  %8109 = vmatprep.mubr.msk.bf16.mxu0 %vm8108_vm5, %v8475_v47  ;;  %v7187_v7 = vmax.f32 %v6691_v16, 0.0  ;;  %v7184_v55 = vmax.f32 %v11777_v35, 0.0 }
 0x4f1   :  { %v6053_v1 = vmax.f32 %v5722_v17, 0.0  ;;  %v7398_v44 = vpack.c.bf16 %v7194_v57, %v7192_v51  ;;  %v6713_v36 = vadd.f32 %v6712_v23, %v11301_v12  ;;  %v6204_v41 = vpack.c.bf16 %v6052_v19, %v6050_v46  ;;  %8111 = vmatmul.mubr.msk.bf16.vlgmr.msra.gmra.mxu0 %vm8110_vm9, %v8475_v47 }
 0x4f2   :  { %v5727_v28 = vpop.f32.mrf.mxu0  ;;  %v6714_v60 = vpop.f32.mrf.mxu1  ;;  %v7195_v18 = vmax.f32 %v6711_v61, 0.0  ;;  %v7185_v17 = vmax.f32 %v11783_v48, 0.0  ;;  %v7395_v20 = vpack.c.bf16 %v7189_v5, %v7187_v7  ;;  %v5726_v34 = vadd.f32 %v5725_v22, %v10932_v14 }
 0x4f3   :  { %v6205_v8 = vpack.c.bf16 %v6053_v1, %v6051_v26  ;;  %v6715_v62 = vadd.f32 %v6714_v60, %v11293_v25  ;;  %7591 = vmatprep.subr.bf16.mxu1 %v7398_v44  ;;  %v5728_v52 = vadd.f32 %v5727_v28, %v10926_v4  ;;  %v7196_v24 = vmax.f32 %v6713_v36, 0.0 }
 0x4f4   :  { %v5729_v56 = vpop.f32.mrf.mxu0  ;;  %v6716_v6 = vpop.f32.mrf.mxu1  ;;  %7592 = vmatpush1.bf16.msra.mxu1 %v7397_v37  ;;  %v7394_v1 = vpack.c.bf16 %v7186_v53, %v7184_v55  ;;  %v7183_v23 = vmax.f32 %v11772_v32, 0.0  ;;  %v6665_v48 = vadd.f32 %v11697_v38, %v11293_v25  ;;  %v7180_v5 = vmax.f32 %v11764_v29, 0.0 }
 0x4f5   :  { %v5730_v13 = vadd.f32 %v5729_v56, %v10932_v14  ;;  %6958 = vmatprep.mubr.bf16.mxu1 %v6205_v8  ;;  %v7197_v3 = vmax.f32 %v6715_v62, 0.0  ;;  %v6717_v10 = vadd.f32 %v6716_v6, %v11301_v12  ;;  %7593 = vmatprep.subr.bf16.mxu1 %v7396_v30  ;;  %v6055_v31 = vmax.f32 %v5728_v52, 0.0 }
 0x4f6   :  { %v5731_v16 = vpop.f32.mrf.mxu0  ;;  %v6720_v57 = vpop.f32.mrf.mxu1  ;;  %6959 = vmatmul.mubr.bf16.gmra.mxu1 %v6204_v41  ;;  %v7181_v37 = vmax.f32 %v11768_v58, 0.0  ;;  %v7393_v8 = vpack.c.bf16 %v7185_v17, %v7183_v23  ;;  %v6054_v32 = vmax.f32 %v5726_v34, 0.0  ;;  %v7178_v36 = vmax.f32 %v11756_v15, 0.0 }
 0x4f7   :  { %v5732_v51 = vadd.f32 %v5731_v16, %v10926_v4  ;;  %v11829_v26 = vpack.c.bf16 %v7197_v3, %v7195_v18  ;;  %v7198_v35 = vmax.f32 %v6717_v10, 0.0  ;;  %v6056_v61 = vmax.f32 %v5730_v13, 0.0 }
 0x4f8   :  { %v5735_v19 = vpop.f32.mrf.mxu0  ;;  %v6722_v44 = vpop.f32.mrf.mxu1  ;;  %7594 = vmatpush1.bf16.msra.mxu1 %v7395_v20  ;;  %v6721_v22 = vadd.f32 %v6720_v57, %v11293_v25  ;;  %v7392_v29 = vpack.c.bf16 %v7182_v39, %v7180_v5  ;;  %v7176_v15 = vmax.f32 %v11752_v9, 0.0  ;;  %v7177_v2 = vmax.f32 %v6665_v48, 0.0 }
 0x4f9   :  { %v6057_v28 = vmax.f32 %v5732_v51, 0.0  ;;  %7595 = vmatprep.subr.bf16.mxu1 %v7394_v1  ;;  %v11836_v46 = vpack.c.bf16 %v7198_v35, %v7196_v24  ;;  %v6723_v62 = vadd.f32 %v6722_v44, %v11301_v12  ;;  %v6206_v7 = vpack.c.bf16 %v6056_v61, %v6054_v32 }
 0x4fa   :  { %v5737_v30 = vpop.f32.mrf.mxu0  ;;  %v6724_v53 = vpop.f32.mrf.mxu1  ;;  %v7199_v13 = vmax.f32 %v6721_v22, 0.0  ;;  %v7391_v39 = vpack.c.bf16 %v7181_v37, %v7179_v33  ;;  %v5736_v63 = vadd.f32 %v5735_v19, %v10932_v14  ;;  %v7390_v34 = vpack.c.bf16 %v7178_v36, %v7176_v15 }
 0x4fb   :  { %v6207_v60 = vpack.c.bf16 %v6057_v28, %v6055_v31  ;;  %v6725_v38 = vadd.f32 %v6724_v53, %v11293_v25  ;;  %v5738_v41 = vadd.f32 %v5737_v30, %v10926_v4  ;;  %v7200_v16 = vmax.f32 %v6723_v62, 0.0 }
 0x4fc   :  { %v5739_v56 = vpop.f32.mrf.mxu0  ;;  %v6726_v52 = vpop.f32.mrf.mxu1  ;;  %7596 = vmatpush1.bf16.msra.mxu1 %v7393_v8  ;;  %v7175_v51 = vmax.f32 %v11746_v42, 0.0  ;;  %v7172_v19 = vmax.f32 %v11734_v50, 0.0  ;;  %v7173_v61 = vmax.f32 %v11738_v0, 0.0  ;;  %v6058_v44 = vmax.f32 %v5736_v63, 0.0 }
 0x4fd   :  { %v5740_v58 = vadd.f32 %v5739_v56, %v10932_v14  ;;  %6968 = vmatprep.mubr.bf16.mxu1 %v6207_v60  ;;  %v7201_v6 = vmax.f32 %v6725_v38, 0.0  ;;  %v6727_v55 = vadd.f32 %v6726_v52, %v11301_v12  ;;  %7597 = vmatprep.subr.bf16.mxu1 %v7392_v29  ;;  %v6059_v57 = vmax.f32 %v5738_v41, 0.0 }
 0x4fe   :  { %v5741_v18 = vpop.f32.mrf.mxu0  ;;  %v11851_v10 = vpop.f32.mrf.mxu1  ;;  %6969 = vmatmul.mubr.bf16.gmra.mxu1 %v6206_v7  ;;  %v7389_v28 = vpack.c.bf16 %v7177_v2, %v7175_v51  ;;  %v7388_v22 = vpack.c.bf16 %v7174_v40, %v7172_v19  ;;  %v7171_v30 = vmax.f32 %v11730_v21, 0.0 }
 0x4ff   :  { %v5742_v3 = vadd.f32 %v5741_v18, %v10926_v4  ;;  %v11853_v17 = vpack.c.bf16 %v7201_v6, %v7199_v13  ;;  %v7202_v20 = vmax.f32 %v6727_v55, 0.0  ;;  %v6060_v24 = vmax.f32 %v5740_v58, 0.0 }
 0x500   :  { %v5745_v9 = vpop.f32.mrf.mxu0  ;;  %v11856_v1 = vpop.f32.mrf.mxu1  ;;  %7598 = vmatpush1.bf16.msra.mxu1 %v7391_v39  ;;  %v7387_v60 = vpack.c.bf16 %v7173_v61, %v7171_v30 }
 0x501   :  { %v6061_v35 = vmax.f32 %v5742_v3, 0.0  ;;  %7599 = vmatprep.subr.bf16.mxu1 %v7390_v34  ;;  %v11859_v31 = vpack.c.bf16 %v7202_v20, %v7200_v16  ;;  %v6208_v37 = vpack.c.bf16 %v6060_v24, %v6058_v44  ;;  %v5746_v53 = vadd.f32 %v5745_v9, %v10932_v14 }
 0x502   :  { %v5747_v23 = vpop.f32.mrf.mxu0  ;;  %v11862_v5 = vpop.f32.mrf.mxu1 }
 0x503   :  { %v6209_v48 = vpack.c.bf16 %v6061_v35, %v6059_v57  ;;  %v5748_v50 = vadd.f32 %v5747_v23, %v10926_v4  ;;  %v6062_v33 = vmax.f32 %v5746_v53, 0.0 }
 0x504   :  { %v5749_v42 = vpop.f32.mrf.mxu0  ;;  %v11869_v32 = vpop.f32.mrf.mxu1  ;;  %7600 = vmatpush1.bf16.msra.mxu1 %v7389_v28 }
 0x505   :  { %v5750_v8 = vadd.f32 %v5749_v42, %v10932_v14  ;;  %6978 = vmatprep.mubr.bf16.mxu1 %v6209_v48  ;;  %7601 = vmatprep.subr.bf16.mxu1 %v7388_v22  ;;  %v6063_v40 = vmax.f32 %v5748_v50, 0.0 }
 0x506   :  { %v5751_v0 = vpop.f32.mrf.mxu0  ;;  %v11873_v59 = vpop.f32.mrf.mxu1  ;;  %6979 = vmatmul.mubr.bf16.gmra.mxu1 %v6208_v37 }
 0x507   :  { %v5752_v36 = vadd.f32 %v5751_v0, %v10926_v4  ;;  %v6064_v62 = vmax.f32 %v5750_v8, 0.0 }
 0x508   :  { %v5755_v21 = vpop.f32.mrf.mxu0  ;;  %v11875_v56 = vpop.f32.mrf.mxu1  ;;  %7602 = vmatpush1.bf16.msra.mxu1 %v7387_v60 }
 0x509   :  { %v6065_v38 = vmax.f32 %v5752_v36, 0.0  ;;  %7603 = vmatprep.subr.bf16.mxu1 %v11678_v11  ;;  %v6210_v52 = vpack.c.bf16 %v6064_v62, %v6062_v33  ;;  %v5756_v11 = vadd.f32 %v5755_v21, %v10932_v14 }
 0x50a   :  { %v5757_v29 = vpop.f32.mrf.mxu0  ;;  %v11878_v41 = vpop.f32.mrf.mxu1 }
 0x50b   :  { %v6211_v7 = vpack.c.bf16 %v6065_v38, %v6063_v40  ;;  %v5758_v15 = vadd.f32 %v5757_v29, %v10926_v4  ;;  %v6066_v9 = vmax.f32 %v5756_v11, 0.0 }
 0x50c   :  { %v5759_v58 = vpop.f32.mrf.mxu0  ;;  %v11882_v6 = vpop.f32.mrf.mxu1  ;;  %7604 = vmatpush1.bf16.msra.mxu1 %v11672_v43 }
 0x50d   :  { %v5760_v13 = vadd.f32 %v5759_v58, %v10932_v14  ;;  %6988 = vmatprep.mubr.bf16.mxu1 %v6211_v7  ;;  %7605 = vmatprep.subr.bf16.mxu1 %v11655_v54  ;;  %v6067_v63 = vmax.f32 %v5758_v15, 0.0 }
 0x50e   :  { %v5761_v55 = vpop.f32.mrf.mxu0  ;;  %v11888_v2 = vpop.f32.mrf.mxu1  ;;  %6989 = vmatmul.mubr.bf16.gmra.mxu1 %v6210_v52 }
 0x50f   :  { %v5762_v18 = vadd.f32 %v5761_v55, %v10926_v4  ;;  %v6068_v3 = vmax.f32 %v5760_v13, 0.0 }
 0x510   :  { %v5765_v39 = vpop.f32.mrf.mxu0  ;;  %v11890_v20 = vpop.f32.mrf.mxu1  ;;  %7606 = vmatpush1.bf16.msra.mxu1 %v11648_v49 }
 0x511   :  { %v6069_v16 = vmax.f32 %v5762_v18, 0.0  ;;  %v6212_v57 = vpack.c.bf16 %v6068_v3, %v6066_v9  ;;  %v5766_v61 = vadd.f32 %v5765_v39, %v10932_v14 }
 0x512   :  { %v5767_v43 = vpop.f32.mrf.mxu0  ;;  %v11893_v54 = vpop.f32.mrf.mxu1 }
 0x513   :  { %v6213_v34 = vpack.c.bf16 %v6069_v16, %v6067_v63  ;;  %v5768_v24 = vadd.f32 %v5767_v43, %v10926_v4  ;;  %v6070_v50 = vmax.f32 %v5766_v61, 0.0  ;;  %v11913_v63 = vadd.f32 %v11869_v32, %v11301_v12 }
 0x514   :  { %v5769_v51 = vpop.f32.mrf.mxu0  ;;  %v6756_v19 = vpop.f32.mrf.mxu1  ;;  %v11924_v32 = vadd.f32 %v11851_v10, %v11293_v25  ;;  %v11928_v61 = vadd.f32 %v11856_v1, %v11301_v12  ;;  %v11945_v1 = vadd.f32 %v11882_v6, %v11301_v12 }
 0x515   :  { %v5770_v35 = vadd.f32 %v5769_v51, %v10932_v14  ;;  %6998 = vmatprep.mubr.bf16.mxu1 %v6213_v34  ;;  %v6071_v48 = vmax.f32 %v5768_v24, 0.0 }
 0x516   :  { %v5771_v23 = vpop.f32.mrf.mxu0  ;;  %v11899_v44 = vpop.f32.mrf.mxu1  ;;  %6999 = vmatmul.mubr.bf16.gmra.mxu1 %v6212_v57  ;;  %v11918_v57 = vadd.f32 %v6756_v19, %v11301_v12  ;;  %v7206_v19 = vmax.f32 %v11913_v63, 0.0 }
 0x517   :  { %v5772_v28 = vadd.f32 %v5771_v23, %v10926_v4  ;;  %v6072_v42 = vmax.f32 %v5770_v35, 0.0  ;;  %v11962_v6 = vadd.f32 %v11899_v44, %v11293_v25 }
 0x518   :  { %v5775_v49 = vpop.f32.mrf.mxu0  ;;  %v11901_v30 = vpop.f32.mrf.mxu1 }
 0x519   :  { %v6073_v22 = vmax.f32 %v5772_v28, 0.0  ;;  %v6214_v53 = vpack.c.bf16 %v6072_v42, %v6070_v50  ;;  %v5776_v38 = vadd.f32 %v5775_v49, %v10932_v14  ;;  %v11932_v28 = vadd.f32 %v11862_v5, %v11293_v25 }
 0x51a   :  { %v5777_v37 = vpop.f32.mrf.mxu0  ;;  %v11903_v0 = vpop.f32.mrf.mxu1  ;;  %v11941_v50 = vadd.f32 %v11875_v56, %v11301_v12  ;;  %v11949_v5 = vadd.f32 %v11888_v2, %v11293_v25  ;;  %v7214_v56 = vmax.f32 %v11918_v57, 0.0  ;;  %v6763_v44 = vadd.f32 %v11901_v30, %v11301_v12 }
 0x51b   :  { %v6215_v8 = vpack.c.bf16 %v6073_v22, %v6071_v48  ;;  %v5778_v36 = vadd.f32 %v5777_v37, %v10926_v4  ;;  %v6074_v11 = vmax.f32 %v5776_v38, 0.0  ;;  %v11937_v48 = vadd.f32 %v11873_v59, %v11293_v25 }
 0x51c   :  { %v5779_v60 = vpop.f32.mrf.mxu0  ;;  %v6766_v40 = vpop.f32.mrf.mxu1  ;;  %v11953_v59 = vadd.f32 %v11890_v20, %v11301_v12 }
 0x51d   :  { %v5780_v21 = vadd.f32 %v5779_v60, %v10932_v14  ;;  %7008 = vmatprep.mubr.bf16.mxu1 %v6215_v8  ;;  %v6075_v58 = vmax.f32 %v5778_v36, 0.0  ;;  %v11957_v60 = vadd.f32 %v11893_v54, %v11293_v25 }
 0x51e   :  { %v5781_v62 = vpop.f32.mrf.mxu0  ;;  %v11909_v33 = vpop.f32.mrf.mxu1  ;;  %7009 = vmatmul.mubr.bf16.gmra.mxu1 %v6214_v53 }
 0x51f   :  { %v5782_v29 = vadd.f32 %v5781_v62, %v10926_v4  ;;  %v6076_v52 = vmax.f32 %v5780_v21, 0.0 }
 0x520   :  { %v5785_v7 = vpop.f32.mrf.mxu0  ;;  %v6772_v13 = vpop.f32.mrf.mxu1 }
 0x521   :  { %v6077_v15 = vmax.f32 %v5782_v29, 0.0  ;;  %v6216_v16 = vpack.c.bf16 %v6076_v52, %v6074_v11  ;;  %v5786_v24 = vadd.f32 %v5785_v7, %v10932_v14 }
 0x522   :  { %v5787_v55 = vpop.f32.mrf.mxu0  ;;  %v6774_v39 = vpop.f32.mrf.mxu1 }
 0x523   :  { %v6217_v18 = vpack.c.bf16 %v6077_v15, %v6075_v58  ;;  %v5788_v43 = vadd.f32 %v5787_v55, %v10926_v4  ;;  %v6078_v53 = vmax.f32 %v5786_v24, 0.0  ;;  %v6767_v15 = vadd.f32 %v6766_v40, %v11301_v12 }
 0x524   :  { %v5789_v3 = vpop.f32.mrf.mxu0  ;;  %v6776_v34 = vpop.f32.mrf.mxu1  ;;  %v6773_v55 = vadd.f32 %v6772_v13, %v11301_v12 }
 0x525   :  { %v5790_v9 = vadd.f32 %v5789_v3, %v10932_v14  ;;  %7018 = vmatprep.mubr.bf16.mxu1 %v6217_v18  ;;  %v6079_v42 = vmax.f32 %v5788_v43, 0.0  ;;  %v6777_v2 = vadd.f32 %v6776_v34, %v11301_v12  ;;  %v6775_v3 = vadd.f32 %v6774_v39, %v11293_v25 }
 0x526   :  { %v5791_v51 = vpop.f32.mrf.mxu0  ;;  %v6780_v23 = vpop.f32.mrf.mxu1  ;;  %7019 = vmatmul.mubr.bf16.gmra.mxu1 %v6216_v16  ;;  %v6765_v39 = vadd.f32 %v11903_v0, %v11293_v25 }
 0x527   :  { %v5792_v35 = vadd.f32 %v5791_v51, %v10926_v4  ;;  %v6080_v22 = vmax.f32 %v5790_v9, 0.0  ;;  %v6781_v54 = vadd.f32 %v6780_v23, %v11293_v25  ;;  %v6771_v51 = vadd.f32 %v11909_v33, %v11293_v25 }
 0x528   :  { %v5795_v49 = vpop.f32.mrf.mxu0  ;;  %v6782_v10 = vpop.f32.mrf.mxu1  ;;  %v7222_v30 = vmax.f32 %v6777_v2, 0.0 }
 0x529   :  { %v6081_v37 = vmax.f32 %v5792_v35, 0.0  ;;  %v6783_v62 = vadd.f32 %v6782_v10, %v11301_v12  ;;  %v6218_v29 = vpack.c.bf16 %v6080_v22, %v6078_v53  ;;  %v5796_v16 = vadd.f32 %v5795_v49, %v10932_v14 }
 0x52a   :  { %v5797_v8 = vpop.f32.mrf.mxu0  ;;  %v6784_v21 = vpop.f32.mrf.mxu1  ;;  %v7223_v13 = vmax.f32 %v6781_v54, 0.0  ;;  %v7220_v49 = vmax.f32 %v6773_v55, 0.0 }
 0x52b   :  { %v6219_v36 = vpack.c.bf16 %v6081_v37, %v6079_v42  ;;  %v6785_v20 = vadd.f32 %v6784_v21, %v11293_v25  ;;  %v5798_v7 = vadd.f32 %v5797_v8, %v10926_v4  ;;  %v7224_v24 = vmax.f32 %v6783_v62, 0.0 }
 0x52c   :  { %v5799_v38 = vpop.f32.mrf.mxu0  ;;  %v6786_v52 = vpop.f32.mrf.mxu1  ;;  %v6082_v21 = vmax.f32 %v5796_v16, 0.0 }
 0x52d   :  { %v5800_v58 = vadd.f32 %v5799_v38, %v10932_v14  ;;  %7028 = vmatprep.mubr.bf16.mxu1 %v6219_v36  ;;  %v6787_v11 = vadd.f32 %v6786_v52, %v11301_v12  ;;  %v7225_v43 = vmax.f32 %v6785_v20, 0.0  ;;  %v6083_v23 = vmax.f32 %v5798_v7, 0.0 }
 0x52e   :  { %v5801_v18 = vpop.f32.mrf.mxu0  ;;  %v6790_v34 = vpop.f32.mrf.mxu1  ;;  %7029 = vmatmul.mubr.bf16.gmra.mxu1 %v6218_v29  ;;  %v7221_v36 = vmax.f32 %v6775_v3, 0.0  ;;  %v7218_v20 = vmax.f32 %v6767_v15, 0.0  ;;  %v7412_v7 = vpack.c.bf16 %v7222_v30, %v7220_v49 }
 0x52f   :  { %v5802_v9 = vadd.f32 %v5801_v18, %v10926_v4  ;;  %v7226_v40 = vmax.f32 %v6787_v11, 0.0  ;;  %v6084_v42 = vmax.f32 %v5800_v58, 0.0  ;;  %v6791_v10 = vadd.f32 %v6790_v34, %v11293_v25 }
 0x530   :  { %v5805_v35 = vpop.f32.mrf.mxu0  ;;  %v6792_v37 = vpop.f32.mrf.mxu1  ;;  %v7413_v33 = vpack.c.bf16 %v7225_v43, %v7223_v13  ;;  %v7219_v58 = vmax.f32 %v6771_v51, 0.0  ;;  %v7216_v18 = vmax.f32 %v6763_v44, 0.0 }
 0x531   :  { %v6085_v22 = vmax.f32 %v5802_v9, 0.0  ;;  %v7414_v53 = vpack.c.bf16 %v7226_v40, %v7224_v24  ;;  %v6793_v38 = vadd.f32 %v6792_v37, %v11301_v12  ;;  %v6220_v0 = vpack.c.bf16 %v6084_v42, %v6082_v21 }
 0x532   :  { %v5807_v8 = vpop.f32.mrf.mxu0  ;;  %v6794_v62 = vpop.f32.mrf.mxu1  ;;  %v7227_v3 = vmax.f32 %v6791_v10, 0.0  ;;  %v7217_v9 = vmax.f32 %v6765_v39, 0.0  ;;  %v7411_v34 = vpack.c.bf16 %v7221_v36, %v7219_v58  ;;  %v5806_v30 = vadd.f32 %v5805_v35, %v10932_v14 }
 0x533   :  { %v6221_v2 = vpack.c.bf16 %v6085_v22, %v6083_v23  ;;  %v6795_v29 = vadd.f32 %v6794_v62, %v11293_v25  ;;  %7607 = vmatprep.subr.bf16.mxu1 %v7414_v53  ;;  %v5808_v52 = vadd.f32 %v5807_v8, %v10926_v4  ;;  %v7228_v40 = vmax.f32 %v6793_v38, 0.0 }
 0x534   :  { %v5809_v54 = vpop.f32.mrf.mxu0  ;;  %v6796_v11 = vpop.f32.mrf.mxu1  ;;  %7608 = vmatpush2.bf16.msra.mxu1 %v7413_v33  ;;  %v7410_v44 = vpack.c.bf16 %v7218_v20, %v7216_v18  ;;  %v7215_v22 = vmax.f32 %v11962_v6, 0.0  ;;  %v6745_v35 = vadd.f32 %v11878_v41, %v11293_v25  ;;  %v7212_v39 = vmax.f32 %v11953_v59, 0.0 }
 0x535   :  { %v5810_v55 = vadd.f32 %v5809_v54, %v10932_v14  ;;  %7038 = vmatprep.mubr.bf16.mxu1 %v6221_v2  ;;  %v7229_v16 = vmax.f32 %v6795_v29, 0.0  ;;  %v6797_v15 = vadd.f32 %v6796_v11, %v11301_v12  ;;  %7609 = vmatprep.subr.bf16.mxu1 %v7412_v7  ;;  %v6087_v37 = vmax.f32 %v5808_v52, 0.0 }
 0x536   :  { %v5811_v43 = vpop.f32.mrf.mxu0  ;;  %v6800_v24 = vpop.f32.mrf.mxu1  ;;  %7039 = vmatmul.mubr.bf16.gmra.mxu1 %v6220_v0  ;;  %v7213_v33 = vmax.f32 %v11957_v60, 0.0  ;;  %v7409_v2 = vpack.c.bf16 %v7217_v9, %v7215_v22  ;;  %v6086_v6 = vmax.f32 %v5806_v30, 0.0  ;;  %v7210_v38 = vmax.f32 %v11945_v1, 0.0 }
 0x537   :  { %v5812_v51 = vadd.f32 %v5811_v43, %v10926_v4  ;;  %v11990_v13 = vpack.c.bf16 %v7229_v16, %v7227_v3  ;;  %v7230_v23 = vmax.f32 %v6797_v15, 0.0  ;;  %v6088_v49 = vmax.f32 %v5810_v55, 0.0 }
 0x538   :  { %v5815_v42 = vpop.f32.mrf.mxu0  ;;  %v6802_v8 = vpop.f32.mrf.mxu1  ;;  %7610 = vmatpush2.bf16.msra.mxu1 %v7411_v34  ;;  %v6801_v53 = vadd.f32 %v6800_v24, %v11293_v25  ;;  %v7408_v59 = vpack.c.bf16 %v7214_v56, %v7212_v39  ;;  %v7211_v7 = vmax.f32 %v11949_v5, 0.0  ;;  %v7208_v1 = vmax.f32 %v11941_v50, 0.0 }
 0x539   :  { %v6089_v10 = vmax.f32 %v5812_v51, 0.0  ;;  %7611 = vmatprep.subr.bf16.mxu1 %v7410_v44  ;;  %v11997_v21 = vpack.c.bf16 %v7230_v23, %v7228_v40  ;;  %v6803_v29 = vadd.f32 %v6802_v8, %v11301_v12  ;;  %v6222_v58 = vpack.c.bf16 %v6088_v49, %v6086_v6 }
 0x53a   :  { %v5817_v36 = vpop.f32.mrf.mxu0  ;;  %v6804_v20 = vpop.f32.mrf.mxu1  ;;  %v7231_v55 = vmax.f32 %v6801_v53, 0.0  ;;  %v7209_v57 = vmax.f32 %v6745_v35, 0.0  ;;  %v7407_v56 = vpack.c.bf16 %v7213_v33, %v7211_v7  ;;  %v5816_v5 = vadd.f32 %v5815_v42, %v10932_v14 }
 0x53b   :  { %v6223_v62 = vpack.c.bf16 %v6089_v10, %v6087_v37  ;;  %v6805_v41 = vadd.f32 %v6804_v20, %v11293_v25  ;;  %v5818_v0 = vadd.f32 %v5817_v36, %v10926_v4  ;;  %v7232_v43 = vmax.f32 %v6803_v29, 0.0 }
 0x53c   :  { %v5819_v54 = vpop.f32.mrf.mxu0  ;;  %v6806_v52 = vpop.f32.mrf.mxu1  ;;  %7612 = vmatpush2.bf16.msra.mxu1 %v7409_v2  ;;  %v7406_v30 = vpack.c.bf16 %v7210_v38, %v7208_v1  ;;  %v7207_v51 = vmax.f32 %v11937_v48, 0.0  ;;  %v7204_v42 = vmax.f32 %v11928_v61, 0.0  ;;  %v7205_v49 = vmax.f32 %v11932_v28, 0.0 }
 0x53d   :  { %v5820_v60 = vadd.f32 %v5819_v54, %v10932_v14  ;;  %7048 = vmatprep.mubr.bf16.mxu1 %v6223_v62  ;;  %v7233_v11 = vmax.f32 %v6805_v41, 0.0  ;;  %v6807_v18 = vadd.f32 %v6806_v52, %v11301_v12  ;;  %7613 = vmatprep.subr.bf16.mxu1 %v7408_v59  ;;  %v6091_v24 = vmax.f32 %v5818_v0, 0.0 }
 0x53e   :  { %v5821_v3 = vpop.f32.mrf.mxu0  ;;  %v12012_v15 = vpop.f32.mrf.mxu1  ;;  %7049 = vmatmul.mubr.bf16.gmra.mxu1 %v6222_v58  ;;  %v7405_v10 = vpack.c.bf16 %v7209_v57, %v7207_v51  ;;  %v6090_v8 = vmax.f32 %v5816_v5, 0.0  ;;  %v7404_v53 = vpack.c.bf16 %v7206_v19, %v7204_v42  ;;  %v7203_v36 = vmax.f32 %v11924_v32, 0.0 }
 0x53f   :  { %v5822_v16 = vadd.f32 %v5821_v3, %v10926_v4  ;;  %v12014_v9 = vpack.c.bf16 %v7233_v11, %v7231_v55  ;;  %v7234_v34 = vmax.f32 %v6807_v18, 0.0  ;;  %v6092_v40 = vmax.f32 %v5820_v60, 0.0 }
 0x540   :  { %v5825_v50 = vpop.f32.mrf.mxu0  ;;  %v12017_v44 = vpop.f32.mrf.mxu1  ;;  %7614 = vmatpush2.bf16.msra.mxu1 %v7407_v56  ;;  %v7403_v62 = vpack.c.bf16 %v7205_v49, %v7203_v36 }
 0x541   :  { %v6093_v23 = vmax.f32 %v5822_v16, 0.0  ;;  %7615 = vmatprep.subr.bf16.mxu1 %v7406_v30  ;;  %v12020_v37 = vpack.c.bf16 %v7234_v34, %v7232_v43  ;;  %v6224_v33 = vpack.c.bf16 %v6092_v40, %v6090_v8  ;;  %v5826_v20 = vadd.f32 %v5825_v50, %v10932_v14 }
 0x542   :  { %v5827_v22 = vpop.f32.mrf.mxu0  ;;  %v12023_v39 = vpop.f32.mrf.mxu1 }
 0x543   :  { %v6225_v35 = vpack.c.bf16 %v6093_v23, %v6091_v24  ;;  %v5828_v61 = vadd.f32 %v5827_v22, %v10926_v4  ;;  %v6094_v7 = vmax.f32 %v5826_v20, 0.0 }
 0x544   :  { %v5829_v48 = vpop.f32.mrf.mxu0  ;;  %v12030_v6 = vpop.f32.mrf.mxu1  ;;  %7616 = vmatpush2.bf16.msra.mxu1 %v7405_v10 }
 0x545   :  { %v5830_v2 = vadd.f32 %v5829_v48, %v10932_v14  ;;  %7058 = vmatprep.mubr.bf16.mxu1 %v6225_v35  ;;  %7617 = vmatprep.subr.bf16.mxu1 %v7404_v53  ;;  %v6095_v19 = vmax.f32 %v5828_v61, 0.0 }
 0x546   :  { %v5831_v28 = vpop.f32.mrf.mxu0  ;;  %v12034_v63 = vpop.f32.mrf.mxu1  ;;  %7059 = vmatmul.mubr.bf16.gmra.mxu1 %v6224_v33 }
 0x547   :  { %v5832_v38 = vadd.f32 %v5831_v28, %v10926_v4  ;;  %v6096_v29 = vmax.f32 %v5830_v2, 0.0 }
 0x548   :  { %v5835_v32 = vpop.f32.mrf.mxu0  ;;  %v12036_v54 = vpop.f32.mrf.mxu1  ;;  %7618 = vmatpush2.bf16.msra.mxu1 %v7403_v62 }
 0x549   :  { %v6097_v41 = vmax.f32 %v5832_v38, 0.0  ;;  %7619 = vmatprep.subr.bf16.mxu1 %v11859_v31  ;;  %v6226_v52 = vpack.c.bf16 %v6096_v29, %v6094_v7  ;;  %v5836_v31 = vadd.f32 %v5835_v32, %v10932_v14 }
 0x54a   :  { %v5837_v59 = vpop.f32.mrf.mxu0  ;;  %v12039_v0 = vpop.f32.mrf.mxu1 }
 0x54b   :  { %v6227_v58 = vpack.c.bf16 %v6097_v41, %v6095_v19  ;;  %v5838_v1 = vadd.f32 %v5837_v59, %v10926_v4  ;;  %v6098_v50 = vmax.f32 %v5836_v31, 0.0 }
 0x54c   :  { %v5839_v60 = vpop.f32.mrf.mxu0  ;;  %v12043_v11 = vpop.f32.mrf.mxu1  ;;  %7620 = vmatpush2.bf16.msra.mxu1 %v11853_v17 }
 0x54d   :  { %v5840_v55 = vadd.f32 %v5839_v60, %v10932_v14  ;;  %7068 = vmatprep.mubr.bf16.mxu1 %v6227_v58  ;;  %7621 = vmatprep.subr.bf16.mxu1 %v11836_v46  ;;  %v6099_v5 = vmax.f32 %v5838_v1, 0.0 }
 0x54e   :  { %v5841_v18 = vpop.f32.mrf.mxu0  ;;  %v12049_v57 = vpop.f32.mrf.mxu1  ;;  %7069 = vmatmul.mubr.bf16.gmra.mxu1 %v6226_v52 }
 0x54f   :  { %v5842_v3 = vadd.f32 %v5841_v18, %v10926_v4  ;;  %v6100_v16 = vmax.f32 %v5840_v55, 0.0  ;;  %v7494_v55 = vsub.s32 3, %v9958_v45 }
 0x550   :  { %v5845_v56 = vpop.f32.mrf.mxu0  ;;  %v12051_v34 = vpop.f32.mrf.mxu1  ;;  %7622 = vmatpush2.bf16.msra.mxu1 %v11829_v26 }
 0x551   :  { %v6101_v43 = vmax.f32 %v5842_v3, 0.0  ;;  %v6228_v24 = vpack.c.bf16 %v6100_v16, %v6098_v50  ;;  %v5846_v49 = vadd.f32 %v5845_v56, %v10932_v14  ;;  %v7495_v50 = vrot.slane %v11801_v27, %v7494_v55 }
 0x552   :  { %v5847_v17 = vpop.f32.mrf.mxu0  ;;  %v12054_v46 = vpop.f32.mrf.mxu1 }
 0x553   :  { %v6229_v30 = vpack.c.bf16 %v6101_v43, %v6099_v5  ;;  %v5848_v40 = vadd.f32 %v5847_v17, %v10926_v4  ;;  %v6102_v36 = vmax.f32 %v5846_v49, 0.0  ;;  %v7490_v5 = vsub.s32 2, %v9958_v45 }
 0x554   :  { %v5849_v51 = vpop.f32.mrf.mxu0  ;;  %v6836_v42 = vpop.f32.mrf.mxu1  ;;  %vm7515_vm10 = vcmp.eq.s32.totalorder %v7495_v50, %v9958_v45 }
 0x555   :  { %v5850_v23 = vadd.f32 %v5849_v51, %v10932_v14  ;;  %7078 = vmatprep.mubr.bf16.mxu1 %v6229_v30  ;;  %v6103_v26 = vmax.f32 %v5848_v40, 0.0  ;;  %v12065_v60 = vadd.f32 %v6836_v42, %v11301_v12  ;;  %vm8112_vm11 = vmpackc.low %vm7515_vm10, %vm7515_vm10 }
 0x556   :  { %v5851_v22 = vpop.f32.mrf.mxu0  ;;  %v6840_v8 = vpop.f32.mrf.mxu1  ;;  %7079 = vmatmul.mubr.bf16.gmra.mxu1 %v6228_v24 }
 0x557   :  { %v5852_v10 = vadd.f32 %v5851_v22, %v10926_v4  ;;  %v6104_v35 = vmax.f32 %v5850_v23, 0.0  ;;  %v7491_v23 = vrot.slane %v11801_v27, %v7490_v5 }
 0x558   :  { %v6842_v53 = vpop.f32.mrf.mxu1 }
 0x559   :  { %v6105_v48 = vmax.f32 %v5852_v10, 0.0  ;;  %v6230_v2 = vpack.c.bf16 %v6104_v35, %v6102_v36  ;;  %v6843_v30 = vadd.f32 %v6842_v53, %v11301_v12  ;;  %vm7514_vm12 = vcmp.eq.s32.totalorder %v7491_v23, %v9958_v45 }
 0x55a   :  { %v6844_v61 = vpop.f32.mrf.mxu1  ;;  %vm8114_vm13 = vmpackc.low %vm7514_vm12, %vm7514_vm12 }
 0x55b   :  { %v6231_v33 = vpack.c.bf16 %v6105_v48, %v6103_v26  ;;  %v6845_v10 = vadd.f32 %v6844_v61, %v11293_v25  ;;  %v6833_v61 = vadd.f32 %v12051_v34, %v11301_v12 }
 0x55c   :  { %v6846_v28 = vpop.f32.mrf.mxu1 }
 0x55d   :  { %7088 = vmatprep.mubr.bf16.mxu1 %v6231_v33  ;;  %v6847_v18 = vadd.f32 %v6846_v28, %v11301_v12  ;;  %v6841_v28 = vadd.f32 %v6840_v8, %v11293_v25 }
 0x55e   :  { %v6850_v62 = vpop.f32.mrf.mxu1  ;;  %7089 = vmatmul.mubr.bf16.gmra.mxu1 %v6230_v2  ;;  %v6827_v2 = vadd.f32 %v12043_v11, %v11301_v12  ;;  %v7246_v11 = vmax.f32 %v12065_v60, 0.0 }
 0x55f   :  { %v6851_v51 = vadd.f32 %v6850_v62, %v11293_v25  ;;  %v7250_v53 = vmax.f32 %v6847_v18, 0.0  ;;  %8113 = vmatprep.mubr.msk.bf16.mxu1 %vm8112_vm11, %v8475_v47  ;;  %v6823_v18 = vadd.f32 %v12036_v54, %v11301_v12 }
 0x560   :  { %v6852_v20 = vpop.f32.mrf.mxu1 }
 0x561   :  { %v6853_v52 = vadd.f32 %v6852_v20, %v11301_v12  ;;  %v7251_v62 = vmax.f32 %v6851_v51, 0.0  ;;  %v6821_v51 = vadd.f32 %v12034_v63, %v11293_v25 }
 0x562   :  { %v6854_v38 = vpop.f32.mrf.mxu1 }
 0x563   :  { %v6855_v31 = vadd.f32 %v6854_v38, %v11293_v25  ;;  %v7252_v42 = vmax.f32 %v6853_v52, 0.0  ;;  %v7248_v38 = vmax.f32 %v6843_v30, 0.0  ;;  %v6831_v52 = vadd.f32 %v12049_v57, %v11293_v25 }
 0x564   :  { %v6856_v32 = vpop.f32.mrf.mxu1  ;;  %v6813_v30 = vadd.f32 %v12017_v44, %v11301_v12 }
 0x565   :  { %v6857_v29 = vadd.f32 %v6856_v32, %v11301_v12  ;;  %v7253_v26 = vmax.f32 %v6855_v31, 0.0  ;;  %v7426_v8 = vpack.c.bf16 %v7250_v53, %v7248_v38  ;;  %v12132_v38 = vld [vmem:[%s12343_s0] sm:$0xff] }
 0x566   :  { %v6860_v14 = vpop.f32.mrf.mxu1  ;;  %8115 = vmatmul.mubr.msk.bf16.vlgmr.msra.gmra.mxu1 %vm8114_vm13, %v8475_v47 }
 0x567   :  { %v6861_v7 = vadd.f32 %v6860_v14, %v11293_v25  ;;  %v7254_v16 = vmax.f32 %v6857_v29, 0.0  ;;  %v7249_v29 = vmax.f32 %v6845_v10, 0.0  ;;  %v7427_v34 = vpack.c.bf16 %v7253_v26, %v7251_v62 }
 0x568   :  { %v6862_v19 = vpop.f32.mrf.mxu1 }
 0x569   :  { %v6863_v41 = vadd.f32 %v6862_v19, %v11301_v12  ;;  %v7255_v24 = vmax.f32 %v6861_v7, 0.0  ;;  %v7428_v36 = vpack.c.bf16 %v7254_v16, %v7252_v42 }
 0x56a   :  { %v6864_v4 = vpop.f32.mrf.mxu1 }
 0x56b   :  { %v6865_v59 = vadd.f32 %v6864_v4, %v11293_v25  ;;  %v7256_v43 = vmax.f32 %v6863_v41, 0.0  ;;  %v6835_v4 = vadd.f32 %v12054_v46, %v11293_v25  ;;  %v7244_v46 = vmax.f32 %v6833_v61, 0.0 }
 0x56c   :  { %v6866_v58 = vpop.f32.mrf.mxu1 }
 0x56d   :  { %v6867_v1 = vadd.f32 %v6866_v58, %v11301_v12  ;;  %v7257_v3 = vmax.f32 %v6865_v59, 0.0  ;;  %v7245_v5 = vmax.f32 %v6835_v4, 0.0  ;;  %v7424_v50 = vpack.c.bf16 %v7246_v11, %v7244_v46 }
 0x56e   :  { %v6870_v56 = vpop.f32.mrf.mxu1 }
 0x56f   :  { %v7258_v17 = vmax.f32 %v6867_v1, 0.0  ;;  %v6871_v49 = vadd.f32 %v6870_v56, %v11293_v25  ;;  %v7429_v35 = vpack.c.bf16 %v7257_v3, %v7255_v24  ;;  %v7247_v1 = vmax.f32 %v6841_v28, 0.0 }
 0x570   :  { %v6872_v40 = vpop.f32.mrf.mxu1  ;;  %v6817_v3 = vadd.f32 %v12030_v6, %v11301_v12  ;;  %v6825_v56 = vadd.f32 %v12039_v0, %v11293_v25  ;;  %v7243_v24 = vmax.f32 %v6831_v52, 0.0 }
 0x571   :  { %v7430_v22 = vpack.c.bf16 %v7258_v17, %v7256_v43  ;;  %v6873_v33 = vadd.f32 %v6872_v40, %v11301_v12  ;;  %v7259_v32 = vmax.f32 %v6871_v49, 0.0  ;;  %v7425_v57 = vpack.c.bf16 %v7249_v29, %v7247_v1 }
 0x572   :  { %v6874_v48 = vpop.f32.mrf.mxu1  ;;  %v7242_v43 = vmax.f32 %v6827_v2, 0.0  ;;  %v7240_v40 = vmax.f32 %v6823_v18, 0.0  ;;  %v7238_v49 = vmax.f32 %v6817_v3, 0.0  ;;  %v7241_v10 = vmax.f32 %v6825_v56, 0.0 }
 0x573   :  { %v6875_v27 = vadd.f32 %v6874_v48, %v11293_v25  ;;  %7632 = vmatprep.subr.bf16.mxu0 %v7430_v22  ;;  %v7260_v59 = vmax.f32 %v6873_v33, 0.0  ;;  %v6815_v22 = vadd.f32 %v12023_v39, %v11293_v25  ;;  %v7423_v26 = vpack.c.bf16 %v7245_v5, %v7243_v24 }
 0x574   :  { %v6876_v20 = vpop.f32.mrf.mxu1  ;;  %7633 = vmatpush1.bf16.msra.mxu0 %v7429_v35  ;;  %v7422_v53 = vpack.c.bf16 %v7242_v43, %v7240_v40  ;;  %v7239_v33 = vmax.f32 %v6821_v51, 0.0  ;;  %v7502_v2 = vsub.s32 5, %v9958_v45  ;;  %v7236_v39 = vmax.f32 %v6813_v30, 0.0 }
 0x575   :  { %v7261_v14 = vmax.f32 %v6875_v27, 0.0  ;;  %v6877_v19 = vadd.f32 %v6876_v20, %v11301_v12  ;;  %7634 = vmatprep.subr.bf16.mxu0 %v7428_v36  ;;  %v6811_v36 = vadd.f32 %v12012_v15, %v11293_v25  ;;  %v7237_v28 = vmax.f32 %v6815_v22, 0.0 }
 0x576   :  { %v6880_v41 = vpop.f32.mrf.mxu1  ;;  %v7421_v62 = vpack.c.bf16 %v7241_v10, %v7239_v33  ;;  %v7503_v15 = vrot.slane %v12132_v38, %v7502_v2 }
 0x577   :  { %v12094_v7 = vpack.c.bf16 %v7261_v14, %v7259_v32  ;;  %v7262_v58 = vmax.f32 %v6877_v19, 0.0  ;;  %v6881_v60 = vadd.f32 %v6880_v41, %v11293_v25  ;;  %v7420_v32 = vpack.c.bf16 %v7238_v49, %v7236_v39 }
 0x578   :  { %v6882_v55 = vpop.f32.mrf.mxu1  ;;  %7635 = vmatpush1.bf16.msra.mxu0 %v7427_v34  ;;  %v7235_v14 = vmax.f32 %v6811_v36, 0.0  ;;  %vm7517_vm14 = vcmp.eq.s32.totalorder %v7503_v15, %v9958_v45 }
 0x579   :  { %v12100_v31 = vpack.c.bf16 %v7262_v58, %v7260_v59  ;;  %7636 = vmatprep.subr.bf16.mxu0 %v7426_v8  ;;  %v6883_v17 = vadd.f32 %v6882_v55, %v11301_v12  ;;  %v7263_v0 = vmax.f32 %v6881_v60, 0.0  ;;  %vm8116_vm15 = vmpackc.low %vm7517_vm14, %vm7517_vm14 }
 0x57a   :  { %v6884_v16 = vpop.f32.mrf.mxu1  ;;  %v7419_v4 = vpack.c.bf16 %v7237_v28, %v7235_v14  ;;  %8117 = vmatprep.mubr.msk.bf16.mxu0 %vm8116_vm15, %v8475_v47 }
 0x57b   :  { %v6885_v54 = vadd.f32 %v6884_v16, %v11293_v25  ;;  %v7264_v44 = vmax.f32 %v6883_v17, 0.0 }
 0x57c   :  { %v6886_v6 = vpop.f32.mrf.mxu1  ;;  %7637 = vmatpush1.bf16.msra.mxu0 %v7425_v57 }
 0x57d   :  { %v7265_v23 = vmax.f32 %v6885_v54, 0.0  ;;  %v6887_v42 = vadd.f32 %v6886_v6, %v11301_v12  ;;  %7638 = vmatprep.subr.bf16.mxu0 %v7424_v50 }
 0x57e   :  { %v12116_v35 = vpop.f32.mrf.mxu1 }
 0x57f   :  { %v12118_v48 = vpack.c.bf16 %v7265_v23, %v7263_v0  ;;  %v7266_v63 = vmax.f32 %v6887_v42, 0.0 }
 0x580   :  { %v12122_v27 = vpop.f32.mrf.mxu1  ;;  %7639 = vmatpush1.bf16.msra.mxu0 %v7423_v26 }
 0x581   :  { %v12125_v61 = vpack.c.bf16 %v7266_v63, %v7264_v44  ;;  %7640 = vmatprep.subr.bf16.mxu0 %v7422_v53 }
 0x582   :  { %v12127_v20 = vpop.f32.mrf.mxu1 }
 0x584   :  { %v12135_v19 = vpop.f32.mrf.mxu1  ;;  %7641 = vmatpush1.bf16.msra.mxu0 %v7421_v62 }
 0x585   :  { %7642 = vmatprep.subr.bf16.mxu0 %v7420_v32 }
 0x586   :  { %v12138_v11 = vpop.f32.mrf.mxu1 }
 0x588   :  { %v12141_v29 = vpop.f32.mrf.mxu1  ;;  %7643 = vmatpush1.bf16.msra.mxu0 %v7419_v4 }
 0x589   :  { %7644 = vmatprep.subr.bf16.mxu0 %v12020_v37 }
 0x58a   :  { %v12144_v34 = vpop.f32.mrf.mxu1 }
 0x58c   :  { %v6906_v41 = vpop.f32.mrf.mxu1  ;;  %7645 = vmatpush1.bf16.msra.mxu0 %v12014_v9 }
 0x58d   :  { %7646 = vmatprep.subr.bf16.mxu0 %v11997_v21  ;;  %v6907_v14 = vadd.f32 %v6906_v41, %v11301_v12 }
 0x58e   :  { %v12148_v8 = vpop.f32.mrf.mxu1 }
 0x590   :  { %v6912_v59 = vpop.f32.mrf.mxu1  ;;  %7647 = vmatpush1.bf16.msra.mxu0 %v11990_v13 }
 0x591   :  { %v6913_v4 = vadd.f32 %v6912_v59, %v11301_v12 }
 0x592   :  { %v6914_v58 = vpop.f32.mrf.mxu1 }
 0x594   :  { %v6916_v52 = vpop.f32.mrf.mxu1 }
 0x595   :  { %v6917_v53 = vadd.f32 %v6916_v52, %v11301_v12 }
 0x596   :  { %v6920_v1 = vpop.f32.mrf.mxu1 }
 0x598   :  { %v6922_v55 = vpop.f32.mrf.mxu1 }
 0x599   :  { %v6923_v10 = vadd.f32 %v6922_v55, %v11301_v12  ;;  %v6921_v55 = vadd.f32 %v6920_v1, %v11293_v25 }
 0x59a   :  { %v6924_v18 = vpop.f32.mrf.mxu1 }
 0x59b   :  { %v6925_v36 = vadd.f32 %v6924_v18, %v11293_v25  ;;  %v7280_v18 = vmax.f32 %v6923_v10, 0.0 }
 0x59c   :  { %v6926_v46 = vpop.f32.mrf.mxu1 }
 0x59d   :  { %v6927_v6 = vadd.f32 %v6926_v46, %v11301_v12 }
 0x59e   :  { %v6930_v60 = vpop.f32.mrf.mxu1 }
 0x59f   :  { %v6931_v42 = vadd.f32 %v6930_v60, %v11293_v25  ;;  %v7282_v28 = vmax.f32 %v6927_v6, 0.0 }
 0x5a0   :  { %v6932_v37 = vpop.f32.mrf.mxu1 }
 0x5a1   :  { %v6933_v54 = vadd.f32 %v6932_v37, %v11301_v12  ;;  %v7283_v46 = vmax.f32 %v6931_v42, 0.0  ;;  %v7442_v41 = vpack.c.bf16 %v7282_v28, %v7280_v18 }
 0x5a2   :  { %v6934_v3 = vpop.f32.mrf.mxu1 }
 0x5a3   :  { %v6935_v30 = vadd.f32 %v6934_v3, %v11293_v25  ;;  %v7284_v26 = vmax.f32 %v6933_v54, 0.0  ;;  %v6903_v54 = vadd.f32 %v12141_v29, %v11301_v12 }
 0x5a4   :  { %v6936_v56 = vpop.f32.mrf.mxu1 }
 0x5a5   :  { %v6937_v21 = vadd.f32 %v6936_v56, %v11301_v12  ;;  %v7285_v33 = vmax.f32 %v6935_v30, 0.0  ;;  %v6915_v56 = vadd.f32 %v6914_v58, %v11293_v25 }
 0x5a6   :  { %v6940_v5 = vpop.f32.mrf.mxu1 }
 0x5a7   :  { %v6941_v13 = vadd.f32 %v6940_v5, %v11293_v25  ;;  %v7286_v40 = vmax.f32 %v6937_v21, 0.0  ;;  %v7278_v5 = vmax.f32 %v6917_v53, 0.0  ;;  %v7277_v6 = vmax.f32 %v6915_v56, 0.0 }
 0x5a8   :  { %v6942_v57 = vpop.f32.mrf.mxu1 }
 0x5a9   :  { %v6943_v16 = vadd.f32 %v6942_v57, %v11301_v12  ;;  %v7287_v22 = vmax.f32 %v6941_v13, 0.0  ;;  %v7444_v62 = vpack.c.bf16 %v7286_v40, %v7284_v26  ;;  %v7281_v57 = vmax.f32 %v6925_v36, 0.0 }
 0x5aa   :  { %v6944_v9 = vpop.f32.mrf.mxu1  ;;  %v7279_v13 = vmax.f32 %v6921_v55, 0.0  ;;  %v7272_v26 = vmax.f32 %v6903_v54, 0.0 }
 0x5ab   :  { %v6945_v43 = vadd.f32 %v6944_v9, %v11293_v25  ;;  %v7288_v0 = vmax.f32 %v6943_v16, 0.0  ;;  %v7443_v9 = vpack.c.bf16 %v7285_v33, %v7283_v46 }
 0x5ac   :  { %v6946_v17 = vpop.f32.mrf.mxu1 }
 0x5ad   :  { %v6947_v50 = vadd.f32 %v6946_v17, %v11301_v12  ;;  %v7289_v51 = vmax.f32 %v6945_v43, 0.0  ;;  %v6911_v43 = vadd.f32 %v12148_v8, %v11293_v25  ;;  %v7441_v8 = vpack.c.bf16 %v7281_v57, %v7279_v13 }
 0x5ae   :  { %v6950_v24 = vpop.f32.mrf.mxu1 }
 0x5af   :  { %v7290_v23 = vmax.f32 %v6947_v50, 0.0  ;;  %v6951_v63 = vadd.f32 %v6950_v24, %v11293_v25  ;;  %v7445_v2 = vpack.c.bf16 %v7289_v51, %v7287_v22  ;;  %v7276_v50 = vmax.f32 %v6913_v4, 0.0 }
 0x5b0   :  { %v6952_v49 = vpop.f32.mrf.mxu1  ;;  %v6897_v51 = vadd.f32 %v12135_v19, %v11301_v12  ;;  %v6905_v24 = vadd.f32 %v12144_v34, %v11293_v25  ;;  %v6893_v22 = vadd.f32 %v12122_v27, %v11301_v12  ;;  %v6901_v19 = vadd.f32 %v12138_v11, %v11293_v25 }
 0x5b1   :  { %v7446_v44 = vpack.c.bf16 %v7290_v23, %v7288_v0  ;;  %v6953_v15 = vadd.f32 %v6952_v49, %v11301_v12  ;;  %v7291_v60 = vmax.f32 %v6951_v63, 0.0  ;;  %v7274_v0 = vmax.f32 %v6907_v14, 0.0 }
 0x5b2   :  { %v6954_v39 = vpop.f32.mrf.mxu1  ;;  %v7440_v23 = vpack.c.bf16 %v7278_v5, %v7276_v50  ;;  %v6895_v49 = vadd.f32 %v12127_v20, %v11293_v25  ;;  %v7275_v10 = vmax.f32 %v6911_v43, 0.0  ;;  %v7270_v36 = vmax.f32 %v6897_v51, 0.0 }
 0x5b3   :  { %v6955_v32 = vadd.f32 %v6954_v39, %v11293_v25  ;;  %7648 = vmatprep.subr.bf16.mxu0 %v7446_v44  ;;  %v7292_v16 = vmax.f32 %v6953_v15, 0.0  ;;  %v7273_v33 = vmax.f32 %v6905_v24, 0.0  ;;  %v7510_v27 = vsub.s32 7, %v9958_v45 }
 0x5b4   :  { %v6956_v52 = vpop.f32.mrf.mxu1  ;;  %7649 = vmatpush2.bf16.msra.mxu0 %v7445_v2  ;;  %v7439_v2 = vpack.c.bf16 %v7277_v6, %v7275_v10  ;;  %v7438_v20 = vpack.c.bf16 %v7274_v0, %v7272_v26  ;;  %v6891_v15 = vadd.f32 %v12116_v35, %v11293_v25  ;;  %v7268_v55 = vmax.f32 %v6893_v22, 0.0 }
 0x5b5   :  { %v7293_v37 = vmax.f32 %v6955_v32, 0.0  ;;  %v6957_v3 = vadd.f32 %v6956_v52, %v11301_v12  ;;  %7650 = vmatprep.subr.bf16.mxu0 %v7444_v62  ;;  %v7271_v32 = vmax.f32 %v6901_v19, 0.0  ;;  %v7511_v4 = vrot.slane %v12132_v38, %v7510_v27 }
 0x5b6   :  { %v6960_v21 = vpop.f32.mrf.mxu1  ;;  %v7269_v52 = vmax.f32 %v6895_v49, 0.0  ;;  %v7267_v35 = vmax.f32 %v6891_v15, 0.0 }
 0x5b7   :  { %v12171_v59 = vpack.c.bf16 %v7293_v37, %v7291_v60  ;;  %v7294_v1 = vmax.f32 %v6957_v3, 0.0  ;;  %v6961_v30 = vadd.f32 %v6960_v21, %v11293_v25  ;;  %v7437_v18 = vpack.c.bf16 %v7273_v33, %v7271_v32 }
 0x5b8   :  { %v6962_v17 = vpop.f32.mrf.mxu1  ;;  %7651 = vmatpush2.bf16.msra.mxu0 %v7443_v9  ;;  %vm7519_vm0 = vcmp.eq.s32.totalorder %v7511_v4, %v9958_v45  ;;  %v7436_v37 = vpack.c.bf16 %v7270_v36, %v7268_v55  ;;  %v8476_v3 = vmov 0.0   ;;  %v7498_v9 = vsub.s32 4, %v9958_v45 }
 0x5b9   :  { %v12177_v58 = vpack.c.bf16 %v7294_v1, %v7292_v16  ;;  %7652 = vmatprep.subr.bf16.mxu0 %v7442_v41  ;;  %v6963_v42 = vadd.f32 %v6962_v17, %v11301_v12  ;;  %v7295_v44 = vmax.f32 %v6961_v30, 0.0  ;;  %v8107_v56 = vsel %vm7519_vm0, 1.0, %v8476_v3  ;;  %v12213_v16 = vpop.f32.mrf.mxu0 }
 0x5ba   :  { %v6964_v40 = vpop.f32.mrf.mxu1  ;;  %v7543_v57 = vpack.c.bf16 %v8107_v56, %v8107_v56  ;;  %v7435_v21 = vpack.c.bf16 %v7269_v52, %v7267_v35  ;;  %v7499_v43 = vrot.slane %v12132_v38, %v7498_v9 }
 0x5bb   :  { %v6965_v29 = vadd.f32 %v6964_v40, %v11293_v25  ;;  %v7296_v28 = vmax.f32 %v6963_v42, 0.0  ;;  %v12219_v13 = vpop.f32.mrf.mxu0 }
 0x5bc   :  { %v6966_v34 = vpop.f32.mrf.mxu1  ;;  %7653 = vmatpush2.bf16.msra.mxu0 %v7441_v8  ;;  %8120 = vmatprep.mubr.msk.bf16.mxu1 %vm7546_vm1, %v7543_v57  ;;  %vm7516_vm2 = vcmp.eq.s32.totalorder %v7499_v43, %v9958_v45 }
 0x5bd   :  { %v7297_v63 = vmax.f32 %v6965_v29, 0.0  ;;  %v6967_v53 = vadd.f32 %v6966_v34, %v11301_v12  ;;  %7654 = vmatprep.subr.bf16.mxu0 %v7440_v23  ;;  %v7588_v54 = vpop.f32.mrf.mxu0  ;;  %vm8118_vm4 = vmpackc.low %vm7516_vm2, %vm7516_vm2 }
 0x5be   :  { %v12193_v39 = vpop.f32.mrf.mxu1 }
 0x5bf   :  { %v12196_v62 = vpack.c.bf16 %v7297_v63, %v7295_v44  ;;  %v7298_v11 = vmax.f32 %v6967_v53, 0.0  ;;  %v7589_v30 = vpop.f32.mrf.mxu0 }
 0x5c0   :  { %v12200_v14 = vpop.f32.mrf.mxu1  ;;  %7655 = vmatpush2.bf16.msra.mxu0 %v7439_v2 }
 0x5c1   :  { %v12203_v46 = vpack.c.bf16 %v7298_v11, %v7296_v28  ;;  %7656 = vmatprep.subr.bf16.mxu0 %v7438_v20 }
 0x5c2   :  { %v12205_v60 = vpop.f32.mrf.mxu1 }
 0x5c4   :  { %v12208_v5 = vpop.f32.mrf.mxu1  ;;  %7657 = vmatpush2.bf16.msra.mxu0 %v7437_v18 }
 0x5c5   :  { %7658 = vmatprep.subr.bf16.mxu0 %v7436_v37 }
 0x5c6   :  { %v12211_v41 = vpop.f32.mrf.mxu1 }
 0x5c8   :  { %v12215_v1 = vpop.f32.mrf.mxu1  ;;  %7659 = vmatpush2.bf16.msra.mxu0 %v7435_v21 }
 0x5c9   :  { %7660 = vmatprep.subr.bf16.mxu0 %v12125_v61 }
 0x5ca   :  { %v12221_v17 = vpop.f32.mrf.mxu1 }
 0x5cc   :  { %v6986_v50 = vpop.f32.mrf.mxu1  ;;  %7661 = vmatpush2.bf16.msra.mxu0 %v12118_v48 }
 0x5cd   :  { %7662 = vmatprep.subr.bf16.mxu0 %v12100_v31 }
 0x5ce   :  { %v12226_v51 = vpop.f32.mrf.mxu1 }
 0x5d0   :  { %v6992_v24 = vpop.f32.mrf.mxu1  ;;  %7663 = vmatpush2.bf16.msra.mxu0 %v12094_v7 }
 0x5d2   :  { %v6994_v61 = vpop.f32.mrf.mxu1 }
 0x5d3   :  { %8119 = vmatmul.mubr.msk.bf16.vlgmr.msra.gmra.mxu0 %vm8118_vm4, %v8475_v47 }
 0x5d4   :  { %v6996_v6 = vpop.f32.mrf.mxu1 }
 0x5d5   :  { %v6997_v3 = vadd.f32 %v6996_v6, %v11301_v12 }
 0x5d6   :  { %v7000_v8 = vpop.f32.mrf.mxu1 }
 0x5d8   :  { %v7002_v40 = vpop.f32.mrf.mxu1 }
 0x5d9   :  { %v7003_v55 = vadd.f32 %v7002_v40, %v11301_v12  ;;  %v6987_v40 = vadd.f32 %v6986_v50, %v11301_v12 }
 0x5da   :  { %v7004_v0 = vpop.f32.mrf.mxu1 }
 0x5db   :  { %v7005_v56 = vadd.f32 %v7004_v0, %v11293_v25  ;;  %v7312_v0 = vmax.f32 %v7003_v55, 0.0  ;;  %v6973_v55 = vadd.f32 %v12200_v14, %v11301_v12 }
 0x5dc   :  { %v7006_v23 = vpop.f32.mrf.mxu1 }
 0x5dd   :  { %v7007_v27 = vadd.f32 %v7006_v23, %v11301_v12  ;;  %v6993_v23 = vadd.f32 %v6992_v24, %v11301_v12 }
 0x5de   :  { %v7010_v48 = vpop.f32.mrf.mxu1 }
 0x5df   :  { %v7011_v15 = vadd.f32 %v7010_v48, %v11293_v25  ;;  %v7314_v21 = vmax.f32 %v7007_v27, 0.0  ;;  %v7001_v48 = vadd.f32 %v7000_v8, %v11293_v25 }
 0x5e0   :  { %v7012_v42 = vpop.f32.mrf.mxu1 }
 0x5e1   :  { %v7013_v63 = vadd.f32 %v7012_v42, %v11301_v12  ;;  %v7315_v42 = vmax.f32 %v7011_v15, 0.0  ;;  %v7458_v50 = vpack.c.bf16 %v7314_v21, %v7312_v0 }
 0x5e2   :  { %v7014_v31 = vpop.f32.mrf.mxu1 }
 0x5e3   :  { %v7015_v36 = vadd.f32 %v7014_v31, %v11293_v25  ;;  %v7316_v52 = vmax.f32 %v7013_v63, 0.0  ;;  %v7311_v63 = vmax.f32 %v7001_v48, 0.0 }
 0x5e4   :  { %v7016_v29 = vpop.f32.mrf.mxu1 }
 0x5e5   :  { %v7017_v10 = vadd.f32 %v7016_v29, %v11301_v12  ;;  %v7317_v35 = vmax.f32 %v7015_v36, 0.0  ;;  %v7308_v36 = vmax.f32 %v6993_v23, 0.0 }
 0x5e6   :  { %v7020_v22 = vpop.f32.mrf.mxu1 }
 0x5e7   :  { %v7021_v26 = vadd.f32 %v7020_v22, %v11293_v25  ;;  %v7318_v20 = vmax.f32 %v7017_v10, 0.0  ;;  %v7313_v10 = vmax.f32 %v7005_v56, 0.0 }
 0x5e8   :  { %v7022_v49 = vpop.f32.mrf.mxu1 }
 0x5e9   :  { %v7023_v7 = vadd.f32 %v7022_v49, %v11301_v12  ;;  %v7319_v32 = vmax.f32 %v7021_v26, 0.0  ;;  %v7460_v43 = vpack.c.bf16 %v7318_v20, %v7316_v52  ;;  %v6995_v49 = vadd.f32 %v6994_v61, %v11293_v25 }
 0x5ea   :  { %v7024_v19 = vpop.f32.mrf.mxu1  ;;  %v6983_v61 = vadd.f32 %v12215_v1, %v11301_v12  ;;  %v7457_v20 = vpack.c.bf16 %v7313_v10, %v7311_v63  ;;  %v6975_v52 = vadd.f32 %v12205_v60, %v11293_v25 }
 0x5eb   :  { %v7025_v34 = vadd.f32 %v7024_v19, %v11293_v25  ;;  %v7320_v28 = vmax.f32 %v7023_v7, 0.0  ;;  %v7310_v19 = vmax.f32 %v6997_v3, 0.0  ;;  %v7459_v7 = vpack.c.bf16 %v7317_v35, %v7315_v42 }
 0x5ec   :  { %v7026_v44 = vpop.f32.mrf.mxu1  ;;  %v7309_v27 = vmax.f32 %v6995_v49, 0.0  ;;  %v7301_v14 = vmax.f32 %v6975_v52, 0.0 }
 0x5ed   :  { %v7027_v53 = vadd.f32 %v7026_v44, %v11301_v12  ;;  %v7321_v33 = vmax.f32 %v7025_v34, 0.0  ;;  %v6991_v44 = vadd.f32 %v12226_v51, %v11293_v25  ;;  %v6977_v51 = vadd.f32 %v12208_v5, %v11301_v12 }
 0x5ee   :  { %v7030_v2 = vpop.f32.mrf.mxu1  ;;  %v7456_v15 = vpack.c.bf16 %v7310_v19, %v7308_v36 }
 0x5ef   :  { %v7322_v11 = vmax.f32 %v7027_v53, 0.0  ;;  %v7031_v37 = vadd.f32 %v7030_v2, %v11293_v25  ;;  %v7461_v57 = vpack.c.bf16 %v7321_v33, %v7319_v32  ;;  %v6985_v2 = vadd.f32 %v12221_v17, %v11293_v25 }
 0x5f0   :  { %v7032_v4 = vpop.f32.mrf.mxu1  ;;  %v6981_v32 = vadd.f32 %v12211_v41, %v11293_v25  ;;  %v7307_v1 = vmax.f32 %v6991_v44, 0.0  ;;  %v7304_v17 = vmax.f32 %v6983_v61, 0.0  ;;  %v7302_v3 = vmax.f32 %v6977_v51, 0.0 }
 0x5f1   :  { %v7462_v18 = vpack.c.bf16 %v7322_v11, %v7320_v28  ;;  %v7033_v54 = vadd.f32 %v7032_v4, %v11301_v12  ;;  %v7323_v31 = vmax.f32 %v7031_v37, 0.0  ;;  %v7306_v11 = vmax.f32 %v6987_v40, 0.0 }
 0x5f2   :  { %v7034_v9 = vpop.f32.mrf.mxu1  ;;  %v7455_v37 = vpack.c.bf16 %v7309_v27, %v7307_v1  ;;  %v6971_v41 = vadd.f32 %v12193_v39, %v11293_v25  ;;  %v7303_v35 = vmax.f32 %v6981_v32, 0.0 }
 0x5f3   :  { %v7035_v30 = vadd.f32 %v7034_v9, %v11293_v25  ;;  %7673 = vmatprep.subr.bf16.mxu1 %v7462_v18  ;;  %v7324_v24 = vmax.f32 %v7033_v54, 0.0  ;;  %v7305_v18 = vmax.f32 %v6985_v2, 0.0  ;;  %v7454_v56 = vpack.c.bf16 %v7306_v11, %v7304_v17 }
 0x5f4   :  { %v7036_v6 = vpop.f32.mrf.mxu1  ;;  %7674 = vmatpush1.bf16.msra.mxu1 %v7461_v57  ;;  %v7300_v9 = vmax.f32 %v6973_v55, 0.0  ;;  %v7299_v54 = vmax.f32 %v6971_v41, 0.0 }
 0x5f5   :  { %v7325_v29 = vmax.f32 %v7035_v30, 0.0  ;;  %v7037_v22 = vadd.f32 %v7036_v6, %v11301_v12  ;;  %7675 = vmatprep.subr.bf16.mxu1 %v7460_v43  ;;  %v7453_v21 = vpack.c.bf16 %v7305_v18, %v7303_v35 }
 0x5f6   :  { %v12250_v34 = vpop.f32.mrf.mxu1  ;;  %v7452_v60 = vpack.c.bf16 %v7302_v3, %v7300_v9  ;;  %v7451_v40 = vpack.c.bf16 %v7301_v14, %v7299_v54 }
 0x5f7   :  { %v12252_v26 = vpack.c.bf16 %v7325_v29, %v7323_v31  ;;  %v7326_v8 = vmax.f32 %v7037_v22, 0.0 }
 0x5f8   :  { %v12256_v53 = vpop.f32.mrf.mxu1  ;;  %7676 = vmatpush1.bf16.msra.mxu1 %v7459_v7 }
 0x5f9   :  { %v12260_v33 = vpack.c.bf16 %v7326_v8, %v7324_v24  ;;  %7677 = vmatprep.subr.bf16.mxu1 %v7458_v50 }
 0x5fa   :  { %v12264_v28 = vpop.f32.mrf.mxu1 }
 0x5fc   :  { %v12270_v4 = vpop.f32.mrf.mxu1  ;;  %7678 = vmatpush1.bf16.msra.mxu1 %v7457_v20 }
 0x5fd   :  { %7679 = vmatprep.subr.bf16.mxu1 %v7456_v15 }
 0x5fe   :  { %v12276_v5 = vpop.f32.mrf.mxu1 }
 0x600   :  { %v12280_v57 = vpop.f32.mrf.mxu1  ;;  %7680 = vmatpush1.bf16.msra.mxu1 %v7455_v37 }
 0x601   :  { %7681 = vmatprep.subr.bf16.mxu1 %v7454_v56 }
 0x602   :  { %v12282_v43 = vpop.f32.mrf.mxu1 }
 0x604   :  { %v7056_v30 = vpop.f32.mrf.mxu1  ;;  %7682 = vmatpush1.bf16.msra.mxu1 %v7453_v21 }
 0x605   :  { %7683 = vmatprep.subr.bf16.mxu1 %v7452_v60 }
 0x606   :  { %v7060_v23 = vpop.f32.mrf.mxu1 }
 0x608   :  { %v7062_v48 = vpop.f32.mrf.mxu1  ;;  %7684 = vmatpush1.bf16.msra.mxu1 %v7451_v40  ;;  %v7057_v40 = vadd.f32 %v7056_v30, %v11301_v12 }
 0x609   :  { %7685 = vmatprep.subr.bf16.mxu1 %v12203_v46  ;;  %v7063_v9 = vadd.f32 %v7062_v48, %v11301_v12  ;;  %v7055_v48 = vadd.f32 %v12282_v43, %v11293_v25  ;;  %v7045_v43 = vadd.f32 %v12264_v28, %v11293_v25 }
 0x60a   :  { %v7064_v39 = vpop.f32.mrf.mxu1  ;;  %v7334_v30 = vmax.f32 %v7057_v40, 0.0 }
 0x60b   :  { %v7065_v21 = vadd.f32 %v7064_v39, %v11293_v25 }
 0x60c   :  { %v7066_v42 = vpop.f32.mrf.mxu1  ;;  %7686 = vmatpush1.bf16.msra.mxu1 %v12196_v62 }
 0x60d   :  { %7687 = vmatprep.subr.bf16.mxu1 %v12177_v58  ;;  %v7067_v37 = vadd.f32 %v7066_v42, %v11301_v12  ;;  %v7061_v42 = vadd.f32 %v7060_v23, %v11293_v25  ;;  %v7051_v23 = vadd.f32 %v12276_v5, %v11293_v25 }
 0x60e   :  { %v7070_v6 = vpop.f32.mrf.mxu1 }
 0x60f   :  { %v7071_v41 = vadd.f32 %v7070_v6, %v11293_v25  ;;  %v7053_v6 = vadd.f32 %v12280_v57, %v11301_v12  ;;  %v7043_v57 = vadd.f32 %v12256_v53, %v11301_v12  ;;  %v7331_v5 = vmax.f32 %v7051_v23, 0.0 }
 0x610   :  { %v7072_v0 = vpop.f32.mrf.mxu1  ;;  %7688 = vmatpush1.bf16.msra.mxu1 %v12171_v59  ;;  %v7329_v53 = vmax.f32 %v7045_v43, 0.0 }
 0x611   :  { %v7073_v32 = vadd.f32 %v7072_v0, %v11301_v12  ;;  %v7338_v0 = vmax.f32 %v7067_v37, 0.0 }
 0x612   :  { %v7074_v31 = vpop.f32.mrf.mxu1 }
 0x613   :  { %v7075_v17 = vadd.f32 %v7074_v31, %v11293_v25  ;;  %v7340_v14 = vmax.f32 %v7073_v32, 0.0 }
 0x614   :  { %v7076_v29 = vpop.f32.mrf.mxu1 }
 0x615   :  { %v7077_v2 = vadd.f32 %v7076_v29, %v11301_v12  ;;  %v7341_v60 = vmax.f32 %v7075_v17, 0.0  ;;  %v7339_v29 = vmax.f32 %v7071_v41, 0.0 }
 0x616   :  { %v7080_v22 = vpop.f32.mrf.mxu1 }
 0x617   :  { %v7081_v11 = vadd.f32 %v7080_v22, %v11293_v25  ;;  %v7342_v3 = vmax.f32 %v7077_v2, 0.0  ;;  %v7336_v22 = vmax.f32 %v7063_v9, 0.0  ;;  %v7471_v39 = vpack.c.bf16 %v7341_v60, %v7339_v29 }
 0x618   :  { %v7082_v49 = vpop.f32.mrf.mxu1 }
 0x619   :  { %v7083_v59 = vadd.f32 %v7082_v49, %v11301_v12  ;;  %v7343_v35 = vmax.f32 %v7081_v11, 0.0  ;;  %v7472_v31 = vpack.c.bf16 %v7342_v3, %v7340_v14  ;;  %v7337_v49 = vmax.f32 %v7065_v21, 0.0 }
 0x61a   :  { %v7084_v19 = vpop.f32.mrf.mxu1 }
 0x61b   :  { %v7085_v61 = vadd.f32 %v7084_v19, %v11293_v25  ;;  %v7344_v1 = vmax.f32 %v7083_v59, 0.0  ;;  %v7047_v19 = vadd.f32 %v12270_v4, %v11301_v12 }
 0x61c   :  { %v7086_v10 = vpop.f32.mrf.mxu1 }
 0x61d   :  { %v7087_v46 = vadd.f32 %v7086_v10, %v11301_v12  ;;  %v7345_v52 = vmax.f32 %v7085_v61, 0.0  ;;  %v7470_v10 = vpack.c.bf16 %v7338_v0, %v7336_v22  ;;  %v7330_v4 = vmax.f32 %v7047_v19, 0.0 }
 0x61e   :  { %v7090_v7 = vpop.f32.mrf.mxu1 }
 0x61f   :  { %v7091_v58 = vadd.f32 %v7090_v7, %v11293_v25  ;;  %v7346_v27 = vmax.f32 %v7087_v46, 0.0  ;;  %v7473_v54 = vpack.c.bf16 %v7345_v52, %v7343_v35  ;;  %v7335_v7 = vmax.f32 %v7061_v42, 0.0 }
 0x620   :  { %v7092_v50 = vpop.f32.mrf.mxu1  ;;  %v7333_v46 = vmax.f32 %v7055_v48, 0.0 }
 0x621   :  { %v7093_v8 = vadd.f32 %v7092_v50, %v11301_v12  ;;  %v7347_v15 = vmax.f32 %v7091_v58, 0.0  ;;  %v7474_v56 = vpack.c.bf16 %v7346_v27, %v7344_v1 }
 0x622   :  { %v7094_v24 = vpop.f32.mrf.mxu1  ;;  %v7467_v61 = vpack.c.bf16 %v7333_v46, %v7331_v5 }
 0x623   :  { %v7095_v62 = vadd.f32 %v7094_v24, %v11293_v25  ;;  %v7348_v20 = vmax.f32 %v7093_v8, 0.0  ;;  %v7332_v24 = vmax.f32 %v7053_v6, 0.0  ;;  %v7469_v8 = vpack.c.bf16 %v7337_v49, %v7335_v7 }
 0x624   :  { %v7096_v44 = vpop.f32.mrf.mxu1 }
 0x625   :  { %v7097_v63 = vadd.f32 %v7096_v44, %v11301_v12  ;;  %v7349_v36 = vmax.f32 %v7095_v62, 0.0  ;;  %v7468_v58 = vpack.c.bf16 %v7334_v30, %v7332_v24  ;;  %v7041_v44 = vadd.f32 %v12250_v34, %v11293_v25 }
 0x626   :  { %v7625_v50 = vpop.f32.mrf.mxu1  ;;  %v7506_v12 = vsub.s32 6, %v9958_v45 }
 0x627   :  { %v7350_v51 = vmax.f32 %v7097_v63, 0.0  ;;  %v7475_v18 = vpack.c.bf16 %v7349_v36, %v7347_v15  ;;  %v7328_v63 = vmax.f32 %v7043_v57, 0.0  ;;  %v7327_v28 = vmax.f32 %v7041_v44, 0.0 }
 0x628   :  { %v7627_v62 = vpop.f32.mrf.mxu1  ;;  %v7507_v27 = vrot.slane %v12132_v38, %v7506_v12  ;;  %v7626_v25 = vadd.f32 %v7625_v50, %v12213_v16 }
 0x629   :  { %v7476_v55 = vpack.c.bf16 %v7350_v51, %v7348_v20  ;;  %v7466_v2 = vpack.c.bf16 %v7330_v4, %v7328_v63  ;;  %v7465_v20 = vpack.c.bf16 %v7329_v53, %v7327_v28  ;;  %v7628_v34 = vadd.f32 %v7627_v62, %v12219_v13 }
 0x62a   :  { %v7629_v59 = vpop.f32.mrf.mxu1  ;;  %vm7518_vm6 = vcmp.eq.s32.totalorder %v7507_v27, %v9958_v45 }
 0x62b   :  { %7691 = vmatprep.subr.bf16.mxu1 %v7476_v55  ;;  %vm8121_vm7 = vmpackc.low %vm7518_vm6, %vm7518_vm6 }
 0x62c   :  { %7692 = vmatpush2.bf16.msra.mxu1 %v7475_v18  ;;  %v7630_v36 = vpop.f32.mrf.mxu1 }
 0x62d   :  { %7693 = vmatprep.subr.bf16.mxu1 %v7474_v56 }
 0x630   :  { %7694 = vmatpush2.bf16.msra.mxu1 %v7473_v54 }
 0x631   :  { %7695 = vmatprep.subr.bf16.mxu1 %v7472_v31 }
 0x634   :  { %7696 = vmatpush2.bf16.msra.mxu1 %v7471_v39 }
 0x635   :  { %7697 = vmatprep.subr.bf16.mxu1 %v7470_v10 }
 0x638   :  { %7698 = vmatpush2.bf16.msra.mxu1 %v7469_v8 }
 0x639   :  { %7699 = vmatprep.subr.bf16.mxu1 %v7468_v58 }
 0x63c   :  { %7700 = vmatpush2.bf16.msra.mxu1 %v7467_v61 }
 0x63d   :  { %7701 = vmatprep.subr.bf16.mxu1 %v7466_v2 }
 0x640   :  { %7702 = vmatpush2.bf16.msra.mxu1 %v7465_v20 }
 0x641   :  { %7703 = vmatprep.subr.bf16.mxu1 %v12260_v33 }
 0x644   :  { %7704 = vmatpush2.bf16.msra.mxu1 %v12252_v26 }
 0x647   :  { %8122 = vmatmul.mubr.msk.bf16.vlgmr.msra.gmra.mxu1 %vm8121_vm7, %v8475_v47 }
 0x693   :  { %v7666_v51 = vpop.f32.mrf.mxu0 }
 0x694   :  { %v7667_v11 = vadd.f32 %v7666_v51, %v7626_v25 }
 0x695   :  { %v7668_v15 = vpop.f32.mrf.mxu0 }
 0x696   :  { %v7669_v32 = vadd.f32 %v7668_v15, %v7628_v34 }
 0x697   :  { %v7670_v38 = vpop.f32.mrf.mxu0 }
 0x699   :  { %v7671_v1 = vpop.f32.mrf.mxu0 }
 0x707   :  { %v7707_v55 = vpop.f32.mrf.mxu1 }
 0x708   :  { %v7708_v17 = vadd.f32 %v7707_v55, %v7667_v11 }
 0x709   :  { %v7709_v33 = vpop.f32.mrf.mxu1 }
 0x70a   :  { %7723 = vst [vmem:[%s12344_s11] sm:$0xff] %v7708_v17  ;;  %v7710_v45 = vadd.f32 %v7709_v33, %v7669_v32 }
 0x70b   :  { %v7711_v26 = vpop.f32.mrf.mxu1 }
 0x70c   :  { %7724 = vst [vmem:[%s12344_s11 + $0x8] sm:$0xff] %v7710_v45 }
 0x70d   :  { %v7712_v47 = vpop.f32.mrf.mxu1 }

</bundles_post_ra>
